<compile_context>
chip_gen: v7x
topology: tpu7x:2x2x1
jax: 0.10.0
libtpu: 0.0.40
codegen_flags: <defaults>
</compile_context>

<pallas_src>
import functools

import numpy as np
import jax
import jax.numpy as jnp
from jax.experimental import pallas as pl
from jax.experimental.pallas import tpu as pltpu


def _cycle_mask_kernel(H, W, C, Chid, B_sub,
                       x_ref, cond_ref, min_ref, mout_ref, colm_ref,
                       w1_ref, b1_ref, w2_ref, b2_ref, w3_ref, b3_ref, resc_ref,
                       z_ref, ld_ref,
                       pbuf1, pbuf2):
    """B_sub batch elements per grid step, fully fused:
    masking -> 3x3 conv -> ReLU -> 1x1 conv -> ReLU -> 3x3 conv -> cross split
    -> tanh / rescale / exp affine coupling -> logdet reduction.

    Each 3x3 conv = 9 accumulated MXU dots over lane-shifted views of an
    apron-padded VMEM buffer (no im2col materialization)."""
    HW = H * W
    P = W + 1                      # zero-apron width on each side of the flat axis
    Cin_pad = pbuf1.shape[0]       # conv1 input channels padded to 8

    # ---- per-step constants, hoisted above the per-sample loop -----------------
    m_in = min_ref[...]                        # (1, HW)
    not_m_in = 1.0 - m_in
    m_out = mout_ref[...]                      # (1, HW)
    cm_left = colm_ref[0:1, :]                 # neighbour x-1 valid
    cm_right = colm_ref[2:3, :]                # neighbour x+1 valid
    b1 = b1_ref[...]                           # (Chid, 1)
    w2 = w2_ref[...]                           # (Chid, Chid)
    b2 = b2_ref[...]                           # (Chid, 1)
    b3 = b3_ref[...]                           # (2C, 1)
    resc_mout = resc_ref[...] * m_out          # (C, HW): rescale * mask_out folded

    # Aprons / padding written ONCE per grid step (samples only rewrite interiors).
    # pbuf1 is fully zeroed: covers its aprons AND the zero-padded channel rows
    # C+1..7 that the zero-padded w1 columns rely on being exactly 0 (VMEM scratch
    # is uninitialized otherwise).
    pbuf1[...] = jnp.zeros_like(pbuf1)
    pbuf2[:, 0:P] = jnp.zeros((Chid, P), jnp.float32)
    pbuf2[:, P + HW:2 * P + HW] = jnp.zeros((Chid, P), jnp.float32)

    def conv3x3(w_ref, pbuf):
        """3x3 'SAME' conv: sum_k  w_ref[k] (Cout, Cin) @ tap_k (Cin, HW).
        Tap (dy, dx) == lane shift by (dy-1)*W + (dx-1) of the apron-padded
        buffer; the apron supplies top/bottom zeros, the column mask kills the
        cross-row wrap of the horizontal taps."""
        acc = None
        for k in range(9):
            dy, dx = divmod(k, 3)
            s0 = P + (dy - 1) * W + (dx - 1)           # static, in [0, 2*(W+1)]
            v = pbuf[:, s0:s0 + HW]
            if dx == 0:
                v = v * cm_left
            elif dx == 2:
                v = v * cm_right
            part = jnp.dot(w_ref[k], v, preferred_element_type=jnp.float32)
            acc = part if acc is None else acc + part
        return acc

    # ---- B_sub samples per step: static unrolled loop, scratch reused ----------
    for b in range(B_sub):
        x = x_ref[b]                               # (C, HW)
        cond = cond_ref[b]                         # (1, HW)
        z1 = x * m_in
        z2 = x * not_m_in

        # conv1 input [z1 ; cond] into the padded buffer interior (rows C+1..7
        # stay zero and are matched by zero weight columns).
        pbuf1[0:C, P:P + HW] = z1
        pbuf1[C:C + 1, P:P + HW] = cond

        # conv1: 3x3, (C+1, padded to 8) -> Chid.
        h1 = jnp.maximum(conv3x3(w1_ref, pbuf1) + b1, 0.0)          # (Chid, HW)

        # conv2: 1x1, Chid -> Chid.
        h2 = jnp.dot(w2, h1, preferred_element_type=jnp.float32) + b2
        h2 = jnp.maximum(h2, 0.0)                                   # (Chid, HW)

        # conv3: 3x3, Chid -> 2*C  (cross split already folded into w3/b3 rows).
        pbuf2[:, P:P + HW] = h2
        h3 = conv3x3(w3_ref, pbuf2) + b3                            # (2C, HW)

        s = jnp.tanh(h3[0:C, :]) * resc_mout                        # weight-normed Rescale * mask_out
        t = h3[C:2 * C, :] * m_out

        # logdet contribution of this sample (lane reduce, then sublanes).
        ld = jnp.sum(s, axis=1, keepdims=True)                      # (C, 1)
        ld_ref[b] = jnp.sum(ld, axis=0, keepdims=True)              # (1, 1)

        # forward (reverse=False) affine coupling.  z1 * mask_in == z1 exactly
        # (binary mask, z1 already = x * mask_in).
        z_ref[b] = z1 + (z2 + t) * jnp.exp(s) * not_m_in
        # TODO(synk): reverse=True branch of CycleMask.forward is not implemented here.


def cycle_mask_forward(x_nchw, logdet, cond_nchw, params, hidden_channels,
                       block_batch=4):
    """Forward pass (reverse=False) of CycleMask.  x_nchw: (N, C, H, W)."""
    N, C, H, W = x_nchw.shape
    HW = H * W
    Chid = hidden_channels
    PW = HW + 2 * (W + 1)

    # Samples per grid step: largest divisor of N that is <= block_batch while
    # keeping the grid length >= 2 (so v7x's two TensorCores both get work and
    # each core keeps one step of prologue/epilogue overlap).
    B_sub = max(d for d in range(1, min(block_batch, N) + 1)
                if N % d == 0 and (N // d >= 2 or d == 1))
    grid_n = N // B_sub

    x = x_nchw.reshape(N, C, HW).astype(jnp.float32)        # NCHW-flat, lane-dense
    cond = cond_nchw.reshape(N, 1, HW).astype(jnp.float32)

    kernel = functools.partial(_cycle_mask_kernel, H, W, C, Chid, B_sub)
    grid_spec = pltpu.PrefetchScalarGridSpec(
        num_scalar_prefetch=0,
        grid=(grid_n,),
        in_specs=[
            pl.BlockSpec((B_sub, C, HW), lambda n: (n, 0, 0)),       # x
            pl.BlockSpec((B_sub, 1, HW), lambda n: (n, 0, 0)),       # conditioning
            pl.BlockSpec((1, HW), lambda n: (0, 0)),                 # mask_in (spatial)
            pl.BlockSpec((1, HW), lambda n: (0, 0)),                 # mask_out (spatial)
            pl.BlockSpec((3, HW), lambda n: (0, 0)),                 # column-validity masks
            pl.BlockSpec((9, Chid, 8), lambda n: (0, 0, 0)),         # conv1 w, per-tap, Cin padded to 8
            pl.BlockSpec((Chid, 1), lambda n: (0, 0)),               # conv1 b
            pl.BlockSpec((Chid, Chid), lambda n: (0, 0)),            # conv2 w
            pl.BlockSpec((Chid, 1), lambda n: (0, 0)),               # conv2 b
            pl.BlockSpec((9, 2 * C, Chid), lambda n: (0, 0, 0)),     # conv3 w, per-tap, cross-permuted
            pl.BlockSpec((2 * C, 1), lambda n: (0, 0)),              # conv3 b
            pl.BlockSpec((C, 1), lambda n: (0, 0)),                  # rescale weight
        ],
        out_specs=[
            pl.BlockSpec((B_sub, C, HW), lambda n: (n, 0, 0)),       # z (lane-dense)
            pl.BlockSpec((B_sub, 1, 1), lambda n: (n, 0, 0)),        # per-sample logdet
        ],
        # VMEM scratch: just the two apron-padded conv inputs (~46 KiB total);
        # the im2col patch matrices of v1 are gone.
        scratch_shapes=[
            pltpu.VMEM((8, PW), jnp.float32),                        # padded [z1; cond; zeros]
            pltpu.VMEM((Chid, PW), jnp.float32),                     # padded hidden
        ],
    )

    # Advisory cost estimate for XLA's scheduler.
    flops_per_sample = 2 * HW * (Chid * 9 * 8 + Chid * Chid + 2 * C * 9 * Chid) + 16 * C * HW
    weight_bytes = 4 * (9 * Chid * 8 + Chid + Chid * Chid + Chid
                        + 9 * 2 * C * Chid + 2 * C + C + 5 * HW)
    cost = pl.CostEstimate(
        flops=N * flops_per_sample,
        transcendentals=2 * N * C * HW,                              # tanh + exp
        bytes_accessed=int(4 * (2 * N * C * HW + N * HW + N) + weight_bytes))

    z_flat, ld_part = pl.pallas_call(
        kernel,
        out_shape=(jax.ShapeDtypeStruct((N, C, HW), jnp.float32),
                   jax.ShapeDtypeStruct((N, 1, 1), jnp.float32)),
        grid_spec=grid_spec,
        cost_estimate=cost,
        # Batch blocks are independent -> "parallel" lets v7x shard the grid
        # across its two TensorCores (neutral on single-core v5e/v6e).
        compiler_params=pltpu.CompilerParams(dimension_semantics=("parallel",)),
    )(x, cond, params["mask_in"], params["mask_out"], params["col_mask"],
      params["w1"], params["b1"], params["w2"], params["b2"],
      params["w3"], params["b3"], params["rescale"])

    z = z_flat.reshape(N, C, H, W)
    return z, ld_part.reshape(N) + logdet


def init_params(key, in_channels, hidden_channels, h, w, idx=0):
    C = in_channels
    C2 = 2 * C
    Cin = C + 1
    ks = jax.random.split(key, 8)
    sc = 0.1
    # Per-tap weight layout: w[k, c_out, c_in] == torch_w[c_out, c_in, ky, kx], k = ky*3 + kx.
    w1 = jax.random.normal(ks[0], (9, hidden_channels, Cin), jnp.float32) * sc
    w1 = jnp.pad(w1, ((0, 0), (0, 0), (0, 8 - Cin)))       # pad input channels 5 -> 8 with zeros
    b1 = jax.random.normal(ks[1], (hidden_channels, 1), jnp.float32) * sc
    w2 = jax.random.normal(ks[2], (hidden_channels, hidden_channels), jnp.float32) * sc
    b2 = jax.random.normal(ks[3], (hidden_channels, 1), jnp.float32) * sc
    w3 = jax.random.normal(ks[4], (9, C2, hidden_channels), jnp.float32) * sc
    b3 = jax.random.normal(ks[5], (C2, 1), jnp.float32) * sc
    # TODO(synk): ConvNet is not defined in the source file; Glow-style
    # 3x3 -> ReLU -> 1x1 -> ReLU -> 3x3 block with random weights is assumed.

    # split_feature('cross'): s = channels 0::2, t = channels 1::2.  Fold the
    # interleaved split into a static output-row permutation so the kernel can
    # use contiguous slices [:C] -> s, [C:] -> t.
    perm = np.concatenate([np.arange(0, C2, 2), np.arange(1, C2, 2)])
    w3 = w3[:, perm, :]
    b3 = b3[perm, :]

    # weight_norm(Rescale): effective weight = g * v / ||v|| (dim=0, v of shape (C,1,1)).
    v = 1.0 + 0.25 * jax.random.normal(ks[6], (C,), jnp.float32)
    g = jnp.abs(v)                               # torch weight_norm init: g = ||v||
    rescale = (g * v / jnp.abs(v)).reshape(C, 1)

    # CycleMask quadrant masks (idx rotation identical to the PyTorch module;
    # the torch masks are (1, C, h, w) but constant over channels -> spatial only).
    split_h, split_w = h // 2, w // 2
    mask_in_np = np.zeros((h, w), np.float32)
    mask_out_np = np.zeros((h, w), np.float32)
    idx = (idx + 1) % 4
    if idx == 0:
        mask_in_np[:split_h, :split_w] = 1.0
        mask_out_np[:split_h, split_w:] = 1.0
    elif idx == 1:
        mask_in_np[:split_h, split_w:] = 1.0
        mask_out_np[split_h:, split_w:] = 1.0
    elif idx == 2:
        mask_in_np[split_h:, split_w:] = 1.0
        mask_out_np[split_h:, :split_w] = 1.0
    else:
        mask_in_np[split_h:, :split_w] = 1.0
        mask_out_np[:split_h, :split_w] = 1.0

    # Column-validity masks for the three horizontal taps of a 3x3 'SAME' conv
    # in flattened-spatial layout (kill cross-row wrap of the lane shift).
    xs = np.arange(w)
    col = np.zeros((3, h, w), np.float32)
    for dx in range(3):
        valid = ((xs + dx - 1 >= 0) & (xs + dx - 1 < w)).astype(np.float32)
        col[dx] = np.broadcast_to(valid[None, :], (h, w))

    return dict(w1=w1, b1=b1, w2=w2, b2=b2, w3=w3, b3=b3, rescale=rescale,
                mask_in=jnp.asarray(mask_in_np.reshape(1, h * w)),
                mask_out=jnp.asarray(mask_out_np.reshape(1, h * w)),
                col_mask=jnp.asarray(col.reshape(3, h * w)))


def cycle_mask_reference(x_nchw, logdet, cond_nchw, params, hidden):
    """Pure-JAX reference (same math, lax conv) for the correctness check."""
    N, C, H, W = x_nchw.shape
    x = jnp.transpose(x_nchw, (0, 2, 3, 1)).astype(jnp.float32)
    cond = jnp.transpose(cond_nchw, (0, 2, 3, 1)).astype(jnp.float32)
    m_in = params["mask_in"].reshape(1, H, W, 1)
    m_out = params["mask_out"].reshape(1, H, W, 1)
    z1 = x * m_in
    z2 = x * (1.0 - m_in)
    hin = jnp.concatenate([z1, cond], axis=-1)
    dn = ("NHWC", "HWIO", "NHWC")
    hi = jax.lax.Precision.HIGHEST
    # kernel layout (9, Cout, Cin_padded) -> HWIO (3, 3, Cin, Cout)
    w1 = params["w1"][:, :, :C + 1].transpose(0, 2, 1).reshape(3, 3, C + 1, hidden)
    a = jax.lax.conv_general_dilated(hin, w1, (1, 1), "SAME", dimension_numbers=dn, precision=hi)
    a = jnp.maximum(a + params["b1"].reshape(1, 1, 1, hidden), 0.0)
    a = jnp.einsum("oc,nhwc->nhwo", params["w2"], a, precision=hi) \
        + params["b2"].reshape(1, 1, 1, hidden)
    a = jnp.maximum(a, 0.0)
    w3 = params["w3"].transpose(0, 2, 1).reshape(3, 3, hidden, 2 * C)
    a = jax.lax.conv_general_dilated(a, w3, (1, 1), "SAME", dimension_numbers=dn, precision=hi)
    a = a + params["b3"].reshape(1, 1, 1, 2 * C)
    s = jnp.tanh(a[..., :C]) * params["rescale"].reshape(1, 1, 1, C)
    s = s * m_out
    t = a[..., C:] * m_out
    z2n = (z2 + t) * jnp.exp(s)
    ld = jnp.sum(s, axis=(1, 2, 3)) + logdet
    z = z1 * m_in + z2n * (1.0 - m_in)
    return jnp.transpose(z, (0, 3, 1, 2)), ld


if __name__ == "__main__":
    N, C, H, W = 8, 4, 16, 16
    hidden = 32
    key = jax.random.PRNGKey(0)
    k_x, k_c, k_p = jax.random.split(key, 3)
    x = jax.random.normal(k_x, (N, C, H, W), jnp.float32)            # NCHW, like PyTorch
    conditioning = jax.random.normal(k_c, (N, 1, H, W), jnp.float32)
    logdet = jnp.zeros((N,), jnp.float32)
    params = init_params(k_p, C, hidden, H, W, idx=0)

    z, ld = cycle_mask_forward(x, logdet, conditioning, params, hidden, block_batch=4)
    jax.block_until_ready((z, ld))

    z_want, ld_want = cycle_mask_reference(x, logdet, conditioning, params, hidden)
    np.testing.assert_allclose(np.asarray(z), np.asarray(z_want), rtol=2e-3, atol=2e-3)
    np.testing.assert_allclose(np.asarray(ld), np.asarray(ld_want), rtol=2e-3, atol=2e-2)
    print("KERNEL_OK")
</pallas_src>

<mosaic_0001>
module attributes {stable_mosaic.version = 11 : i64} {
  func.func @_cycle_mask_kernel(%arg0: i32, %arg1: memref<4x4x256xf32, #tpu.memory_space<vmem>>, %arg2: memref<4x1x256xf32, #tpu.memory_space<vmem>>, %arg3: memref<1x256xf32, #tpu.memory_space<vmem>>, %arg4: memref<1x256xf32, #tpu.memory_space<vmem>>, %arg5: memref<3x256xf32, #tpu.memory_space<vmem>>, %arg6: memref<9x32x8xf32, #tpu.memory_space<vmem>>, %arg7: memref<32x1xf32, #tpu.memory_space<vmem>>, %arg8: memref<32x32xf32, #tpu.memory_space<vmem>>, %arg9: memref<32x1xf32, #tpu.memory_space<vmem>>, %arg10: memref<9x8x32xf32, #tpu.memory_space<vmem>>, %arg11: memref<8x1xf32, #tpu.memory_space<vmem>>, %arg12: memref<4x1xf32, #tpu.memory_space<vmem>>, %arg13: memref<4x4x256xf32, #tpu.memory_space<vmem>>, %arg14: memref<4x1x1xf32, #tpu.memory_space<vmem>>, %arg15: memref<8x290xf32, #tpu.memory_space<vmem>>, %arg16: memref<32x290xf32, #tpu.memory_space<vmem>>) attributes {dimension_semantics = [#tpu.dimension_semantics<parallel>], iteration_bounds = array<i64: 2>, scalar_prefetch = 0 : i64, scratch_operands = 2 : i64, tpu.core_type = #tpu.core_type<tc>, window_params = [{transform_indices = @transform_0, window_bounds = array<i64: 4, 4, 256>}, {transform_indices = @transform_1, window_bounds = array<i64: 4, 1, 256>}, {pipeline_mode = #tpu.pipeline_mode<synchronous>, transform_indices = @transform_2, window_bounds = array<i64: 1, 256>}, {pipeline_mode = #tpu.pipeline_mode<synchronous>, transform_indices = @transform_3, window_bounds = array<i64: 1, 256>}, {pipeline_mode = #tpu.pipeline_mode<synchronous>, transform_indices = @transform_4, window_bounds = array<i64: 3, 256>}, {pipeline_mode = #tpu.pipeline_mode<synchronous>, transform_indices = @transform_5, window_bounds = array<i64: 9, 32, 8>}, {pipeline_mode = #tpu.pipeline_mode<synchronous>, transform_indices = @transform_6, window_bounds = array<i64: 32, 1>}, {pipeline_mode = #tpu.pipeline_mode<synchronous>, transform_indices = @transform_7, window_bounds = array<i64: 32, 32>}, {pipeline_mode = #tpu.pipeline_mode<synchronous>, transform_indices = @transform_8, window_bounds = array<i64: 32, 1>}, {pipeline_mode = #tpu.pipeline_mode<synchronous>, transform_indices = @transform_9, window_bounds = array<i64: 9, 8, 32>}, {pipeline_mode = #tpu.pipeline_mode<synchronous>, transform_indices = @transform_10, window_bounds = array<i64: 8, 1>}, {pipeline_mode = #tpu.pipeline_mode<synchronous>, transform_indices = @transform_11, window_bounds = array<i64: 4, 1>}, {transform_indices = @transform_12, window_bounds = array<i64: 4, 4, 256>}, {transform_indices = @transform_13, window_bounds = array<i64: 4, 1, 1>}]} {
    %c0 = arith.constant 0 : index
    %c0_0 = arith.constant 0 : index
    %0 = vector.load %arg3[%c0, %c0_0] : memref<1x256xf32, #tpu.memory_space<vmem>>, vector<1x256xf32>
    %cst = arith.constant 1.000000e+00 : f32
    %1 = vector.broadcast %cst : f32 to vector<1x256xf32>
    %2 = arith.subf %1, %0 : vector<1x256xf32>
    %c0_1 = arith.constant 0 : index
    %c0_2 = arith.constant 0 : index
    %3 = vector.load %arg4[%c0_1, %c0_2] : memref<1x256xf32, #tpu.memory_space<vmem>>, vector<1x256xf32>
    %c0_3 = arith.constant 0 : index
    %c0_4 = arith.constant 0 : index
    %4 = vector.load %arg5[%c0_3, %c0_4] : memref<3x256xf32, #tpu.memory_space<vmem>>, vector<1x256xf32>
    %c2 = arith.constant 2 : index
    %c0_5 = arith.constant 0 : index
    %5 = vector.load %arg5[%c2, %c0_5] : memref<3x256xf32, #tpu.memory_space<vmem>>, vector<1x256xf32>
    %c0_6 = arith.constant 0 : index
    %c0_7 = arith.constant 0 : index
    %6 = vector.load %arg7[%c0_6, %c0_7] : memref<32x1xf32, #tpu.memory_space<vmem>>, vector<32x1xf32>
    %c0_8 = arith.constant 0 : index
    %c0_9 = arith.constant 0 : index
    %7 = vector.load %arg8[%c0_8, %c0_9] : memref<32x32xf32, #tpu.memory_space<vmem>>, vector<32x32xf32>
    %c0_10 = arith.constant 0 : index
    %c0_11 = arith.constant 0 : index
    %8 = vector.load %arg9[%c0_10, %c0_11] : memref<32x1xf32, #tpu.memory_space<vmem>>, vector<32x1xf32>
    %c0_12 = arith.constant 0 : index
    %c0_13 = arith.constant 0 : index
    %9 = vector.load %arg11[%c0_12, %c0_13] : memref<8x1xf32, #tpu.memory_space<vmem>>, vector<8x1xf32>
    %c0_14 = arith.constant 0 : index
    %c0_15 = arith.constant 0 : index
    %10 = vector.load %arg12[%c0_14, %c0_15] : memref<4x1xf32, #tpu.memory_space<vmem>>, vector<4x1xf32>
    %11 = vector.broadcast %10 : vector<4x1xf32> to vector<4x256xf32>
    %12 = vector.broadcast %3 : vector<1x256xf32> to vector<4x256xf32>
    %13 = arith.mulf %11, %12 : vector<4x256xf32>
    %cst_16 = arith.constant 0.000000e+00 : f32
    %14 = vector.broadcast %cst_16 : f32 to vector<8x290xf32>
    %c0_17 = arith.constant 0 : index
    %c0_18 = arith.constant 0 : index
    %15 = vector.load %arg15[%c0_17, %c0_18] : memref<8x290xf32, #tpu.memory_space<vmem>>, vector<8x290xf32>
    tpu.vector_store %arg15[%c0_17, %c0_18], %14 {strides = array<i32>} : memref<8x290xf32, #tpu.memory_space<vmem>>, vector<8x290xf32>,
    %cst_19 = arith.constant 0.000000e+00 : f32
    %16 = vector.broadcast %cst_19 : f32 to vector<32x17xf32>
    %c0_20 = arith.constant 0 : index
    %c0_21 = arith.constant 0 : index
    %17 = vector.load %arg16[%c0_20, %c0_21] : memref<32x290xf32, #tpu.memory_space<vmem>>, vector<32x17xf32>
    tpu.vector_store %arg16[%c0_20, %c0_21], %16 {strides = array<i32>} : memref<32x290xf32, #tpu.memory_space<vmem>>, vector<32x17xf32>,
    %cst_22 = arith.constant 0.000000e+00 : f32
    %18 = vector.broadcast %cst_22 : f32 to vector<32x17xf32>
    %c0_23 = arith.constant 0 : index
    %c273 = arith.constant 273 : index
    %19 = vector.load %arg16[%c0_23, %c273] : memref<32x290xf32, #tpu.memory_space<vmem>>, vector<32x17xf32>
    tpu.vector_store %arg16[%c0_23, %c273], %18 {strides = array<i32>} : memref<32x290xf32, #tpu.memory_space<vmem>>, vector<32x17xf32>,
    %c0_24 = arith.constant 0 : index
    %c0_25 = arith.constant 0 : index
    %c0_26 = arith.constant 0 : index
    %20 = vector.load %arg1[%c0_24, %c0_25, %c0_26] : memref<4x4x256xf32, #tpu.memory_space<vmem>>, vector<1x4x256xf32>
    %21 = vector.shape_cast %20 : vector<1x4x256xf32> to vector<4x256xf32>
    %c0_27 = arith.constant 0 : index
    %c0_28 = arith.constant 0 : index
    %c0_29 = arith.constant 0 : index
    %22 = vector.load %arg2[%c0_27, %c0_28, %c0_29] : memref<4x1x256xf32, #tpu.memory_space<vmem>>, vector<1x1x256xf32>
    %23 = vector.shape_cast %22 : vector<1x1x256xf32> to vector<1x256xf32>
    %24 = vector.broadcast %0 : vector<1x256xf32> to vector<4x256xf32>
    %25 = arith.mulf %21, %24 : vector<4x256xf32>
    %26 = vector.broadcast %2 : vector<1x256xf32> to vector<4x256xf32>
    %27 = arith.mulf %21, %26 : vector<4x256xf32>
    %c0_30 = arith.constant 0 : index
    %c17 = arith.constant 17 : index
    %28 = vector.load %arg15[%c0_30, %c17] : memref<8x290xf32, #tpu.memory_space<vmem>>, vector<4x256xf32>
    tpu.vector_store %arg15[%c0_30, %c17], %25 {strides = array<i32>} : memref<8x290xf32, #tpu.memory_space<vmem>>, vector<4x256xf32>,
    %c4 = arith.constant 4 : index
    %c17_31 = arith.constant 17 : index
    %29 = vector.load %arg15[%c4, %c17_31] : memref<8x290xf32, #tpu.memory_space<vmem>>, vector<1x256xf32>
    tpu.vector_store %arg15[%c4, %c17_31], %23 {strides = array<i32>} : memref<8x290xf32, #tpu.memory_space<vmem>>, vector<1x256xf32>,
    %c0_32 = arith.constant 0 : index
    %c0_33 = arith.constant 0 : index
    %30 = vector.load %arg15[%c0_32, %c0_33] : memref<8x290xf32, #tpu.memory_space<vmem>>, vector<8x256xf32>
    %31 = vector.broadcast %4 : vector<1x256xf32> to vector<8x256xf32>
    %32 = arith.mulf %30, %31 : vector<8x256xf32>
    %c0_34 = arith.constant 0 : index
    %c0_35 = arith.constant 0 : index
    %c0_36 = arith.constant 0 : index
    %33 = vector.load %arg6[%c0_34, %c0_35, %c0_36] : memref<9x32x8xf32, #tpu.memory_space<vmem>>, vector<1x32x8xf32>
    %34 = vector.shape_cast %33 : vector<1x32x8xf32> to vector<32x8xf32>
    %cst_37 = arith.constant dense<0.000000e+00> : vector<32x256xf32>
    %35 = tpu.matmul %34, %32, %cst_37 {dimension_numbers = #tpu.dot_dimension_numbers<[1], [0], [0], [1], [0, 0, 1, 1], [], []>} : vector<32x8xf32>, vector<8x256xf32>, vector<32x256xf32> -> vector<32x256xf32>
    %c0_38 = arith.constant 0 : index
    %c1 = arith.constant 1 : index
    %36 = vector.load %arg15[%c0_38, %c1] : memref<8x290xf32, #tpu.memory_space<vmem>>, vector<8x256xf32>
    %c1_39 = arith.constant 1 : index
    %c0_40 = arith.constant 0 : index
    %c0_41 = arith.constant 0 : index
    %37 = vector.load %arg6[%c1_39, %c0_40, %c0_41] : memref<9x32x8xf32, #tpu.memory_space<vmem>>, vector<1x32x8xf32>
    %38 = vector.shape_cast %37 : vector<1x32x8xf32> to vector<32x8xf32>
    %cst_42 = arith.constant dense<0.000000e+00> : vector<32x256xf32>
    %39 = tpu.matmul %38, %36, %cst_42 {dimension_numbers = #tpu.dot_dimension_numbers<[1], [0], [0], [1], [0, 0, 1, 1], [], []>} : vector<32x8xf32>, vector<8x256xf32>, vector<32x256xf32> -> vector<32x256xf32>
    %40 = arith.addf %35, %39 : vector<32x256xf32>
    %c0_43 = arith.constant 0 : index
    %c2_44 = arith.constant 2 : index
    %41 = vector.load %arg15[%c0_43, %c2_44] : memref<8x290xf32, #tpu.memory_space<vmem>>, vector<8x256xf32>
    %42 = vector.broadcast %5 : vector<1x256xf32> to vector<8x256xf32>
    %43 = arith.mulf %41, %42 : vector<8x256xf32>
    %c2_45 = arith.constant 2 : index
    %c0_46 = arith.constant 0 : index
    %c0_47 = arith.constant 0 : index
    %44 = vector.load %arg6[%c2_45, %c0_46, %c0_47] : memref<9x32x8xf32, #tpu.memory_space<vmem>>, vector<1x32x8xf32>
    %45 = vector.shape_cast %44 : vector<1x32x8xf32> to vector<32x8xf32>
    %cst_48 = arith.constant dense<0.000000e+00> : vector<32x256xf32>
    %46 = tpu.matmul %45, %43, %cst_48 {dimension_numbers = #tpu.dot_dimension_numbers<[1], [0], [0], [1], [0, 0, 1, 1], [], []>} : vector<32x8xf32>, vector<8x256xf32>, vector<32x256xf32> -> vector<32x256xf32>
    %47 = arith.addf %40, %46 : vector<32x256xf32>
    %c0_49 = arith.constant 0 : index
    %c16 = arith.constant 16 : index
    %48 = vector.load %arg15[%c0_49, %c16] : memref<8x290xf32, #tpu.memory_space<vmem>>, vector<8x256xf32>
    %49 = vector.broadcast %4 : vector<1x256xf32> to vector<8x256xf32>
    %50 = arith.mulf %48, %49 : vector<8x256xf32>
    %c3 = arith.constant 3 : index
    %c0_50 = arith.constant 0 : index
    %c0_51 = arith.constant 0 : index
    %51 = vector.load %arg6[%c3, %c0_50, %c0_51] : memref<9x32x8xf32, #tpu.memory_space<vmem>>, vector<1x32x8xf32>
    %52 = vector.shape_cast %51 : vector<1x32x8xf32> to vector<32x8xf32>
    %cst_52 = arith.constant dense<0.000000e+00> : vector<32x256xf32>
    %53 = tpu.matmul %52, %50, %cst_52 {dimension_numbers = #tpu.dot_dimension_numbers<[1], [0], [0], [1], [0, 0, 1, 1], [], []>} : vector<32x8xf32>, vector<8x256xf32>, vector<32x256xf32> -> vector<32x256xf32>
    %54 = arith.addf %47, %53 : vector<32x256xf32>
    %c0_53 = arith.constant 0 : index
    %c17_54 = arith.constant 17 : index
    %55 = vector.load %arg15[%c0_53, %c17_54] : memref<8x290xf32, #tpu.memory_space<vmem>>, vector<8x256xf32>
    %c4_55 = arith.constant 4 : index
    %c0_56 = arith.constant 0 : index
    %c0_57 = arith.constant 0 : index
    %56 = vector.load %arg6[%c4_55, %c0_56, %c0_57] : memref<9x32x8xf32, #tpu.memory_space<vmem>>, vector<1x32x8xf32>
    %57 = vector.shape_cast %56 : vector<1x32x8xf32> to vector<32x8xf32>
    %cst_58 = arith.constant dense<0.000000e+00> : vector<32x256xf32>
    %58 = tpu.matmul %57, %55, %cst_58 {dimension_numbers = #tpu.dot_dimension_numbers<[1], [0], [0], [1], [0, 0, 1, 1], [], []>} : vector<32x8xf32>, vector<8x256xf32>, vector<32x256xf32> -> vector<32x256xf32>
    %59 = arith.addf %54, %58 : vector<32x256xf32>
    %c0_59 = arith.constant 0 : index
    %c18 = arith.constant 18 : index
    %60 = vector.load %arg15[%c0_59, %c18] : memref<8x290xf32, #tpu.memory_space<vmem>>, vector<8x256xf32>
    %61 = vector.broadcast %5 : vector<1x256xf32> to vector<8x256xf32>
    %62 = arith.mulf %60, %61 : vector<8x256xf32>
    %c5 = arith.constant 5 : index
    %c0_60 = arith.constant 0 : index
    %c0_61 = arith.constant 0 : index
    %63 = vector.load %arg6[%c5, %c0_60, %c0_61] : memref<9x32x8xf32, #tpu.memory_space<vmem>>, vector<1x32x8xf32>
    %64 = vector.shape_cast %63 : vector<1x32x8xf32> to vector<32x8xf32>
    %cst_62 = arith.constant dense<0.000000e+00> : vector<32x256xf32>
    %65 = tpu.matmul %64, %62, %cst_62 {dimension_numbers = #tpu.dot_dimension_numbers<[1], [0], [0], [1], [0, 0, 1, 1], [], []>} : vector<32x8xf32>, vector<8x256xf32>, vector<32x256xf32> -> vector<32x256xf32>
    %66 = arith.addf %59, %65 : vector<32x256xf32>
    %c0_63 = arith.constant 0 : index
    %c32 = arith.constant 32 : index
    %67 = vector.load %arg15[%c0_63, %c32] : memref<8x290xf32, #tpu.memory_space<vmem>>, vector<8x256xf32>
    %68 = vector.broadcast %4 : vector<1x256xf32> to vector<8x256xf32>
    %69 = arith.mulf %67, %68 : vector<8x256xf32>
    %c6 = arith.constant 6 : index
    %c0_64 = arith.constant 0 : index
    %c0_65 = arith.constant 0 : index
    %70 = vector.load %arg6[%c6, %c0_64, %c0_65] : memref<9x32x8xf32, #tpu.memory_space<vmem>>, vector<1x32x8xf32>
    %71 = vector.shape_cast %70 : vector<1x32x8xf32> to vector<32x8xf32>
    %cst_66 = arith.constant dense<0.000000e+00> : vector<32x256xf32>
    %72 = tpu.matmul %71, %69, %cst_66 {dimension_numbers = #tpu.dot_dimension_numbers<[1], [0], [0], [1], [0, 0, 1, 1], [], []>} : vector<32x8xf32>, vector<8x256xf32>, vector<32x256xf32> -> vector<32x256xf32>
    %73 = arith.addf %66, %72 : vector<32x256xf32>
    %c0_67 = arith.constant 0 : index
    %c33 = arith.constant 33 : index
    %74 = vector.load %arg15[%c0_67, %c33] : memref<8x290xf32, #tpu.memory_space<vmem>>, vector<8x256xf32>
    %c7 = arith.constant 7 : index
    %c0_68 = arith.constant 0 : index
    %c0_69 = arith.constant 0 : index
    %75 = vector.load %arg6[%c7, %c0_68, %c0_69] : memref<9x32x8xf32, #tpu.memory_space<vmem>>, vector<1x32x8xf32>
    %76 = vector.shape_cast %75 : vector<1x32x8xf32> to vector<32x8xf32>
    %cst_70 = arith.constant dense<0.000000e+00> : vector<32x256xf32>
    %77 = tpu.matmul %76, %74, %cst_70 {dimension_numbers = #tpu.dot_dimension_numbers<[1], [0], [0], [1], [0, 0, 1, 1], [], []>} : vector<32x8xf32>, vector<8x256xf32>, vector<32x256xf32> -> vector<32x256xf32>
    %78 = arith.addf %73, %77 : vector<32x256xf32>
    %c0_71 = arith.constant 0 : index
    %c34 = arith.constant 34 : index
    %79 = vector.load %arg15[%c0_71, %c34] : memref<8x290xf32, #tpu.memory_space<vmem>>, vector<8x256xf32>
    %80 = vector.broadcast %5 : vector<1x256xf32> to vector<8x256xf32>
    %81 = arith.mulf %79, %80 : vector<8x256xf32>
    %c8 = arith.constant 8 : index
    %c0_72 = arith.constant 0 : index
    %c0_73 = arith.constant 0 : index
    %82 = vector.load %arg6[%c8, %c0_72, %c0_73] : memref<9x32x8xf32, #tpu.memory_space<vmem>>, vector<1x32x8xf32>
    %83 = vector.shape_cast %82 : vector<1x32x8xf32> to vector<32x8xf32>
    %cst_74 = arith.constant dense<0.000000e+00> : vector<32x256xf32>
    %84 = tpu.matmul %83, %81, %cst_74 {dimension_numbers = #tpu.dot_dimension_numbers<[1], [0], [0], [1], [0, 0, 1, 1], [], []>} : vector<32x8xf32>, vector<8x256xf32>, vector<32x256xf32> -> vector<32x256xf32>
    %85 = arith.addf %78, %84 : vector<32x256xf32>
    %86 = vector.broadcast %6 : vector<32x1xf32> to vector<32x256xf32>
    %87 = arith.addf %85, %86 : vector<32x256xf32>
    %cst_75 = arith.constant 0.000000e+00 : f32
    %88 = vector.broadcast %cst_75 : f32 to vector<32x256xf32>
    %89 = arith.maximumf %87, %88 : vector<32x256xf32>
    %cst_76 = arith.constant dense<0.000000e+00> : vector<32x256xf32>
    %90 = tpu.matmul %7, %89, %cst_76 {dimension_numbers = #tpu.dot_dimension_numbers<[1], [0], [0], [1], [0, 0, 1, 1], [], []>} : vector<32x32xf32>, vector<32x256xf32>, vector<32x256xf32> -> vector<32x256xf32>
    %91 = vector.broadcast %8 : vector<32x1xf32> to vector<32x256xf32>
    %92 = arith.addf %90, %91 : vector<32x256xf32>
    %cst_77 = arith.constant 0.000000e+00 : f32
    %93 = vector.broadcast %cst_77 : f32 to vector<32x256xf32>
    %94 = arith.maximumf %92, %93 : vector<32x256xf32>
    %c0_78 = arith.constant 0 : index
    %c17_79 = arith.constant 17 : index
    %95 = vector.load %arg16[%c0_78, %c17_79] : memref<32x290xf32, #tpu.memory_space<vmem>>, vector<32x256xf32>
    tpu.vector_store %arg16[%c0_78, %c17_79], %94 {strides = array<i32>} : memref<32x290xf32, #tpu.memory_space<vmem>>, vector<32x256xf32>,
    %c0_80 = arith.constant 0 : index
    %c0_81 = arith.constant 0 : index
    %96 = vector.load %arg16[%c0_80, %c0_81] : memref<32x290xf32, #tpu.memory_space<vmem>>, vector<32x256xf32>
    %97 = vector.broadcast %4 : vector<1x256xf32> to vector<32x256xf32>
    %98 = arith.mulf %96, %97 : vector<32x256xf32>
    %c0_82 = arith.constant 0 : index
    %c0_83 = arith.constant 0 : index
    %c0_84 = arith.constant 0 : index
    %99 = vector.load %arg10[%c0_82, %c0_83, %c0_84] : memref<9x8x32xf32, #tpu.memory_space<vmem>>, vector<1x8x32xf32>
    %100 = vector.shape_cast %99 : vector<1x8x32xf32> to vector<8x32xf32>
    %cst_85 = arith.constant dense<0.000000e+00> : vector<8x256xf32>
    %101 = tpu.matmul %100, %98, %cst_85 {dimension_numbers = #tpu.dot_dimension_numbers<[1], [0], [0], [1], [0, 0, 1, 1], [], []>} : vector<8x32xf32>, vector<32x256xf32>, vector<8x256xf32> -> vector<8x256xf32>
    %c0_86 = arith.constant 0 : index
    %c1_87 = arith.constant 1 : index
    %102 = vector.load %arg16[%c0_86, %c1_87] : memref<32x290xf32, #tpu.memory_space<vmem>>, vector<32x256xf32>
    %c1_88 = arith.constant 1 : index
    %c0_89 = arith.constant 0 : index
    %c0_90 = arith.constant 0 : index
    %103 = vector.load %arg10[%c1_88, %c0_89, %c0_90] : memref<9x8x32xf32, #tpu.memory_space<vmem>>, vector<1x8x32xf32>
    %104 = vector.shape_cast %103 : vector<1x8x32xf32> to vector<8x32xf32>
    %cst_91 = arith.constant dense<0.000000e+00> : vector<8x256xf32>
    %105 = tpu.matmul %104, %102, %cst_91 {dimension_numbers = #tpu.dot_dimension_numbers<[1], [0], [0], [1], [0, 0, 1, 1], [], []>} : vector<8x32xf32>, vector<32x256xf32>, vector<8x256xf32> -> vector<8x256xf32>
    %106 = arith.addf %101, %105 : vector<8x256xf32>
    %c0_92 = arith.constant 0 : index
    %c2_93 = arith.constant 2 : index
    %107 = vector.load %arg16[%c0_92, %c2_93] : memref<32x290xf32, #tpu.memory_space<vmem>>, vector<32x256xf32>
    %108 = vector.broadcast %5 : vector<1x256xf32> to vector<32x256xf32>
    %109 = arith.mulf %107, %108 : vector<32x256xf32>
    %c2_94 = arith.constant 2 : index
    %c0_95 = arith.constant 0 : index
    %c0_96 = arith.constant 0 : index
    %110 = vector.load %arg10[%c2_94, %c0_95, %c0_96] : memref<9x8x32xf32, #tpu.memory_space<vmem>>, vector<1x8x32xf32>
    %111 = vector.shape_cast %110 : vector<1x8x32xf32> to vector<8x32xf32>
    %cst_97 = arith.constant dense<0.000000e+00> : vector<8x256xf32>
    %112 = tpu.matmul %111, %109, %cst_97 {dimension_numbers = #tpu.dot_dimension_numbers<[1], [0], [0], [1], [0, 0, 1, 1], [], []>} : vector<8x32xf32>, vector<32x256xf32>, vector<8x256xf32> -> vector<8x256xf32>
    %113 = arith.addf %106, %112 : vector<8x256xf32>
    %c0_98 = arith.constant 0 : index
    %c16_99 = arith.constant 16 : index
    %114 = vector.load %arg16[%c0_98, %c16_99] : memref<32x290xf32, #tpu.memory_space<vmem>>, vector<32x256xf32>
    %115 = vector.broadcast %4 : vector<1x256xf32> to vector<32x256xf32>
    %116 = arith.mulf %114, %115 : vector<32x256xf32>
    %c3_100 = arith.constant 3 : index
    %c0_101 = arith.constant 0 : index
    %c0_102 = arith.constant 0 : index
    %117 = vector.load %arg10[%c3_100, %c0_101, %c0_102] : memref<9x8x32xf32, #tpu.memory_space<vmem>>, vector<1x8x32xf32>
    %118 = vector.shape_cast %117 : vector<1x8x32xf32> to vector<8x32xf32>
    %cst_103 = arith.constant dense<0.000000e+00> : vector<8x256xf32>
    %119 = tpu.matmul %118, %116, %cst_103 {dimension_numbers = #tpu.dot_dimension_numbers<[1], [0], [0], [1], [0, 0, 1, 1], [], []>} : vector<8x32xf32>, vector<32x256xf32>, vector<8x256xf32> -> vector<8x256xf32>
    %120 = arith.addf %113, %119 : vector<8x256xf32>
    %c0_104 = arith.constant 0 : index
    %c17_105 = arith.constant 17 : index
    %121 = vector.load %arg16[%c0_104, %c17_105] : memref<32x290xf32, #tpu.memory_space<vmem>>, vector<32x256xf32>
    %c4_106 = arith.constant 4 : index
    %c0_107 = arith.constant 0 : index
    %c0_108 = arith.constant 0 : index
    %122 = vector.load %arg10[%c4_106, %c0_107, %c0_108] : memref<9x8x32xf32, #tpu.memory_space<vmem>>, vector<1x8x32xf32>
    %123 = vector.shape_cast %122 : vector<1x8x32xf32> to vector<8x32xf32>
    %cst_109 = arith.constant dense<0.000000e+00> : vector<8x256xf32>
    %124 = tpu.matmul %123, %121, %cst_109 {dimension_numbers = #tpu.dot_dimension_numbers<[1], [0], [0], [1], [0, 0, 1, 1], [], []>} : vector<8x32xf32>, vector<32x256xf32>, vector<8x256xf32> -> vector<8x256xf32>
    %125 = arith.addf %120, %124 : vector<8x256xf32>
    %c0_110 = arith.constant 0 : index
    %c18_111 = arith.constant 18 : index
    %126 = vector.load %arg16[%c0_110, %c18_111] : memref<32x290xf32, #tpu.memory_space<vmem>>, vector<32x256xf32>
    %127 = vector.broadcast %5 : vector<1x256xf32> to vector<32x256xf32>
    %128 = arith.mulf %126, %127 : vector<32x256xf32>
    %c5_112 = arith.constant 5 : index
    %c0_113 = arith.constant 0 : index
    %c0_114 = arith.constant 0 : index
    %129 = vector.load %arg10[%c5_112, %c0_113, %c0_114] : memref<9x8x32xf32, #tpu.memory_space<vmem>>, vector<1x8x32xf32>
    %130 = vector.shape_cast %129 : vector<1x8x32xf32> to vector<8x32xf32>
    %cst_115 = arith.constant dense<0.000000e+00> : vector<8x256xf32>
    %131 = tpu.matmul %130, %128, %cst_115 {dimension_numbers = #tpu.dot_dimension_numbers<[1], [0], [0], [1], [0, 0, 1, 1], [], []>} : vector<8x32xf32>, vector<32x256xf32>, vector<8x256xf32> -> vector<8x256xf32>
    %132 = arith.addf %125, %131 : vector<8x256xf32>
    %c0_116 = arith.constant 0 : index
    %c32_117 = arith.constant 32 : index
    %133 = vector.load %arg16[%c0_116, %c32_117] : memref<32x290xf32, #tpu.memory_space<vmem>>, vector<32x256xf32>
    %134 = vector.broadcast %4 : vector<1x256xf32> to vector<32x256xf32>
    %135 = arith.mulf %133, %134 : vector<32x256xf32>
    %c6_118 = arith.constant 6 : index
    %c0_119 = arith.constant 0 : index
    %c0_120 = arith.constant 0 : index
    %136 = vector.load %arg10[%c6_118, %c0_119, %c0_120] : memref<9x8x32xf32, #tpu.memory_space<vmem>>, vector<1x8x32xf32>
    %137 = vector.shape_cast %136 : vector<1x8x32xf32> to vector<8x32xf32>
    %cst_121 = arith.constant dense<0.000000e+00> : vector<8x256xf32>
    %138 = tpu.matmul %137, %135, %cst_121 {dimension_numbers = #tpu.dot_dimension_numbers<[1], [0], [0], [1], [0, 0, 1, 1], [], []>} : vector<8x32xf32>, vector<32x256xf32>, vector<8x256xf32> -> vector<8x256xf32>
    %139 = arith.addf %132, %138 : vector<8x256xf32>
    %c0_122 = arith.constant 0 : index
    %c33_123 = arith.constant 33 : index
    %140 = vector.load %arg16[%c0_122, %c33_123] : memref<32x290xf32, #tpu.memory_space<vmem>>, vector<32x256xf32>
    %c7_124 = arith.constant 7 : index
    %c0_125 = arith.constant 0 : index
    %c0_126 = arith.constant 0 : index
    %141 = vector.load %arg10[%c7_124, %c0_125, %c0_126] : memref<9x8x32xf32, #tpu.memory_space<vmem>>, vector<1x8x32xf32>
    %142 = vector.shape_cast %141 : vector<1x8x32xf32> to vector<8x32xf32>
    %cst_127 = arith.constant dense<0.000000e+00> : vector<8x256xf32>
    %143 = tpu.matmul %142, %140, %cst_127 {dimension_numbers = #tpu.dot_dimension_numbers<[1], [0], [0], [1], [0, 0, 1, 1], [], []>} : vector<8x32xf32>, vector<32x256xf32>, vector<8x256xf32> -> vector<8x256xf32>
    %144 = arith.addf %139, %143 : vector<8x256xf32>
    %c0_128 = arith.constant 0 : index
    %c34_129 = arith.constant 34 : index
    %145 = vector.load %arg16[%c0_128, %c34_129] : memref<32x290xf32, #tpu.memory_space<vmem>>, vector<32x256xf32>
    %146 = vector.broadcast %5 : vector<1x256xf32> to vector<32x256xf32>
    %147 = arith.mulf %145, %146 : vector<32x256xf32>
    %c8_130 = arith.constant 8 : index
    %c0_131 = arith.constant 0 : index
    %c0_132 = arith.constant 0 : index
    %148 = vector.load %arg10[%c8_130, %c0_131, %c0_132] : memref<9x8x32xf32, #tpu.memory_space<vmem>>, vector<1x8x32xf32>
    %149 = vector.shape_cast %148 : vector<1x8x32xf32> to vector<8x32xf32>
    %cst_133 = arith.constant dense<0.000000e+00> : vector<8x256xf32>
    %150 = tpu.matmul %149, %147, %cst_133 {dimension_numbers = #tpu.dot_dimension_numbers<[1], [0], [0], [1], [0, 0, 1, 1], [], []>} : vector<8x32xf32>, vector<32x256xf32>, vector<8x256xf32> -> vector<8x256xf32>
    %151 = arith.addf %144, %150 : vector<8x256xf32>
    %152 = vector.broadcast %9 : vector<8x1xf32> to vector<8x256xf32>
    %153 = arith.addf %151, %152 : vector<8x256xf32>
    %154 = vector.extract_strided_slice %153 {offsets = [0, 0], sizes = [4, 256], strides = [1, 1]} : vector<8x256xf32> to vector<4x256xf32>
    %155 = math.tanh %154 : vector<4x256xf32>
    %156 = arith.mulf %155, %13 : vector<4x256xf32>
    %157 = vector.extract_strided_slice %153 {offsets = [4, 0], sizes = [4, 256], strides = [1, 1]} : vector<8x256xf32> to vector<4x256xf32>
    %158 = vector.broadcast %3 : vector<1x256xf32> to vector<4x256xf32>
    %159 = arith.mulf %157, %158 : vector<4x256xf32>
    %cst_134 = arith.constant dense<0.000000e+00> : vector<4xf32>
    %160 = vector.multi_reduction <add>, %156, %cst_134 [1] : vector<4x256xf32> to vector<4xf32>
    %161 = vector.shape_cast %160 : vector<4xf32> to vector<4x1xf32>
    %cst_135 = arith.constant dense<0.000000e+00> : vector<1xf32>
    %162 = vector.multi_reduction <add>, %161, %cst_135 [0] : vector<4x1xf32> to vector<1xf32>
    %163 = vector.shape_cast %162 : vector<1xf32> to vector<1x1xf32>
    %c0_136 = arith.constant 0 : index
    %c0_137 = arith.constant 0 : index
    %c0_138 = arith.constant 0 : index
    %164 = vector.load %arg14[%c0_136, %c0_137, %c0_138] : memref<4x1x1xf32, #tpu.memory_space<vmem>>, vector<1x1x1xf32>
    %165 = vector.shape_cast %164 : vector<1x1x1xf32> to vector<1x1xf32>
    %166 = vector.shape_cast %163 : vector<1x1xf32> to vector<1x1x1xf32>
    tpu.vector_store %arg14[%c0_136, %c0_137, %c0_138], %166 {strides = array<i32>} : memref<4x1x1xf32, #tpu.memory_space<vmem>>, vector<1x1x1xf32>,
    %167 = arith.addf %27, %159 : vector<4x256xf32>
    %168 = math.exp %156 : vector<4x256xf32>
    %169 = arith.mulf %167, %168 : vector<4x256xf32>
    %170 = vector.broadcast %2 : vector<1x256xf32> to vector<4x256xf32>
    %171 = arith.mulf %169, %170 : vector<4x256xf32>
    %172 = arith.addf %25, %171 : vector<4x256xf32>
    %c0_139 = arith.constant 0 : index
    %c0_140 = arith.constant 0 : index
    %c0_141 = arith.constant 0 : index
    %173 = vector.load %arg13[%c0_139, %c0_140, %c0_141] : memref<4x4x256xf32, #tpu.memory_space<vmem>>, vector<1x4x256xf32>
    %174 = vector.shape_cast %173 : vector<1x4x256xf32> to vector<4x256xf32>
    %175 = vector.shape_cast %172 : vector<4x256xf32> to vector<1x4x256xf32>
    tpu.vector_store %arg13[%c0_139, %c0_140, %c0_141], %175 {strides = array<i32>} : memref<4x4x256xf32, #tpu.memory_space<vmem>>, vector<1x4x256xf32>,
    %c1_142 = arith.constant 1 : index
    %c0_143 = arith.constant 0 : index
    %c0_144 = arith.constant 0 : index
    %176 = vector.load %arg1[%c1_142, %c0_143, %c0_144] : memref<4x4x256xf32, #tpu.memory_space<vmem>>, vector<1x4x256xf32>
    %177 = vector.shape_cast %176 : vector<1x4x256xf32> to vector<4x256xf32>
    %c1_145 = arith.constant 1 : index
    %c0_146 = arith.constant 0 : index
    %c0_147 = arith.constant 0 : index
    %178 = vector.load %arg2[%c1_145, %c0_146, %c0_147] : memref<4x1x256xf32, #tpu.memory_space<vmem>>, vector<1x1x256xf32>
    %179 = vector.shape_cast %178 : vector<1x1x256xf32> to vector<1x256xf32>
    %180 = vector.broadcast %0 : vector<1x256xf32> to vector<4x256xf32>
    %181 = arith.mulf %177, %180 : vector<4x256xf32>
    %182 = vector.broadcast %2 : vector<1x256xf32> to vector<4x256xf32>
    %183 = arith.mulf %177, %182 : vector<4x256xf32>
    %c0_148 = arith.constant 0 : index
    %c17_149 = arith.constant 17 : index
    %184 = vector.load %arg15[%c0_148, %c17_149] : memref<8x290xf32, #tpu.memory_space<vmem>>, vector<4x256xf32>
    tpu.vector_store %arg15[%c0_148, %c17_149], %181 {strides = array<i32>} : memref<8x290xf32, #tpu.memory_space<vmem>>, vector<4x256xf32>,
    %c4_150 = arith.constant 4 : index
    %c17_151 = arith.constant 17 : index
    %185 = vector.load %arg15[%c4_150, %c17_151] : memref<8x290xf32, #tpu.memory_space<vmem>>, vector<1x256xf32>
    tpu.vector_store %arg15[%c4_150, %c17_151], %179 {strides = array<i32>} : memref<8x290xf32, #tpu.memory_space<vmem>>, vector<1x256xf32>,
    %c0_152 = arith.constant 0 : index
    %c0_153 = arith.constant 0 : index
    %186 = vector.load %arg15[%c0_152, %c0_153] : memref<8x290xf32, #tpu.memory_space<vmem>>, vector<8x256xf32>
    %187 = vector.broadcast %4 : vector<1x256xf32> to vector<8x256xf32>
    %188 = arith.mulf %186, %187 : vector<8x256xf32>
    %c0_154 = arith.constant 0 : index
    %c0_155 = arith.constant 0 : index
    %c0_156 = arith.constant 0 : index
    %189 = vector.load %arg6[%c0_154, %c0_155, %c0_156] : memref<9x32x8xf32, #tpu.memory_space<vmem>>, vector<1x32x8xf32>
    %190 = vector.shape_cast %189 : vector<1x32x8xf32> to vector<32x8xf32>
    %cst_157 = arith.constant dense<0.000000e+00> : vector<32x256xf32>
    %191 = tpu.matmul %190, %188, %cst_157 {dimension_numbers = #tpu.dot_dimension_numbers<[1], [0], [0], [1], [0, 0, 1, 1], [], []>} : vector<32x8xf32>, vector<8x256xf32>, vector<32x256xf32> -> vector<32x256xf32>
    %c0_158 = arith.constant 0 : index
    %c1_159 = arith.constant 1 : index
    %192 = vector.load %arg15[%c0_158, %c1_159] : memref<8x290xf32, #tpu.memory_space<vmem>>, vector<8x256xf32>
    %c1_160 = arith.constant 1 : index
    %c0_161 = arith.constant 0 : index
    %c0_162 = arith.constant 0 : index
    %193 = vector.load %arg6[%c1_160, %c0_161, %c0_162] : memref<9x32x8xf32, #tpu.memory_space<vmem>>, vector<1x32x8xf32>
    %194 = vector.shape_cast %193 : vector<1x32x8xf32> to vector<32x8xf32>
    %cst_163 = arith.constant dense<0.000000e+00> : vector<32x256xf32>
    %195 = tpu.matmul %194, %192, %cst_163 {dimension_numbers = #tpu.dot_dimension_numbers<[1], [0], [0], [1], [0, 0, 1, 1], [], []>} : vector<32x8xf32>, vector<8x256xf32>, vector<32x256xf32> -> vector<32x256xf32>
    %196 = arith.addf %191, %195 : vector<32x256xf32>
    %c0_164 = arith.constant 0 : index
    %c2_165 = arith.constant 2 : index
    %197 = vector.load %arg15[%c0_164, %c2_165] : memref<8x290xf32, #tpu.memory_space<vmem>>, vector<8x256xf32>
    %198 = vector.broadcast %5 : vector<1x256xf32> to vector<8x256xf32>
    %199 = arith.mulf %197, %198 : vector<8x256xf32>
    %c2_166 = arith.constant 2 : index
    %c0_167 = arith.constant 0 : index
    %c0_168 = arith.constant 0 : index
    %200 = vector.load %arg6[%c2_166, %c0_167, %c0_168] : memref<9x32x8xf32, #tpu.memory_space<vmem>>, vector<1x32x8xf32>
    %201 = vector.shape_cast %200 : vector<1x32x8xf32> to vector<32x8xf32>
    %cst_169 = arith.constant dense<0.000000e+00> : vector<32x256xf32>
    %202 = tpu.matmul %201, %199, %cst_169 {dimension_numbers = #tpu.dot_dimension_numbers<[1], [0], [0], [1], [0, 0, 1, 1], [], []>} : vector<32x8xf32>, vector<8x256xf32>, vector<32x256xf32> -> vector<32x256xf32>
    %203 = arith.addf %196, %202 : vector<32x256xf32>
    %c0_170 = arith.constant 0 : index
    %c16_171 = arith.constant 16 : index
    %204 = vector.load %arg15[%c0_170, %c16_171] : memref<8x290xf32, #tpu.memory_space<vmem>>, vector<8x256xf32>
    %205 = vector.broadcast %4 : vector<1x256xf32> to vector<8x256xf32>
    %206 = arith.mulf %204, %205 : vector<8x256xf32>
    %c3_172 = arith.constant 3 : index
    %c0_173 = arith.constant 0 : index
    %c0_174 = arith.constant 0 : index
    %207 = vector.load %arg6[%c3_172, %c0_173, %c0_174] : memref<9x32x8xf32, #tpu.memory_space<vmem>>, vector<1x32x8xf32>
    %208 = vector.shape_cast %207 : vector<1x32x8xf32> to vector<32x8xf32>
    %cst_175 = arith.constant dense<0.000000e+00> : vector<32x256xf32>
    %209 = tpu.matmul %208, %206, %cst_175 {dimension_numbers = #tpu.dot_dimension_numbers<[1], [0], [0], [1], [0, 0, 1, 1], [], []>} : vector<32x8xf32>, vector<8x256xf32>, vector<32x256xf32> -> vector<32x256xf32>
    %210 = arith.addf %203, %209 : vector<32x256xf32>
    %c0_176 = arith.constant 0 : index
    %c17_177 = arith.constant 17 : index
    %211 = vector.load %arg15[%c0_176, %c17_177] : memref<8x290xf32, #tpu.memory_space<vmem>>, vector<8x256xf32>
    %c4_178 = arith.constant 4 : index
    %c0_179 = arith.constant 0 : index
    %c0_180 = arith.constant 0 : index
    %212 = vector.load %arg6[%c4_178, %c0_179, %c0_180] : memref<9x32x8xf32, #tpu.memory_space<vmem>>, vector<1x32x8xf32>
    %213 = vector.shape_cast %212 : vector<1x32x8xf32> to vector<32x8xf32>
    %cst_181 = arith.constant dense<0.000000e+00> : vector<32x256xf32>
    %214 = tpu.matmul %213, %211, %cst_181 {dimension_numbers = #tpu.dot_dimension_numbers<[1], [0], [0], [1], [0, 0, 1, 1], [], []>} : vector<32x8xf32>, vector<8x256xf32>, vector<32x256xf32> -> vector<32x256xf32>
    %215 = arith.addf %210, %214 : vector<32x256xf32>
    %c0_182 = arith.constant 0 : index
    %c18_183 = arith.constant 18 : index
    %216 = vector.load %arg15[%c0_182, %c18_183] : memref<8x290xf32, #tpu.memory_space<vmem>>, vector<8x256xf32>
    %217 = vector.broadcast %5 : vector<1x256xf32> to vector<8x256xf32>
    %218 = arith.mulf %216, %217 : vector<8x256xf32>
    %c5_184 = arith.constant 5 : index
    %c0_185 = arith.constant 0 : index
    %c0_186 = arith.constant 0 : index
    %219 = vector.load %arg6[%c5_184, %c0_185, %c0_186] : memref<9x32x8xf32, #tpu.memory_space<vmem>>, vector<1x32x8xf32>
    %220 = vector.shape_cast %219 : vector<1x32x8xf32> to vector<32x8xf32>
    %cst_187 = arith.constant dense<0.000000e+00> : vector<32x256xf32>
    %221 = tpu.matmul %220, %218, %cst_187 {dimension_numbers = #tpu.dot_dimension_numbers<[1], [0], [0], [1], [0, 0, 1, 1], [], []>} : vector<32x8xf32>, vector<8x256xf32>, vector<32x256xf32> -> vector<32x256xf32>
    %222 = arith.addf %215, %221 : vector<32x256xf32>
    %c0_188 = arith.constant 0 : index
    %c32_189 = arith.constant 32 : index
    %223 = vector.load %arg15[%c0_188, %c32_189] : memref<8x290xf32, #tpu.memory_space<vmem>>, vector<8x256xf32>
    %224 = vector.broadcast %4 : vector<1x256xf32> to vector<8x256xf32>
    %225 = arith.mulf %223, %224 : vector<8x256xf32>
    %c6_190 = arith.constant 6 : index
    %c0_191 = arith.constant 0 : index
    %c0_192 = arith.constant 0 : index
    %226 = vector.load %arg6[%c6_190, %c0_191, %c0_192] : memref<9x32x8xf32, #tpu.memory_space<vmem>>, vector<1x32x8xf32>
    %227 = vector.shape_cast %226 : vector<1x32x8xf32> to vector<32x8xf32>
    %cst_193 = arith.constant dense<0.000000e+00> : vector<32x256xf32>
    %228 = tpu.matmul %227, %225, %cst_193 {dimension_numbers = #tpu.dot_dimension_numbers<[1], [0], [0], [1], [0, 0, 1, 1], [], []>} : vector<32x8xf32>, vector<8x256xf32>, vector<32x256xf32> -> vector<32x256xf32>
    %229 = arith.addf %222, %228 : vector<32x256xf32>
    %c0_194 = arith.constant 0 : index
    %c33_195 = arith.constant 33 : index
    %230 = vector.load %arg15[%c0_194, %c33_195] : memref<8x290xf32, #tpu.memory_space<vmem>>, vector<8x256xf32>
    %c7_196 = arith.constant 7 : index
    %c0_197 = arith.constant 0 : index
    %c0_198 = arith.constant 0 : index
    %231 = vector.load %arg6[%c7_196, %c0_197, %c0_198] : memref<9x32x8xf32, #tpu.memory_space<vmem>>, vector<1x32x8xf32>
    %232 = vector.shape_cast %231 : vector<1x32x8xf32> to vector<32x8xf32>
    %cst_199 = arith.constant dense<0.000000e+00> : vector<32x256xf32>
    %233 = tpu.matmul %232, %230, %cst_199 {dimension_numbers = #tpu.dot_dimension_numbers<[1], [0], [0], [1], [0, 0, 1, 1], [], []>} : vector<32x8xf32>, vector<8x256xf32>, vector<32x256xf32> -> vector<32x256xf32>
    %234 = arith.addf %229, %233 : vector<32x256xf32>
    %c0_200 = arith.constant 0 : index
    %c34_201 = arith.constant 34 : index
    %235 = vector.load %arg15[%c0_200, %c34_201] : memref<8x290xf32, #tpu.memory_space<vmem>>, vector<8x256xf32>
    %236 = vector.broadcast %5 : vector<1x256xf32> to vector<8x256xf32>
    %237 = arith.mulf %235, %236 : vector<8x256xf32>
    %c8_202 = arith.constant 8 : index
    %c0_203 = arith.constant 0 : index
    %c0_204 = arith.constant 0 : index
    %238 = vector.load %arg6[%c8_202, %c0_203, %c0_204] : memref<9x32x8xf32, #tpu.memory_space<vmem>>, vector<1x32x8xf32>
    %239 = vector.shape_cast %238 : vector<1x32x8xf32> to vector<32x8xf32>
    %cst_205 = arith.constant dense<0.000000e+00> : vector<32x256xf32>
    %240 = tpu.matmul %239, %237, %cst_205 {dimension_numbers = #tpu.dot_dimension_numbers<[1], [0], [0], [1], [0, 0, 1, 1], [], []>} : vector<32x8xf32>, vector<8x256xf32>, vector<32x256xf32> -> vector<32x256xf32>
    %241 = arith.addf %234, %240 : vector<32x256xf32>
    %242 = vector.broadcast %6 : vector<32x1xf32> to vector<32x256xf32>
    %243 = arith.addf %241, %242 : vector<32x256xf32>
    %cst_206 = arith.constant 0.000000e+00 : f32
    %244 = vector.broadcast %cst_206 : f32 to vector<32x256xf32>
    %245 = arith.maximumf %243, %244 : vector<32x256xf32>
    %cst_207 = arith.constant dense<0.000000e+00> : vector<32x256xf32>
    %246 = tpu.matmul %7, %245, %cst_207 {dimension_numbers = #tpu.dot_dimension_numbers<[1], [0], [0], [1], [0, 0, 1, 1], [], []>} : vector<32x32xf32>, vector<32x256xf32>, vector<32x256xf32> -> vector<32x256xf32>
    %247 = vector.broadcast %8 : vector<32x1xf32> to vector<32x256xf32>
    %248 = arith.addf %246, %247 : vector<32x256xf32>
    %cst_208 = arith.constant 0.000000e+00 : f32
    %249 = vector.broadcast %cst_208 : f32 to vector<32x256xf32>
    %250 = arith.maximumf %248, %249 : vector<32x256xf32>
    %c0_209 = arith.constant 0 : index
    %c17_210 = arith.constant 17 : index
    %251 = vector.load %arg16[%c0_209, %c17_210] : memref<32x290xf32, #tpu.memory_space<vmem>>, vector<32x256xf32>
    tpu.vector_store %arg16[%c0_209, %c17_210], %250 {strides = array<i32>} : memref<32x290xf32, #tpu.memory_space<vmem>>, vector<32x256xf32>,
    %c0_211 = arith.constant 0 : index
    %c0_212 = arith.constant 0 : index
    %252 = vector.load %arg16[%c0_211, %c0_212] : memref<32x290xf32, #tpu.memory_space<vmem>>, vector<32x256xf32>
    %253 = vector.broadcast %4 : vector<1x256xf32> to vector<32x256xf32>
    %254 = arith.mulf %252, %253 : vector<32x256xf32>
    %c0_213 = arith.constant 0 : index
    %c0_214 = arith.constant 0 : index
    %c0_215 = arith.constant 0 : index
    %255 = vector.load %arg10[%c0_213, %c0_214, %c0_215] : memref<9x8x32xf32, #tpu.memory_space<vmem>>, vector<1x8x32xf32>
    %256 = vector.shape_cast %255 : vector<1x8x32xf32> to vector<8x32xf32>
    %cst_216 = arith.constant dense<0.000000e+00> : vector<8x256xf32>
    %257 = tpu.matmul %256, %254, %cst_216 {dimension_numbers = #tpu.dot_dimension_numbers<[1], [0], [0], [1], [0, 0, 1, 1], [], []>} : vector<8x32xf32>, vector<32x256xf32>, vector<8x256xf32> -> vector<8x256xf32>
    %c0_217 = arith.constant 0 : index
    %c1_218 = arith.constant 1 : index
    %258 = vector.load %arg16[%c0_217, %c1_218] : memref<32x290xf32, #tpu.memory_space<vmem>>, vector<32x256xf32>
    %c1_219 = arith.constant 1 : index
    %c0_220 = arith.constant 0 : index
    %c0_221 = arith.constant 0 : index
    %259 = vector.load %arg10[%c1_219, %c0_220, %c0_221] : memref<9x8x32xf32, #tpu.memory_space<vmem>>, vector<1x8x32xf32>
    %260 = vector.shape_cast %259 : vector<1x8x32xf32> to vector<8x32xf32>
    %cst_222 = arith.constant dense<0.000000e+00> : vector<8x256xf32>
    %261 = tpu.matmul %260, %258, %cst_222 {dimension_numbers = #tpu.dot_dimension_numbers<[1], [0], [0], [1], [0, 0, 1, 1], [], []>} : vector<8x32xf32>, vector<32x256xf32>, vector<8x256xf32> -> vector<8x256xf32>
    %262 = arith.addf %257, %261 : vector<8x256xf32>
    %c0_223 = arith.constant 0 : index
    %c2_224 = arith.constant 2 : index
    %263 = vector.load %arg16[%c0_223, %c2_224] : memref<32x290xf32, #tpu.memory_space<vmem>>, vector<32x256xf32>
    %264 = vector.broadcast %5 : vector<1x256xf32> to vector<32x256xf32>
    %265 = arith.mulf %263, %264 : vector<32x256xf32>
    %c2_225 = arith.constant 2 : index
    %c0_226 = arith.constant 0 : index
    %c0_227 = arith.constant 0 : index
    %266 = vector.load %arg10[%c2_225, %c0_226, %c0_227] : memref<9x8x32xf32, #tpu.memory_space<vmem>>, vector<1x8x32xf32>
    %267 = vector.shape_cast %266 : vector<1x8x32xf32> to vector<8x32xf32>
    %cst_228 = arith.constant dense<0.000000e+00> : vector<8x256xf32>
    %268 = tpu.matmul %267, %265, %cst_228 {dimension_numbers = #tpu.dot_dimension_numbers<[1], [0], [0], [1], [0, 0, 1, 1], [], []>} : vector<8x32xf32>, vector<32x256xf32>, vector<8x256xf32> -> vector<8x256xf32>
    %269 = arith.addf %262, %268 : vector<8x256xf32>
    %c0_229 = arith.constant 0 : index
    %c16_230 = arith.constant 16 : index
    %270 = vector.load %arg16[%c0_229, %c16_230] : memref<32x290xf32, #tpu.memory_space<vmem>>, vector<32x256xf32>
    %271 = vector.broadcast %4 : vector<1x256xf32> to vector<32x256xf32>
    %272 = arith.mulf %270, %271 : vector<32x256xf32>
    %c3_231 = arith.constant 3 : index
    %c0_232 = arith.constant 0 : index
    %c0_233 = arith.constant 0 : index
    %273 = vector.load %arg10[%c3_231, %c0_232, %c0_233] : memref<9x8x32xf32, #tpu.memory_space<vmem>>, vector<1x8x32xf32>
    %274 = vector.shape_cast %273 : vector<1x8x32xf32> to vector<8x32xf32>
    %cst_234 = arith.constant dense<0.000000e+00> : vector<8x256xf32>
    %275 = tpu.matmul %274, %272, %cst_234 {dimension_numbers = #tpu.dot_dimension_numbers<[1], [0], [0], [1], [0, 0, 1, 1], [], []>} : vector<8x32xf32>, vector<32x256xf32>, vector<8x256xf32> -> vector<8x256xf32>
    %276 = arith.addf %269, %275 : vector<8x256xf32>
    %c0_235 = arith.constant 0 : index
    %c17_236 = arith.constant 17 : index
    %277 = vector.load %arg16[%c0_235, %c17_236] : memref<32x290xf32, #tpu.memory_space<vmem>>, vector<32x256xf32>
    %c4_237 = arith.constant 4 : index
    %c0_238 = arith.constant 0 : index
    %c0_239 = arith.constant 0 : index
    %278 = vector.load %arg10[%c4_237, %c0_238, %c0_239] : memref<9x8x32xf32, #tpu.memory_space<vmem>>, vector<1x8x32xf32>
    %279 = vector.shape_cast %278 : vector<1x8x32xf32> to vector<8x32xf32>
    %cst_240 = arith.constant dense<0.000000e+00> : vector<8x256xf32>
    %280 = tpu.matmul %279, %277, %cst_240 {dimension_numbers = #tpu.dot_dimension_numbers<[1], [0], [0], [1], [0, 0, 1, 1], [], []>} : vector<8x32xf32>, vector<32x256xf32>, vector<8x256xf32> -> vector<8x256xf32>
    %281 = arith.addf %276, %280 : vector<8x256xf32>
    %c0_241 = arith.constant 0 : index
    %c18_242 = arith.constant 18 : index
    %282 = vector.load %arg16[%c0_241, %c18_242] : memref<32x290xf32, #tpu.memory_space<vmem>>, vector<32x256xf32>
    %283 = vector.broadcast %5 : vector<1x256xf32> to vector<32x256xf32>
    %284 = arith.mulf %282, %283 : vector<32x256xf32>
    %c5_243 = arith.constant 5 : index
    %c0_244 = arith.constant 0 : index
    %c0_245 = arith.constant 0 : index
    %285 = vector.load %arg10[%c5_243, %c0_244, %c0_245] : memref<9x8x32xf32, #tpu.memory_space<vmem>>, vector<1x8x32xf32>
    %286 = vector.shape_cast %285 : vector<1x8x32xf32> to vector<8x32xf32>
    %cst_246 = arith.constant dense<0.000000e+00> : vector<8x256xf32>
    %287 = tpu.matmul %286, %284, %cst_246 {dimension_numbers = #tpu.dot_dimension_numbers<[1], [0], [0], [1], [0, 0, 1, 1], [], []>} : vector<8x32xf32>, vector<32x256xf32>, vector<8x256xf32> -> vector<8x256xf32>
    %288 = arith.addf %281, %287 : vector<8x256xf32>
    %c0_247 = arith.constant 0 : index
    %c32_248 = arith.constant 32 : index
    %289 = vector.load %arg16[%c0_247, %c32_248] : memref<32x290xf32, #tpu.memory_space<vmem>>, vector<32x256xf32>
    %290 = vector.broadcast %4 : vector<1x256xf32> to vector<32x256xf32>
    %291 = arith.mulf %289, %290 : vector<32x256xf32>
    %c6_249 = arith.constant 6 : index
    %c0_250 = arith.constant 0 : index
    %c0_251 = arith.constant 0 : index
    %292 = vector.load %arg10[%c6_249, %c0_250, %c0_251] : memref<9x8x32xf32, #tpu.memory_space<vmem>>, vector<1x8x32xf32>
    %293 = vector.shape_cast %292 : vector<1x8x32xf32> to vector<8x32xf32>
    %cst_252 = arith.constant dense<0.000000e+00> : vector<8x256xf32>
    %294 = tpu.matmul %293, %291, %cst_252 {dimension_numbers = #tpu.dot_dimension_numbers<[1], [0], [0], [1], [0, 0, 1, 1], [], []>} : vector<8x32xf32>, vector<32x256xf32>, vector<8x256xf32> -> vector<8x256xf32>
    %295 = arith.addf %288, %294 : vector<8x256xf32>
    %c0_253 = arith.constant 0 : index
    %c33_254 = arith.constant 33 : index
    %296 = vector.load %arg16[%c0_253, %c33_254] : memref<32x290xf32, #tpu.memory_space<vmem>>, vector<32x256xf32>
    %c7_255 = arith.constant 7 : index
    %c0_256 = arith.constant 0 : index
    %c0_257 = arith.constant 0 : index
    %297 = vector.load %arg10[%c7_255, %c0_256, %c0_257] : memref<9x8x32xf32, #tpu.memory_space<vmem>>, vector<1x8x32xf32>
    %298 = vector.shape_cast %297 : vector<1x8x32xf32> to vector<8x32xf32>
    %cst_258 = arith.constant dense<0.000000e+00> : vector<8x256xf32>
    %299 = tpu.matmul %298, %296, %cst_258 {dimension_numbers = #tpu.dot_dimension_numbers<[1], [0], [0], [1], [0, 0, 1, 1], [], []>} : vector<8x32xf32>, vector<32x256xf32>, vector<8x256xf32> -> vector<8x256xf32>
    %300 = arith.addf %295, %299 : vector<8x256xf32>
    %c0_259 = arith.constant 0 : index
    %c34_260 = arith.constant 34 : index
    %301 = vector.load %arg16[%c0_259, %c34_260] : memref<32x290xf32, #tpu.memory_space<vmem>>, vector<32x256xf32>
    %302 = vector.broadcast %5 : vector<1x256xf32> to vector<32x256xf32>
    %303 = arith.mulf %301, %302 : vector<32x256xf32>
    %c8_261 = arith.constant 8 : index
    %c0_262 = arith.constant 0 : index
    %c0_263 = arith.constant 0 : index
    %304 = vector.load %arg10[%c8_261, %c0_262, %c0_263] : memref<9x8x32xf32, #tpu.memory_space<vmem>>, vector<1x8x32xf32>
    %305 = vector.shape_cast %304 : vector<1x8x32xf32> to vector<8x32xf32>
    %cst_264 = arith.constant dense<0.000000e+00> : vector<8x256xf32>
    %306 = tpu.matmul %305, %303, %cst_264 {dimension_numbers = #tpu.dot_dimension_numbers<[1], [0], [0], [1], [0, 0, 1, 1], [], []>} : vector<8x32xf32>, vector<32x256xf32>, vector<8x256xf32> -> vector<8x256xf32>
    %307 = arith.addf %300, %306 : vector<8x256xf32>
    %308 = vector.broadcast %9 : vector<8x1xf32> to vector<8x256xf32>
    %309 = arith.addf %307, %308 : vector<8x256xf32>
    %310 = vector.extract_strided_slice %309 {offsets = [0, 0], sizes = [4, 256], strides = [1, 1]} : vector<8x256xf32> to vector<4x256xf32>
    %311 = math.tanh %310 : vector<4x256xf32>
    %312 = arith.mulf %311, %13 : vector<4x256xf32>
    %313 = vector.extract_strided_slice %309 {offsets = [4, 0], sizes = [4, 256], strides = [1, 1]} : vector<8x256xf32> to vector<4x256xf32>
    %314 = vector.broadcast %3 : vector<1x256xf32> to vector<4x256xf32>
    %315 = arith.mulf %313, %314 : vector<4x256xf32>
    %cst_265 = arith.constant dense<0.000000e+00> : vector<4xf32>
    %316 = vector.multi_reduction <add>, %312, %cst_265 [1] : vector<4x256xf32> to vector<4xf32>
    %317 = vector.shape_cast %316 : vector<4xf32> to vector<4x1xf32>
    %cst_266 = arith.constant dense<0.000000e+00> : vector<1xf32>
    %318 = vector.multi_reduction <add>, %317, %cst_266 [0] : vector<4x1xf32> to vector<1xf32>
    %319 = vector.shape_cast %318 : vector<1xf32> to vector<1x1xf32>
    %c1_267 = arith.constant 1 : index
    %c0_268 = arith.constant 0 : index
    %c0_269 = arith.constant 0 : index
    %320 = vector.load %arg14[%c1_267, %c0_268, %c0_269] : memref<4x1x1xf32, #tpu.memory_space<vmem>>, vector<1x1x1xf32>
    %321 = vector.shape_cast %320 : vector<1x1x1xf32> to vector<1x1xf32>
    %322 = vector.shape_cast %319 : vector<1x1xf32> to vector<1x1x1xf32>
    tpu.vector_store %arg14[%c1_267, %c0_268, %c0_269], %322 {strides = array<i32>} : memref<4x1x1xf32, #tpu.memory_space<vmem>>, vector<1x1x1xf32>,
    %323 = arith.addf %183, %315 : vector<4x256xf32>
    %324 = math.exp %312 : vector<4x256xf32>
    %325 = arith.mulf %323, %324 : vector<4x256xf32>
    %326 = vector.broadcast %2 : vector<1x256xf32> to vector<4x256xf32>
    %327 = arith.mulf %325, %326 : vector<4x256xf32>
    %328 = arith.addf %181, %327 : vector<4x256xf32>
    %c1_270 = arith.constant 1 : index
    %c0_271 = arith.constant 0 : index
    %c0_272 = arith.constant 0 : index
    %329 = vector.load %arg13[%c1_270, %c0_271, %c0_272] : memref<4x4x256xf32, #tpu.memory_space<vmem>>, vector<1x4x256xf32>
    %330 = vector.shape_cast %329 : vector<1x4x256xf32> to vector<4x256xf32>
    %331 = vector.shape_cast %328 : vector<4x256xf32> to vector<1x4x256xf32>
    tpu.vector_store %arg13[%c1_270, %c0_271, %c0_272], %331 {strides = array<i32>} : memref<4x4x256xf32, #tpu.memory_space<vmem>>, vector<1x4x256xf32>,
    %c2_273 = arith.constant 2 : index
    %c0_274 = arith.constant 0 : index
    %c0_275 = arith.constant 0 : index
    %332 = vector.load %arg1[%c2_273, %c0_274, %c0_275] : memref<4x4x256xf32, #tpu.memory_space<vmem>>, vector<1x4x256xf32>
    %333 = vector.shape_cast %332 : vector<1x4x256xf32> to vector<4x256xf32>
    %c2_276 = arith.constant 2 : index
    %c0_277 = arith.constant 0 : index
    %c0_278 = arith.constant 0 : index
    %334 = vector.load %arg2[%c2_276, %c0_277, %c0_278] : memref<4x1x256xf32, #tpu.memory_space<vmem>>, vector<1x1x256xf32>
    %335 = vector.shape_cast %334 : vector<1x1x256xf32> to vector<1x256xf32>
    %336 = vector.broadcast %0 : vector<1x256xf32> to vector<4x256xf32>
    %337 = arith.mulf %333, %336 : vector<4x256xf32>
    %338 = vector.broadcast %2 : vector<1x256xf32> to vector<4x256xf32>
    %339 = arith.mulf %333, %338 : vector<4x256xf32>
    %c0_279 = arith.constant 0 : index
    %c17_280 = arith.constant 17 : index
    %340 = vector.load %arg15[%c0_279, %c17_280] : memref<8x290xf32, #tpu.memory_space<vmem>>, vector<4x256xf32>
    tpu.vector_store %arg15[%c0_279, %c17_280], %337 {strides = array<i32>} : memref<8x290xf32, #tpu.memory_space<vmem>>, vector<4x256xf32>,
    %c4_281 = arith.constant 4 : index
    %c17_282 = arith.constant 17 : index
    %341 = vector.load %arg15[%c4_281, %c17_282] : memref<8x290xf32, #tpu.memory_space<vmem>>, vector<1x256xf32>
    tpu.vector_store %arg15[%c4_281, %c17_282], %335 {strides = array<i32>} : memref<8x290xf32, #tpu.memory_space<vmem>>, vector<1x256xf32>,
    %c0_283 = arith.constant 0 : index
    %c0_284 = arith.constant 0 : index
    %342 = vector.load %arg15[%c0_283, %c0_284] : memref<8x290xf32, #tpu.memory_space<vmem>>, vector<8x256xf32>
    %343 = vector.broadcast %4 : vector<1x256xf32> to vector<8x256xf32>
    %344 = arith.mulf %342, %343 : vector<8x256xf32>
    %c0_285 = arith.constant 0 : index
    %c0_286 = arith.constant 0 : index
    %c0_287 = arith.constant 0 : index
    %345 = vector.load %arg6[%c0_285, %c0_286, %c0_287] : memref<9x32x8xf32, #tpu.memory_space<vmem>>, vector<1x32x8xf32>
    %346 = vector.shape_cast %345 : vector<1x32x8xf32> to vector<32x8xf32>
    %cst_288 = arith.constant dense<0.000000e+00> : vector<32x256xf32>
    %347 = tpu.matmul %346, %344, %cst_288 {dimension_numbers = #tpu.dot_dimension_numbers<[1], [0], [0], [1], [0, 0, 1, 1], [], []>} : vector<32x8xf32>, vector<8x256xf32>, vector<32x256xf32> -> vector<32x256xf32>
    %c0_289 = arith.constant 0 : index
    %c1_290 = arith.constant 1 : index
    %348 = vector.load %arg15[%c0_289, %c1_290] : memref<8x290xf32, #tpu.memory_space<vmem>>, vector<8x256xf32>
    %c1_291 = arith.constant 1 : index
    %c0_292 = arith.constant 0 : index
    %c0_293 = arith.constant 0 : index
    %349 = vector.load %arg6[%c1_291, %c0_292, %c0_293] : memref<9x32x8xf32, #tpu.memory_space<vmem>>, vector<1x32x8xf32>
    %350 = vector.shape_cast %349 : vector<1x32x8xf32> to vector<32x8xf32>
    %cst_294 = arith.constant dense<0.000000e+00> : vector<32x256xf32>
    %351 = tpu.matmul %350, %348, %cst_294 {dimension_numbers = #tpu.dot_dimension_numbers<[1], [0], [0], [1], [0, 0, 1, 1], [], []>} : vector<32x8xf32>, vector<8x256xf32>, vector<32x256xf32> -> vector<32x256xf32>
    %352 = arith.addf %347, %351 : vector<32x256xf32>
    %c0_295 = arith.constant 0 : index
    %c2_296 = arith.constant 2 : index
    %353 = vector.load %arg15[%c0_295, %c2_296] : memref<8x290xf32, #tpu.memory_space<vmem>>, vector<8x256xf32>
    %354 = vector.broadcast %5 : vector<1x256xf32> to vector<8x256xf32>
    %355 = arith.mulf %353, %354 : vector<8x256xf32>
    %c2_297 = arith.constant 2 : index
    %c0_298 = arith.constant 0 : index
    %c0_299 = arith.constant 0 : index
    %356 = vector.load %arg6[%c2_297, %c0_298, %c0_299] : memref<9x32x8xf32, #tpu.memory_space<vmem>>, vector<1x32x8xf32>
    %357 = vector.shape_cast %356 : vector<1x32x8xf32> to vector<32x8xf32>
    %cst_300 = arith.constant dense<0.000000e+00> : vector<32x256xf32>
    %358 = tpu.matmul %357, %355, %cst_300 {dimension_numbers = #tpu.dot_dimension_numbers<[1], [0], [0], [1], [0, 0, 1, 1], [], []>} : vector<32x8xf32>, vector<8x256xf32>, vector<32x256xf32> -> vector<32x256xf32>
    %359 = arith.addf %352, %358 : vector<32x256xf32>
    %c0_301 = arith.constant 0 : index
    %c16_302 = arith.constant 16 : index
    %360 = vector.load %arg15[%c0_301, %c16_302] : memref<8x290xf32, #tpu.memory_space<vmem>>, vector<8x256xf32>
    %361 = vector.broadcast %4 : vector<1x256xf32> to vector<8x256xf32>
    %362 = arith.mulf %360, %361 : vector<8x256xf32>
    %c3_303 = arith.constant 3 : index
    %c0_304 = arith.constant 0 : index
    %c0_305 = arith.constant 0 : index
    %363 = vector.load %arg6[%c3_303, %c0_304, %c0_305] : memref<9x32x8xf32, #tpu.memory_space<vmem>>, vector<1x32x8xf32>
    %364 = vector.shape_cast %363 : vector<1x32x8xf32> to vector<32x8xf32>
    %cst_306 = arith.constant dense<0.000000e+00> : vector<32x256xf32>
    %365 = tpu.matmul %364, %362, %cst_306 {dimension_numbers = #tpu.dot_dimension_numbers<[1], [0], [0], [1], [0, 0, 1, 1], [], []>} : vector<32x8xf32>, vector<8x256xf32>, vector<32x256xf32> -> vector<32x256xf32>
    %366 = arith.addf %359, %365 : vector<32x256xf32>
    %c0_307 = arith.constant 0 : index
    %c17_308 = arith.constant 17 : index
    %367 = vector.load %arg15[%c0_307, %c17_308] : memref<8x290xf32, #tpu.memory_space<vmem>>, vector<8x256xf32>
    %c4_309 = arith.constant 4 : index
    %c0_310 = arith.constant 0 : index
    %c0_311 = arith.constant 0 : index
    %368 = vector.load %arg6[%c4_309, %c0_310, %c0_311] : memref<9x32x8xf32, #tpu.memory_space<vmem>>, vector<1x32x8xf32>
    %369 = vector.shape_cast %368 : vector<1x32x8xf32> to vector<32x8xf32>
    %cst_312 = arith.constant dense<0.000000e+00> : vector<32x256xf32>
    %370 = tpu.matmul %369, %367, %cst_312 {dimension_numbers = #tpu.dot_dimension_numbers<[1], [0], [0], [1], [0, 0, 1, 1], [], []>} : vector<32x8xf32>, vector<8x256xf32>, vector<32x256xf32> -> vector<32x256xf32>
    %371 = arith.addf %366, %370 : vector<32x256xf32>
    %c0_313 = arith.constant 0 : index
    %c18_314 = arith.constant 18 : index
    %372 = vector.load %arg15[%c0_313, %c18_314] : memref<8x290xf32, #tpu.memory_space<vmem>>, vector<8x256xf32>
    %373 = vector.broadcast %5 : vector<1x256xf32> to vector<8x256xf32>
    %374 = arith.mulf %372, %373 : vector<8x256xf32>
    %c5_315 = arith.constant 5 : index
    %c0_316 = arith.constant 0 : index
    %c0_317 = arith.constant 0 : index
    %375 = vector.load %arg6[%c5_315, %c0_316, %c0_317] : memref<9x32x8xf32, #tpu.memory_space<vmem>>, vector<1x32x8xf32>
    %376 = vector.shape_cast %375 : vector<1x32x8xf32> to vector<32x8xf32>
    %cst_318 = arith.constant dense<0.000000e+00> : vector<32x256xf32>
    %377 = tpu.matmul %376, %374, %cst_318 {dimension_numbers = #tpu.dot_dimension_numbers<[1], [0], [0], [1], [0, 0, 1, 1], [], []>} : vector<32x8xf32>, vector<8x256xf32>, vector<32x256xf32> -> vector<32x256xf32>
    %378 = arith.addf %371, %377 : vector<32x256xf32>
    %c0_319 = arith.constant 0 : index
    %c32_320 = arith.constant 32 : index
    %379 = vector.load %arg15[%c0_319, %c32_320] : memref<8x290xf32, #tpu.memory_space<vmem>>, vector<8x256xf32>
    %380 = vector.broadcast %4 : vector<1x256xf32> to vector<8x256xf32>
    %381 = arith.mulf %379, %380 : vector<8x256xf32>
    %c6_321 = arith.constant 6 : index
    %c0_322 = arith.constant 0 : index
    %c0_323 = arith.constant 0 : index
    %382 = vector.load %arg6[%c6_321, %c0_322, %c0_323] : memref<9x32x8xf32, #tpu.memory_space<vmem>>, vector<1x32x8xf32>
    %383 = vector.shape_cast %382 : vector<1x32x8xf32> to vector<32x8xf32>
    %cst_324 = arith.constant dense<0.000000e+00> : vector<32x256xf32>
    %384 = tpu.matmul %383, %381, %cst_324 {dimension_numbers = #tpu.dot_dimension_numbers<[1], [0], [0], [1], [0, 0, 1, 1], [], []>} : vector<32x8xf32>, vector<8x256xf32>, vector<32x256xf32> -> vector<32x256xf32>
    %385 = arith.addf %378, %384 : vector<32x256xf32>
    %c0_325 = arith.constant 0 : index
    %c33_326 = arith.constant 33 : index
    %386 = vector.load %arg15[%c0_325, %c33_326] : memref<8x290xf32, #tpu.memory_space<vmem>>, vector<8x256xf32>
    %c7_327 = arith.constant 7 : index
    %c0_328 = arith.constant 0 : index
    %c0_329 = arith.constant 0 : index
    %387 = vector.load %arg6[%c7_327, %c0_328, %c0_329] : memref<9x32x8xf32, #tpu.memory_space<vmem>>, vector<1x32x8xf32>
    %388 = vector.shape_cast %387 : vector<1x32x8xf32> to vector<32x8xf32>
    %cst_330 = arith.constant dense<0.000000e+00> : vector<32x256xf32>
    %389 = tpu.matmul %388, %386, %cst_330 {dimension_numbers = #tpu.dot_dimension_numbers<[1], [0], [0], [1], [0, 0, 1, 1], [], []>} : vector<32x8xf32>, vector<8x256xf32>, vector<32x256xf32> -> vector<32x256xf32>
    %390 = arith.addf %385, %389 : vector<32x256xf32>
    %c0_331 = arith.constant 0 : index
    %c34_332 = arith.constant 34 : index
    %391 = vector.load %arg15[%c0_331, %c34_332] : memref<8x290xf32, #tpu.memory_space<vmem>>, vector<8x256xf32>
    %392 = vector.broadcast %5 : vector<1x256xf32> to vector<8x256xf32>
    %393 = arith.mulf %391, %392 : vector<8x256xf32>
    %c8_333 = arith.constant 8 : index
    %c0_334 = arith.constant 0 : index
    %c0_335 = arith.constant 0 : index
    %394 = vector.load %arg6[%c8_333, %c0_334, %c0_335] : memref<9x32x8xf32, #tpu.memory_space<vmem>>, vector<1x32x8xf32>
    %395 = vector.shape_cast %394 : vector<1x32x8xf32> to vector<32x8xf32>
    %cst_336 = arith.constant dense<0.000000e+00> : vector<32x256xf32>
    %396 = tpu.matmul %395, %393, %cst_336 {dimension_numbers = #tpu.dot_dimension_numbers<[1], [0], [0], [1], [0, 0, 1, 1], [], []>} : vector<32x8xf32>, vector<8x256xf32>, vector<32x256xf32> -> vector<32x256xf32>
    %397 = arith.addf %390, %396 : vector<32x256xf32>
    %398 = vector.broadcast %6 : vector<32x1xf32> to vector<32x256xf32>
    %399 = arith.addf %397, %398 : vector<32x256xf32>
    %cst_337 = arith.constant 0.000000e+00 : f32
    %400 = vector.broadcast %cst_337 : f32 to vector<32x256xf32>
    %401 = arith.maximumf %399, %400 : vector<32x256xf32>
    %cst_338 = arith.constant dense<0.000000e+00> : vector<32x256xf32>
    %402 = tpu.matmul %7, %401, %cst_338 {dimension_numbers = #tpu.dot_dimension_numbers<[1], [0], [0], [1], [0, 0, 1, 1], [], []>} : vector<32x32xf32>, vector<32x256xf32>, vector<32x256xf32> -> vector<32x256xf32>
    %403 = vector.broadcast %8 : vector<32x1xf32> to vector<32x256xf32>
    %404 = arith.addf %402, %403 : vector<32x256xf32>
    %cst_339 = arith.constant 0.000000e+00 : f32
    %405 = vector.broadcast %cst_339 : f32 to vector<32x256xf32>
    %406 = arith.maximumf %404, %405 : vector<32x256xf32>
    %c0_340 = arith.constant 0 : index
    %c17_341 = arith.constant 17 : index
    %407 = vector.load %arg16[%c0_340, %c17_341] : memref<32x290xf32, #tpu.memory_space<vmem>>, vector<32x256xf32>
    tpu.vector_store %arg16[%c0_340, %c17_341], %406 {strides = array<i32>} : memref<32x290xf32, #tpu.memory_space<vmem>>, vector<32x256xf32>,
    %c0_342 = arith.constant 0 : index
    %c0_343 = arith.constant 0 : index
    %408 = vector.load %arg16[%c0_342, %c0_343] : memref<32x290xf32, #tpu.memory_space<vmem>>, vector<32x256xf32>
    %409 = vector.broadcast %4 : vector<1x256xf32> to vector<32x256xf32>
    %410 = arith.mulf %408, %409 : vector<32x256xf32>
    %c0_344 = arith.constant 0 : index
    %c0_345 = arith.constant 0 : index
    %c0_346 = arith.constant 0 : index
    %411 = vector.load %arg10[%c0_344, %c0_345, %c0_346] : memref<9x8x32xf32, #tpu.memory_space<vmem>>, vector<1x8x32xf32>
    %412 = vector.shape_cast %411 : vector<1x8x32xf32> to vector<8x32xf32>
    %cst_347 = arith.constant dense<0.000000e+00> : vector<8x256xf32>
    %413 = tpu.matmul %412, %410, %cst_347 {dimension_numbers = #tpu.dot_dimension_numbers<[1], [0], [0], [1], [0, 0, 1, 1], [], []>} : vector<8x32xf32>, vector<32x256xf32>, vector<8x256xf32> -> vector<8x256xf32>
    %c0_348 = arith.constant 0 : index
    %c1_349 = arith.constant 1 : index
    %414 = vector.load %arg16[%c0_348, %c1_349] : memref<32x290xf32, #tpu.memory_space<vmem>>, vector<32x256xf32>
    %c1_350 = arith.constant 1 : index
    %c0_351 = arith.constant 0 : index
    %c0_352 = arith.constant 0 : index
    %415 = vector.load %arg10[%c1_350, %c0_351, %c0_352] : memref<9x8x32xf32, #tpu.memory_space<vmem>>, vector<1x8x32xf32>
    %416 = vector.shape_cast %415 : vector<1x8x32xf32> to vector<8x32xf32>
    %cst_353 = arith.constant dense<0.000000e+00> : vector<8x256xf32>
    %417 = tpu.matmul %416, %414, %cst_353 {dimension_numbers = #tpu.dot_dimension_numbers<[1], [0], [0], [1], [0, 0, 1, 1], [], []>} : vector<8x32xf32>, vector<32x256xf32>, vector<8x256xf32> -> vector<8x256xf32>
    %418 = arith.addf %413, %417 : vector<8x256xf32>
    %c0_354 = arith.constant 0 : index
    %c2_355 = arith.constant 2 : index
    %419 = vector.load %arg16[%c0_354, %c2_355] : memref<32x290xf32, #tpu.memory_space<vmem>>, vector<32x256xf32>
    %420 = vector.broadcast %5 : vector<1x256xf32> to vector<32x256xf32>
    %421 = arith.mulf %419, %420 : vector<32x256xf32>
    %c2_356 = arith.constant 2 : index
    %c0_357 = arith.constant 0 : index
    %c0_358 = arith.constant 0 : index
    %422 = vector.load %arg10[%c2_356, %c0_357, %c0_358] : memref<9x8x32xf32, #tpu.memory_space<vmem>>, vector<1x8x32xf32>
    %423 = vector.shape_cast %422 : vector<1x8x32xf32> to vector<8x32xf32>
    %cst_359 = arith.constant dense<0.000000e+00> : vector<8x256xf32>
    %424 = tpu.matmul %423, %421, %cst_359 {dimension_numbers = #tpu.dot_dimension_numbers<[1], [0], [0], [1], [0, 0, 1, 1], [], []>} : vector<8x32xf32>, vector<32x256xf32>, vector<8x256xf32> -> vector<8x256xf32>
    %425 = arith.addf %418, %424 : vector<8x256xf32>
    %c0_360 = arith.constant 0 : index
    %c16_361 = arith.constant 16 : index
    %426 = vector.load %arg16[%c0_360, %c16_361] : memref<32x290xf32, #tpu.memory_space<vmem>>, vector<32x256xf32>
    %427 = vector.broadcast %4 : vector<1x256xf32> to vector<32x256xf32>
    %428 = arith.mulf %426, %427 : vector<32x256xf32>
    %c3_362 = arith.constant 3 : index
    %c0_363 = arith.constant 0 : index
    %c0_364 = arith.constant 0 : index
    %429 = vector.load %arg10[%c3_362, %c0_363, %c0_364] : memref<9x8x32xf32, #tpu.memory_space<vmem>>, vector<1x8x32xf32>
    %430 = vector.shape_cast %429 : vector<1x8x32xf32> to vector<8x32xf32>
    %cst_365 = arith.constant dense<0.000000e+00> : vector<8x256xf32>
    %431 = tpu.matmul %430, %428, %cst_365 {dimension_numbers = #tpu.dot_dimension_numbers<[1], [0], [0], [1], [0, 0, 1, 1], [], []>} : vector<8x32xf32>, vector<32x256xf32>, vector<8x256xf32> -> vector<8x256xf32>
    %432 = arith.addf %425, %431 : vector<8x256xf32>
    %c0_366 = arith.constant 0 : index
    %c17_367 = arith.constant 17 : index
    %433 = vector.load %arg16[%c0_366, %c17_367] : memref<32x290xf32, #tpu.memory_space<vmem>>, vector<32x256xf32>
    %c4_368 = arith.constant 4 : index
    %c0_369 = arith.constant 0 : index
    %c0_370 = arith.constant 0 : index
    %434 = vector.load %arg10[%c4_368, %c0_369, %c0_370] : memref<9x8x32xf32, #tpu.memory_space<vmem>>, vector<1x8x32xf32>
    %435 = vector.shape_cast %434 : vector<1x8x32xf32> to vector<8x32xf32>
    %cst_371 = arith.constant dense<0.000000e+00> : vector<8x256xf32>
    %436 = tpu.matmul %435, %433, %cst_371 {dimension_numbers = #tpu.dot_dimension_numbers<[1], [0], [0], [1], [0, 0, 1, 1], [], []>} : vector<8x32xf32>, vector<32x256xf32>, vector<8x256xf32> -> vector<8x256xf32>
    %437 = arith.addf %432, %436 : vector<8x256xf32>
    %c0_372 = arith.constant 0 : index
    %c18_373 = arith.constant 18 : index
    %438 = vector.load %arg16[%c0_372, %c18_373] : memref<32x290xf32, #tpu.memory_space<vmem>>, vector<32x256xf32>
    %439 = vector.broadcast %5 : vector<1x256xf32> to vector<32x256xf32>
    %440 = arith.mulf %438, %439 : vector<32x256xf32>
    %c5_374 = arith.constant 5 : index
    %c0_375 = arith.constant 0 : index
    %c0_376 = arith.constant 0 : index
    %441 = vector.load %arg10[%c5_374, %c0_375, %c0_376] : memref<9x8x32xf32, #tpu.memory_space<vmem>>, vector<1x8x32xf32>
    %442 = vector.shape_cast %441 : vector<1x8x32xf32> to vector<8x32xf32>
    %cst_377 = arith.constant dense<0.000000e+00> : vector<8x256xf32>
    %443 = tpu.matmul %442, %440, %cst_377 {dimension_numbers = #tpu.dot_dimension_numbers<[1], [0], [0], [1], [0, 0, 1, 1], [], []>} : vector<8x32xf32>, vector<32x256xf32>, vector<8x256xf32> -> vector<8x256xf32>
    %444 = arith.addf %437, %443 : vector<8x256xf32>
    %c0_378 = arith.constant 0 : index
    %c32_379 = arith.constant 32 : index
    %445 = vector.load %arg16[%c0_378, %c32_379] : memref<32x290xf32, #tpu.memory_space<vmem>>, vector<32x256xf32>
    %446 = vector.broadcast %4 : vector<1x256xf32> to vector<32x256xf32>
    %447 = arith.mulf %445, %446 : vector<32x256xf32>
    %c6_380 = arith.constant 6 : index
    %c0_381 = arith.constant 0 : index
    %c0_382 = arith.constant 0 : index
    %448 = vector.load %arg10[%c6_380, %c0_381, %c0_382] : memref<9x8x32xf32, #tpu.memory_space<vmem>>, vector<1x8x32xf32>
    %449 = vector.shape_cast %448 : vector<1x8x32xf32> to vector<8x32xf32>
    %cst_383 = arith.constant dense<0.000000e+00> : vector<8x256xf32>
    %450 = tpu.matmul %449, %447, %cst_383 {dimension_numbers = #tpu.dot_dimension_numbers<[1], [0], [0], [1], [0, 0, 1, 1], [], []>} : vector<8x32xf32>, vector<32x256xf32>, vector<8x256xf32> -> vector<8x256xf32>
    %451 = arith.addf %444, %450 : vector<8x256xf32>
    %c0_384 = arith.constant 0 : index
    %c33_385 = arith.constant 33 : index
    %452 = vector.load %arg16[%c0_384, %c33_385] : memref<32x290xf32, #tpu.memory_space<vmem>>, vector<32x256xf32>
    %c7_386 = arith.constant 7 : index
    %c0_387 = arith.constant 0 : index
    %c0_388 = arith.constant 0 : index
    %453 = vector.load %arg10[%c7_386, %c0_387, %c0_388] : memref<9x8x32xf32, #tpu.memory_space<vmem>>, vector<1x8x32xf32>
    %454 = vector.shape_cast %453 : vector<1x8x32xf32> to vector<8x32xf32>
    %cst_389 = arith.constant dense<0.000000e+00> : vector<8x256xf32>
    %455 = tpu.matmul %454, %452, %cst_389 {dimension_numbers = #tpu.dot_dimension_numbers<[1], [0], [0], [1], [0, 0, 1, 1], [], []>} : vector<8x32xf32>, vector<32x256xf32>, vector<8x256xf32> -> vector<8x256xf32>
    %456 = arith.addf %451, %455 : vector<8x256xf32>
    %c0_390 = arith.constant 0 : index
    %c34_391 = arith.constant 34 : index
    %457 = vector.load %arg16[%c0_390, %c34_391] : memref<32x290xf32, #tpu.memory_space<vmem>>, vector<32x256xf32>
    %458 = vector.broadcast %5 : vector<1x256xf32> to vector<32x256xf32>
    %459 = arith.mulf %457, %458 : vector<32x256xf32>
    %c8_392 = arith.constant 8 : index
    %c0_393 = arith.constant 0 : index
    %c0_394 = arith.constant 0 : index
    %460 = vector.load %arg10[%c8_392, %c0_393, %c0_394] : memref<9x8x32xf32, #tpu.memory_space<vmem>>, vector<1x8x32xf32>
    %461 = vector.shape_cast %460 : vector<1x8x32xf32> to vector<8x32xf32>
    %cst_395 = arith.constant dense<0.000000e+00> : vector<8x256xf32>
    %462 = tpu.matmul %461, %459, %cst_395 {dimension_numbers = #tpu.dot_dimension_numbers<[1], [0], [0], [1], [0, 0, 1, 1], [], []>} : vector<8x32xf32>, vector<32x256xf32>, vector<8x256xf32> -> vector<8x256xf32>
    %463 = arith.addf %456, %462 : vector<8x256xf32>
    %464 = vector.broadcast %9 : vector<8x1xf32> to vector<8x256xf32>
    %465 = arith.addf %463, %464 : vector<8x256xf32>
    %466 = vector.extract_strided_slice %465 {offsets = [0, 0], sizes = [4, 256], strides = [1, 1]} : vector<8x256xf32> to vector<4x256xf32>
    %467 = math.tanh %466 : vector<4x256xf32>
    %468 = arith.mulf %467, %13 : vector<4x256xf32>
    %469 = vector.extract_strided_slice %465 {offsets = [4, 0], sizes = [4, 256], strides = [1, 1]} : vector<8x256xf32> to vector<4x256xf32>
    %470 = vector.broadcast %3 : vector<1x256xf32> to vector<4x256xf32>
    %471 = arith.mulf %469, %470 : vector<4x256xf32>
    %cst_396 = arith.constant dense<0.000000e+00> : vector<4xf32>
    %472 = vector.multi_reduction <add>, %468, %cst_396 [1] : vector<4x256xf32> to vector<4xf32>
    %473 = vector.shape_cast %472 : vector<4xf32> to vector<4x1xf32>
    %cst_397 = arith.constant dense<0.000000e+00> : vector<1xf32>
    %474 = vector.multi_reduction <add>, %473, %cst_397 [0] : vector<4x1xf32> to vector<1xf32>
    %475 = vector.shape_cast %474 : vector<1xf32> to vector<1x1xf32>
    %c2_398 = arith.constant 2 : index
    %c0_399 = arith.constant 0 : index
    %c0_400 = arith.constant 0 : index
    %476 = vector.load %arg14[%c2_398, %c0_399, %c0_400] : memref<4x1x1xf32, #tpu.memory_space<vmem>>, vector<1x1x1xf32>
    %477 = vector.shape_cast %476 : vector<1x1x1xf32> to vector<1x1xf32>
    %478 = vector.shape_cast %475 : vector<1x1xf32> to vector<1x1x1xf32>
    tpu.vector_store %arg14[%c2_398, %c0_399, %c0_400], %478 {strides = array<i32>} : memref<4x1x1xf32, #tpu.memory_space<vmem>>, vector<1x1x1xf32>,
    %479 = arith.addf %339, %471 : vector<4x256xf32>
    %480 = math.exp %468 : vector<4x256xf32>
    %481 = arith.mulf %479, %480 : vector<4x256xf32>
    %482 = vector.broadcast %2 : vector<1x256xf32> to vector<4x256xf32>
    %483 = arith.mulf %481, %482 : vector<4x256xf32>
    %484 = arith.addf %337, %483 : vector<4x256xf32>
    %c2_401 = arith.constant 2 : index
    %c0_402 = arith.constant 0 : index
    %c0_403 = arith.constant 0 : index
    %485 = vector.load %arg13[%c2_401, %c0_402, %c0_403] : memref<4x4x256xf32, #tpu.memory_space<vmem>>, vector<1x4x256xf32>
    %486 = vector.shape_cast %485 : vector<1x4x256xf32> to vector<4x256xf32>
    %487 = vector.shape_cast %484 : vector<4x256xf32> to vector<1x4x256xf32>
    tpu.vector_store %arg13[%c2_401, %c0_402, %c0_403], %487 {strides = array<i32>} : memref<4x4x256xf32, #tpu.memory_space<vmem>>, vector<1x4x256xf32>,
    %c3_404 = arith.constant 3 : index
    %c0_405 = arith.constant 0 : index
    %c0_406 = arith.constant 0 : index
    %488 = vector.load %arg1[%c3_404, %c0_405, %c0_406] : memref<4x4x256xf32, #tpu.memory_space<vmem>>, vector<1x4x256xf32>
    %489 = vector.shape_cast %488 : vector<1x4x256xf32> to vector<4x256xf32>
    %c3_407 = arith.constant 3 : index
    %c0_408 = arith.constant 0 : index
    %c0_409 = arith.constant 0 : index
    %490 = vector.load %arg2[%c3_407, %c0_408, %c0_409] : memref<4x1x256xf32, #tpu.memory_space<vmem>>, vector<1x1x256xf32>
    %491 = vector.shape_cast %490 : vector<1x1x256xf32> to vector<1x256xf32>
    %492 = vector.broadcast %0 : vector<1x256xf32> to vector<4x256xf32>
    %493 = arith.mulf %489, %492 : vector<4x256xf32>
    %494 = vector.broadcast %2 : vector<1x256xf32> to vector<4x256xf32>
    %495 = arith.mulf %489, %494 : vector<4x256xf32>
    %c0_410 = arith.constant 0 : index
    %c17_411 = arith.constant 17 : index
    %496 = vector.load %arg15[%c0_410, %c17_411] : memref<8x290xf32, #tpu.memory_space<vmem>>, vector<4x256xf32>
    tpu.vector_store %arg15[%c0_410, %c17_411], %493 {strides = array<i32>} : memref<8x290xf32, #tpu.memory_space<vmem>>, vector<4x256xf32>,
    %c4_412 = arith.constant 4 : index
    %c17_413 = arith.constant 17 : index
    %497 = vector.load %arg15[%c4_412, %c17_413] : memref<8x290xf32, #tpu.memory_space<vmem>>, vector<1x256xf32>
    tpu.vector_store %arg15[%c4_412, %c17_413], %491 {strides = array<i32>} : memref<8x290xf32, #tpu.memory_space<vmem>>, vector<1x256xf32>,
    %c0_414 = arith.constant 0 : index
    %c0_415 = arith.constant 0 : index
    %498 = vector.load %arg15[%c0_414, %c0_415] : memref<8x290xf32, #tpu.memory_space<vmem>>, vector<8x256xf32>
    %499 = vector.broadcast %4 : vector<1x256xf32> to vector<8x256xf32>
    %500 = arith.mulf %498, %499 : vector<8x256xf32>
    %c0_416 = arith.constant 0 : index
    %c0_417 = arith.constant 0 : index
    %c0_418 = arith.constant 0 : index
    %501 = vector.load %arg6[%c0_416, %c0_417, %c0_418] : memref<9x32x8xf32, #tpu.memory_space<vmem>>, vector<1x32x8xf32>
    %502 = vector.shape_cast %501 : vector<1x32x8xf32> to vector<32x8xf32>
    %cst_419 = arith.constant dense<0.000000e+00> : vector<32x256xf32>
    %503 = tpu.matmul %502, %500, %cst_419 {dimension_numbers = #tpu.dot_dimension_numbers<[1], [0], [0], [1], [0, 0, 1, 1], [], []>} : vector<32x8xf32>, vector<8x256xf32>, vector<32x256xf32> -> vector<32x256xf32>
    %c0_420 = arith.constant 0 : index
    %c1_421 = arith.constant 1 : index
    %504 = vector.load %arg15[%c0_420, %c1_421] : memref<8x290xf32, #tpu.memory_space<vmem>>, vector<8x256xf32>
    %c1_422 = arith.constant 1 : index
    %c0_423 = arith.constant 0 : index
    %c0_424 = arith.constant 0 : index
    %505 = vector.load %arg6[%c1_422, %c0_423, %c0_424] : memref<9x32x8xf32, #tpu.memory_space<vmem>>, vector<1x32x8xf32>
    %506 = vector.shape_cast %505 : vector<1x32x8xf32> to vector<32x8xf32>
    %cst_425 = arith.constant dense<0.000000e+00> : vector<32x256xf32>
    %507 = tpu.matmul %506, %504, %cst_425 {dimension_numbers = #tpu.dot_dimension_numbers<[1], [0], [0], [1], [0, 0, 1, 1], [], []>} : vector<32x8xf32>, vector<8x256xf32>, vector<32x256xf32> -> vector<32x256xf32>
    %508 = arith.addf %503, %507 : vector<32x256xf32>
    %c0_426 = arith.constant 0 : index
    %c2_427 = arith.constant 2 : index
    %509 = vector.load %arg15[%c0_426, %c2_427] : memref<8x290xf32, #tpu.memory_space<vmem>>, vector<8x256xf32>
    %510 = vector.broadcast %5 : vector<1x256xf32> to vector<8x256xf32>
    %511 = arith.mulf %509, %510 : vector<8x256xf32>
    %c2_428 = arith.constant 2 : index
    %c0_429 = arith.constant 0 : index
    %c0_430 = arith.constant 0 : index
    %512 = vector.load %arg6[%c2_428, %c0_429, %c0_430] : memref<9x32x8xf32, #tpu.memory_space<vmem>>, vector<1x32x8xf32>
    %513 = vector.shape_cast %512 : vector<1x32x8xf32> to vector<32x8xf32>
    %cst_431 = arith.constant dense<0.000000e+00> : vector<32x256xf32>
    %514 = tpu.matmul %513, %511, %cst_431 {dimension_numbers = #tpu.dot_dimension_numbers<[1], [0], [0], [1], [0, 0, 1, 1], [], []>} : vector<32x8xf32>, vector<8x256xf32>, vector<32x256xf32> -> vector<32x256xf32>
    %515 = arith.addf %508, %514 : vector<32x256xf32>
    %c0_432 = arith.constant 0 : index
    %c16_433 = arith.constant 16 : index
    %516 = vector.load %arg15[%c0_432, %c16_433] : memref<8x290xf32, #tpu.memory_space<vmem>>, vector<8x256xf32>
    %517 = vector.broadcast %4 : vector<1x256xf32> to vector<8x256xf32>
    %518 = arith.mulf %516, %517 : vector<8x256xf32>
    %c3_434 = arith.constant 3 : index
    %c0_435 = arith.constant 0 : index
    %c0_436 = arith.constant 0 : index
    %519 = vector.load %arg6[%c3_434, %c0_435, %c0_436] : memref<9x32x8xf32, #tpu.memory_space<vmem>>, vector<1x32x8xf32>
    %520 = vector.shape_cast %519 : vector<1x32x8xf32> to vector<32x8xf32>
    %cst_437 = arith.constant dense<0.000000e+00> : vector<32x256xf32>
    %521 = tpu.matmul %520, %518, %cst_437 {dimension_numbers = #tpu.dot_dimension_numbers<[1], [0], [0], [1], [0, 0, 1, 1], [], []>} : vector<32x8xf32>, vector<8x256xf32>, vector<32x256xf32> -> vector<32x256xf32>
    %522 = arith.addf %515, %521 : vector<32x256xf32>
    %c0_438 = arith.constant 0 : index
    %c17_439 = arith.constant 17 : index
    %523 = vector.load %arg15[%c0_438, %c17_439] : memref<8x290xf32, #tpu.memory_space<vmem>>, vector<8x256xf32>
    %c4_440 = arith.constant 4 : index
    %c0_441 = arith.constant 0 : index
    %c0_442 = arith.constant 0 : index
    %524 = vector.load %arg6[%c4_440, %c0_441, %c0_442] : memref<9x32x8xf32, #tpu.memory_space<vmem>>, vector<1x32x8xf32>
    %525 = vector.shape_cast %524 : vector<1x32x8xf32> to vector<32x8xf32>
    %cst_443 = arith.constant dense<0.000000e+00> : vector<32x256xf32>
    %526 = tpu.matmul %525, %523, %cst_443 {dimension_numbers = #tpu.dot_dimension_numbers<[1], [0], [0], [1], [0, 0, 1, 1], [], []>} : vector<32x8xf32>, vector<8x256xf32>, vector<32x256xf32> -> vector<32x256xf32>
    %527 = arith.addf %522, %526 : vector<32x256xf32>
    %c0_444 = arith.constant 0 : index
    %c18_445 = arith.constant 18 : index
    %528 = vector.load %arg15[%c0_444, %c18_445] : memref<8x290xf32, #tpu.memory_space<vmem>>, vector<8x256xf32>
    %529 = vector.broadcast %5 : vector<1x256xf32> to vector<8x256xf32>
    %530 = arith.mulf %528, %529 : vector<8x256xf32>
    %c5_446 = arith.constant 5 : index
    %c0_447 = arith.constant 0 : index
    %c0_448 = arith.constant 0 : index
    %531 = vector.load %arg6[%c5_446, %c0_447, %c0_448] : memref<9x32x8xf32, #tpu.memory_space<vmem>>, vector<1x32x8xf32>
    %532 = vector.shape_cast %531 : vector<1x32x8xf32> to vector<32x8xf32>
    %cst_449 = arith.constant dense<0.000000e+00> : vector<32x256xf32>
    %533 = tpu.matmul %532, %530, %cst_449 {dimension_numbers = #tpu.dot_dimension_numbers<[1], [0], [0], [1], [0, 0, 1, 1], [], []>} : vector<32x8xf32>, vector<8x256xf32>, vector<32x256xf32> -> vector<32x256xf32>
    %534 = arith.addf %527, %533 : vector<32x256xf32>
    %c0_450 = arith.constant 0 : index
    %c32_451 = arith.constant 32 : index
    %535 = vector.load %arg15[%c0_450, %c32_451] : memref<8x290xf32, #tpu.memory_space<vmem>>, vector<8x256xf32>
    %536 = vector.broadcast %4 : vector<1x256xf32> to vector<8x256xf32>
    %537 = arith.mulf %535, %536 : vector<8x256xf32>
    %c6_452 = arith.constant 6 : index
    %c0_453 = arith.constant 0 : index
    %c0_454 = arith.constant 0 : index
    %538 = vector.load %arg6[%c6_452, %c0_453, %c0_454] : memref<9x32x8xf32, #tpu.memory_space<vmem>>, vector<1x32x8xf32>
    %539 = vector.shape_cast %538 : vector<1x32x8xf32> to vector<32x8xf32>
    %cst_455 = arith.constant dense<0.000000e+00> : vector<32x256xf32>
    %540 = tpu.matmul %539, %537, %cst_455 {dimension_numbers = #tpu.dot_dimension_numbers<[1], [0], [0], [1], [0, 0, 1, 1], [], []>} : vector<32x8xf32>, vector<8x256xf32>, vector<32x256xf32> -> vector<32x256xf32>
    %541 = arith.addf %534, %540 : vector<32x256xf32>
    %c0_456 = arith.constant 0 : index
    %c33_457 = arith.constant 33 : index
    %542 = vector.load %arg15[%c0_456, %c33_457] : memref<8x290xf32, #tpu.memory_space<vmem>>, vector<8x256xf32>
    %c7_458 = arith.constant 7 : index
    %c0_459 = arith.constant 0 : index
    %c0_460 = arith.constant 0 : index
    %543 = vector.load %arg6[%c7_458, %c0_459, %c0_460] : memref<9x32x8xf32, #tpu.memory_space<vmem>>, vector<1x32x8xf32>
    %544 = vector.shape_cast %543 : vector<1x32x8xf32> to vector<32x8xf32>
    %cst_461 = arith.constant dense<0.000000e+00> : vector<32x256xf32>
    %545 = tpu.matmul %544, %542, %cst_461 {dimension_numbers = #tpu.dot_dimension_numbers<[1], [0], [0], [1], [0, 0, 1, 1], [], []>} : vector<32x8xf32>, vector<8x256xf32>, vector<32x256xf32> -> vector<32x256xf32>
    %546 = arith.addf %541, %545 : vector<32x256xf32>
    %c0_462 = arith.constant 0 : index
    %c34_463 = arith.constant 34 : index
    %547 = vector.load %arg15[%c0_462, %c34_463] : memref<8x290xf32, #tpu.memory_space<vmem>>, vector<8x256xf32>
    %548 = vector.broadcast %5 : vector<1x256xf32> to vector<8x256xf32>
    %549 = arith.mulf %547, %548 : vector<8x256xf32>
    %c8_464 = arith.constant 8 : index
    %c0_465 = arith.constant 0 : index
    %c0_466 = arith.constant 0 : index
    %550 = vector.load %arg6[%c8_464, %c0_465, %c0_466] : memref<9x32x8xf32, #tpu.memory_space<vmem>>, vector<1x32x8xf32>
    %551 = vector.shape_cast %550 : vector<1x32x8xf32> to vector<32x8xf32>
    %cst_467 = arith.constant dense<0.000000e+00> : vector<32x256xf32>
    %552 = tpu.matmul %551, %549, %cst_467 {dimension_numbers = #tpu.dot_dimension_numbers<[1], [0], [0], [1], [0, 0, 1, 1], [], []>} : vector<32x8xf32>, vector<8x256xf32>, vector<32x256xf32> -> vector<32x256xf32>
    %553 = arith.addf %546, %552 : vector<32x256xf32>
    %554 = vector.broadcast %6 : vector<32x1xf32> to vector<32x256xf32>
    %555 = arith.addf %553, %554 : vector<32x256xf32>
    %cst_468 = arith.constant 0.000000e+00 : f32
    %556 = vector.broadcast %cst_468 : f32 to vector<32x256xf32>
    %557 = arith.maximumf %555, %556 : vector<32x256xf32>
    %cst_469 = arith.constant dense<0.000000e+00> : vector<32x256xf32>
    %558 = tpu.matmul %7, %557, %cst_469 {dimension_numbers = #tpu.dot_dimension_numbers<[1], [0], [0], [1], [0, 0, 1, 1], [], []>} : vector<32x32xf32>, vector<32x256xf32>, vector<32x256xf32> -> vector<32x256xf32>
    %559 = vector.broadcast %8 : vector<32x1xf32> to vector<32x256xf32>
    %560 = arith.addf %558, %559 : vector<32x256xf32>
    %cst_470 = arith.constant 0.000000e+00 : f32
    %561 = vector.broadcast %cst_470 : f32 to vector<32x256xf32>
    %562 = arith.maximumf %560, %561 : vector<32x256xf32>
    %c0_471 = arith.constant 0 : index
    %c17_472 = arith.constant 17 : index
    %563 = vector.load %arg16[%c0_471, %c17_472] : memref<32x290xf32, #tpu.memory_space<vmem>>, vector<32x256xf32>
    tpu.vector_store %arg16[%c0_471, %c17_472], %562 {strides = array<i32>} : memref<32x290xf32, #tpu.memory_space<vmem>>, vector<32x256xf32>,
    %c0_473 = arith.constant 0 : index
    %c0_474 = arith.constant 0 : index
    %564 = vector.load %arg16[%c0_473, %c0_474] : memref<32x290xf32, #tpu.memory_space<vmem>>, vector<32x256xf32>
    %565 = vector.broadcast %4 : vector<1x256xf32> to vector<32x256xf32>
    %566 = arith.mulf %564, %565 : vector<32x256xf32>
    %c0_475 = arith.constant 0 : index
    %c0_476 = arith.constant 0 : index
    %c0_477 = arith.constant 0 : index
    %567 = vector.load %arg10[%c0_475, %c0_476, %c0_477] : memref<9x8x32xf32, #tpu.memory_space<vmem>>, vector<1x8x32xf32>
    %568 = vector.shape_cast %567 : vector<1x8x32xf32> to vector<8x32xf32>
    %cst_478 = arith.constant dense<0.000000e+00> : vector<8x256xf32>
    %569 = tpu.matmul %568, %566, %cst_478 {dimension_numbers = #tpu.dot_dimension_numbers<[1], [0], [0], [1], [0, 0, 1, 1], [], []>} : vector<8x32xf32>, vector<32x256xf32>, vector<8x256xf32> -> vector<8x256xf32>
    %c0_479 = arith.constant 0 : index
    %c1_480 = arith.constant 1 : index
    %570 = vector.load %arg16[%c0_479, %c1_480] : memref<32x290xf32, #tpu.memory_space<vmem>>, vector<32x256xf32>
    %c1_481 = arith.constant 1 : index
    %c0_482 = arith.constant 0 : index
    %c0_483 = arith.constant 0 : index
    %571 = vector.load %arg10[%c1_481, %c0_482, %c0_483] : memref<9x8x32xf32, #tpu.memory_space<vmem>>, vector<1x8x32xf32>
    %572 = vector.shape_cast %571 : vector<1x8x32xf32> to vector<8x32xf32>
    %cst_484 = arith.constant dense<0.000000e+00> : vector<8x256xf32>
    %573 = tpu.matmul %572, %570, %cst_484 {dimension_numbers = #tpu.dot_dimension_numbers<[1], [0], [0], [1], [0, 0, 1, 1], [], []>} : vector<8x32xf32>, vector<32x256xf32>, vector<8x256xf32> -> vector<8x256xf32>
    %574 = arith.addf %569, %573 : vector<8x256xf32>
    %c0_485 = arith.constant 0 : index
    %c2_486 = arith.constant 2 : index
    %575 = vector.load %arg16[%c0_485, %c2_486] : memref<32x290xf32, #tpu.memory_space<vmem>>, vector<32x256xf32>
    %576 = vector.broadcast %5 : vector<1x256xf32> to vector<32x256xf32>
    %577 = arith.mulf %575, %576 : vector<32x256xf32>
    %c2_487 = arith.constant 2 : index
    %c0_488 = arith.constant 0 : index
    %c0_489 = arith.constant 0 : index
    %578 = vector.load %arg10[%c2_487, %c0_488, %c0_489] : memref<9x8x32xf32, #tpu.memory_space<vmem>>, vector<1x8x32xf32>
    %579 = vector.shape_cast %578 : vector<1x8x32xf32> to vector<8x32xf32>
    %cst_490 = arith.constant dense<0.000000e+00> : vector<8x256xf32>
    %580 = tpu.matmul %579, %577, %cst_490 {dimension_numbers = #tpu.dot_dimension_numbers<[1], [0], [0], [1], [0, 0, 1, 1], [], []>} : vector<8x32xf32>, vector<32x256xf32>, vector<8x256xf32> -> vector<8x256xf32>
    %581 = arith.addf %574, %580 : vector<8x256xf32>
    %c0_491 = arith.constant 0 : index
    %c16_492 = arith.constant 16 : index
    %582 = vector.load %arg16[%c0_491, %c16_492] : memref<32x290xf32, #tpu.memory_space<vmem>>, vector<32x256xf32>
    %583 = vector.broadcast %4 : vector<1x256xf32> to vector<32x256xf32>
    %584 = arith.mulf %582, %583 : vector<32x256xf32>
    %c3_493 = arith.constant 3 : index
    %c0_494 = arith.constant 0 : index
    %c0_495 = arith.constant 0 : index
    %585 = vector.load %arg10[%c3_493, %c0_494, %c0_495] : memref<9x8x32xf32, #tpu.memory_space<vmem>>, vector<1x8x32xf32>
    %586 = vector.shape_cast %585 : vector<1x8x32xf32> to vector<8x32xf32>
    %cst_496 = arith.constant dense<0.000000e+00> : vector<8x256xf32>
    %587 = tpu.matmul %586, %584, %cst_496 {dimension_numbers = #tpu.dot_dimension_numbers<[1], [0], [0], [1], [0, 0, 1, 1], [], []>} : vector<8x32xf32>, vector<32x256xf32>, vector<8x256xf32> -> vector<8x256xf32>
    %588 = arith.addf %581, %587 : vector<8x256xf32>
    %c0_497 = arith.constant 0 : index
    %c17_498 = arith.constant 17 : index
    %589 = vector.load %arg16[%c0_497, %c17_498] : memref<32x290xf32, #tpu.memory_space<vmem>>, vector<32x256xf32>
    %c4_499 = arith.constant 4 : index
    %c0_500 = arith.constant 0 : index
    %c0_501 = arith.constant 0 : index
    %590 = vector.load %arg10[%c4_499, %c0_500, %c0_501] : memref<9x8x32xf32, #tpu.memory_space<vmem>>, vector<1x8x32xf32>
    %591 = vector.shape_cast %590 : vector<1x8x32xf32> to vector<8x32xf32>
    %cst_502 = arith.constant dense<0.000000e+00> : vector<8x256xf32>
    %592 = tpu.matmul %591, %589, %cst_502 {dimension_numbers = #tpu.dot_dimension_numbers<[1], [0], [0], [1], [0, 0, 1, 1], [], []>} : vector<8x32xf32>, vector<32x256xf32>, vector<8x256xf32> -> vector<8x256xf32>
    %593 = arith.addf %588, %592 : vector<8x256xf32>
    %c0_503 = arith.constant 0 : index
    %c18_504 = arith.constant 18 : index
    %594 = vector.load %arg16[%c0_503, %c18_504] : memref<32x290xf32, #tpu.memory_space<vmem>>, vector<32x256xf32>
    %595 = vector.broadcast %5 : vector<1x256xf32> to vector<32x256xf32>
    %596 = arith.mulf %594, %595 : vector<32x256xf32>
    %c5_505 = arith.constant 5 : index
    %c0_506 = arith.constant 0 : index
    %c0_507 = arith.constant 0 : index
    %597 = vector.load %arg10[%c5_505, %c0_506, %c0_507] : memref<9x8x32xf32, #tpu.memory_space<vmem>>, vector<1x8x32xf32>
    %598 = vector.shape_cast %597 : vector<1x8x32xf32> to vector<8x32xf32>
    %cst_508 = arith.constant dense<0.000000e+00> : vector<8x256xf32>
    %599 = tpu.matmul %598, %596, %cst_508 {dimension_numbers = #tpu.dot_dimension_numbers<[1], [0], [0], [1], [0, 0, 1, 1], [], []>} : vector<8x32xf32>, vector<32x256xf32>, vector<8x256xf32> -> vector<8x256xf32>
    %600 = arith.addf %593, %599 : vector<8x256xf32>
    %c0_509 = arith.constant 0 : index
    %c32_510 = arith.constant 32 : index
    %601 = vector.load %arg16[%c0_509, %c32_510] : memref<32x290xf32, #tpu.memory_space<vmem>>, vector<32x256xf32>
    %602 = vector.broadcast %4 : vector<1x256xf32> to vector<32x256xf32>
    %603 = arith.mulf %601, %602 : vector<32x256xf32>
    %c6_511 = arith.constant 6 : index
    %c0_512 = arith.constant 0 : index
    %c0_513 = arith.constant 0 : index
    %604 = vector.load %arg10[%c6_511, %c0_512, %c0_513] : memref<9x8x32xf32, #tpu.memory_space<vmem>>, vector<1x8x32xf32>
    %605 = vector.shape_cast %604 : vector<1x8x32xf32> to vector<8x32xf32>
    %cst_514 = arith.constant dense<0.000000e+00> : vector<8x256xf32>
    %606 = tpu.matmul %605, %603, %cst_514 {dimension_numbers = #tpu.dot_dimension_numbers<[1], [0], [0], [1], [0, 0, 1, 1], [], []>} : vector<8x32xf32>, vector<32x256xf32>, vector<8x256xf32> -> vector<8x256xf32>
    %607 = arith.addf %600, %606 : vector<8x256xf32>
    %c0_515 = arith.constant 0 : index
    %c33_516 = arith.constant 33 : index
    %608 = vector.load %arg16[%c0_515, %c33_516] : memref<32x290xf32, #tpu.memory_space<vmem>>, vector<32x256xf32>
    %c7_517 = arith.constant 7 : index
    %c0_518 = arith.constant 0 : index
    %c0_519 = arith.constant 0 : index
    %609 = vector.load %arg10[%c7_517, %c0_518, %c0_519] : memref<9x8x32xf32, #tpu.memory_space<vmem>>, vector<1x8x32xf32>
    %610 = vector.shape_cast %609 : vector<1x8x32xf32> to vector<8x32xf32>
    %cst_520 = arith.constant dense<0.000000e+00> : vector<8x256xf32>
    %611 = tpu.matmul %610, %608, %cst_520 {dimension_numbers = #tpu.dot_dimension_numbers<[1], [0], [0], [1], [0, 0, 1, 1], [], []>} : vector<8x32xf32>, vector<32x256xf32>, vector<8x256xf32> -> vector<8x256xf32>
    %612 = arith.addf %607, %611 : vector<8x256xf32>
    %c0_521 = arith.constant 0 : index
    %c34_522 = arith.constant 34 : index
    %613 = vector.load %arg16[%c0_521, %c34_522] : memref<32x290xf32, #tpu.memory_space<vmem>>, vector<32x256xf32>
    %614 = vector.broadcast %5 : vector<1x256xf32> to vector<32x256xf32>
    %615 = arith.mulf %613, %614 : vector<32x256xf32>
    %c8_523 = arith.constant 8 : index
    %c0_524 = arith.constant 0 : index
    %c0_525 = arith.constant 0 : index
    %616 = vector.load %arg10[%c8_523, %c0_524, %c0_525] : memref<9x8x32xf32, #tpu.memory_space<vmem>>, vector<1x8x32xf32>
    %617 = vector.shape_cast %616 : vector<1x8x32xf32> to vector<8x32xf32>
    %cst_526 = arith.constant dense<0.000000e+00> : vector<8x256xf32>
    %618 = tpu.matmul %617, %615, %cst_526 {dimension_numbers = #tpu.dot_dimension_numbers<[1], [0], [0], [1], [0, 0, 1, 1], [], []>} : vector<8x32xf32>, vector<32x256xf32>, vector<8x256xf32> -> vector<8x256xf32>
    %619 = arith.addf %612, %618 : vector<8x256xf32>
    %620 = vector.broadcast %9 : vector<8x1xf32> to vector<8x256xf32>
    %621 = arith.addf %619, %620 : vector<8x256xf32>
    %622 = vector.extract_strided_slice %621 {offsets = [0, 0], sizes = [4, 256], strides = [1, 1]} : vector<8x256xf32> to vector<4x256xf32>
    %623 = math.tanh %622 : vector<4x256xf32>
    %624 = arith.mulf %623, %13 : vector<4x256xf32>
    %625 = vector.extract_strided_slice %621 {offsets = [4, 0], sizes = [4, 256], strides = [1, 1]} : vector<8x256xf32> to vector<4x256xf32>
    %626 = vector.broadcast %3 : vector<1x256xf32> to vector<4x256xf32>
    %627 = arith.mulf %625, %626 : vector<4x256xf32>
    %cst_527 = arith.constant dense<0.000000e+00> : vector<4xf32>
    %628 = vector.multi_reduction <add>, %624, %cst_527 [1] : vector<4x256xf32> to vector<4xf32>
    %629 = vector.shape_cast %628 : vector<4xf32> to vector<4x1xf32>
    %cst_528 = arith.constant dense<0.000000e+00> : vector<1xf32>
    %630 = vector.multi_reduction <add>, %629, %cst_528 [0] : vector<4x1xf32> to vector<1xf32>
    %631 = vector.shape_cast %630 : vector<1xf32> to vector<1x1xf32>
    %c3_529 = arith.constant 3 : index
    %c0_530 = arith.constant 0 : index
    %c0_531 = arith.constant 0 : index
    %632 = vector.load %arg14[%c3_529, %c0_530, %c0_531] : memref<4x1x1xf32, #tpu.memory_space<vmem>>, vector<1x1x1xf32>
    %633 = vector.shape_cast %632 : vector<1x1x1xf32> to vector<1x1xf32>
    %634 = vector.shape_cast %631 : vector<1x1xf32> to vector<1x1x1xf32>
    tpu.vector_store %arg14[%c3_529, %c0_530, %c0_531], %634 {strides = array<i32>} : memref<4x1x1xf32, #tpu.memory_space<vmem>>, vector<1x1x1xf32>,
    %635 = arith.addf %495, %627 : vector<4x256xf32>
    %636 = math.exp %624 : vector<4x256xf32>
    %637 = arith.mulf %635, %636 : vector<4x256xf32>
    %638 = vector.broadcast %2 : vector<1x256xf32> to vector<4x256xf32>
    %639 = arith.mulf %637, %638 : vector<4x256xf32>
    %640 = arith.addf %493, %639 : vector<4x256xf32>
    %c3_532 = arith.constant 3 : index
    %c0_533 = arith.constant 0 : index
    %c0_534 = arith.constant 0 : index
    %641 = vector.load %arg13[%c3_532, %c0_533, %c0_534] : memref<4x4x256xf32, #tpu.memory_space<vmem>>, vector<1x4x256xf32>
    %642 = vector.shape_cast %641 : vector<1x4x256xf32> to vector<4x256xf32>
    %643 = vector.shape_cast %640 : vector<4x256xf32> to vector<1x4x256xf32>
    tpu.vector_store %arg13[%c3_532, %c0_533, %c0_534], %643 {strides = array<i32>} : memref<4x4x256xf32, #tpu.memory_space<vmem>>, vector<1x4x256xf32>,
    return
  }
  func.func @transform_0(%arg0: i32) -> (i32, i32, i32) {
    %c0_i32 = arith.constant 0 : i32
    %c0_i32_0 = arith.constant 0 : i32
    %c0_i32_1 = arith.constant 0 : i32
    return %arg0, %c0_i32, %c0_i32_0 : i32, i32, i32
  }
  func.func @transform_1(%arg0: i32) -> (i32, i32, i32) {
    %c0_i32 = arith.constant 0 : i32
    %c0_i32_0 = arith.constant 0 : i32
    %c0_i32_1 = arith.constant 0 : i32
    return %arg0, %c0_i32, %c0_i32_0 : i32, i32, i32
  }
  func.func @transform_2(%arg0: i32) -> (i32, i32) {
    %c0_i32 = arith.constant 0 : i32
    %c0_i32_0 = arith.constant 0 : i32
    %c0_i32_1 = arith.constant 0 : i32
    return %c0_i32, %c0_i32_0 : i32, i32
  }
  func.func @transform_3(%arg0: i32) -> (i32, i32) {
    %c0_i32 = arith.constant 0 : i32
    %c0_i32_0 = arith.constant 0 : i32
    %c0_i32_1 = arith.constant 0 : i32
    return %c0_i32, %c0_i32_0 : i32, i32
  }
  func.func @transform_4(%arg0: i32) -> (i32, i32) {
    %c0_i32 = arith.constant 0 : i32
    %c0_i32_0 = arith.constant 0 : i32
    %c0_i32_1 = arith.constant 0 : i32
    return %c0_i32, %c0_i32_0 : i32, i32
  }
  func.func @transform_5(%arg0: i32) -> (i32, i32, i32) {
    %c0_i32 = arith.constant 0 : i32
    %c0_i32_0 = arith.constant 0 : i32
    %c0_i32_1 = arith.constant 0 : i32
    %c0_i32_2 = arith.constant 0 : i32
    return %c0_i32, %c0_i32_0, %c0_i32_1 : i32, i32, i32
  }
  func.func @transform_6(%arg0: i32) -> (i32, i32) {
    %c0_i32 = arith.constant 0 : i32
    %c0_i32_0 = arith.constant 0 : i32
    %c0_i32_1 = arith.constant 0 : i32
    return %c0_i32, %c0_i32_0 : i32, i32
  }
  func.func @transform_7(%arg0: i32) -> (i32, i32) {
    %c0_i32 = arith.constant 0 : i32
    %c0_i32_0 = arith.constant 0 : i32
    %c0_i32_1 = arith.constant 0 : i32
    return %c0_i32, %c0_i32_0 : i32, i32
  }
  func.func @transform_8(%arg0: i32) -> (i32, i32) {
    %c0_i32 = arith.constant 0 : i32
    %c0_i32_0 = arith.constant 0 : i32
    %c0_i32_1 = arith.constant 0 : i32
    return %c0_i32, %c0_i32_0 : i32, i32
  }
  func.func @transform_9(%arg0: i32) -> (i32, i32, i32) {
    %c0_i32 = arith.constant 0 : i32
    %c0_i32_0 = arith.constant 0 : i32
    %c0_i32_1 = arith.constant 0 : i32
    %c0_i32_2 = arith.constant 0 : i32
    return %c0_i32, %c0_i32_0, %c0_i32_1 : i32, i32, i32
  }
  func.func @transform_10(%arg0: i32) -> (i32, i32) {
    %c0_i32 = arith.constant 0 : i32
    %c0_i32_0 = arith.constant 0 : i32
    %c0_i32_1 = arith.constant 0 : i32
    return %c0_i32, %c0_i32_0 : i32, i32
  }
  func.func @transform_11(%arg0: i32) -> (i32, i32) {
    %c0_i32 = arith.constant 0 : i32
    %c0_i32_0 = arith.constant 0 : i32
    %c0_i32_1 = arith.constant 0 : i32
    return %c0_i32, %c0_i32_0 : i32, i32
  }
  func.func @transform_12(%arg0: i32) -> (i32, i32, i32) {
    %c0_i32 = arith.constant 0 : i32
    %c0_i32_0 = arith.constant 0 : i32
    %c0_i32_1 = arith.constant 0 : i32
    return %arg0, %c0_i32, %c0_i32_0 : i32, i32, i32
  }
  func.func @transform_13(%arg0: i32) -> (i32, i32, i32) {
    %c0_i32 = arith.constant 0 : i32
    %c0_i32_0 = arith.constant 0 : i32
    %c0_i32_1 = arith.constant 0 : i32
    return %arg0, %c0_i32, %c0_i32_0 : i32, i32, i32
  }
}

</mosaic_0001>

<bundles_post_ra>
// kernel: tpu_custom_call.1
= control target key start
LH: loop header
LB: loop body
LE: loop exit
PB: predicated region body
PF: predicated region fallthrough
CT: control target
= control target key end

     0   :  { %s16782_s0 = inlined_call_operand.vmem [shape: f32[8,4,256], index: 0, kind: input, shape index: {}]   ;;  %s16783_s1 = inlined_call_operand.vmem [shape: f32[8,1,256], index: 1, kind: input, shape index: {}]   ;;  %s16784_s2 = inlined_call_operand.vmem [shape: f32[1,256], index: 2, kind: input, shape index: {}]   ;;  %s16785_s3 = inlined_call_operand.vmem [shape: f32[1,256], index: 3, kind: input, shape index: {}]   ;;  %s16786_s4 = inlined_call_operand.vmem [shape: f32[3,256], index: 4, kind: input, shape index: {}]   ;;  %s16787_s5 = inlined_call_operand.vmem [shape: f32[9,32,8], index: 5, kind: input, shape index: {}]   ;;  %s16788_s6 = inlined_call_operand.vmem [shape: f32[32,1], index: 6, kind: input, shape index: {}]   ;;  %s16789_s7 = inlined_call_operand.vmem [shape: f32[32,32], index: 7, kind: input, shape index: {}]   ;;  %s16790_s8 = inlined_call_operand.vmem [shape: f32[32,1], index: 8, kind: input, shape index: {}]   ;;  %s16791_s9 = inlined_call_operand.vmem [shape: f32[9,8,32], index: 9, kind: input, shape index: {}]   ;;  %s16792_s10 = inlined_call_operand.vmem [shape: f32[8,1], index: 10, kind: input, shape index: {}]   ;;  %s16793_s11 = inlined_call_operand.vmem [shape: f32[4,1], index: 11, kind: input, shape index: {}]   ;;  %s16794_s12 = inlined_call_operand.hbm [shape: f32[8,4,256], index: 12, kind: output, shape index: {0}]   ;;  %s16795_s13 = inlined_call_operand.vmem [shape: f32[8,1,1], index: 13, kind: output, shape index: {1}]  }
   0x1   :  { %16829 = sst [smem:[#allocation21_spill]] %s16782_s0 }
   0x2   :  { %16830 = sst [smem:[#allocation22_spill]] %s16783_s1 }
   0x3   :  { %16831 = sst [smem:[#allocation23_spill]] %s16786_s4 }
   0x4   :  { %16832 = sst [smem:[#allocation24_spill]] %s16788_s6 }
   0x5   :  { %16833 = sst [smem:[#allocation25_spill]] %s16790_s8 }
   0x6   :  { %19 = vsyncpa [#allocation5], 0 }
   0x7   :  { %21 = vsyncpa [#allocation5 + $0x1], 0  ;;  %s13120_s25 = smov 0   ;;  %s13122_s26 = smov 0  }
   0x8   :  { %s13124_s27 = smov 0   ;;  %s13126_s28 = smov 0  }
   0x9 LB: > { %16834 = sst [smem:[#allocation7_spill]] %s13017_s25  ;;  %s13141_s29 = sadd.s32 4294967295, %s13029_s28   ;;  %s13029_s28 = sphi %s13126_s28, %s16893_s28   ;;  %s13025_s27 = sphi %s13124_s27, %s16895_s27   ;;  %s13021_s26 = sphi %s13122_s26, %s16897_s26   ;;  %s13017_s25 = sphi %s13120_s25, %s16896_s25  }
   0xa   : > { %16835 = sst [smem:[#allocation8_spill]] %s13025_s27  ;;  %s10870_s30 = sadd.s32 4294967294, %s13029_s28  }
   0xb   : > { %s13145_s14 = sadd.s32 1, %s13029_s28   ;;  %s296_s15 = sadd.s32 1, %s13025_s27 }
   0xc   : > { %16836 = sst [smem:[#allocation9_spill]] %s13145_s14  ;;  %s293_s16 = ssub.s32 %s13029_s28, %s13145_s14 }
   0xd   : > { %p306_p0 = scmp.ne.s32.totalorder %s13025_s27, %s13021_s26  ;;  %p294_p1 = scmp.eq.s32.totalorder %s293_s16, 0 }
   0xe   : > { %p307_p2 = scmp.eq.s32.totalorder %s13141_s29, 1  ;;  %p312_p3 = scmp.ne.s32.totalorder %s13021_s26, %s13017_s25 }
   0xf   : > { %p313_p4 = scmp.eq.s32.totalorder %s10870_s30, 1  ;;  %p10873_p7 = scmp.ge.s32.totalorder %s13029_s28, 1 }
  0x10   : > { %s13156_s17 = scalar_select %p294_p1, %s13025_s27, %s296_s15  }
  0x11   : > { %p13158_p5 = por %p307_p2, %p306_p0  ;;  %p13162_p6 = por %p313_p4, %p312_p3 }
  0x12   : > { %16837 = sst [smem:[#allocation10_spill]] %s13156_s17  ;;  %p406_p8 = scmp.lt.s32.totalorder %s13029_s28, 3 }
  0x13   : > { %s16839_s19 = scalar_select %p13162_p6, 1, 0 }
  0x14   : > { %p407_p9 = pnand %p10873_p7, %p406_p8 }
  0x15   : > { %16840 = sst [smem:[#allocation11_spill]] %s16839_s19 }
  0x16   : > { %410 = sbr.rel (%p407_p9) target bundleno = 4421 (0x1145), region = 68 }
  0x1d   : > { %s10875_s20 = sshll.u32 %s13141_s29, 2  ;;  %v505_v0 = vlaneseq  ;;  %vm519_vm0 = vcmask 277504   ;;  %v16815_v1 = vmov 0.0   ;;  %vm521_vm1 = vcmask 138240   ;;  %v479_v3 = vld [vmem:[%s16784_s2] sm:$0x3] }
  0x1e   : > { %p461_p10 = scmp.lt.s32.totalorder %s10875_s20, 7  ;;  %517 = vst [vmem:[#allocation2] sm:$0xff] %v16815_v1  ;;  %518 = vst [vmem:[#allocation2 + $0x8] sm:$0xff] %v16815_v1  ;;  %701 = vmatprep.mubr.f32.mxu0 %v16815_v1  ;;  %1917 = vmatprep.mubr.f32.mxu1 %v16815_v1  ;;  %s16843_s1 = sld [smem:[#allocation22_spill]]  ;;  %vm567_vm5 = vcmask 1043592   ;;  %vm570_vm6 = vcmask 134144  }
  0x1f   : > { %520 = vst.msk [vmem:[#allocation2 + $0x10] sm:$0xff] %vm519_vm0, %v16815_v1  ;;  %v506_v2 = vshrl.u32 %v505_v0, 7  ;;  %s16844_s0 = sld [smem:[#allocation21_spill]]  ;;  %s16813_s27 = smov 17   ;;  %vm579_vm2 = vcmp.ge.s32.totalorder %v505_v0, 17  ;;  %vm580_vm3 = vcmp.lt.s32.totalorder %v505_v0, 273 }
  0x20   : > { %s16899_s20 = smov (!%p461_p10, %s10875_s20), 7  ;;  %522 = vst.msk [vmem:[#allocation3] sm:$0xff] %vm521_vm1, %v16815_v1  ;;  %523 = vst.msk [vmem:[#allocation3 + $0x18] sm:$0xff] %vm521_vm1, %v16815_v1  ;;  %s16845_s4 = sld [smem:[#allocation23_spill]]  ;;  %vm840_vm7 = vcmask 15360   ;;  %vm980_vm8 = vcmask 130048  }
  0x21   : > { %524 = vst.msk [vmem:[#allocation3 + $0x30] sm:$0xff] %vm521_vm1, %v16815_v1  ;;  %525 = vst.msk [vmem:[#allocation3 + $0x48] sm:$0xff] %vm521_vm1, %v16815_v1  ;;  %v13188_v4 = vsub.s32 0, %v506_v2  ;;  %v13190_v5 = vsub.s32 1, %v506_v2  ;;  %s10879_s23 = sshll.u32 %s16899_s20, 1  ;;  %s11256_s16 = sshll.u32 %s16899_s20, 3 }
  0x22   : > { %s13033_s21 = smov 2   ;;  %s13034_s22 = smov 16   ;;  %vm13241_vm4 = vmand %vm579_vm2, %vm580_vm3  ;;  %vm619_vm9 = vcmask 1039360   ;;  %v10882_v46 = vld [vmem:[%s16787_s5 + $0x20] sm:$0xff]  ;;  %vm624_vm10 = vcmask 64512   ;;  %vm1245_vm11 = vcmask 146432  }
  0x23   : > { %16841 = vst [vmem:[#allocation12_spill] sm:$0xff] %v13188_v4  ;;  %16842 = vst [vmem:[#allocation13_spill] sm:$0xff] %v13190_v5  ;;  %v537_v6 = vrot.slane %v479_v3, %v13188_v4  ;;  %v541_v7 = vrot.slane %v479_v3, %v13190_v5  ;;  %s13036_s24 = smov 18   ;;  %s16799_s30 = smov 126   ;;  %v10883_v52 = vld [vmem:[%s16787_s5 + $0x28] sm:$0xff]  ;;  %vm862_vm12 = vcmask 1031168  }
  0x24   : > { %s13196_s15 = scalar_lea.vmem %s16843_s1, %s10879_s23  ;;  %s16803_s23 = smov 127   ;;  %v10884_v58 = vld [vmem:[%s16787_s5 + $0x30] sm:$0xff]  ;;  %vm1385_vm13 = vcmask 261120   ;;  %v10885_v63 = vld [vmem:[%s16787_s5 + $0x38] sm:$0xff]  ;;  %vm1002_vm14 = vcmask 916480   ;;  %vm1127_vm15 = vcmask 908288  }
  0x25   : > { %v532_v8 = vld [vmem:[%s13196_s15] sm:$0x3]  ;;  %s13205_s17 = scalar_lea.vmem %s16844_s0, %s11256_s16  ;;  %v13209_v10 = vcombine.low %v537_v6, %v541_v7  ;;  %s13038_s16 = smov 32   ;;  %vm1407_vm2 = vcmask 785408   ;;  %vm1532_vm3 = vcmask 777216  }
  0x26   : > { %573 = vrot.lane.b32.xlu0 %v532_v8, %s16813_s27  ;;  %v531_v9 = vld [vmem:[%s13205_s17] sm:$0xff]  ;;  %s16849_s6 = sld [smem:[#allocation24_spill]]  ;;  %s16850_s8 = sld [smem:[#allocation25_spill]] }
  0x27   : > { %v10881_v11 = vld [vmem:[%s16845_s4 + $0x2] ss:$4 sm:$0x3]  ;;  %v13215_v12 = vmul.f32 %v13209_v10, %v531_v9  ;;  %v482_v15 = vld [vmem:[%s16845_s4] ss:$4 sm:$0x3] }
  0x28   : > { %v13222_v14 = vrot.slane %v10881_v11, %v13190_v5  ;;  %v13229_v16 = vrot.slane %v10881_v11, %v13188_v4  ;;  %v13232_v17 = vrot.slane %v482_v15, %v13190_v5  ;;  %v13236_v18 = vrot.slane %v482_v15, %v13188_v4  ;;  %v600_v8 = vld [vmem:[%s16787_s5] sm:$0xff]  ;;  %s16851_s0 = smov 17   ;;  %s16860_s1 = smov 94  }
  0x29   : > { %16846 = vst [vmem:[#allocation14_spill] sm:$0xff] %v13215_v12  ;;  %v558_v13 = vcombine.high %v13215_v12, %v13215_v12  ;;  %s451_s25 = sand.u32 1, %s13021_s26  }
  0x2a   : > { %559 = vrot.lane.b32.xlu0 %v13215_v12, %s16813_s27  ;;  %s10874_s19 = sshll.u32 %s451_s25, 5 }
  0x2b   : > { %561 = vrot.lane.b32.xlu1 %v558_v13, %s16813_s27  ;;  %s16853_s27 = smov 111  }
  0x2e   : > { %838 = vrot.lane.b32.xlu0 %v13222_v14, %s13033_s21 }
  0x2f   : > { %836 = vrot.lane.b32.xlu1 %v13229_v16, %s13033_s21  ;;  %s16797_s21 = smov 112  }
  0x32   : > { %978 = vrot.lane.b32.xlu0 %v13232_v17, %s13034_s22 }
  0x33   : > { %976 = vrot.lane.b32.xlu1 %v13236_v18, %s13034_s22  ;;  %s16805_s22 = smov 111  }
  0x98   : > { %v574_v19 = vpop.permute.xlu0 %573 }
  0x99   : > { %v575_v21 = vrot.slane %v574_v19, 7 }
  0x9b   : > { %v576_v22 = vsel %vm521_vm1, %v575_v21, %v574_v19 }
  0x9c   : > { %583 = vst.msk [vmem:[#allocation2 + $0x4] ss:$8 sm:$0x7] %vm13241_vm4, %v576_v22  ;;  %v560_v23 = vpop.permute.xlu0 %559  ;;  %v602_v22 = vld [vmem:[%s16787_s5 + $0x10] sm:$0xff] }
  0x9d   : > { %568 = vst.msk [vmem:[#allocation2] sm:$0xf] %vm567_vm5, %v560_v23  ;;  %v562_v24 = vpop.permute.xlu1 %561 }
  0x9e   : > { %v563_v25 = vsel %vm521_vm1, %v560_v23, %v562_v24  ;;  %571 = vst.msk [vmem:[#allocation2 + $0x10] sm:$0xf] %vm570_vm6, %v562_v24 }
  0x9f   : > { %569 = vst [vmem:[#allocation2 + $0x8] sm:$0xf] %v563_v25 }
  0xa0   : > { %v13266_v30 = vpop.permute.xlu0 %838 }
  0xa1   : > { %v13262_v29 = vpop.permute.xlu1 %836 }
  0xa2   : > { %v13272_v32 = vsel %vm840_vm7, %v13262_v29, %v13266_v30  ;;  %vm1671_vm7 = vcmask 769024  }
  0xa4   : > { %v13259_v28 = vld [vmem:[#allocation2] sm:$0xff]  ;;  %v13281_v35 = vpop.permute.xlu0 %978 }
  0xa5   : > { %v13251_v26 = vld [vmem:[#allocation2 + $0x10] sm:$0xff]  ;;  %v845_v31 = vmul.f32 %v13262_v29, %v13259_v28  ;;  %v13283_v36 = vpop.permute.xlu1 %976  ;;  %v598_v49 = vmul.f32 %v13236_v18, %v13259_v28 }
  0xa6   : > { %v13253_v27 = vld [vmem:[#allocation2 + $0x8] sm:$0xff]  ;;  %617 = vrot.lane.b32.xlu0 %v13251_v26, %s16803_s23  ;;  %v847_v34 = vmul.f32 %v13266_v30, %v13251_v26  ;;  %v13289_v37 = vsel %vm980_vm8, %v13283_v36, %v13281_v35  ;;  %v987_v38 = vmul.f32 %v13281_v35, %v13251_v26  ;;  %v985_v40 = vmul.f32 %v13283_v36, %v13259_v28 }
  0xa7   : > { %615 = vrot.lane.b32.xlu1 %v13253_v27, %s16803_s23  ;;  %v846_v33 = vmul.f32 %v13272_v32, %v13253_v27  ;;  %v986_v39 = vmul.f32 %v13289_v37, %v13253_v27  ;;  %v599_v48 = vmul.f32 %v13232_v17, %v13253_v27  ;;  %vm526_vm8 = vcmask 277640  }
  0xa8   : > { %527 = vst.msk [vmem:[#allocation3 + $0x10] sm:$0xff] %vm526_vm8, %v16815_v1  ;;  %528 = vst.msk [vmem:[#allocation3 + $0x28] sm:$0xff] %vm526_vm8, %v16815_v1 }
  0xa9   : > { %529 = vst.msk [vmem:[#allocation3 + $0x40] sm:$0xff] %vm526_vm8, %v16815_v1  ;;  %530 = vst.msk [vmem:[#allocation3 + $0x58] sm:$0xff] %vm526_vm8, %v16815_v1 }
  0xaa   : > { %1241 = vrot.lane.b32.xlu0 %v13229_v16, %s13036_s24 }
  0xab   : > { %613 = vrot.lane.b32.xlu1 %v13259_v28, %s16803_s23  ;;  %s16809_s23 = smov 94  }
  0xae   : > { %856 = vrot.lane.b32.xlu0 %v845_v31, %s16799_s30  ;;  %v603_v31 = vld [vmem:[%s16787_s5 + $0x18] sm:$0xff] }
  0xaf   : > { %1243 = vrot.lane.b32.xlu1 %v13222_v14, %s13036_s24  ;;  %s13041_s24 = smov 34  }
  0xb2   : > { %858 = vrot.lane.b32.xlu0 %v846_v33, %s16799_s30 }
  0xb3   : > { %860 = vrot.lane.b32.xlu1 %v847_v34, %s16799_s30  ;;  %s16855_s30 = smov 126  }
  0xb6   : > { %1383 = vrot.lane.b32.xlu0 %v13232_v17, %s13038_s16 }
  0xb7   : > { %1381 = vrot.lane.b32.xlu1 %v13236_v18, %s13038_s16  ;;  %s16801_s16 = smov 110  }
  0xba   : > { %1000 = vrot.lane.b32.xlu0 %v987_v38, %s16797_s21 }
  0xbb   : > { %998 = vrot.lane.b32.xlu1 %v986_v39, %s16797_s21 }
  0xbe   : > { %1123 = vrot.lane.b32.xlu0 %v13253_v27, %s16805_s22 }
  0xbf   : > { %996 = vrot.lane.b32.xlu1 %v985_v40, %s16797_s21  ;;  %v10895_v40 = vld [vmem:[%s16787_s5 + $0x48] sm:$0xff]  ;;  %s16859_s21 = smov 95  }
  0xc2   : > { %1121 = vrot.lane.b32.xlu0 %v13259_v28, %s16805_s22 }
  0xc3   : > { %1125 = vrot.lane.b32.xlu1 %v13251_v26, %s16805_s22  ;;  %s16854_s22 = smov 127  }
  0xc6   : > { %1648 = vrot.lane.b32.xlu0 %v13222_v14, %s13041_s24 }
  0xc7   : > { %1646 = vrot.lane.b32.xlu1 %v13229_v16, %s13041_s24  ;;  %s16811_s24 = smov 96   ;;  %v601_v16 = vld [vmem:[%s16787_s5 + $0x8] sm:$0xff] }
 0x118   : > { %v618_v41 = vpop.permute.xlu0 %617 }
 0x119   : > { %v616_v42 = vpop.permute.xlu1 %615 }
 0x11a   : > { %v621_v43 = vsel %vm619_vm9, %v616_v42, %v618_v41  ;;  %v10897_v41 = vld [vmem:[%s16787_s5 + $0x58] sm:$0xff] }
 0x11b   : > { %637 = vmatprep.subr.mxu0 %v621_v43 }
 0x11c   : > { %v13310_v44 = vpop.permute.xlu0 %1241 }
 0x11d   : > { %v614_v45 = vpop.permute.xlu1 %613  ;;  %v1250_v60 = vmul.f32 %v13310_v44, %v13259_v28 }
 0x11e   : > { %v620_v47 = vsel %vm619_vm9, %v614_v45, %v616_v42  ;;  %v10902_v42 = vld [vmem:[%s16787_s5 + $0x60] sm:$0xff]  ;;  %v10903_v45 = vld [vmem:[%s16787_s5 + $0x68] sm:$0xff] }
 0x11f   : > { %638 = vmatpush1.msra.mxu0 %v620_v47  ;;  %v10905_v47 = vld [vmem:[%s16787_s5 + $0x78] sm:$0xff] }
 0x120   : > { %v857_v50 = vpop.permute.xlu0 %856  ;;  %10886 = vmatmul.mubr.msk.f32.vlgmr.msra.gmra.mrb[0].mxu0 %vm624_vm10, %v10882_v46  ;;  %738 = vmatprep.subr.mxu0 %v599_v48  ;;  %v10904_v46 = vld [vmem:[%s16787_s5 + $0x70] sm:$0xff]  ;;  %v485_v48 = vld [vmem:[%s16849_s6] sm:$0xff] }
 0x121   : > { %739 = vmatpush1.msra.mxu0 %v598_v49  ;;  %v13321_v51 = vpop.permute.xlu1 %1243  ;;  %707 = vmatprep.mubr.f32.mxu0 %v16815_v1  ;;  %v13046_v49 = vmov 0  }
 0x122   : > { %v1252_v53 = vmul.f32 %v13321_v51, %v13251_v26  ;;  %v13331_v54 = vsel %vm1245_vm11, %v13310_v44, %v13321_v51  ;;  %11956 = vset.pattern.permute.xlu1 %v13046_v49  ;;  %11957 = vset.pattern.permute.xlu0 %v13046_v49  ;;  %v10935_v49 = vld [vmem:[%s16787_s5 + $0xe8] sm:$0xff]  ;;  %vm1990_vm11 = vcmask 1047688  }
 0x123   : > { %v1251_v55 = vmul.f32 %v13331_v54, %v13253_v27 }
 0x124   : > { %v859_v56 = vpop.permute.xlu0 %858  ;;  %10887 = vmatmul.mubr.msk.f32.gmra.mrb[2].mxu0 %vm624_vm10, %v10883_v52  ;;  %1265 = vrot.lane.b32.xlu0 %v1252_v53, %s16801_s16  ;;  %v10910_v52 = vld [vmem:[%s16787_s5 + $0x80] sm:$0xff]  ;;  %v487_v53 = vld [vmem:[%s16849_s6 + $0x10] sm:$0xff] }
 0x125   : > { %1263 = vrot.lane.b32.xlu1 %v1251_v55, %s16801_s16  ;;  %v861_v57 = vpop.permute.xlu1 %860  ;;  %713 = vmatprep.mubr.f32.mxu0 %v16815_v1  ;;  %v863_v11 = vsel %vm862_vm12, %v857_v50, %v859_v56  ;;  %v486_v50 = vld [vmem:[%s16849_s6 + $0x8] sm:$0xff]  ;;  %v493_v55 = vld [vmem:[%s16850_s8] sm:$0xff] }
 0x126   : > { %v864_v59 = vsel %vm862_vm12, %v859_v56, %v861_v57  ;;  %v10911_v56 = vld [vmem:[%s16787_s5 + $0x88] sm:$0xff]  ;;  %v488_v57 = vld [vmem:[%s16849_s6 + $0x18] sm:$0xff]  ;;  %s16706_s6 = scalar_lea.vmem %s16795_s13, %s16899_s20  ;;  %s11258_s20 = sshll.u32 %s13141_s29, 9 }
 0x127   : > { %879 = vmatprep.subr.mxu0 %v864_v59  ;;  %v10912_v59 = vld [vmem:[%s16787_s5 + $0x90] sm:$0xff]  ;;  %s13047_s29 = smov [#allocation4]  }
 0x128   : > { %v13345_v61 = vpop.permute.xlu0 %1383  ;;  %10888 = vmatmul.mubr.msk.f32.gmra.mrb[4].mxu0 %vm624_vm10, %v10884_v58  ;;  %v495_v58 = vld [vmem:[%s16850_s8 + $0x10] sm:$0xff] }
 0x129   : > { %1261 = vrot.lane.b32.xlu1 %v1250_v60, %s16801_s16  ;;  %v13349_v62 = vpop.permute.xlu1 %1381  ;;  %719 = vmatprep.mubr.f32.mxu0 %v16815_v1  ;;  %v1392_v2 = vmul.f32 %v13345_v61, %v13251_v26  ;;  %s16807_s16 = smov 95   ;;  %v494_v60 = vld [vmem:[%s16850_s8 + $0x8] sm:$0xff] }
 0x12a   : > { %v13358_v0 = vsel %vm1385_vm13, %v13349_v62, %v13345_v61  ;;  %v1390_v13 = vmul.f32 %v13349_v62, %v13259_v28 }
 0x12b   : > { %v1391_v3 = vmul.f32 %v13358_v0, %v13253_v27 }
 0x12c   : > { %v1001_v6 = vpop.permute.xlu0 %1000  ;;  %10889 = vmatmul.mubr.msk.f32.gmra.mrb[6].mxu0 %vm624_vm10, %v10885_v63  ;;  %v10913_v63 = vld [vmem:[%s16787_s5 + $0x98] sm:$0xff] }
 0x12d   : > { %1405 = vrot.lane.b32.xlu1 %v1392_v2, %s16811_s24  ;;  %1403 = vrot.lane.b32.xlu0 %v1391_v3, %s16811_s24  ;;  %v999_v7 = vpop.permute.xlu1 %998  ;;  %v496_v2 = vld [vmem:[%s16850_s8 + $0x18] sm:$0xff]  ;;  %s16691_s8 = scalar_lea.vmem [#allocation4], %s10874_s19 }
 0x12e   : > { %802 = vmatprep.mubr.f32.mxu0 %v16815_v1  ;;  %v1004_v14 = vsel %vm1002_vm14, %v999_v7, %v1001_v6 }
 0x130   : > { %v1124_v9 = vpop.permute.xlu0 %1123  ;;  %10890 = vmatmul.mubr.msk.f32.vlgmr.msra.gmra.mrb[0].mxu0 %vm624_vm10, %v600_v8 }
 0x131   : > { %880 = vmatpush1.msra.mxu0 %v863_v11  ;;  %1528 = vrot.lane.b32.xlu1 %v13253_v27, %s16807_s16  ;;  %v997_v15 = vpop.permute.xlu1 %996 }
 0x132   : > { %1401 = vrot.lane.b32.xlu0 %v1390_v13, %s16811_s24  ;;  %1019 = vmatprep.subr.mxu0 %v1004_v14  ;;  %v1003_v39 = vsel %vm1002_vm14, %v997_v15, %v999_v7  ;;  %v10919_v15 = vld [vmem:[%s16787_s5 + $0xa8] sm:$0xff]  ;;  %s16856_s24 = smov 112  }
 0x133   : > { %808 = vmatprep.mubr.f32.mxu0 %v16815_v1 }
 0x134   : > { %v1122_v19 = vpop.permute.xlu0 %1121  ;;  %10891 = vmatmul.mubr.msk.f32.gmra.mrb[2].mxu0 %vm624_vm10, %v601_v16 }
 0x135   : > { %1526 = vrot.lane.b32.xlu1 %v13259_v28, %s16807_s16  ;;  %v1126_v21 = vpop.permute.xlu1 %1125  ;;  %814 = vmatprep.mubr.f32.mxu0 %v16815_v1  ;;  %v1128_v43 = vsel %vm1127_vm15, %v1122_v19, %v1124_v9 }
 0x136   : > { %1530 = vrot.lane.b32.xlu0 %v13251_v26, %s16807_s16  ;;  %s16858_s16 = smov 96  }
 0x138   : > { %v13392_v23 = vpop.permute.xlu0 %1648  ;;  %10892 = vmatmul.mubr.msk.f32.gmra.mrb[4].mxu0 %vm624_vm10, %v602_v22 }
 0x139   : > { %v13395_v24 = vpop.permute.xlu1 %1646  ;;  %820 = vmatprep.mubr.f32.mxu0 %v16815_v1  ;;  %v1656_v25 = vmul.f32 %v13392_v23, %v13251_v26  ;;  %v10894_v26 = vld [vmem:[%s16787_s5 + $0x40] sm:$0xff] }
 0x13a   : > { %v13406_v33 = vsel %vm519_vm0, %v13395_v24, %v13392_v23  ;;  %v1654_v38 = vmul.f32 %v13395_v24, %v13259_v28  ;;  %v10896_v28 = vld [vmem:[%s16787_s5 + $0x50] sm:$0xff]  ;;  %vm1267_vm0 = vcmask 900096  }
 0x13b   : > { %1669 = vrot.lane.b32.xlu1 %v1656_v25, %s16809_s23  ;;  %v1655_v34 = vmul.f32 %v13406_v33, %v13253_v27  ;;  %v1129_v27 = vsel %vm1127_vm15, %v1124_v9, %v1126_v21  ;;  %v10918_v9 = vld [vmem:[%s16787_s5 + $0xa0] sm:$0xff]  ;;  %v10920_v21 = vld [vmem:[%s16787_s5 + $0xb0] sm:$0xff] }
 0x13c   : > { %10893 = vmatmul.mubr.msk.f32.gmra.mrb[6].mxu0 %vm624_vm10, %v603_v31 }
 0x13d   : > { %1667 = vrot.lane.b32.xlu0 %v1655_v34, %s16809_s23  ;;  %943 = vmatprep.mubr.f32.mxu0 %v16815_v1  ;;  %v10921_v34 = vld [vmem:[%s16787_s5 + $0xb8] sm:$0xff] }
 0x13f   : > { %1787 = vperm.xlu1 %11956, %v485_v48  }
 0x140   : > { %10898 = vmatmul.mubr.msk.f32.vlgmr.msra.gmra.mrb[0].mxu0 %vm624_vm10, %v10894_v26 }
 0x141   : > { %1020 = vmatpush1.msra.mxu0 %v1003_v39  ;;  %1665 = vrot.lane.b32.xlu0 %v1654_v38, %s16809_s23  ;;  %v10926_v39 = vld [vmem:[%s16787_s5 + $0xc0] sm:$0xff]  ;;  %s16857_s23 = smov 110  }
 0x142   : > { %1144 = vmatprep.subr.mxu0 %v1129_v27  ;;  %949 = vmatprep.mubr.f32.mxu0 %v16815_v1 }
 0x143   : > { %1797 = vperm.xlu1 %11956, %v487_v53   ;;  %v10942_v53 = vld [vmem:[%s16787_s5 + $0x100] sm:$0xff] }
 0x144   : > { %10899 = vmatmul.mubr.msk.f32.gmra.mrb[2].mxu0 %vm624_vm10, %v10895_v40 }
 0x145   : > { %955 = vmatprep.mubr.f32.mxu0 %v16815_v1  ;;  %1792 = vperm.xlu0 %11957, %v486_v50   ;;  %v10936_v50 = vld [vmem:[%s16787_s5 + $0xf0] sm:$0xff] }
 0x147   : > { %1802 = vperm.xlu1 %11956, %v488_v57   ;;  %v10945_v57 = vld [vmem:[%s16787_s5 + $0x118] sm:$0xff] }
 0x148   : > { %10900 = vmatmul.mubr.msk.f32.gmra.mrb[4].mxu0 %vm624_vm10, %v10896_v28 }
 0x149   : > { %961 = vmatprep.mubr.f32.mxu0 %v16815_v1  ;;  %1823 = vperm.xlu0 %11957, %v493_v55   ;;  %v10943_v55 = vld [vmem:[%s16787_s5 + $0x108] sm:$0xff] }
 0x14b   : > { %1828 = vperm.xlu1 %11956, %v494_v60  }
 0x14c   : > { %10901 = vmatmul.mubr.msk.f32.gmra.mrb[6].mxu0 %vm624_vm10, %v10897_v41 }
 0x14d   : > { %1083 = vmatprep.mubr.f32.mxu0 %v16815_v1  ;;  %1833 = vperm.xlu0 %11957, %v495_v58  }
 0x14f   : > { %1838 = vperm.xlu1 %11956, %v496_v2  }
 0x150   : > { %10906 = vmatmul.mubr.msk.f32.vlgmr.msra.gmra.mrb[0].mxu0 %vm624_vm10, %v10902_v42  ;;  %v10927_v42 = vld [vmem:[%s16787_s5 + $0xc8] sm:$0xff] }
 0x151   : > { %1145 = vmatpush1.msra.mxu0 %v1128_v43  ;;  %1089 = vmatprep.mubr.f32.mxu0 %v16815_v1  ;;  %v10928_v43 = vld [vmem:[%s16787_s5 + $0xd0] sm:$0xff] }
 0x154   : > { %10907 = vmatmul.mubr.msk.f32.gmra.mrb[2].mxu0 %vm624_vm10, %v10903_v45  ;;  %v10929_v45 = vld [vmem:[%s16787_s5 + $0xd8] sm:$0xff] }
 0x155   : > { %1095 = vmatprep.mubr.f32.mxu0 %v16815_v1 }
 0x158   : > { %10908 = vmatmul.mubr.msk.f32.gmra.mrb[4].mxu0 %vm624_vm10, %v10904_v46 }
 0x159   : > { %1101 = vmatprep.mubr.f32.mxu0 %v16815_v1 }
 0x15c   : > { %10909 = vmatmul.mubr.msk.f32.gmra.mrb[6].mxu0 %vm624_vm10, %v10905_v47  ;;  %v10934_v47 = vld [vmem:[%s16787_s5 + $0xe0] sm:$0xff] }
 0x15d   : > { %1208 = vmatprep.mubr.f32.mxu0 %v16815_v1 }
 0x160   : > { %10914 = vmatmul.mubr.msk.f32.vlgmr.msra.gmra.mrb[0].mxu0 %vm624_vm10, %v10910_v52  ;;  %v10937_v52 = vld [vmem:[%s16787_s5 + $0xf8] sm:$0xff] }
 0x161   : > { %1214 = vmatprep.mubr.f32.mxu0 %v16815_v1 }
 0x164   : > { %10915 = vmatmul.mubr.msk.f32.gmra.mrb[2].mxu0 %vm624_vm10, %v10911_v56  ;;  %v10944_v56 = vld [vmem:[%s16787_s5 + $0x110] sm:$0xff] }
 0x165   : > { %1220 = vmatprep.mubr.f32.mxu0 %v16815_v1 }
 0x168   : > { %10916 = vmatmul.mubr.msk.f32.gmra.mrb[4].mxu0 %vm624_vm10, %v10912_v59 }
 0x169   : > { %1226 = vmatprep.mubr.f32.mxu0 %v16815_v1 }
 0x16c   : > { %10917 = vmatmul.mubr.msk.f32.gmra.mrb[6].mxu0 %vm624_vm10, %v10913_v63 }
 0x16d   : > { %1348 = vmatprep.mubr.f32.mxu0 %v16815_v1 }
 0x196   : > { %v1266_v3 = vpop.permute.xlu0 %1265 }
 0x197   : > { %v1264_v6 = vpop.permute.xlu1 %1263 }
 0x198   : > { %v1269_v7 = vsel %vm1267_vm0, %v1264_v6, %v1266_v3 }
 0x199   : > { %1284 = vmatprep.subr.mxu0 %v1269_v7 }
 0x19b   : > { %v1262_v8 = vpop.permute.xlu1 %1261 }
 0x19c   : > { %v1268_v11 = vsel %vm1267_vm0, %v1262_v8, %v1264_v6 }
 0x19d   : > { %1285 = vmatpush1.msra.mxu0 %v1268_v11 }
 0x19e   : > { %10922 = vmatmul.mubr.msk.f32.vlgmr.msra.gmra.mrb[0].mxu0 %vm624_vm10, %v10918_v9 }
 0x19f   : > { %v1404_v13 = vpop.permute.xlu0 %1403  ;;  %v1406_v14 = vpop.permute.xlu1 %1405  ;;  %1354 = vmatprep.mubr.f32.mxu0 %v16815_v1 }
 0x1a0   : > { %v1409_v16 = vsel %vm1407_vm2, %v1404_v13, %v1406_v14 }
 0x1a1   : > { %1424 = vmatprep.subr.mxu0 %v1409_v16 }
 0x1a2   : > { %10923 = vmatmul.mubr.msk.f32.gmra.mrb[2].mxu0 %vm624_vm10, %v10919_v15 }
 0x1a3   : > { %1360 = vmatprep.mubr.f32.mxu0 %v16815_v1  ;;  %v1529_v25 = vpop.permute.xlu1 %1528 }
 0x1a4   : > { %v1402_v19 = vpop.permute.xlu0 %1401 }
 0x1a5   : > { %v1408_v22 = vsel %vm1407_vm2, %v1402_v19, %v1404_v13 }
 0x1a6   : > { %1425 = vmatpush1.msra.mxu0 %v1408_v22 }
 0x1a7   : > { %10924 = vmatmul.mubr.msk.f32.gmra.mrb[4].mxu0 %vm624_vm10, %v10920_v21  ;;  %v1527_v38 = vpop.permute.xlu1 %1526 }
 0x1a8   : > { %v1531_v31 = vpop.permute.xlu0 %1530  ;;  %1366 = vmatprep.mubr.f32.mxu0 %v16815_v1  ;;  %v1533_v27 = vsel %vm1532_vm3, %v1527_v38, %v1529_v25 }
 0x1a9   : > { %v1534_v26 = vsel %vm1532_vm3, %v1529_v25, %v1531_v31 }
 0x1aa   : > { %1549 = vmatprep.subr.mxu0 %v1534_v26 }
 0x1ab   : > { %10925 = vmatmul.mubr.msk.f32.gmra.mrb[6].mxu0 %vm624_vm10, %v10921_v34 }
 0x1ac   : > { %1488 = vmatprep.mubr.f32.mxu0 %v16815_v1 }
 0x1ad   : > { %v1670_v40 = vpop.permute.xlu1 %1669 }
 0x1af   : > { %10930 = vmatmul.mubr.msk.f32.vlgmr.msra.gmra.mrb[0].mxu0 %vm624_vm10, %v10926_v39  ;;  %v1668_v28 = vpop.permute.xlu0 %1667 }
 0x1b0   : > { %1550 = vmatpush1.msra.mxu0 %v1533_v27  ;;  %1494 = vmatprep.mubr.f32.mxu0 %v16815_v1  ;;  %v1673_v41 = vsel %vm1671_vm7, %v1668_v28, %v1670_v40 }
 0x1b1   : > { %1688 = vmatprep.subr.mxu0 %v1673_v41 }
 0x1b3   : > { %10931 = vmatmul.mubr.msk.f32.gmra.mrb[2].mxu0 %vm624_vm10, %v10927_v42  ;;  %v1666_v46 = vpop.permute.xlu0 %1665 }
 0x1b4   : > { %1500 = vmatprep.mubr.f32.mxu0 %v16815_v1  ;;  %v1672_v48 = vsel %vm1671_vm7, %v1666_v46, %v1668_v28 }
 0x1b7   : > { %10932 = vmatmul.mubr.msk.f32.gmra.mrb[4].mxu0 %vm624_vm10, %v10928_v43 }
 0x1b8   : > { %1506 = vmatprep.mubr.f32.mxu0 %v16815_v1 }
 0x1bb   : > { %10933 = vmatmul.mubr.msk.f32.gmra.mrb[6].mxu0 %vm624_vm10, %v10929_v45 }
 0x1bc   : > { %1613 = vmatprep.mubr.f32.mxu0 %v16815_v1 }
 0x1be   : > { %v13592_v58 = vpop.permute.xlu1 %1787 }
 0x1bf   : > { %10938 = vmatmul.mubr.msk.f32.vlgmr.msra.gmra.mrb[0].mxu0 %vm624_vm10, %v10934_v47  ;;  %v489_v47 = vld [vmem:[%s16789_s7] sm:$0xff] }
 0x1c0   : > { %1689 = vmatpush1.msra.mxu0 %v1672_v48  ;;  %1619 = vmatprep.mubr.f32.mxu0 %v16815_v1  ;;  %v490_v48 = vld [vmem:[%s16789_s7 + $0x8] sm:$0xff] }
 0x1c2   : > { %v13599_v9 = vpop.permute.xlu1 %1797 }
 0x1c3   : > { %10939 = vmatmul.mubr.msk.f32.gmra.mrb[2].mxu0 %vm624_vm10, %v10935_v49  ;;  %v491_v49 = vld [vmem:[%s16789_s7 + $0x10] sm:$0xff] }
 0x1c4   : > { %1625 = vmatprep.mubr.f32.mxu0 %v16815_v1  ;;  %v13596_v3 = vpop.permute.xlu0 %1792 }
 0x1c6   : > { %v13603_v34 = vpop.permute.xlu1 %1802 }
 0x1c7   : > { %10940 = vmatmul.mubr.msk.f32.gmra.mrb[4].mxu0 %vm624_vm10, %v10936_v50  ;;  %v492_v50 = vld [vmem:[%s16789_s7 + $0x18] sm:$0xff] }
 0x1c8   : > { %1631 = vmatprep.mubr.f32.mxu0 %v16815_v1 }
 0x1cb   : > { %10941 = vmatmul.mubr.msk.f32.gmra.mrb[6].mxu0 %vm624_vm10, %v10937_v52  ;;  %v13632_v52 = vpop.permute.xlu0 %1823 }
 0x1cc   : > { %1752 = vmatprep.mubr.f32.mxu0 %v16815_v1 }
 0x1cf   : > { %10946 = vmatmul.mubr.msk.f32.vlgmr.msra.gmra.mrb[0].mxu0 %vm624_vm10, %v10942_v53 }
 0x1d0   : > { %1758 = vmatprep.mubr.f32.mxu0 %v16815_v1 }
 0x1d3   : > { %10947 = vmatmul.mubr.msk.f32.gmra.mrb[2].mxu0 %vm624_vm10, %v10943_v55 }
 0x1d4   : > { %1764 = vmatprep.mubr.f32.mxu0 %v16815_v1 }
 0x1d7   : > { %10948 = vmatmul.mubr.msk.f32.gmra.mrb[4].mxu0 %vm624_vm10, %v10944_v56 }
 0x1d8   : > { %1770 = vmatprep.mubr.f32.mxu0 %v16815_v1 }
 0x1db   : > { %10949 = vmatmul.mubr.msk.f32.gmra.mrb[6].mxu0 %vm624_vm10, %v10945_v57 }
 0x1dc   : > { %4443 = vmatprep.mubr.f32.mxu0 %v16815_v1 }
 0x2a2   : > { %v1754_v59 = vpop.f32.mrb[0].mxu0 }
 0x2a3   : > { %v1756_v60 = vpop.f32.mrb[1].mxu0  ;;  %v1805_v63 = vadd.f32 %v13592_v58, %v1754_v59 }
 0x2a4   : > { %v1806_v2 = vadd.f32 %v13592_v58, %v1756_v60  ;;  %v13636_v60 = vpop.permute.xlu1 %1828 }
 0x2a5   : > { %v1813_v13 = vmax.f32 %v1805_v63, 0.0 }
 0x2a6   : > { %v1760_v6 = vpop.f32.mrb[2].mxu0  ;;  %v1814_v15 = vmax.f32 %v1806_v2, 0.0 }
 0x2a7   : > { %v1807_v7 = vadd.f32 %v13596_v3, %v1760_v6  ;;  %v1762_v8 = vpop.f32.mrb[3].mxu0 }
 0x2a8   : > { %v1808_v11 = vadd.f32 %v13596_v3, %v1762_v8 }
 0x2a9   : > { %v1815_v14 = vmax.f32 %v1807_v7, 0.0 }
 0x2aa   : > { %v1816_v16 = vmax.f32 %v1808_v11, 0.0  ;;  %v1766_v19 = vpop.f32.mrb[4].mxu0 }
 0x2ab   : > { %v1768_v21 = vpop.f32.mrb[5].mxu0  ;;  %v11261_v22 = vpack.c.bf16 %v1815_v14, %v1813_v13  ;;  %v1809_v31 = vadd.f32 %v13599_v9, %v1766_v19  ;;  %v13642_v13 = vpop.permute.xlu0 %1833 }
 0x2ac   : > { %v11259_v25 = vpack.c.bf16 %v1816_v16, %v1814_v15  ;;  %v1810_v26 = vadd.f32 %v13599_v9, %v1768_v21 }
 0x2ad   : > { %v1817_v28 = vmax.f32 %v1809_v31, 0.0 }
 0x2ae   : > { %v1772_v38 = vpop.f32.mrb[6].mxu0  ;;  %11260 = vmatprep.subr.bf16.mxu1 %v11259_v25  ;;  %v1818_v42 = vmax.f32 %v1810_v26, 0.0  ;;  %v13648_v25 = vpop.permute.xlu1 %1838 }
 0x2af   : > { %v1811_v39 = vadd.f32 %v13603_v34, %v1772_v38  ;;  %v1774_v27 = vpop.f32.mrb[7].mxu0  ;;  %11262 = vmatpush1.bf16.msra.mxu1 %v11261_v22 }
 0x2b0   : > { %v1812_v40 = vadd.f32 %v13603_v34, %v1774_v27 }
 0x2b1   : > { %v1819_v41 = vmax.f32 %v1811_v39, 0.0 }
 0x2b2   : > { %v1820_v43 = vmax.f32 %v1812_v40, 0.0  ;;  %v10971_v40 = vld [vmem:[%s13205_s17 + $0x8] sm:$0xff] }
 0x2b3   : > { %v11265_v45 = vpack.c.bf16 %v1819_v41, %v1817_v28 }
 0x2b4   : > { %v11263_v46 = vpack.c.bf16 %v1820_v43, %v1818_v42  ;;  %v13657_v42 = vmul.f32 %v10971_v40, %v13209_v10  ;;  %v10972_v43 = vld [vmem:[%s13196_s15 + $0x2] sm:$0x3] }
 0x2b6   : > { %11264 = vmatprep.subr.bf16.mxu1 %v11263_v46  ;;  %16852 = vst [vmem:[#allocation15_spill] sm:$0xff] %v13657_v42 }
 0x2b7   : > { %11266 = vmatpush1.bf16.msra.mxu1 %v11265_v45  ;;  %v3224_v45 = vcombine.high %v13657_v42, %v13657_v42 }
 0x2ba   : > { %10950 = vmatmul.mubr.msk.f32.vlgmr.msra.gmra.mrb[0].mxu1 %vm1385_vm13, %v489_v47 }
 0x2bb   : > { %1923 = vmatprep.mubr.f32.mxu1 %v16815_v1 }
 0x2be   : > { %10951 = vmatmul.mubr.msk.f32.gmra.mrb[2].mxu1 %vm1385_vm13, %v490_v48 }
 0x2bf   : > { %1929 = vmatprep.mubr.f32.mxu1 %v16815_v1 }
 0x2c2   : > { %10952 = vmatmul.mubr.msk.f32.gmra.mrb[4].mxu1 %vm1385_vm13, %v491_v49 }
 0x2c3   : > { %1935 = vmatprep.mubr.f32.mxu1 %v16815_v1 }
 0x2c6   : > { %10953 = vmatmul.mubr.msk.f32.gmra.mrb[6].mxu1 %vm1385_vm13, %v492_v50 }
 0x2c7   : > { %2145 = vmatprep.mubr.f32.mxu1 %v16815_v1 }
 0x38d   : > { %v1919_v53 = vpop.f32.mrb[0].mxu1 }
 0x38e   : > { %v1920_v55 = vadd.f32 %v1919_v53, %v13632_v52  ;;  %v1921_v56 = vpop.f32.mrb[1].mxu1 }
 0x38f   : > { %v1922_v57 = vadd.f32 %v1921_v56, %v13632_v52 }
 0x390   : > { %v1942_v59 = vmax.f32 %v1920_v55, 0.0 }
 0x391   : > { %v1943_v63 = vmax.f32 %v1922_v57, 0.0  ;;  %v1925_v2 = vpop.f32.mrb[2].mxu1 }
 0x392   : > { %v1926_v6 = vadd.f32 %v1925_v2, %v13636_v60  ;;  %v1927_v7 = vpop.f32.mrb[3].mxu1  ;;  %1958 = vrot.lane.b32.xlu0 %v1942_v59, %s16851_s0 }
 0x393   : > { %v1928_v8 = vadd.f32 %v1927_v7, %v13636_v60  ;;  %1960 = vrot.lane.b32.xlu1 %v1943_v63, %s16851_s0 }
 0x394   : > { %v1944_v11 = vmax.f32 %v1926_v6, 0.0 }
 0x395   : > { %v1945_v14 = vmax.f32 %v1928_v8, 0.0  ;;  %v1931_v15 = vpop.f32.mrb[4].mxu1 }
 0x396   : > { %v1932_v16 = vadd.f32 %v1931_v15, %v13642_v13  ;;  %v1933_v19 = vpop.f32.mrb[5].mxu1  ;;  %1962 = vrot.lane.b32.xlu0 %v1944_v11, %s16851_s0 }
 0x397   : > { %v1934_v21 = vadd.f32 %v1933_v19, %v13642_v13  ;;  %1964 = vrot.lane.b32.xlu1 %v1945_v14, %s16851_s0 }
 0x398   : > { %v1946_v22 = vmax.f32 %v1932_v16, 0.0 }
 0x399   : > { %v1947_v31 = vmax.f32 %v1934_v21, 0.0  ;;  %v1937_v26 = vpop.f32.mrb[6].mxu1 }
 0x39a   : > { %v1938_v38 = vadd.f32 %v1937_v26, %v13648_v25  ;;  %v1939_v39 = vpop.f32.mrb[7].mxu1  ;;  %1966 = vrot.lane.b32.xlu0 %v1946_v22, %s16851_s0 }
 0x39b   : > { %v1940_v27 = vadd.f32 %v1939_v39, %v13648_v25  ;;  %1968 = vrot.lane.b32.xlu1 %v1947_v31, %s16851_s0 }
 0x39c   : > { %v1948_v28 = vmax.f32 %v1938_v38, 0.0 }
 0x39d   : > { %v1949_v41 = vmax.f32 %v1940_v27, 0.0 }
 0x39e   : > { %1970 = vrot.lane.b32.xlu0 %v1948_v28, %s16851_s0 }
 0x39f   : > { %1972 = vrot.lane.b32.xlu1 %v1949_v41, %s16851_s0 }
 0x3a2   : > { %3237 = vrot.lane.b32.xlu0 %v10972_v43, %s16851_s0 }
 0x3a3   : > { %3225 = vrot.lane.b32.xlu1 %v13657_v42, %s16851_s0 }
 0x3a6   : > { %3227 = vrot.lane.b32.xlu0 %v3224_v45, %s16851_s0 }
 0x404   : > { %v1959_v46 = vpop.permute.xlu0 %1958 }
 0x405   : > { %1991 = vst.msk [vmem:[#allocation3] sm:$0xff] %vm1990_vm11, %v1959_v46  ;;  %v1961_v47 = vpop.permute.xlu1 %1960 }
 0x406   : > { %1993 = vst.msk [vmem:[#allocation3 + $0x10] sm:$0xff] %vm521_vm1, %v1961_v47  ;;  %v13672_v53 = vsel %vm521_vm1, %v1959_v46, %v1961_v47 }
 0x407   : > { %v2227_v7 = vmul.f32 %v13672_v53, %v13272_v32  ;;  %v2369_v31 = vmul.f32 %v13672_v53, %v13289_v37 }
 0x408   : > { %v1963_v48 = vpop.permute.xlu0 %1962 }
 0x409   : > { %1994 = vst.msk [vmem:[#allocation3 + $0x18] sm:$0xff] %vm1990_vm11, %v1963_v48  ;;  %v1965_v49 = vpop.permute.xlu1 %1964 }
 0x40a   : > { %1996 = vst.msk [vmem:[#allocation3 + $0x28] sm:$0xff] %vm521_vm1, %v1965_v49  ;;  %v13695_v8 = vsel %vm521_vm1, %v1963_v48, %v1965_v49 }
 0x40b   : > { %v2230_v26 = vmul.f32 %v13695_v8, %v13272_v32  ;;  %v2372_v46 = vmul.f32 %v13695_v8, %v13289_v37 }
 0x40c   : > { %v1967_v50 = vpop.permute.xlu0 %1966  ;;  %v13688_v2 = vld [vmem:[#allocation3] sm:$0xff] }
 0x40d   : > { %1997 = vst.msk [vmem:[#allocation3 + $0x30] sm:$0xff] %vm1990_vm11, %v1967_v50  ;;  %v1969_v55 = vpop.permute.xlu1 %1968  ;;  %v13675_v56 = vld [vmem:[#allocation3 + $0x10] sm:$0xff]  ;;  %v2628_v1 = vmul.f32 %v13688_v2, %v13310_v44 }
 0x40e   : > { %1999 = vst.msk [vmem:[#allocation3 + $0x40] sm:$0xff] %vm521_vm1, %v1969_v55  ;;  %v13680_v57 = vpack.i.bf16 %v13675_v56, %v13672_v53  ;;  %v2228_v59 = vmul.f32 %v13675_v56, %v13266_v30  ;;  %v2370_v19 = vmul.f32 %v13675_v56, %v13281_v35  ;;  %v13729_v47 = vsel %vm521_vm1, %v1967_v50, %v1969_v55 }
 0x40f   : > { %v2226_v50 = vmul.f32 %v13688_v2, %v13262_v29  ;;  %v2233_v55 = vmul.f32 %v13729_v47, %v13272_v32 }
 0x410   : > { %v1971_v63 = vpop.permute.xlu0 %1970  ;;  %11964 = vrot.lane.b32.xlu1 %v13680_v57, %s16853_s27  ;;  %11959 = vrot.lane.b32.xlu0 %v13680_v57, %s16854_s22  ;;  %v13690_v6 = vld [vmem:[#allocation3 + $0x18] sm:$0xff]  ;;  %v11973_v16 = vpack.i.bf16 %v2228_v59, %v2227_v7  ;;  %v11978_v27 = vpack.i.bf16 %v2370_v19, %v2369_v31 }
 0x411   : > { %2000 = vst.msk [vmem:[#allocation3 + $0x48] sm:$0xff] %vm1990_vm11, %v1971_v63  ;;  %v1973_v11 = vpop.permute.xlu1 %1972  ;;  %v13700_v14 = vpack.i.bf16 %v13690_v6, %v13688_v2  ;;  %v13702_v15 = vld [vmem:[#allocation3 + $0x28] sm:$0xff]  ;;  %v2229_v7 = vmul.f32 %v13690_v6, %v13262_v29 }
 0x412   : > { %2002 = vst.msk [vmem:[#allocation3 + $0x58] sm:$0xff] %vm521_vm1, %v1973_v11  ;;  %v2231_v21 = vmul.f32 %v13702_v15, %v13266_v30  ;;  %v2373_v28 = vmul.f32 %v13702_v15, %v13281_v35  ;;  %v13735_v49 = vpack.i.bf16 %v13702_v15, %v13695_v8 }
 0x413   : > { %v11988_v19 = vpack.i.bf16 %v2229_v7, %v2226_v50 }
 0x414   : > { %v3238_v22 = vpop.permute.xlu0 %3237  ;;  %11969 = vrot.lane.b32.xlu0 %v13700_v14, %s16854_s22  ;;  %11974 = vrot.lane.b32.xlu1 %v11973_v16, %s16855_s30  ;;  %v11998_v40 = vpack.i.bf16 %v2231_v21, %v2230_v26  ;;  %v12003_v59 = vpack.i.bf16 %v2373_v28, %v2372_v46  ;;  %v2368_v26 = vmul.f32 %v13688_v2, %v13283_v36 }
 0x415   : > { %v3239_v38 = vrot.slane %v3238_v22, 7  ;;  %v3226_v39 = vpop.permute.xlu1 %3225  ;;  %v13720_v43 = vld [vmem:[#allocation3 + $0x40] sm:$0xff]  ;;  %v13763_v28 = vsel %vm521_vm1, %v1971_v63, %v1973_v11  ;;  %v13775_v46 = vmul.f32 %v13695_v8, %v13232_v17  ;;  %v13785_v63 = vmul.f32 %v13672_v53, %v13232_v17  ;;  %v13787_v11 = vld [vmem:[#allocation3 + $0x30] sm:$0xff] }
 0x416   : > { %3233 = vst.msk [vmem:[#allocation2] sm:$0xf] %vm567_vm5, %v3226_v39  ;;  %v2234_v16 = vmul.f32 %v13720_v43, %v13266_v30  ;;  %v2376_v31 = vmul.f32 %v13720_v43, %v13281_v35  ;;  %v13801_v50 = vmul.f32 %v13763_v28, %v13232_v17 }
 0x417   : > { %v3240_v41 = vsel %vm521_vm1, %v3239_v38, %v3238_v22  ;;  %v2371_v22 = vmul.f32 %v13690_v6, %v13283_v36  ;;  %v2375_v38 = vmul.f32 %v13729_v47, %v13289_v37 }
 0x418   : > { %3242 = vst.msk [vmem:[#allocation2 + $0x4] ss:$8 sm:$0x7] %vm13241_vm4, %v3240_v41  ;;  %v3228_v45 = vpop.permute.xlu0 %3227  ;;  %11979 = vrot.lane.b32.xlu1 %v11978_v27, %s16856_s24  ;;  %11999 = vrot.lane.b32.xlu0 %v11998_v40, %s16855_s30  ;;  %v12018_v21 = vpack.i.bf16 %v2234_v16, %v2233_v55  ;;  %v13767_v41 = vpack.i.bf16 %v13720_v43, %v13729_v47 }
 0x419   : > { %v3229_v48 = vsel %vm521_vm1, %v3226_v39, %v3228_v45  ;;  %3235 = vst.msk [vmem:[#allocation2 + $0x10] sm:$0xf] %vm570_vm6, %v3228_v45  ;;  %v11993_v39 = vpack.i.bf16 %v2371_v22, %v2368_v26  ;;  %v12023_v27 = vpack.i.bf16 %v2376_v31, %v2375_v38  ;;  %v13758_v40 = vld [vmem:[#allocation3 + $0x58] sm:$0xff]  ;;  %v13797_v16 = vmul.f32 %v13729_v47, %v13232_v17 }
 0x41a   : > { %3234 = vst [vmem:[#allocation2 + $0x8] sm:$0xf] %v3229_v48  ;;  %v13771_v45 = vpack.i.bf16 %v13758_v40, %v13763_v28  ;;  %v13777_v48 = vld [vmem:[#allocation3 + $0x48] sm:$0xff]  ;;  %v2633_v31 = vmul.f32 %v13702_v15, %v13321_v51  ;;  %v2632_v26 = vmul.f32 %v13695_v8, %v13331_v54 }
 0x41c   : > { %11984 = vrot.lane.b32.xlu1 %v13735_v49, %s16854_s22  ;;  %12004 = vrot.lane.b32.xlu0 %v12003_v59, %s16856_s24  ;;  %v13791_v59 = vpack.i.bf16 %v13777_v48, %v13787_v11  ;;  %v12058_v38 = vpack.i.bf16 %v2633_v31, %v2632_v26  ;;  %v2377_v31 = vmul.f32 %v13777_v48, %v13283_v36 }
 0x41d   : > { %v2631_v26 = vmul.f32 %v13690_v6, %v13310_v44 }
 0x41f   : > { %v12083_v42 = vpack.i.bf16 %v2631_v26, %v2628_v1  ;;  %v2637_v1 = vmul.f32 %v13777_v48, %v13310_v44 }
 0x420   : > { %11989 = vrot.lane.b32.xlu1 %v11988_v19, %s16855_s30  ;;  %12019 = vrot.lane.b32.xlu0 %v12018_v21, %s16855_s30  ;;  %v2630_v19 = vmul.f32 %v13675_v56, %v13321_v51  ;;  %v2629_v21 = vmul.f32 %v13672_v53, %v13331_v54 }
 0x422   : > { %v12053_v22 = vpack.i.bf16 %v2630_v19, %v2629_v21  ;;  %v2232_v19 = vmul.f32 %v13787_v11, %v13262_v29  ;;  %v2236_v21 = vmul.f32 %v13763_v28, %v13272_v32 }
 0x424   : > { %11994 = vrot.lane.b32.xlu1 %v11993_v39, %s16856_s24  ;;  %12024 = vrot.lane.b32.xlu0 %v12023_v27, %s16856_s24  ;;  %v2235_v39 = vmul.f32 %v13777_v48, %v13262_v29  ;;  %v2237_v27 = vmul.f32 %v13758_v40, %v13266_v30 }
 0x426   : > { %v12078_v55 = vpack.i.bf16 %v2237_v27, %v2236_v21  ;;  %v2379_v27 = vmul.f32 %v13758_v40, %v13281_v35 }
 0x428   : > { %12009 = vrot.lane.b32.xlu1 %v13767_v41, %s16854_s22  ;;  %12029 = vrot.lane.b32.xlu0 %v13771_v45, %s16854_s22 }
 0x42c   : > { %12014 = vrot.lane.b32.xlu1 %v13791_v59, %s16854_s22  ;;  %12034 = vrot.lane.b32.xlu0 %v13735_v49, %s16853_s27 }
 0x430   : > { %12039 = vrot.lane.b32.xlu1 %v13700_v14, %s16853_s27  ;;  %12044 = vrot.lane.b32.xlu0 %v13767_v41, %s16853_s27 }
 0x434   : > { %12054 = vrot.lane.b32.xlu1 %v12053_v22, %s16857_s23  ;;  %12049 = vrot.lane.b32.xlu0 %v13791_v59, %s16853_s27  ;;  %v12063_v22 = vpack.i.bf16 %v2235_v39, %v2232_v19  ;;  %v2636_v39 = vmul.f32 %v13720_v43, %v13321_v51  ;;  %v2378_v19 = vmul.f32 %v13763_v28, %v13289_v37 }
 0x438   : > { %12074 = vrot.lane.b32.xlu1 %v13771_v45, %s16853_s27  ;;  %12059 = vrot.lane.b32.xlu0 %v12058_v38, %s16857_s23  ;;  %v2374_v38 = vmul.f32 %v13787_v11, %v13283_v36 }
 0x43a   : > { %v12068_v7 = vpack.i.bf16 %v2377_v31, %v2374_v38  ;;  %v2772_v31 = vmul.f32 %v13675_v56, %v13345_v61 }
 0x43c   : > { %12064 = vrot.lane.b32.xlu0 %v12063_v22, %s16855_s30  ;;  %12079 = vrot.lane.b32.xlu1 %v12078_v55, %s16855_s30  ;;  %v2635_v55 = vmul.f32 %v13729_v47, %v13331_v54  ;;  %v12098_v22 = vpack.i.bf16 %v2379_v27, %v2378_v19  ;;  %v2773_v27 = vmul.f32 %v13690_v6, %v13349_v62 }
 0x43d   : > { %v2770_v19 = vmul.f32 %v13688_v2, %v13349_v62 }
 0x43e   : > { %v12088_v21 = vpack.i.bf16 %v2636_v39, %v2635_v55  ;;  %v2775_v39 = vmul.f32 %v13702_v15, %v13345_v61  ;;  %v2774_v55 = vmul.f32 %v13695_v8, %v13358_v0 }
 0x440   : > { %12069 = vrot.lane.b32.xlu0 %v12068_v7, %s16856_s24  ;;  %12084 = vrot.lane.b32.xlu1 %v12083_v42, %s16857_s23  ;;  %v2634_v42 = vmul.f32 %v13787_v11, %v13310_v44  ;;  %v2771_v7 = vmul.f32 %v13672_v53, %v13358_v0 }
 0x442   : > { %v12093_v26 = vpack.i.bf16 %v2637_v1, %v2634_v42  ;;  %v12103_v38 = vpack.i.bf16 %v2772_v31, %v2771_v7  ;;  %v2778_v1 = vmul.f32 %v13720_v43, %v13345_v61  ;;  %v2777_v31 = vmul.f32 %v13729_v47, %v13358_v0 }
 0x443   : > { %v2779_v7 = vmul.f32 %v13777_v48, %v13349_v62 }
 0x444   : > { %12089 = vrot.lane.b32.xlu0 %v12088_v21, %s16857_s23  ;;  %12099 = vrot.lane.b32.xlu1 %v12098_v22, %s16856_s24  ;;  %v12108_v21 = vpack.i.bf16 %v2775_v39, %v2774_v55  ;;  %v12113_v22 = vpack.i.bf16 %v2773_v27, %v2770_v19  ;;  %v12118_v42 = vpack.i.bf16 %v2778_v1, %v2777_v31 }
 0x445   : > { %v2638_v39 = vmul.f32 %v13763_v28, %v13331_v54  ;;  %v2781_v19 = vmul.f32 %v13758_v40, %v13345_v61  ;;  %v3032_v1 = vmul.f32 %v13675_v56, %v13392_v23  ;;  %v3033_v56 = vmul.f32 %v13690_v6, %v13395_v24 }
 0x448   : > { %12094 = vrot.lane.b32.xlu0 %v12093_v26, %s16857_s23  ;;  %12104 = vrot.lane.b32.xlu1 %v12103_v38, %s16858_s16  ;;  %v2639_v26 = vmul.f32 %v13758_v40, %v13321_v51  ;;  %v2776_v38 = vmul.f32 %v13787_v11, %v13349_v62 }
 0x44a   : > { %v12123_v27 = vpack.i.bf16 %v2779_v7, %v2776_v38  ;;  %v12138_v55 = vpack.i.bf16 %v2639_v26, %v2638_v39  ;;  %v3036_v7 = vmul.f32 %v13787_v11, %v13395_v24  ;;  %v13939_v39 = vld [vmem:[#allocation2 + $0x8] sm:$0xff] }
 0x44c   : > { %12109 = vrot.lane.b32.xlu0 %v12108_v21, %s16858_s16  ;;  %12114 = vrot.lane.b32.xlu1 %v12113_v22, %s16858_s16  ;;  %v3035_v22 = vmul.f32 %v13702_v15, %v13392_v23  ;;  %v3038_v15 = vmul.f32 %v13720_v43, %v13392_v23  ;;  %v3041_v43 = vmul.f32 %v13758_v40, %v13392_v23 }
 0x44d   : > { %v3473_v40 = vmul.f32 %v13939_v39, %v13272_v32 }
 0x450   : > { %12119 = vrot.lane.b32.xlu0 %v12118_v42, %s16858_s16  ;;  %12129 = vrot.lane.b32.xlu1 %v13680_v57, %s16859_s21  ;;  %v2780_v57 = vmul.f32 %v13763_v28, %v13358_v0  ;;  %v3039_v42 = vmul.f32 %v13777_v48, %v13395_v24 }
 0x452   : > { %v12153_v21 = vpack.i.bf16 %v2781_v19, %v2780_v57  ;;  %v12193_v26 = vpack.i.bf16 %v3039_v42, %v3036_v7  ;;  %v3602_v57 = vmul.f32 %v13939_v39, %v13289_v37 }
 0x454   : > { %12124 = vrot.lane.b32.xlu0 %v12123_v27, %s16858_s16  ;;  %12139 = vrot.lane.b32.xlu1 %v12138_v55, %s16857_s23  ;;  %v13941_v27 = vld [vmem:[#allocation2 + $0x10] sm:$0xff] }
 0x455   : > { %v3474_v55 = vmul.f32 %v13941_v27, %v13266_v30 }
 0x458   : > { %12134 = vrot.lane.b32.xlu0 %v13735_v49, %s16859_s21  ;;  %12144 = vrot.lane.b32.xlu1 %v13700_v14, %s16859_s21  ;;  %v3034_v14 = vmul.f32 %v13695_v8, %v13406_v33  ;;  %v3031_v49 = vmul.f32 %v13672_v53, %v13406_v33  ;;  %v3030_v8 = vmul.f32 %v13688_v2, %v13395_v24 }
 0x45a   : > { %v12168_v31 = vpack.i.bf16 %v3032_v1, %v3031_v49  ;;  %v12178_v53 = vpack.i.bf16 %v3033_v56, %v3030_v8 }
 0x45c   : > { %12149 = vrot.lane.b32.xlu0 %v13767_v41, %s16859_s21  ;;  %12154 = vrot.lane.b32.xlu1 %v12153_v21, %s16858_s16  ;;  %v12173_v41 = vpack.i.bf16 %v3035_v22, %v3034_v14  ;;  %v3603_v21 = vmul.f32 %v13941_v27, %v13281_v35 }
 0x460   : > { %12164 = vrot.lane.b32.xlu0 %v13791_v59, %s16859_s21  ;;  %12159 = vrot.lane.b32.xlu1 %v13771_v45, %s16859_s21  ;;  %v3037_v45 = vmul.f32 %v13729_v47, %v13406_v33  ;;  %v3040_v47 = vmul.f32 %v13763_v28, %v13406_v33  ;;  %v13949_v28 = vld [vmem:[#allocation2] sm:$0xff] }
 0x461   : > { %v3472_v19 = vmul.f32 %v13949_v28, %v13262_v29  ;;  %v3601_v22 = vmul.f32 %v13949_v28, %v13283_v36  ;;  %v3853_v8 = vmul.f32 %v13949_v28, %v13310_v44 }
 0x462   : > { %v12183_v59 = vpack.i.bf16 %v3038_v15, %v3037_v45  ;;  %v12188_v38 = vpack.i.bf16 %v3041_v43, %v3040_v47  ;;  %v3855_v15 = vmul.f32 %v13941_v27, %v13321_v51 }
 0x464   : > { %12174 = vrot.lane.b32.xlu0 %v12173_v41, %s16860_s1  ;;  %12169 = vrot.lane.b32.xlu1 %v12168_v31, %s16860_s1  ;;  %v3854_v31 = vmul.f32 %v13939_v39, %v13331_v54 }
 0x468   : > { %12184 = vrot.lane.b32.xlu0 %v12183_v59, %s16860_s1  ;;  %12179 = vrot.lane.b32.xlu1 %v12178_v53, %s16860_s1  ;;  %v3983_v59 = vmul.f32 %v13939_v39, %v13358_v0 }
 0x46c   : > { %12194 = vrot.lane.b32.xlu0 %v12193_v26, %s16860_s1  ;;  %12189 = vrot.lane.b32.xlu1 %v12188_v38, %s16860_s1  ;;  %v3984_v26 = vmul.f32 %v13941_v27, %v13345_v61  ;;  %v3982_v38 = vmul.f32 %v13949_v28, %v13349_v62 }
 0x470   : > { %3264 = vrot.lane.b32.xlu0 %v13941_v27, %s16854_s22  ;;  %3262 = vrot.lane.b32.xlu1 %v13939_v39, %s16854_s22 }
 0x474   : > { %3260 = vrot.lane.b32.xlu1 %v13949_v28, %s16854_s22  ;;  %3484 = vrot.lane.b32.xlu0 %v3473_v40, %s16855_s30 }
 0x478   : > { %3486 = vrot.lane.b32.xlu1 %v3474_v55, %s16855_s30  ;;  %3482 = vrot.lane.b32.xlu0 %v3472_v19, %s16855_s30 }
 0x47c   : > { %3613 = vrot.lane.b32.xlu1 %v3602_v57, %s16856_s24  ;;  %3615 = vrot.lane.b32.xlu0 %v3603_v21, %s16856_s24 }
 0x480   : > { %3611 = vrot.lane.b32.xlu1 %v3601_v22, %s16856_s24  ;;  %3736 = vrot.lane.b32.xlu0 %v13939_v39, %s16853_s27 }
 0x482   : > { %v11960_v1 = vpop.permute.xlu0 %11959  ;;  %v13971_v14 = vpop.permute.xlu1 %11964 }
 0x483   : > { %v11962_v53 = vunpack.i.h.bf16 %v11960_v1  ;;  %v11961_v42 = vunpack.i.l.bf16 %v11960_v1 }
 0x484   : > { %3738 = vrot.lane.b32.xlu1 %v13941_v27, %s16853_s27  ;;  %3734 = vrot.lane.b32.xlu0 %v13949_v28, %s16853_s27 }
 0x485   : > { %v2063_v22 = vsel %vm619_vm9, %v11961_v42, %v11962_v53  ;;  %v4235_v53 = vmul.f32 %v13939_v39, %v13406_v33 }
 0x486   : > { %v11970_v49 = vpop.permute.xlu0 %11969  ;;  %v13977_v41 = vpop.permute.xlu1 %11974 }
 0x487   : > { %v11971_v43 = vunpack.i.l.bf16 %v11970_v49  ;;  %v11972_v40 = vunpack.i.h.bf16 %v11970_v49 }
 0x488   : > { %3865 = vrot.lane.b32.xlu1 %v3854_v31, %s16857_s23  ;;  %3867 = vrot.lane.b32.xlu0 %v3855_v15, %s16857_s23 }
 0x489   : > { %v2062_v57 = vsel %vm619_vm9, %v11971_v43, %v11961_v42 }
 0x48a   : > { %v13985_v56 = vpop.permute.xlu0 %11999  ;;  %v13987_v45 = vpop.permute.xlu1 %11979 }
 0x48b   : > { %v12001_v5 = vunpack.i.l.bf16 %v13985_v56 }
 0x48c   : > { %3863 = vrot.lane.b32.xlu1 %v3853_v8, %s16857_s23  ;;  %3994 = vrot.lane.b32.xlu0 %v3983_v59, %s16858_s16 }
 0x48e   : > { %v13995_v7 = vpop.permute.xlu0 %12004  ;;  %v11985_v47 = vpop.permute.xlu1 %11984 }
 0x48f   : > { %v11987_v55 = vunpack.i.h.bf16 %v11985_v47  ;;  %v11986_v19 = vunpack.i.l.bf16 %v11985_v47 }
 0x490   : > { %3996 = vrot.lane.b32.xlu1 %v3984_v26, %s16858_s16  ;;  %3992 = vrot.lane.b32.xlu0 %v3982_v38, %s16858_s16  ;;  %v4236_v26 = vmul.f32 %v13941_v27, %v13392_v23  ;;  %v4234_v38 = vmul.f32 %v13949_v28, %v13395_v24 }
 0x491   : > { %v2064_v21 = vsel %vm619_vm9, %v11972_v40, %v11986_v19  ;;  %v2065_v1 = vsel %vm619_vm9, %v11986_v19, %v11987_v55 }
 0x492   : > { %v14007_v31 = vpop.permute.xlu0 %12019  ;;  %v14009_v15 = vpop.permute.xlu1 %11989  ;;  %v11267_v8 = vpack.c.bf16 %v2065_v1, %v2063_v22  ;;  %v11269_v49 = vpack.c.bf16 %v2064_v21, %v2062_v57 }
 0x494   : > { %4117 = vrot.lane.b32.xlu1 %v13939_v39, %s16859_s21  ;;  %4119 = vrot.lane.b32.xlu0 %v13941_v27, %s16859_s21 }
 0x495   : > { %11268 = vmatprep.subr.bf16.mxu1 %v11267_v8 }
 0x496   : > { %11270 = vmatpush1.bf16.msra.mxu1 %v11269_v49  ;;  %v14015_v59 = vpop.permute.xlu0 %12024  ;;  %v14017_v43 = vpop.permute.xlu1 %11994 }
 0x498   : > { %4115 = vrot.lane.b32.xlu1 %v13949_v28, %s16859_s21  ;;  %4246 = vrot.lane.b32.xlu0 %v4235_v53, %s16860_s1 }
 0x49a   : > { %v12030_v42 = vpop.permute.xlu0 %12029  ;;  %v12010_v47 = vpop.permute.xlu1 %12009 }
 0x49b   : > { %v12032_v40 = vunpack.i.h.bf16 %v12030_v42  ;;  %v12031_v55 = vunpack.i.l.bf16 %v12030_v42  ;;  %v12012_v19 = vunpack.i.h.bf16 %v12010_v47  ;;  %v12011_v57 = vunpack.i.l.bf16 %v12010_v47 }
 0x49c   : > { %4248 = vrot.lane.b32.xlu1 %v4236_v26, %s16860_s1  ;;  %4244 = vrot.lane.b32.xlu0 %v4234_v38, %s16860_s1 }
 0x49d   : > { %v2067_v21 = vsel %vm619_vm9, %v12011_v57, %v12012_v19  ;;  %v2069_v22 = vsel %vm619_vm9, %v12031_v55, %v12032_v40  ;;  %v2013_v19 = vmul.f32 %v13690_v6, %v13236_v18  ;;  %v12002_v40 = vunpack.i.h.bf16 %v13985_v56 }
 0x49e   : > { %v14032_v1 = vpop.permute.xlu0 %12034  ;;  %v12015_v8 = vpop.permute.xlu1 %12014  ;;  %v11271_v49 = vpack.c.bf16 %v2069_v22, %v2067_v21  ;;  %v10954_v21 = vld [vmem:[%s16791_s9 + $0x8] sm:$0xff]  ;;  %v11976_v6 = vunpack.i.l.bf16 %v13977_v41 }
 0x49f   : > { %v12017_v27 = vunpack.i.h.bf16 %v12015_v8  ;;  %v12016_v53 = vunpack.i.l.bf16 %v12015_v8 }
 0x4a0   : > { %11272 = vmatprep.subr.bf16.mxu1 %v11271_v49  ;;  %v2017_v49 = vmul.f32 %v13777_v48, %v13236_v18 }
 0x4a1   : > { %v2068_v12 = vsel %vm619_vm9, %v12017_v27, %v12031_v55  ;;  %v2066_v42 = vsel %vm619_vm9, %v12016_v53, %v12011_v57  ;;  %v2011_v55 = vmul.f32 %v13688_v2, %v13236_v18  ;;  %v16861_v57 = vpack.c.bf16 %v13775_v46, %v13785_v63 }
 0x4a2   : > { %v14036_v47 = vpop.permute.xlu0 %12044  ;;  %v14038_v26 = vpop.permute.xlu1 %12039  ;;  %v11273_v38 = vpack.c.bf16 %v2068_v12, %v2066_v42  ;;  %v11977_v12 = vunpack.i.h.bf16 %v13977_v41  ;;  %v11992_v27 = vunpack.i.h.bf16 %v14009_v15  ;;  %v11991_v2 = vunpack.i.l.bf16 %v14009_v15 }
 0x4a3   : > { %v11277_v56 = vpack.c.bf16 %v2013_v19, %v2011_v55  ;;  %v2015_v46 = vmul.f32 %v13787_v11, %v13236_v18  ;;  %v2279_v63 = vsel %vm862_vm12, %v12001_v5, %v12002_v40  ;;  %v16862_v41 = vmov 0.0  }
 0x4a4   : > { %11274 = vmatpush1.bf16.msra.mxu1 %v11273_v38  ;;  %v16863_v53 = vpack.c.bf16 %v13801_v50, %v13797_v16  ;;  %v2277_v15 = vsel %vm862_vm12, %v11976_v6, %v11977_v12  ;;  %v2278_v19 = vsel %vm862_vm12, %v11992_v27, %v12001_v5  ;;  %v11982_v40 = vunpack.i.h.bf16 %v13987_v45  ;;  %v2019_v50 = vld [vmem:[%s16791_s9] sm:$0xff] }
 0x4a5   : > { %11276 = vmatprep.subr.bf16.mxu1 %v16861_v57  ;;  %v11281_v38 = vpack.c.bf16 %v2017_v49, %v2015_v46  ;;  %v11283_v11 = vpack.c.bf16 %v2279_v63, %v2277_v15  ;;  %v11981_v55 = vunpack.i.l.bf16 %v13987_v45  ;;  %v12007_v57 = vunpack.i.h.bf16 %v13995_v7 }
 0x4a6   : > { %v14054_v22 = vpop.permute.xlu0 %12049  ;;  %v14056_v8 = vpop.permute.xlu1 %12054  ;;  %v12006_v16 = vunpack.i.l.bf16 %v13995_v7  ;;  %v12022_v12 = vunpack.i.h.bf16 %v14007_v31  ;;  %v12021_v5 = vunpack.i.l.bf16 %v14007_v31  ;;  %v11997_v7 = vunpack.i.h.bf16 %v14017_v43 }
 0x4a7   : > { %10955 = vmatmul.mubr.msk.f32.vlgmr.msra.gmra.mrb[8].mxu1 %vm1385_vm13, %v10954_v21  ;;  %v2276_v21 = vsel %vm862_vm12, %v11991_v2, %v11976_v6  ;;  %v11996_v63 = vunpack.i.l.bf16 %v14017_v43 }
 0x4a8   : > { %11278 = vmatpush1.bf16.msra.mxu1 %v11277_v56  ;;  %2219 = vmatprep.mubr.f32.mxu1 %v16862_v41  ;;  %v11285_v49 = vpack.c.bf16 %v2278_v19, %v2276_v21  ;;  %v2281_v19 = vsel %vm862_vm12, %v12021_v5, %v12022_v12  ;;  %v12036_v12 = vunpack.i.l.bf16 %v14032_v1 }
 0x4a9   : > { %11280 = vmatprep.subr.bf16.mxu1 %v16863_v53  ;;  %v2419_v53 = vsel %vm1002_vm14, %v11981_v55, %v11982_v40 }
 0x4aa   : > { %v14070_v42 = vpop.permute.xlu0 %12059  ;;  %v14072_v48 = vpop.permute.xlu1 %12074 }
 0x4ac   : > { %11282 = vmatpush1.bf16.msra.mxu1 %v11281_v38  ;;  %v2421_v38 = vsel %vm1002_vm14, %v12006_v16, %v12007_v57 }
 0x4ad   : > { %11284 = vmatprep.subr.bf16.mxu1 %v11283_v11  ;;  %v12027_v11 = vunpack.i.h.bf16 %v14015_v59  ;;  %v11291_v57 = vpack.c.bf16 %v2421_v38, %v2419_v53 }
 0x4ae   : > { %v12065_v6 = vpop.permute.xlu0 %12064  ;;  %v12080_v56 = vpop.permute.xlu1 %12079 }
 0x4af   : > { %v12067_v27 = vunpack.i.h.bf16 %v12065_v6  ;;  %v12066_v2 = vunpack.i.l.bf16 %v12065_v6  ;;  %v12082_v45 = vunpack.i.h.bf16 %v12080_v56  ;;  %v12081_v46 = vunpack.i.l.bf16 %v12080_v56  ;;  %10956 = vmatmul.mubr.msk.f32.vlgmr.msra.gmra.mrb[8].mxu1 %vm1385_vm13, %v2019_v50 }
 0x4b0   : > { %11286 = vmatpush1.bf16.msra.mxu1 %v11285_v49  ;;  %2359 = vmatprep.mubr.f32.mxu1 %v16862_v41  ;;  %v12026_v50 = vunpack.i.l.bf16 %v14015_v59  ;;  %v2420_v49 = vsel %vm1002_vm14, %v11997_v7, %v12006_v16  ;;  %v10957_v59 = vld [vmem:[%s16791_s9 + $0x10] sm:$0xff] }
 0x4b1   : > { %v2280_v31 = vsel %vm862_vm12, %v12066_v2, %v12021_v5  ;;  %v2282_v15 = vsel %vm862_vm12, %v12067_v27, %v12081_v46  ;;  %v2283_v21 = vsel %vm862_vm12, %v12081_v46, %v12082_v45  ;;  %v2418_v2 = vsel %vm1002_vm14, %v11996_v63, %v11981_v55 }
 0x4b2   : > { %v12070_v43 = vpop.permute.xlu0 %12069  ;;  %v14098_v6 = vpop.permute.xlu1 %12084  ;;  %v11287_v40 = vpack.c.bf16 %v2283_v21, %v2281_v19  ;;  %v11289_v56 = vpack.c.bf16 %v2282_v15, %v2280_v31  ;;  %v12037_v27 = vunpack.i.h.bf16 %v14032_v1  ;;  %v11967_v45 = vunpack.i.h.bf16 %v13971_v14 }
 0x4b3   : > { %v12071_v5 = vunpack.i.l.bf16 %v12070_v43  ;;  %v11966_v46 = vunpack.i.l.bf16 %v13971_v14  ;;  %v2423_v55 = vsel %vm1002_vm14, %v12026_v50, %v12027_v11  ;;  %v12072_v7 = vunpack.i.h.bf16 %v12070_v43 }
 0x4b4   : > { %11288 = vmatprep.subr.bf16.mxu1 %v11287_v40  ;;  %v11293_v38 = vpack.c.bf16 %v2420_v49, %v2418_v2  ;;  %v12042_v31 = vunpack.i.h.bf16 %v14038_v26  ;;  %v12041_v15 = vunpack.i.l.bf16 %v14038_v26  ;;  %v12077_v19 = vunpack.i.h.bf16 %v14072_v48 }
 0x4b5   : > { %11290 = vmatpush1.bf16.msra.mxu1 %v11289_v56  ;;  %v2539_v14 = vsel %vm1127_vm15, %v12036_v12, %v12037_v27  ;;  %v12076_v21 = vunpack.i.l.bf16 %v14072_v48  ;;  %v2422_v40 = vsel %vm1002_vm14, %v12071_v5, %v12026_v50  ;;  %v2537_v2 = vsel %vm1127_vm15, %v11966_v46, %v11967_v45 }
 0x4b6   : > { %v14109_v53 = vpop.permute.xlu0 %12089  ;;  %v12100_v16 = vpop.permute.xlu1 %12099  ;;  %11292 = vmatprep.subr.bf16.mxu1 %v11291_v57  ;;  %v12047_v27 = vunpack.i.h.bf16 %v14036_v47  ;;  %v12046_v48 = vunpack.i.l.bf16 %v14036_v47  ;;  %v11299_v50 = vpack.c.bf16 %v2539_v14, %v2537_v2  ;;  %v2538_v5 = vsel %vm1127_vm15, %v12042_v31, %v12036_v12 }
 0x4b7   : > { %v12102_v63 = vunpack.i.h.bf16 %v12100_v16  ;;  %v12101_v1 = vunpack.i.l.bf16 %v12100_v16  ;;  %v12062_v16 = vunpack.i.h.bf16 %v14070_v42  ;;  %v2543_v45 = vsel %vm1127_vm15, %v12076_v21, %v12077_v19 }
 0x4b8   : > { %10958 = vmatmul.mubr.msk.f32.vlgmr.msra.gmra.mrb[8].mxu1 %vm1385_vm13, %v10957_v59  ;;  %v2536_v59 = vsel %vm1127_vm15, %v12041_v15, %v11966_v46  ;;  %v12051_v47 = vunpack.i.l.bf16 %v14054_v22  ;;  %v12057_v12 = vunpack.i.h.bf16 %v14056_v8  ;;  %v12056_v46 = vunpack.i.l.bf16 %v14056_v8 }
 0x4b9   : > { %v2424_v11 = vsel %vm1002_vm14, %v12072_v7, %v12101_v1  ;;  %11294 = vmatpush1.bf16.msra.mxu1 %v11293_v38  ;;  %v2425_v43 = vsel %vm1002_vm14, %v12101_v1, %v12102_v63  ;;  %2501 = vmatprep.mubr.f32.mxu1 %v16862_v41  ;;  %v12061_v7 = vunpack.i.l.bf16 %v14070_v42  ;;  %v12052_v63 = vunpack.i.h.bf16 %v14054_v22 }
 0x4ba   : > { %v14122_v56 = vpop.permute.xlu0 %12094  ;;  %v14124_v26 = vpop.permute.xlu1 %12104  ;;  %v11295_v57 = vpack.c.bf16 %v2425_v43, %v2423_v55  ;;  %v11297_v49 = vpack.c.bf16 %v2424_v11, %v2422_v40  ;;  %v10959_v55 = vld [vmem:[%s16791_s9 + $0x18] sm:$0xff]  ;;  %v12087_v42 = vunpack.i.h.bf16 %v14098_v6  ;;  %v12086_v31 = vunpack.i.l.bf16 %v14098_v6 }
 0x4bb   : > { %v11301_v15 = vpack.c.bf16 %v2538_v5, %v2536_v59  ;;  %v2541_v14 = vsel %vm1127_vm15, %v12046_v48, %v12047_v27  ;;  %v2542_v19 = vsel %vm1127_vm15, %v12052_v63, %v12076_v21  ;;  %v2681_v22 = vsel %vm1267_vm0, %v12061_v7, %v12062_v16  ;;  %v10961_v16 = vld [vmem:[%s16791_s9 + $0x20] sm:$0xff] }
 0x4bc   : > { %11296 = vmatprep.subr.bf16.mxu1 %v11295_v57  ;;  %v11303_v40 = vpack.c.bf16 %v2543_v45, %v2541_v14  ;;  %v2540_v8 = vsel %vm1127_vm15, %v12051_v47, %v12046_v48  ;;  %v2679_v6 = vsel %vm1267_vm0, %v12056_v46, %v12057_v12  ;;  %v2680_v57 = vsel %vm1267_vm0, %v12087_v42, %v12061_v7 }
 0x4bd   : > { %11298 = vmatpush1.bf16.msra.mxu1 %v11297_v49  ;;  %v2678_v21 = vsel %vm1267_vm0, %v12086_v31, %v12056_v46  ;;  %v11305_v49 = vpack.c.bf16 %v2542_v19, %v2540_v8  ;;  %v11307_v2 = vpack.c.bf16 %v2681_v22, %v2679_v6  ;;  %v12092_v27 = vunpack.i.h.bf16 %v14109_v53 }
 0x4be   : > { %v12110_v1 = vpop.permute.xlu0 %12109  ;;  %v12115_v38 = vpop.permute.xlu1 %12114  ;;  %11300 = vmatprep.subr.bf16.mxu1 %v11299_v50  ;;  %v12091_v50 = vunpack.i.l.bf16 %v14109_v53  ;;  %v12096_v48 = vunpack.i.l.bf16 %v14122_v56  ;;  %v12107_v7 = vunpack.i.h.bf16 %v14124_v26  ;;  %v12106_v45 = vunpack.i.l.bf16 %v14124_v26 }
 0x4bf   : > { %v12112_v5 = vunpack.i.h.bf16 %v12110_v1  ;;  %v12111_v59 = vunpack.i.l.bf16 %v12110_v1  ;;  %v11309_v12 = vpack.c.bf16 %v2680_v57, %v2678_v21  ;;  %v12117_v53 = vunpack.i.h.bf16 %v12115_v38 }
 0x4c0   : > { %10960 = vmatmul.mubr.msk.f32.vlgmr.msra.gmra.mrb[8].mxu1 %vm1385_vm13, %v10959_v55  ;;  %v12097_v55 = vunpack.i.h.bf16 %v14122_v56  ;;  %v12116_v46 = vunpack.i.l.bf16 %v12115_v38  ;;  %v2683_v31 = vsel %vm1267_vm0, %v12091_v50, %v12092_v27  ;;  %v2682_v56 = vsel %vm1267_vm0, %v12096_v48, %v12091_v50 }
 0x4c1   : > { %11302 = vmatpush1.bf16.msra.mxu1 %v11301_v15  ;;  %2619 = vmatprep.mubr.f32.mxu1 %v16862_v41  ;;  %v2823_v15 = vsel %vm1407_vm2, %v12111_v59, %v12112_v5  ;;  %v2821_v8 = vsel %vm1407_vm2, %v12106_v45, %v12107_v7  ;;  %v2822_v6 = vsel %vm1407_vm2, %v12117_v53, %v12111_v59  ;;  %v10963_v59 = vld [vmem:[%s16791_s9 + $0x28] sm:$0xff] }
 0x4c2   : > { %v14149_v11 = vpop.permute.xlu0 %12119  ;;  %v14151_v43 = vpop.permute.xlu1 %12129  ;;  %11304 = vmatprep.subr.bf16.mxu1 %v11303_v40  ;;  %v2820_v57 = vsel %vm1407_vm2, %v12116_v46, %v12106_v45 }
 0x4c3   : > { %v12122_v21 = vunpack.i.h.bf16 %v14149_v11  ;;  %v12132_v27 = vunpack.i.h.bf16 %v14151_v43  ;;  %v12131_v50 = vunpack.i.l.bf16 %v14151_v43 }
 0x4c5   : > { %11306 = vmatpush1.bf16.msra.mxu1 %v11305_v49  ;;  %v11315_v49 = vpack.c.bf16 %v2823_v15, %v2821_v8 }
 0x4c6   : > { %v12125_v63 = vpop.permute.xlu0 %12124  ;;  %v12140_v47 = vpop.permute.xlu1 %12139  ;;  %11308 = vmatprep.subr.bf16.mxu1 %v11307_v2  ;;  %v12121_v2 = vunpack.i.l.bf16 %v14149_v11 }
 0x4c7   : > { %v12142_v1 = vunpack.i.h.bf16 %v12140_v47  ;;  %v12141_v42 = vunpack.i.l.bf16 %v12140_v47  ;;  %v12126_v5 = vunpack.i.l.bf16 %v12125_v63  ;;  %v11317_v47 = vpack.c.bf16 %v2822_v6, %v2820_v57 }
 0x4c8   : > { %10962 = vmatmul.mubr.msk.f32.vlgmr.msra.gmra.mrb[8].mxu1 %vm1385_vm13, %v10961_v16 }
 0x4c9   : > { %v2684_v14 = vsel %vm1267_vm0, %v12097_v55, %v12141_v42  ;;  %11310 = vmatpush1.bf16.msra.mxu1 %v11309_v12  ;;  %v2685_v26 = vsel %vm1267_vm0, %v12141_v42, %v12142_v1  ;;  %2761 = vmatprep.mubr.f32.mxu1 %v16862_v41  ;;  %v12127_v55 = vunpack.i.h.bf16 %v12125_v63  ;;  %v2824_v43 = vsel %vm1407_vm2, %v12126_v5, %v12121_v2 }
 0x4ca   : > { %v12135_v19 = vpop.permute.xlu0 %12134  ;;  %v12145_v40 = vpop.permute.xlu1 %12144  ;;  %v11311_v38 = vpack.c.bf16 %v2685_v26, %v2683_v31  ;;  %v11313_v22 = vpack.c.bf16 %v2684_v14, %v2682_v56  ;;  %v2825_v1 = vsel %vm1407_vm2, %v12121_v2, %v12122_v21  ;;  %v2939_v42 = vsel %vm1532_vm3, %v12131_v50, %v12132_v27  ;;  %v10965_v27 = vld [vmem:[%s16791_s9 + $0x30] sm:$0xff] }
 0x4cb   : > { %v12137_v48 = vunpack.i.h.bf16 %v12135_v19  ;;  %v12136_v16 = vunpack.i.l.bf16 %v12135_v19  ;;  %v12147_v12 = vunpack.i.h.bf16 %v12145_v40  ;;  %v12146_v11 = vunpack.i.l.bf16 %v12145_v40 }
 0x4cc   : > { %11312 = vmatprep.subr.bf16.mxu1 %v11311_v38 }
 0x4cd   : > { %11314 = vmatpush1.bf16.msra.mxu1 %v11313_v22  ;;  %v2941_v15 = vsel %vm1532_vm3, %v12136_v16, %v12137_v48  ;;  %v2940_v22 = vsel %vm1532_vm3, %v12147_v12, %v12136_v16  ;;  %v2938_v8 = vsel %vm1532_vm3, %v12146_v11, %v12131_v50 }
 0x4ce   : > { %v12150_v7 = vpop.permute.xlu0 %12149  ;;  %v12155_v45 = vpop.permute.xlu1 %12154  ;;  %11316 = vmatprep.subr.bf16.mxu1 %v11315_v49  ;;  %v11323_v2 = vpack.c.bf16 %v2941_v15, %v2939_v42 }
 0x4cf   : > { %v12157_v53 = vunpack.i.h.bf16 %v12155_v45  ;;  %v12156_v46 = vunpack.i.l.bf16 %v12155_v45  ;;  %v12152_v56 = vunpack.i.h.bf16 %v12150_v7  ;;  %v12151_v14 = vunpack.i.l.bf16 %v12150_v7 }
 0x4d0   : > { %10964 = vmatmul.mubr.msk.f32.vlgmr.msra.gmra.mrb[8].mxu1 %vm1385_vm13, %v10963_v59 }
 0x4d1   : > { %v2826_v31 = vsel %vm1407_vm2, %v12127_v55, %v12156_v46  ;;  %11318 = vmatpush1.bf16.msra.mxu1 %v11317_v47  ;;  %v2827_v63 = vsel %vm1407_vm2, %v12156_v46, %v12157_v53  ;;  %2903 = vmatprep.mubr.f32.mxu1 %v16862_v41  ;;  %v11325_v55 = vpack.c.bf16 %v2940_v22, %v2938_v8 }
 0x4d2   : > { %v12165_v26 = vpop.permute.xlu0 %12164  ;;  %v12160_v19 = vpop.permute.xlu1 %12159  ;;  %v11319_v40 = vpack.c.bf16 %v2827_v63, %v2825_v1  ;;  %v11321_v38 = vpack.c.bf16 %v2826_v31, %v2824_v43  ;;  %v2943_v16 = vsel %vm1532_vm3, %v12151_v14, %v12152_v56 }
 0x4d3   : > { %v12162_v6 = vunpack.i.h.bf16 %v12160_v19  ;;  %v12161_v57 = vunpack.i.l.bf16 %v12160_v19  ;;  %v12167_v21 = vunpack.i.h.bf16 %v12165_v26  ;;  %v12166_v49 = vunpack.i.l.bf16 %v12165_v26 }
 0x4d4   : > { %11320 = vmatprep.subr.bf16.mxu1 %v11319_v40 }
 0x4d5   : > { %11322 = vmatpush1.bf16.msra.mxu1 %v11321_v38  ;;  %v2945_v5 = vsel %vm1532_vm3, %v12161_v57, %v12162_v6  ;;  %v2942_v12 = vsel %vm1532_vm3, %v12166_v49, %v12151_v14  ;;  %v2944_v11 = vsel %vm1532_vm3, %v12167_v21, %v12161_v57  ;;  %v10967_v38 = vld [vmem:[%s16791_s9 + $0x38] sm:$0xff] }
 0x4d6   : > { %v12175_v48 = vpop.permute.xlu0 %12174  ;;  %v12170_v59 = vpop.permute.xlu1 %12169  ;;  %11324 = vmatprep.subr.bf16.mxu1 %v11323_v2  ;;  %v11327_v53 = vpack.c.bf16 %v2945_v5, %v2943_v16  ;;  %v11329_v15 = vpack.c.bf16 %v2944_v11, %v2942_v12 }
 0x4d7   : > { %v12177_v50 = vunpack.i.h.bf16 %v12175_v48  ;;  %v12176_v7 = vunpack.i.l.bf16 %v12175_v48  ;;  %v12172_v45 = vunpack.i.h.bf16 %v12170_v59  ;;  %v12171_v47 = vunpack.i.l.bf16 %v12170_v59 }
 0x4d8   : > { %10966 = vmatmul.mubr.msk.f32.vlgmr.msra.gmra.mrb[8].mxu1 %vm1385_vm13, %v10965_v27 }
 0x4d9   : > { %11326 = vmatpush1.bf16.msra.mxu1 %v11325_v55  ;;  %v3081_v46 = vsel %vm1671_vm7, %v12171_v47, %v12172_v45  ;;  %v3083_v43 = vsel %vm1671_vm7, %v12176_v7, %v12177_v50  ;;  %3021 = vmatprep.mubr.f32.mxu1 %v16862_v41  ;;  %v10969_v45 = vld [vmem:[%s16791_s9 + $0x40] sm:$0xff] }
 0x4da   : > { %v12185_v1 = vpop.permute.xlu0 %12184  ;;  %v12180_v42 = vpop.permute.xlu1 %12179  ;;  %11328 = vmatprep.subr.bf16.mxu1 %v11327_v53  ;;  %v11331_v26 = vpack.c.bf16 %v3083_v43, %v3081_v46  ;;  %v3247_v53 = vmul.f32 %v13939_v39, %v13232_v17  ;;  %v10973_v46 = vld [vmem:[%s16787_s5 + $0x20] sm:$0xff]  ;;  %v10974_v39 = vld [vmem:[%s16787_s5 + $0x28] sm:$0xff] }
 0x4db   : > { %v12182_v31 = vunpack.i.h.bf16 %v12180_v42  ;;  %v12181_v63 = vunpack.i.l.bf16 %v12180_v42  ;;  %v12187_v56 = vunpack.i.h.bf16 %v12185_v1  ;;  %v12186_v14 = vunpack.i.l.bf16 %v12185_v1 }
 0x4dc   : > { %v3246_v42 = vmul.f32 %v13949_v28, %v13236_v18  ;;  %v10975_v28 = vld [vmem:[%s16787_s5 + $0x30] sm:$0xff] }
 0x4dd   : > { %v3082_v19 = vsel %vm1671_vm7, %v12182_v31, %v12176_v7  ;;  %v3080_v40 = vsel %vm1671_vm7, %v12181_v63, %v12171_v47  ;;  %11330 = vmatpush1.bf16.msra.mxu1 %v11329_v15  ;;  %v3085_v27 = vsel %vm1671_vm7, %v12186_v14, %v12187_v56  ;;  %v10976_v15 = vld [vmem:[%s16787_s5 + $0x38] sm:$0xff]  ;;  %v3248_v56 = vld [vmem:[%s16787_s5] sm:$0xff] }
 0x4de   : > { %v12195_v22 = vpop.permute.xlu0 %12194  ;;  %v12190_v8 = vpop.permute.xlu1 %12189  ;;  %11332 = vmatprep.subr.bf16.mxu1 %v11331_v26  ;;  %v11333_v6 = vpack.c.bf16 %v3082_v19, %v3080_v40 }
 0x4df   : > { %v12197_v57 = vunpack.i.h.bf16 %v12195_v22  ;;  %v12196_v21 = vunpack.i.l.bf16 %v12195_v22  ;;  %v12192_v49 = vunpack.i.h.bf16 %v12190_v8  ;;  %v12191_v2 = vunpack.i.l.bf16 %v12190_v8  ;;  %v3250_v22 = vld [vmem:[%s16787_s5 + $0x10] sm:$0xff] }
 0x4e0   : > { %10968 = vmatmul.mubr.msk.f32.vlgmr.msra.gmra.mrb[8].mxu1 %vm1385_vm13, %v10967_v38  ;;  %v3249_v38 = vld [vmem:[%s16787_s5 + $0x8] sm:$0xff] }
 0x4e1   : > { %v3084_v5 = vsel %vm1671_vm7, %v12196_v21, %v12186_v14  ;;  %v3086_v48 = vsel %vm1671_vm7, %v12197_v57, %v12191_v2  ;;  %11334 = vmatpush1.bf16.msra.mxu1 %v11333_v6  ;;  %v3087_v59 = vsel %vm1671_vm7, %v12191_v2, %v12192_v49  ;;  %3163 = vmatprep.mubr.f32.mxu1 %v16862_v41  ;;  %v3251_v6 = vld [vmem:[%s16787_s5 + $0x18] sm:$0xff]  ;;  %v10985_v57 = vld [vmem:[%s16787_s5 + $0x40] sm:$0xff] }
 0x4e2   : > { %v3265_v55 = vpop.permute.xlu0 %3264  ;;  %v3263_v16 = vpop.permute.xlu1 %3262  ;;  %v11335_v50 = vpack.c.bf16 %v3087_v59, %v3085_v27  ;;  %v11337_v7 = vpack.c.bf16 %v3086_v48, %v3084_v5  ;;  %v10986_v5 = vld [vmem:[%s16787_s5 + $0x48] sm:$0xff]  ;;  %v10987_v48 = vld [vmem:[%s16787_s5 + $0x50] sm:$0xff] }
 0x4e3   : > { %v3267_v47 = vsel %vm619_vm9, %v3263_v16, %v3265_v55  ;;  %v10988_v55 = vld [vmem:[%s16787_s5 + $0x58] sm:$0xff] }
 0x4e4   : > { %11336 = vmatprep.subr.bf16.mxu1 %v11335_v50 }
 0x4e5   : > { %11338 = vmatpush1.bf16.msra.mxu1 %v11337_v7 }
 0x4e6   : > { %v3261_v12 = vpop.permute.xlu1 %3260  ;;  %3282 = vmatprep.subr.mxu1 %v3267_v47  ;;  %v3485_v43 = vpop.permute.xlu0 %3484 }
 0x4e7   : > { %v3266_v11 = vsel %vm619_vm9, %v3261_v12, %v3263_v16  ;;  %v10993_v16 = vld [vmem:[%s16787_s5 + $0x60] sm:$0xff]  ;;  %v10994_v12 = vld [vmem:[%s16787_s5 + $0x68] sm:$0xff] }
 0x4e8   : > { %10970 = vmatmul.mubr.msk.f32.vlgmr.msra.gmra.mrb[8].mxu1 %vm1385_vm13, %v10969_v45 }
 0x4e9   : > { %3283 = vmatpush1.msra.mxu1 %v3266_v11  ;;  %3346 = vmatprep.mubr.f32.mxu1 %v16862_v41  ;;  %v10995_v11 = vld [vmem:[%s16787_s5 + $0x70] sm:$0xff] }
 0x4ea   : > { %v3487_v1 = vpop.permute.xlu1 %3486  ;;  %3383 = vmatprep.subr.mxu1 %v3247_v53  ;;  %v3483_v63 = vpop.permute.xlu0 %3482 }
 0x4eb   : > { %v3489_v31 = vsel %vm862_vm12, %v3485_v43, %v3487_v1  ;;  %v3488_v19 = vsel %vm862_vm12, %v3483_v63, %v3485_v43  ;;  %v11001_v43 = vld [vmem:[%s16787_s5 + $0x80] sm:$0xff]  ;;  %v11003_v63 = vld [vmem:[%s16787_s5 + $0x90] sm:$0xff] }
 0x4ec   : > { %10977 = vmatmul.mubr.msk.f32.vlgmr.msra.gmra.mrb[10].mxu1 %vm624_vm10, %v10973_v46  ;;  %v10996_v46 = vld [vmem:[%s16787_s5 + $0x78] sm:$0xff] }
 0x4ed   : > { %3384 = vmatpush1.msra.mxu1 %v3246_v42  ;;  %3352 = vmatprep.mubr.f32.mxu1 %v16862_v41 }
 0x4ee   : > { %3504 = vmatprep.subr.mxu1 %v3489_v31  ;;  %v3616_v14 = vpop.permute.xlu0 %3615  ;;  %v3614_v26 = vpop.permute.xlu1 %3613 }
 0x4ef   : > { %v3618_v40 = vsel %vm1002_vm14, %v3614_v26, %v3616_v14  ;;  %v11009_v14 = vld [vmem:[%s16787_s5 + $0xa0] sm:$0xff] }
 0x4f0   : > { %10978 = vmatmul.mubr.msk.f32.gmra.mrb[12].mxu1 %vm624_vm10, %v10974_v39 }
 0x4f1   : > { %3358 = vmatprep.mubr.f32.mxu1 %v16862_v41 }
 0x4f2   : > { %v3612_v8 = vpop.permute.xlu1 %3611  ;;  %v3737_v49 = vpop.permute.xlu0 %3736 }
 0x4f3   : > { %v3617_v2 = vsel %vm1002_vm14, %v3612_v8, %v3614_v26  ;;  %v11011_v8 = vld [vmem:[%s16787_s5 + $0xb0] sm:$0xff] }
 0x4f4   : > { %10979 = vmatmul.mubr.msk.f32.gmra.mrb[14].mxu1 %vm624_vm10, %v10975_v28  ;;  %v11002_v28 = vld [vmem:[%s16787_s5 + $0x88] sm:$0xff] }
 0x4f5   : > { %3364 = vmatprep.mubr.f32.mxu1 %v16862_v41 }
 0x4f6   : > { %v3739_v21 = vpop.permute.xlu1 %3738  ;;  %v3735_v59 = vpop.permute.xlu0 %3734 }
 0x4f7   : > { %v3741_v27 = vsel %vm1127_vm15, %v3737_v49, %v3739_v21  ;;  %v3740_v45 = vsel %vm1127_vm15, %v3735_v59, %v3737_v49  ;;  %v11017_v21 = vld [vmem:[%s16787_s5 + $0xc0] sm:$0xff]  ;;  %v11019_v59 = vld [vmem:[%s16787_s5 + $0xd0] sm:$0xff] }
 0x4f8   : > { %10980 = vmatmul.mubr.msk.f32.gmra.mrb[16].mxu1 %vm624_vm10, %v10976_v15 }
 0x4f9   : > { %3447 = vmatprep.mubr.f32.mxu1 %v16862_v41 }
 0x4fa   : > { %v3868_v50 = vpop.permute.xlu0 %3867  ;;  %v3866_v7 = vpop.permute.xlu1 %3865 }
 0x4fb   : > { %v3870_v47 = vsel %vm1267_vm0, %v3866_v7, %v3868_v50  ;;  %v11025_v50 = vld [vmem:[%s16787_s5 + $0xe0] sm:$0xff] }
 0x4fc   : > { %10981 = vmatmul.mubr.msk.f32.vlgmr.msra.gmra.mrb[10].mxu1 %vm624_vm10, %v3248_v56  ;;  %v11004_v56 = vld [vmem:[%s16787_s5 + $0x98] sm:$0xff] }
 0x4fd   : > { %3505 = vmatpush1.msra.mxu1 %v3488_v19  ;;  %3453 = vmatprep.mubr.f32.mxu1 %v16862_v41 }
 0x4fe   : > { %3633 = vmatprep.subr.mxu1 %v3618_v40  ;;  %v3864_v53 = vpop.permute.xlu1 %3863  ;;  %v3995_v42 = vpop.permute.xlu0 %3994 }
 0x4ff   : > { %v3869_v31 = vsel %vm1267_vm0, %v3864_v53, %v3866_v7  ;;  %v11034_v53 = vld [vmem:[%s16787_s5 + $0x108] sm:$0xff] }
 0x500   : > { %10982 = vmatmul.mubr.msk.f32.gmra.mrb[12].mxu1 %vm624_vm10, %v3249_v38 }
 0x501   : > { %3459 = vmatprep.mubr.f32.mxu1 %v16862_v41 }
 0x502   : > { %v3997_v1 = vpop.permute.xlu1 %3996  ;;  %v3993_v15 = vpop.permute.xlu0 %3992 }
 0x503   : > { %v3999_v39 = vsel %vm1407_vm2, %v3995_v42, %v3997_v1  ;;  %v3998_v40 = vsel %vm1407_vm2, %v3993_v15, %v3995_v42 }
 0x504   : > { %10983 = vmatmul.mubr.msk.f32.gmra.mrb[14].mxu1 %vm624_vm10, %v3250_v22  ;;  %v11010_v22 = vld [vmem:[%s16787_s5 + $0xa8] sm:$0xff] }
 0x505   : > { %3465 = vmatprep.mubr.f32.mxu1 %v16862_v41 }
 0x506   : > { %v4120_v26 = vpop.permute.xlu0 %4119  ;;  %v4118_v19 = vpop.permute.xlu1 %4117 }
 0x507   : > { %v4122_v38 = vsel %vm1532_vm3, %v4118_v19, %v4120_v26 }
 0x508   : > { %10984 = vmatmul.mubr.msk.f32.gmra.mrb[16].mxu1 %vm624_vm10, %v3251_v6 }
 0x509   : > { %3568 = vmatprep.mubr.f32.mxu1 %v16862_v41 }
 0x50a   : > { %v4116_v6 = vpop.permute.xlu1 %4115 }
 0x50c   : > { %10989 = vmatmul.mubr.msk.f32.vlgmr.msra.gmra.mrb[10].mxu1 %vm624_vm10, %v10985_v57  ;;  %v11012_v57 = vld [vmem:[%s16787_s5 + $0xb8] sm:$0xff] }
 0x50d   : > { %3634 = vmatpush1.msra.mxu1 %v3617_v2  ;;  %3574 = vmatprep.mubr.f32.mxu1 %v16862_v41  ;;  %v4247_v2 = vpop.permute.xlu0 %4246 }
 0x50e   : > { %3756 = vmatprep.subr.mxu1 %v3741_v27  ;;  %v4249_v49 = vpop.permute.xlu1 %4248  ;;  %v4121_v27 = vsel %vm1532_vm3, %v4116_v6, %v4118_v19 }
 0x510   : > { %10990 = vmatmul.mubr.msk.f32.gmra.mrb[12].mxu1 %vm624_vm10, %v10986_v5  ;;  %v4251_v5 = vsel %vm1671_vm7, %v4247_v2, %v4249_v49 }
 0x511   : > { %3580 = vmatprep.mubr.f32.mxu1 %v16862_v41 }
 0x514   : > { %10991 = vmatmul.mubr.msk.f32.gmra.mrb[14].mxu1 %vm624_vm10, %v10987_v48  ;;  %v11018_v48 = vld [vmem:[%s16787_s5 + $0xc8] sm:$0xff] }
 0x515   : > { %3586 = vmatprep.mubr.f32.mxu1 %v16862_v41 }
 0x518   : > { %10992 = vmatmul.mubr.msk.f32.gmra.mrb[16].mxu1 %vm624_vm10, %v10988_v55  ;;  %v11020_v55 = vld [vmem:[%s16787_s5 + $0xd8] sm:$0xff] }
 0x519   : > { %3697 = vmatprep.mubr.f32.mxu1 %v16862_v41 }
 0x51c   : > { %10997 = vmatmul.mubr.msk.f32.vlgmr.msra.gmra.mrb[10].mxu1 %vm624_vm10, %v10993_v16  ;;  %v4245_v16 = vpop.permute.xlu0 %4244 }
 0x51d   : > { %3757 = vmatpush1.msra.mxu1 %v3740_v45  ;;  %3703 = vmatprep.mubr.f32.mxu1 %v16862_v41  ;;  %v4250_v7 = vsel %vm1671_vm7, %v4245_v16, %v4247_v2  ;;  %v11026_v45 = vld [vmem:[%s16787_s5 + $0xe8] sm:$0xff] }
 0x51e   : > { %3885 = vmatprep.subr.mxu1 %v3870_v47  ;;  %v11027_v47 = vld [vmem:[%s16787_s5 + $0xf0] sm:$0xff] }
 0x520   : > { %10998 = vmatmul.mubr.msk.f32.gmra.mrb[12].mxu1 %vm624_vm10, %v10994_v12  ;;  %v11028_v12 = vld [vmem:[%s16787_s5 + $0xf8] sm:$0xff] }
 0x521   : > { %3709 = vmatprep.mubr.f32.mxu1 %v16862_v41 }
 0x524   : > { %10999 = vmatmul.mubr.msk.f32.gmra.mrb[14].mxu1 %vm624_vm10, %v10995_v11  ;;  %v11033_v11 = vld [vmem:[%s16787_s5 + $0x100] sm:$0xff] }
 0x525   : > { %3715 = vmatprep.mubr.f32.mxu1 %v16862_v41 }
 0x528   : > { %11000 = vmatmul.mubr.msk.f32.gmra.mrb[16].mxu1 %vm624_vm10, %v10996_v46  ;;  %v11035_v46 = vld [vmem:[%s16787_s5 + $0x110] sm:$0xff] }
 0x529   : > { %3820 = vmatprep.mubr.f32.mxu1 %v16862_v41 }
 0x52c   : > { %11005 = vmatmul.mubr.msk.f32.vlgmr.msra.gmra.mrb[10].mxu1 %vm624_vm10, %v11001_v43  ;;  %v11036_v43 = vld [vmem:[%s16787_s5 + $0x118] sm:$0xff] }
 0x52d   : > { %3886 = vmatpush1.msra.mxu1 %v3869_v31  ;;  %3826 = vmatprep.mubr.f32.mxu1 %v16862_v41 }
 0x52e   : > { %4014 = vmatprep.subr.mxu1 %v3999_v39 }
 0x530   : > { %11006 = vmatmul.mubr.msk.f32.gmra.mrb[12].mxu1 %vm624_vm10, %v11002_v28 }
 0x531   : > { %3832 = vmatprep.mubr.f32.mxu1 %v16862_v41 }
 0x534   : > { %11007 = vmatmul.mubr.msk.f32.gmra.mrb[14].mxu1 %vm624_vm10, %v11003_v63 }
 0x535   : > { %3838 = vmatprep.mubr.f32.mxu1 %v16862_v41 }
 0x538   : > { %11008 = vmatmul.mubr.msk.f32.gmra.mrb[16].mxu1 %vm624_vm10, %v11004_v56 }
 0x539   : > { %3949 = vmatprep.mubr.f32.mxu1 %v16862_v41 }
 0x53c   : > { %11013 = vmatmul.mubr.msk.f32.vlgmr.msra.gmra.mrb[10].mxu1 %vm624_vm10, %v11009_v14 }
 0x53d   : > { %4015 = vmatpush1.msra.mxu1 %v3998_v40  ;;  %3955 = vmatprep.mubr.f32.mxu1 %v16862_v41 }
 0x53e   : > { %4137 = vmatprep.subr.mxu1 %v4122_v38 }
 0x540   : > { %11014 = vmatmul.mubr.msk.f32.gmra.mrb[12].mxu1 %vm624_vm10, %v11010_v22 }
 0x541   : > { %3961 = vmatprep.mubr.f32.mxu1 %v16862_v41 }
 0x544   : > { %11015 = vmatmul.mubr.msk.f32.gmra.mrb[14].mxu1 %vm624_vm10, %v11011_v8 }
 0x545   : > { %3967 = vmatprep.mubr.f32.mxu1 %v16862_v41 }
 0x548   : > { %11016 = vmatmul.mubr.msk.f32.gmra.mrb[16].mxu1 %vm624_vm10, %v11012_v57 }
 0x549   : > { %4078 = vmatprep.mubr.f32.mxu1 %v16862_v41 }
 0x54c   : > { %11021 = vmatmul.mubr.msk.f32.vlgmr.msra.gmra.mrb[10].mxu1 %vm624_vm10, %v11017_v21 }
 0x54d   : > { %4138 = vmatpush1.msra.mxu1 %v4121_v27  ;;  %4084 = vmatprep.mubr.f32.mxu1 %v16862_v41 }
 0x54e   : > { %4266 = vmatprep.subr.mxu1 %v4251_v5 }
 0x550   : > { %11022 = vmatmul.mubr.msk.f32.gmra.mrb[12].mxu1 %vm624_vm10, %v11018_v48 }
 0x551   : > { %4090 = vmatprep.mubr.f32.mxu1 %v16862_v41 }
 0x554   : > { %11023 = vmatmul.mubr.msk.f32.gmra.mrb[14].mxu1 %vm624_vm10, %v11019_v59 }
 0x555   : > { %4096 = vmatprep.mubr.f32.mxu1 %v16862_v41 }
 0x558   : > { %11024 = vmatmul.mubr.msk.f32.gmra.mrb[16].mxu1 %vm624_vm10, %v11020_v55 }
 0x559   : > { %4201 = vmatprep.mubr.f32.mxu1 %v16862_v41 }
 0x55c   : > { %11029 = vmatmul.mubr.msk.f32.vlgmr.msra.gmra.mrb[10].mxu1 %vm624_vm10, %v11025_v50 }
 0x55d   : > { %4267 = vmatpush1.msra.mxu1 %v4250_v7  ;;  %4207 = vmatprep.mubr.f32.mxu1 %v16862_v41 }
 0x560   : > { %11030 = vmatmul.mubr.msk.f32.gmra.mrb[12].mxu1 %vm624_vm10, %v11026_v45 }
 0x561   : > { %4213 = vmatprep.mubr.f32.mxu1 %v16862_v41 }
 0x564   : > { %11031 = vmatmul.mubr.msk.f32.gmra.mrb[14].mxu1 %vm624_vm10, %v11027_v47 }
 0x565   : > { %4219 = vmatprep.mubr.f32.mxu1 %v16862_v41 }
 0x568   : > { %11032 = vmatmul.mubr.msk.f32.gmra.mrb[16].mxu1 %vm624_vm10, %v11028_v12  ;;  %v12950_v12 = vld [vmem:[%s16789_s7] sm:$0xff] }
 0x569   : > { %4330 = vmatprep.mubr.f32.mxu1 %v16862_v41 }
 0x56c   : > { %11037 = vmatmul.mubr.msk.f32.vlgmr.msra.gmra.mrb[10].mxu1 %vm624_vm10, %v11033_v11  ;;  %v12951_v11 = vld [vmem:[%s16789_s7 + $0x8] sm:$0xff] }
 0x56d   : > { %4336 = vmatprep.mubr.f32.mxu1 %v16862_v41 }
 0x570   : > { %11038 = vmatmul.mubr.msk.f32.gmra.mrb[12].mxu1 %vm624_vm10, %v11034_v53  ;;  %v12952_v53 = vld [vmem:[%s16789_s7 + $0x10] sm:$0xff] }
 0x571   : > { %4342 = vmatprep.mubr.f32.mxu1 %v16862_v41 }
 0x574   : > { %11039 = vmatmul.mubr.msk.f32.gmra.mrb[14].mxu1 %vm624_vm10, %v11035_v46  ;;  %v12953_v46 = vld [vmem:[%s16789_s7 + $0x18] sm:$0xff] }
 0x575   : > { %4348 = vmatprep.mubr.f32.mxu1 %v16862_v41 }
 0x578   : > { %11040 = vmatmul.mubr.msk.f32.gmra.mrb[16].mxu1 %vm624_vm10, %v11036_v43 }
 0x579   : > { %6955 = vmatprep.mubr.f32.mxu1 %v16862_v41 }
 0x5bb   : > { %v14419_v1 = vpop.f32.mrb[8].mxu1 }
 0x5bc   : > { %16864 = vst [vmem:[#allocation16_spill] sm:$0xff] %v14419_v1  ;;  %v14421_v42 = vpop.f32.mrb[9].mxu1 }
 0x5bd   : > { %16865 = vst [vmem:[#allocation17_spill] sm:$0xff] %v14421_v42 }
 0x63f   : > { %v4332_v31 = vpop.f32.mrb[10].mxu1 }
 0x640   : > { %v4334_v39 = vpop.f32.mrb[11].mxu1  ;;  %v4363_v28 = vadd.f32 %v4332_v31, %v13592_v58 }
 0x641   : > { %v4364_v63 = vadd.f32 %v4334_v39, %v13592_v58 }
 0x642   : > { %v4371_v19 = vmax.f32 %v4363_v28, 0.0 }
 0x643   : > { %v4338_v15 = vpop.f32.mrb[12].mxu1  ;;  %v4372_v38 = vmax.f32 %v4364_v63, 0.0 }
 0x644   : > { %v4365_v56 = vadd.f32 %v4338_v15, %v13596_v3  ;;  %v4340_v14 = vpop.f32.mrb[13].mxu1 }
 0x645   : > { %v4366_v26 = vadd.f32 %v4340_v14, %v13596_v3 }
 0x646   : > { %v4373_v40 = vmax.f32 %v4365_v56, 0.0 }
 0x647   : > { %v4374_v22 = vmax.f32 %v4366_v26, 0.0  ;;  %v4344_v8 = vpop.f32.mrb[14].mxu1 }
 0x648   : > { %v11341_v6 = vpack.c.bf16 %v4373_v40, %v4371_v19  ;;  %v4346_v57 = vpop.f32.mrb[15].mxu1  ;;  %v4367_v49 = vadd.f32 %v4344_v8, %v13599_v9 }
 0x649   : > { %v11339_v21 = vpack.c.bf16 %v4374_v22, %v4372_v38  ;;  %v4368_v2 = vadd.f32 %v4346_v57, %v13599_v9 }
 0x64a   : > { %v4375_v55 = vmax.f32 %v4367_v49, 0.0 }
 0x64b   : > { %v4350_v27 = vpop.f32.mrb[16].mxu1  ;;  %11340 = vmatprep.subr.bf16.mxu0 %v11339_v21  ;;  %v4376_v50 = vmax.f32 %v4368_v2, 0.0 }
 0x64c   : > { %v4369_v5 = vadd.f32 %v4350_v27, %v13603_v34  ;;  %v4352_v48 = vpop.f32.mrb[17].mxu1  ;;  %11342 = vmatpush1.bf16.msra.mxu0 %v11341_v6 }
 0x64d   : > { %v4370_v59 = vadd.f32 %v4352_v48, %v13603_v34 }
 0x64e   : > { %v4377_v16 = vmax.f32 %v4369_v5, 0.0 }
 0x64f   : > { %v4378_v7 = vmax.f32 %v4370_v59, 0.0  ;;  %v11064_v59 = vld [vmem:[%s13205_s17 + $0x10] sm:$0xff] }
 0x650   : > { %v11345_v45 = vpack.c.bf16 %v4377_v16, %v4375_v55 }
 0x651   : > { %v11343_v47 = vpack.c.bf16 %v4378_v7, %v4376_v50  ;;  %v14468_v50 = vmul.f32 %v11064_v59, %v13209_v10  ;;  %v11065_v7 = vld [vmem:[%s13196_s15 + $0x4] sm:$0x3] }
 0x653   : > { %11344 = vmatprep.subr.bf16.mxu0 %v11343_v47  ;;  %16866 = vst [vmem:[#allocation18_spill] sm:$0xff] %v14468_v50 }
 0x654   : > { %11346 = vmatpush1.bf16.msra.mxu0 %v11345_v45  ;;  %v5736_v45 = vcombine.high %v14468_v50, %v14468_v50 }
 0x657   : > { %11041 = vmatmul.mubr.msk.f32.vlgmr.msra.gmra.mrb[8].mxu0 %vm1385_vm13, %v12950_v12 }
 0x658   : > { %4449 = vmatprep.mubr.f32.mxu0 %v16862_v41 }
 0x65b   : > { %11042 = vmatmul.mubr.msk.f32.gmra.mrb[10].mxu0 %vm1385_vm13, %v12951_v11 }
 0x65c   : > { %4455 = vmatprep.mubr.f32.mxu0 %v16862_v41 }
 0x65f   : > { %11043 = vmatmul.mubr.msk.f32.gmra.mrb[12].mxu0 %vm1385_vm13, %v12952_v53 }
 0x660   : > { %4461 = vmatprep.mubr.f32.mxu0 %v16862_v41 }
 0x663   : > { %11044 = vmatmul.mubr.msk.f32.gmra.mrb[14].mxu0 %vm1385_vm13, %v12953_v46 }
 0x664   : > { %4669 = vmatprep.mubr.f32.mxu0 %v16862_v41 }
 0x72a   : > { %v4445_v43 = vpop.f32.mrb[8].mxu0 }
 0x72b   : > { %v4446_v31 = vadd.f32 %v4445_v43, %v13632_v52  ;;  %v4447_v39 = vpop.f32.mrb[9].mxu0 }
 0x72c   : > { %v4448_v28 = vadd.f32 %v4447_v39, %v13632_v52 }
 0x72d   : > { %v4468_v63 = vmax.f32 %v4446_v31, 0.0 }
 0x72e   : > { %v4469_v15 = vmax.f32 %v4448_v28, 0.0  ;;  %v4451_v56 = vpop.f32.mrb[10].mxu0 }
 0x72f   : > { %v4452_v14 = vadd.f32 %v4451_v56, %v13636_v60  ;;  %v4453_v26 = vpop.f32.mrb[11].mxu0  ;;  %4484 = vrot.lane.b32.xlu1 %v4468_v63, %s16851_s0 }
 0x730   : > { %v4454_v19 = vadd.f32 %v4453_v26, %v13636_v60  ;;  %4486 = vrot.lane.b32.xlu0 %v4469_v15, %s16851_s0 }
 0x731   : > { %v4470_v40 = vmax.f32 %v4452_v14, 0.0 }
 0x732   : > { %v4471_v38 = vmax.f32 %v4454_v19, 0.0  ;;  %v4457_v22 = vpop.f32.mrb[12].mxu0 }
 0x733   : > { %v4458_v8 = vadd.f32 %v4457_v22, %v13642_v13  ;;  %v4459_v6 = vpop.f32.mrb[13].mxu0  ;;  %4488 = vrot.lane.b32.xlu1 %v4470_v40, %s16851_s0 }
 0x734   : > { %v4460_v57 = vadd.f32 %v4459_v6, %v13642_v13  ;;  %4490 = vrot.lane.b32.xlu0 %v4471_v38, %s16851_s0 }
 0x735   : > { %v4472_v21 = vmax.f32 %v4458_v8, 0.0 }
 0x736   : > { %v4473_v49 = vmax.f32 %v4460_v57, 0.0  ;;  %v4463_v2 = vpop.f32.mrb[14].mxu0 }
 0x737   : > { %v4464_v27 = vadd.f32 %v4463_v2, %v13648_v25  ;;  %v4465_v5 = vpop.f32.mrb[15].mxu0  ;;  %4492 = vrot.lane.b32.xlu1 %v4472_v21, %s16851_s0 }
 0x738   : > { %v4466_v48 = vadd.f32 %v4465_v5, %v13648_v25  ;;  %4494 = vrot.lane.b32.xlu0 %v4473_v49, %s16851_s0 }
 0x739   : > { %v4474_v55 = vmax.f32 %v4464_v27, 0.0 }
 0x73a   : > { %v4475_v16 = vmax.f32 %v4466_v48, 0.0 }
 0x73b   : > { %4496 = vrot.lane.b32.xlu1 %v4474_v55, %s16851_s0 }
 0x73c   : > { %4498 = vrot.lane.b32.xlu0 %v4475_v16, %s16851_s0 }
 0x73f   : > { %5749 = vrot.lane.b32.xlu1 %v11065_v7, %s16851_s0 }
 0x740   : > { %5737 = vrot.lane.b32.xlu0 %v14468_v50, %s16851_s0 }
 0x743   : > { %5739 = vrot.lane.b32.xlu1 %v5736_v45, %s16851_s0 }
 0x7a1   : > { %v4485_v47 = vpop.permute.xlu1 %4484 }
 0x7a2   : > { %4516 = vst.msk [vmem:[#allocation3] sm:$0xff] %vm1990_vm11, %v4485_v47  ;;  %v4487_v12 = vpop.permute.xlu0 %4486 }
 0x7a3   : > { %4518 = vst.msk [vmem:[#allocation3 + $0x10] sm:$0xff] %vm521_vm1, %v4487_v12  ;;  %v14483_v43 = vsel %vm521_vm1, %v4485_v47, %v4487_v12 }
 0x7a4   : > { %v4751_v56 = vmul.f32 %v14483_v43, %v13272_v32  ;;  %v4892_v49 = vmul.f32 %v14483_v43, %v13289_v37 }
 0x7a5   : > { %v4489_v11 = vpop.permute.xlu1 %4488 }
 0x7a6   : > { %4519 = vst.msk [vmem:[#allocation3 + $0x18] sm:$0xff] %vm1990_vm11, %v4489_v11  ;;  %v4491_v53 = vpop.permute.xlu0 %4490 }
 0x7a7   : > { %4521 = vst.msk [vmem:[#allocation3 + $0x28] sm:$0xff] %vm521_vm1, %v4491_v53  ;;  %v14506_v19 = vsel %vm521_vm1, %v4489_v11, %v4491_v53 }
 0x7a8   : > { %v4754_v2 = vmul.f32 %v14506_v19, %v13272_v32  ;;  %v4895_v47 = vmul.f32 %v14506_v19, %v13289_v37 }
 0x7a9   : > { %v4493_v46 = vpop.permute.xlu1 %4492  ;;  %v14501_v14 = vld [vmem:[#allocation3] sm:$0xff] }
 0x7aa   : > { %4522 = vst.msk [vmem:[#allocation3 + $0x30] sm:$0xff] %vm1990_vm11, %v4493_v46  ;;  %v4495_v31 = vpop.permute.xlu0 %4494  ;;  %v14486_v39 = vld [vmem:[#allocation3 + $0x10] sm:$0xff] }
 0x7ab   : > { %4524 = vst.msk [vmem:[#allocation3 + $0x40] sm:$0xff] %vm521_vm1, %v4495_v31  ;;  %v14491_v28 = vpack.i.bf16 %v14486_v39, %v14483_v43  ;;  %v4752_v63 = vmul.f32 %v14486_v39, %v13266_v30  ;;  %v4893_v6 = vmul.f32 %v14486_v39, %v13281_v35  ;;  %v14540_v12 = vsel %vm521_vm1, %v4493_v46, %v4495_v31 }
 0x7ac   : > { %v4750_v46 = vmul.f32 %v14501_v14, %v13262_v29  ;;  %v4757_v31 = vmul.f32 %v14540_v12, %v13272_v32 }
 0x7ad   : > { %v4497_v15 = vpop.permute.xlu1 %4496  ;;  %12204 = vrot.lane.b32.xlu0 %v14491_v28, %s16853_s27  ;;  %12199 = vrot.lane.b32.xlu1 %v14491_v28, %s16854_s22  ;;  %v14503_v26 = vld [vmem:[#allocation3 + $0x18] sm:$0xff]  ;;  %v12213_v8 = vpack.i.bf16 %v4752_v63, %v4751_v56  ;;  %v12218_v48 = vpack.i.bf16 %v4893_v6, %v4892_v49 }
 0x7ae   : > { %4525 = vst.msk [vmem:[#allocation3 + $0x48] sm:$0xff] %vm1990_vm11, %v4497_v15  ;;  %v4499_v40 = vpop.permute.xlu0 %4498  ;;  %v14511_v38 = vpack.i.bf16 %v14503_v26, %v14501_v14  ;;  %v14513_v22 = vld [vmem:[#allocation3 + $0x28] sm:$0xff]  ;;  %v4753_v56 = vmul.f32 %v14503_v26, %v13262_v29 }
 0x7af   : > { %4527 = vst.msk [vmem:[#allocation3 + $0x58] sm:$0xff] %vm521_vm1, %v4499_v40  ;;  %v4755_v57 = vmul.f32 %v14513_v22, %v13266_v30  ;;  %v4896_v55 = vmul.f32 %v14513_v22, %v13281_v35  ;;  %v14546_v53 = vpack.i.bf16 %v14513_v22, %v14506_v19 }
 0x7b0   : > { %v12228_v6 = vpack.i.bf16 %v4753_v56, %v4750_v46  ;;  %v5149_v56 = vmul.f32 %v14501_v14, %v13310_v44 }
 0x7b1   : > { %v5750_v21 = vpop.permute.xlu1 %5749  ;;  %12214 = vrot.lane.b32.xlu0 %v12213_v8, %s16855_s30  ;;  %12209 = vrot.lane.b32.xlu1 %v14511_v38, %s16854_s22  ;;  %v12238_v59 = vpack.i.bf16 %v4755_v57, %v4754_v2  ;;  %v12243_v63 = vpack.i.bf16 %v4896_v55, %v4895_v47  ;;  %v4891_v2 = vmul.f32 %v14501_v14, %v13283_v36 }
 0x7b2   : > { %v5751_v27 = vrot.slane %v5750_v21, 7  ;;  %v5738_v5 = vpop.permute.xlu0 %5737  ;;  %v14531_v7 = vld [vmem:[#allocation3 + $0x40] sm:$0xff]  ;;  %v14574_v55 = vsel %vm521_vm1, %v4497_v15, %v4499_v40  ;;  %v14586_v47 = vmul.f32 %v14506_v19, %v13232_v17  ;;  %v14596_v15 = vmul.f32 %v14483_v43, %v13232_v17  ;;  %v14598_v40 = vld [vmem:[#allocation3 + $0x30] sm:$0xff] }
 0x7b3   : > { %5745 = vst.msk [vmem:[#allocation2] sm:$0xf] %vm567_vm5, %v5738_v5  ;;  %v4758_v8 = vmul.f32 %v14531_v7, %v13266_v30  ;;  %v4899_v49 = vmul.f32 %v14531_v7, %v13281_v35  ;;  %v14612_v46 = vmul.f32 %v14574_v55, %v13232_v17 }
 0x7b4   : > { %v5752_v16 = vsel %vm521_vm1, %v5751_v27, %v5750_v21  ;;  %v4894_v21 = vmul.f32 %v14503_v26, %v13283_v36  ;;  %v4898_v27 = vmul.f32 %v14540_v12, %v13289_v37 }
 0x7b5   : > { %5754 = vst.msk [vmem:[#allocation2 + $0x4] ss:$8 sm:$0x7] %vm13241_vm4, %v5752_v16  ;;  %v5740_v45 = vpop.permute.xlu1 %5739  ;;  %12219 = vrot.lane.b32.xlu0 %v12218_v48, %s16856_s24  ;;  %12239 = vrot.lane.b32.xlu1 %v12238_v59, %s16855_s30  ;;  %v12258_v57 = vpack.i.bf16 %v4758_v8, %v4757_v31  ;;  %v14578_v16 = vpack.i.bf16 %v14531_v7, %v14540_v12 }
 0x7b6   : > { %v5741_v11 = vsel %vm521_vm1, %v5738_v5, %v5740_v45  ;;  %5747 = vst.msk [vmem:[#allocation2 + $0x10] sm:$0xf] %vm570_vm6, %v5740_v45  ;;  %v12233_v5 = vpack.i.bf16 %v4894_v21, %v4891_v2  ;;  %v12263_v48 = vpack.i.bf16 %v4899_v49, %v4898_v27  ;;  %v14569_v59 = vld [vmem:[#allocation3 + $0x58] sm:$0xff]  ;;  %v14608_v8 = vmul.f32 %v14540_v12, %v13232_v17 }
 0x7b7   : > { %5746 = vst [vmem:[#allocation2 + $0x8] sm:$0xf] %v5741_v11  ;;  %v14582_v45 = vpack.i.bf16 %v14569_v59, %v14574_v55  ;;  %v14588_v11 = vld [vmem:[#allocation3 + $0x48] sm:$0xff]  ;;  %v5154_v49 = vmul.f32 %v14513_v22, %v13321_v51  ;;  %v5153_v2 = vmul.f32 %v14506_v19, %v13331_v54 }
 0x7b9   : > { %12224 = vrot.lane.b32.xlu0 %v14546_v53, %s16854_s22  ;;  %12244 = vrot.lane.b32.xlu1 %v12243_v63, %s16856_s24  ;;  %v14602_v63 = vpack.i.bf16 %v14588_v11, %v14598_v40  ;;  %v12298_v27 = vpack.i.bf16 %v5154_v49, %v5153_v2  ;;  %v4900_v49 = vmul.f32 %v14588_v11, %v13283_v36 }
 0x7ba   : > { %v5152_v2 = vmul.f32 %v14503_v26, %v13310_v44 }
 0x7bc   : > { %v12323_v42 = vpack.i.bf16 %v5152_v2, %v5149_v56  ;;  %v5158_v56 = vmul.f32 %v14588_v11, %v13310_v44 }
 0x7bd   : > { %12229 = vrot.lane.b32.xlu0 %v12228_v6, %s16855_s30  ;;  %12259 = vrot.lane.b32.xlu1 %v12258_v57, %s16855_s30  ;;  %v5151_v6 = vmul.f32 %v14486_v39, %v13321_v51  ;;  %v5150_v57 = vmul.f32 %v14483_v43, %v13331_v54 }
 0x7bf   : > { %v12293_v21 = vpack.i.bf16 %v5151_v6, %v5150_v57  ;;  %v4756_v6 = vmul.f32 %v14598_v40, %v13262_v29  ;;  %v4760_v57 = vmul.f32 %v14574_v55, %v13272_v32 }
 0x7c1   : > { %12234 = vrot.lane.b32.xlu0 %v12233_v5, %s16856_s24  ;;  %12264 = vrot.lane.b32.xlu1 %v12263_v48, %s16856_s24  ;;  %v4759_v5 = vmul.f32 %v14588_v11, %v13262_v29  ;;  %v4761_v48 = vmul.f32 %v14569_v59, %v13266_v30 }
 0x7c3   : > { %v12318_v31 = vpack.i.bf16 %v4761_v48, %v4760_v57  ;;  %v4902_v48 = vmul.f32 %v14569_v59, %v13281_v35 }
 0x7c5   : > { %12249 = vrot.lane.b32.xlu0 %v14578_v16, %s16854_s22  ;;  %12269 = vrot.lane.b32.xlu1 %v14582_v45, %s16854_s22 }
 0x7c9   : > { %12254 = vrot.lane.b32.xlu0 %v14602_v63, %s16854_s22  ;;  %12274 = vrot.lane.b32.xlu1 %v14546_v53, %s16853_s27 }
 0x7cd   : > { %12279 = vrot.lane.b32.xlu0 %v14511_v38, %s16853_s27  ;;  %12284 = vrot.lane.b32.xlu1 %v14578_v16, %s16853_s27 }
 0x7d1   : > { %12294 = vrot.lane.b32.xlu0 %v12293_v21, %s16857_s23  ;;  %12289 = vrot.lane.b32.xlu1 %v14602_v63, %s16853_s27  ;;  %v12303_v21 = vpack.i.bf16 %v4759_v5, %v4756_v6  ;;  %v5157_v5 = vmul.f32 %v14531_v7, %v13321_v51  ;;  %v4901_v6 = vmul.f32 %v14574_v55, %v13289_v37 }
 0x7d5   : > { %12314 = vrot.lane.b32.xlu0 %v14582_v45, %s16853_s27  ;;  %12299 = vrot.lane.b32.xlu1 %v12298_v27, %s16857_s23  ;;  %v4897_v27 = vmul.f32 %v14598_v40, %v13283_v36 }
 0x7d7   : > { %v12308_v50 = vpack.i.bf16 %v4900_v49, %v4897_v27  ;;  %v5292_v49 = vmul.f32 %v14486_v39, %v13345_v61 }
 0x7d9   : > { %12304 = vrot.lane.b32.xlu1 %v12303_v21, %s16855_s30  ;;  %12319 = vrot.lane.b32.xlu0 %v12318_v31, %s16855_s30  ;;  %v5156_v31 = vmul.f32 %v14540_v12, %v13331_v54  ;;  %v12338_v21 = vpack.i.bf16 %v4902_v48, %v4901_v6  ;;  %v5293_v48 = vmul.f32 %v14503_v26, %v13349_v62 }
 0x7da   : > { %v5290_v6 = vmul.f32 %v14501_v14, %v13349_v62 }
 0x7db   : > { %v12328_v57 = vpack.i.bf16 %v5157_v5, %v5156_v31  ;;  %v5295_v5 = vmul.f32 %v14513_v22, %v13345_v61  ;;  %v5294_v31 = vmul.f32 %v14506_v19, %v13358_v0 }
 0x7dd   : > { %12309 = vrot.lane.b32.xlu1 %v12308_v50, %s16856_s24  ;;  %12324 = vrot.lane.b32.xlu0 %v12323_v42, %s16857_s23  ;;  %v5155_v42 = vmul.f32 %v14598_v40, %v13310_v44  ;;  %v5291_v50 = vmul.f32 %v14483_v43, %v13358_v0 }
 0x7df   : > { %v12333_v2 = vpack.i.bf16 %v5158_v56, %v5155_v42  ;;  %v12343_v27 = vpack.i.bf16 %v5292_v49, %v5291_v50  ;;  %v5298_v56 = vmul.f32 %v14531_v7, %v13345_v61  ;;  %v5297_v49 = vmul.f32 %v14540_v12, %v13358_v0 }
 0x7e0   : > { %v5299_v50 = vmul.f32 %v14588_v11, %v13349_v62 }
 0x7e1   : > { %12329 = vrot.lane.b32.xlu1 %v12328_v57, %s16857_s23  ;;  %12339 = vrot.lane.b32.xlu0 %v12338_v21, %s16856_s24  ;;  %v12348_v57 = vpack.i.bf16 %v5295_v5, %v5294_v31  ;;  %v12353_v21 = vpack.i.bf16 %v5293_v48, %v5290_v6  ;;  %v12358_v42 = vpack.i.bf16 %v5298_v56, %v5297_v49 }
 0x7e2   : > { %v5159_v5 = vmul.f32 %v14574_v55, %v13331_v54  ;;  %v5301_v6 = vmul.f32 %v14569_v59, %v13345_v61  ;;  %v5550_v56 = vmul.f32 %v14486_v39, %v13392_v23  ;;  %v5551_v39 = vmul.f32 %v14503_v26, %v13395_v24 }
 0x7e5   : > { %12334 = vrot.lane.b32.xlu1 %v12333_v2, %s16857_s23  ;;  %12344 = vrot.lane.b32.xlu0 %v12343_v27, %s16858_s16  ;;  %v5160_v2 = vmul.f32 %v14569_v59, %v13321_v51  ;;  %v5296_v27 = vmul.f32 %v14598_v40, %v13349_v62 }
 0x7e7   : > { %v12363_v48 = vpack.i.bf16 %v5299_v50, %v5296_v27  ;;  %v12378_v31 = vpack.i.bf16 %v5160_v2, %v5159_v5  ;;  %v5554_v50 = vmul.f32 %v14598_v40, %v13395_v24  ;;  %v14750_v5 = vld [vmem:[#allocation2 + $0x10] sm:$0xff] }
 0x7e9   : > { %12349 = vrot.lane.b32.xlu1 %v12348_v57, %s16858_s16  ;;  %12354 = vrot.lane.b32.xlu0 %v12353_v21, %s16858_s16  ;;  %v5553_v21 = vmul.f32 %v14513_v22, %v13392_v23  ;;  %v5556_v22 = vmul.f32 %v14531_v7, %v13392_v23  ;;  %v5559_v7 = vmul.f32 %v14569_v59, %v13392_v23 }
 0x7ed   : > { %12359 = vrot.lane.b32.xlu1 %v12358_v42, %s16858_s16  ;;  %12369 = vrot.lane.b32.xlu0 %v14491_v28, %s16859_s21  ;;  %v5300_v28 = vmul.f32 %v14574_v55, %v13358_v0  ;;  %v5557_v42 = vmul.f32 %v14588_v11, %v13395_v24 }
 0x7ef   : > { %v12393_v57 = vpack.i.bf16 %v5301_v6, %v5300_v28  ;;  %v12433_v2 = vpack.i.bf16 %v5557_v42, %v5554_v50 }
 0x7f1   : > { %12364 = vrot.lane.b32.xlu1 %v12363_v48, %s16858_s16  ;;  %12379 = vrot.lane.b32.xlu0 %v12378_v31, %s16857_s23  ;;  %v14752_v48 = vld [vmem:[#allocation2 + $0x8] sm:$0xff]  ;;  %v5986_v31 = vmul.f32 %v14750_v5, %v13266_v30 }
 0x7f2   : > { %v5985_v59 = vmul.f32 %v14752_v48, %v13272_v32  ;;  %v6114_v28 = vmul.f32 %v14752_v48, %v13289_v37 }
 0x7f5   : > { %12374 = vrot.lane.b32.xlu1 %v14546_v53, %s16859_s21  ;;  %12384 = vrot.lane.b32.xlu0 %v14511_v38, %s16859_s21  ;;  %v5552_v38 = vmul.f32 %v14506_v19, %v13406_v33  ;;  %v5549_v53 = vmul.f32 %v14483_v43, %v13406_v33  ;;  %v5548_v19 = vmul.f32 %v14501_v14, %v13395_v24 }
 0x7f7   : > { %v12408_v49 = vpack.i.bf16 %v5550_v56, %v5549_v53  ;;  %v12418_v43 = vpack.i.bf16 %v5551_v39, %v5548_v19 }
 0x7f9   : > { %12389 = vrot.lane.b32.xlu1 %v14578_v16, %s16859_s21  ;;  %12394 = vrot.lane.b32.xlu0 %v12393_v57, %s16858_s16  ;;  %v12413_v16 = vpack.i.bf16 %v5553_v21, %v5552_v38  ;;  %v6115_v57 = vmul.f32 %v14750_v5, %v13281_v35 }
 0x7fd   : > { %12404 = vrot.lane.b32.xlu1 %v14602_v63, %s16859_s21  ;;  %12399 = vrot.lane.b32.xlu0 %v14582_v45, %s16859_s21  ;;  %v5555_v45 = vmul.f32 %v14540_v12, %v13406_v33  ;;  %v5558_v12 = vmul.f32 %v14574_v55, %v13406_v33  ;;  %v14760_v55 = vld [vmem:[#allocation2] sm:$0xff] }
 0x7fe   : > { %v5984_v6 = vmul.f32 %v14760_v55, %v13262_v29  ;;  %v6113_v21 = vmul.f32 %v14760_v55, %v13283_v36  ;;  %v6365_v19 = vmul.f32 %v14760_v55, %v13310_v44 }
 0x7ff   : > { %v12423_v63 = vpack.i.bf16 %v5556_v22, %v5555_v45  ;;  %v12428_v27 = vpack.i.bf16 %v5559_v7, %v5558_v12  ;;  %v6367_v22 = vmul.f32 %v14750_v5, %v13321_v51 }
 0x801   : > { %12414 = vrot.lane.b32.xlu1 %v12413_v16, %s16860_s1  ;;  %12409 = vrot.lane.b32.xlu0 %v12408_v49, %s16860_s1  ;;  %v6366_v49 = vmul.f32 %v14752_v48, %v13331_v54 }
 0x805   : > { %12424 = vrot.lane.b32.xlu1 %v12423_v63, %s16860_s1  ;;  %12419 = vrot.lane.b32.xlu0 %v12418_v43, %s16860_s1  ;;  %v6495_v63 = vmul.f32 %v14752_v48, %v13358_v0 }
 0x809   : > { %12434 = vrot.lane.b32.xlu1 %v12433_v2, %s16860_s1  ;;  %12429 = vrot.lane.b32.xlu0 %v12428_v27, %s16860_s1  ;;  %v6496_v2 = vmul.f32 %v14750_v5, %v13345_v61  ;;  %v6494_v27 = vmul.f32 %v14760_v55, %v13349_v62 }
 0x80d   : > { %5776 = vrot.lane.b32.xlu1 %v14750_v5, %s16854_s22  ;;  %5774 = vrot.lane.b32.xlu0 %v14752_v48, %s16854_s22 }
 0x811   : > { %5772 = vrot.lane.b32.xlu0 %v14760_v55, %s16854_s22  ;;  %5996 = vrot.lane.b32.xlu1 %v5985_v59, %s16855_s30 }
 0x815   : > { %5998 = vrot.lane.b32.xlu0 %v5986_v31, %s16855_s30  ;;  %5994 = vrot.lane.b32.xlu1 %v5984_v6, %s16855_s30 }
 0x819   : > { %6125 = vrot.lane.b32.xlu0 %v6114_v28, %s16856_s24  ;;  %6127 = vrot.lane.b32.xlu1 %v6115_v57, %s16856_s24 }
 0x81d   : > { %6123 = vrot.lane.b32.xlu0 %v6113_v21, %s16856_s24  ;;  %6248 = vrot.lane.b32.xlu1 %v14752_v48, %s16853_s27 }
 0x81f   : > { %v14782_v56 = vpop.permute.xlu0 %12204  ;;  %v12200_v38 = vpop.permute.xlu1 %12199 }
 0x820   : > { %v12202_v43 = vunpack.i.h.bf16 %v12200_v38  ;;  %v12201_v42 = vunpack.i.l.bf16 %v12200_v38 }
 0x821   : > { %6250 = vrot.lane.b32.xlu0 %v14750_v5, %s16853_s27  ;;  %6246 = vrot.lane.b32.xlu1 %v14760_v55, %s16853_s27 }
 0x822   : > { %v4587_v21 = vsel %vm619_vm9, %v12201_v42, %v12202_v43  ;;  %v6747_v43 = vmul.f32 %v14752_v48, %v13406_v33 }
 0x823   : > { %v14788_v53 = vpop.permute.xlu0 %12214  ;;  %v12210_v16 = vpop.permute.xlu1 %12209 }
 0x824   : > { %v12211_v7 = vunpack.i.l.bf16 %v12210_v16  ;;  %v12212_v59 = vunpack.i.h.bf16 %v12210_v16 }
 0x825   : > { %6377 = vrot.lane.b32.xlu0 %v6366_v49, %s16857_s23  ;;  %6379 = vrot.lane.b32.xlu1 %v6367_v22, %s16857_s23 }
 0x826   : > { %v4586_v28 = vsel %vm619_vm9, %v12211_v7, %v12201_v42 }
 0x827   : > { %v14796_v39 = vpop.permute.xlu0 %12219  ;;  %v14798_v45 = vpop.permute.xlu1 %12239 }
 0x828   : > { %v12241_v4 = vunpack.i.l.bf16 %v14798_v45 }
 0x829   : > { %6375 = vrot.lane.b32.xlu0 %v6365_v19, %s16857_s23  ;;  %6506 = vrot.lane.b32.xlu1 %v6495_v63, %s16858_s16 }
 0x82b   : > { %v12225_v50 = vpop.permute.xlu0 %12224  ;;  %v14806_v12 = vpop.permute.xlu1 %12244 }
 0x82c   : > { %v12227_v31 = vunpack.i.h.bf16 %v12225_v50  ;;  %v12226_v6 = vunpack.i.l.bf16 %v12225_v50 }
 0x82d   : > { %6508 = vrot.lane.b32.xlu0 %v6496_v2, %s16858_s16  ;;  %6504 = vrot.lane.b32.xlu1 %v6494_v27, %s16858_s16  ;;  %v6748_v2 = vmul.f32 %v14750_v5, %v13392_v23  ;;  %v6746_v27 = vmul.f32 %v14760_v55, %v13395_v24 }
 0x82e   : > { %v4588_v57 = vsel %vm619_vm9, %v12212_v59, %v12226_v6  ;;  %v4589_v38 = vsel %vm619_vm9, %v12226_v6, %v12227_v31 }
 0x82f   : > { %v14818_v49 = vpop.permute.xlu0 %12229  ;;  %v14820_v22 = vpop.permute.xlu1 %12259  ;;  %v11347_v19 = vpack.c.bf16 %v4589_v38, %v4587_v21  ;;  %v11349_v16 = vpack.c.bf16 %v4588_v57, %v4586_v28 }
 0x831   : > { %6629 = vrot.lane.b32.xlu0 %v14752_v48, %s16859_s21  ;;  %6631 = vrot.lane.b32.xlu1 %v14750_v5, %s16859_s21 }
 0x832   : > { %11348 = vmatprep.subr.bf16.mxu0 %v11347_v19 }
 0x833   : > { %11350 = vmatpush1.bf16.msra.mxu0 %v11349_v16  ;;  %v14826_v63 = vpop.permute.xlu0 %12234  ;;  %v14828_v7 = vpop.permute.xlu1 %12264 }
 0x835   : > { %6627 = vrot.lane.b32.xlu0 %v14760_v55, %s16859_s21  ;;  %6758 = vrot.lane.b32.xlu1 %v6747_v43, %s16860_s1 }
 0x837   : > { %v12250_v42 = vpop.permute.xlu0 %12249  ;;  %v12270_v50 = vpop.permute.xlu1 %12269 }
 0x838   : > { %v12252_v59 = vunpack.i.h.bf16 %v12250_v42  ;;  %v12251_v31 = vunpack.i.l.bf16 %v12250_v42  ;;  %v12272_v6 = vunpack.i.h.bf16 %v12270_v50  ;;  %v12271_v28 = vunpack.i.l.bf16 %v12270_v50 }
 0x839   : > { %6760 = vrot.lane.b32.xlu0 %v6748_v2, %s16860_s1  ;;  %6756 = vrot.lane.b32.xlu1 %v6746_v27, %s16860_s1 }
 0x83a   : > { %v4591_v57 = vsel %vm619_vm9, %v12251_v31, %v12252_v59  ;;  %v4593_v21 = vsel %vm619_vm9, %v12271_v28, %v12272_v6  ;;  %v4538_v59 = vmul.f32 %v14503_v26, %v13236_v18  ;;  %v12242_v6 = vunpack.i.h.bf16 %v14798_v45 }
 0x83b   : > { %v12255_v38 = vpop.permute.xlu0 %12254  ;;  %v14843_v19 = vpop.permute.xlu1 %12274  ;;  %v11351_v16 = vpack.c.bf16 %v4593_v21, %v4591_v57  ;;  %v11045_v57 = vld [vmem:[%s16791_s9 + $0x8] sm:$0xff]  ;;  %v12216_v26 = vunpack.i.l.bf16 %v14788_v53 }
 0x83c   : > { %v12257_v5 = vunpack.i.h.bf16 %v12255_v38  ;;  %v12256_v43 = vunpack.i.l.bf16 %v12255_v38 }
 0x83d   : > { %11352 = vmatprep.subr.bf16.mxu0 %v11351_v16  ;;  %v4542_v16 = vmul.f32 %v14588_v11, %v13236_v18 }
 0x83e   : > { %v4590_v1 = vsel %vm619_vm9, %v12256_v43, %v12251_v31  ;;  %v4592_v42 = vsel %vm619_vm9, %v12257_v5, %v12271_v28  ;;  %v4536_v31 = vmul.f32 %v14501_v14, %v13236_v18  ;;  %v16867_v28 = vpack.c.bf16 %v14586_v47, %v14596_v15 }
 0x83f   : > { %v14847_v50 = vpop.permute.xlu0 %12279  ;;  %v14849_v2 = vpop.permute.xlu1 %12284  ;;  %v11353_v27 = vpack.c.bf16 %v4592_v42, %v4590_v1  ;;  %v12217_v1 = vunpack.i.h.bf16 %v14788_v53  ;;  %v12232_v5 = vunpack.i.h.bf16 %v14818_v49  ;;  %v12231_v14 = vunpack.i.l.bf16 %v14818_v49 }
 0x840   : > { %v11357_v45 = vpack.c.bf16 %v4538_v59, %v4536_v31  ;;  %v4540_v47 = vmul.f32 %v14598_v40, %v13236_v18  ;;  %v4802_v15 = vsel %vm862_vm12, %v12241_v4, %v12242_v6  ;;  %v16868_v53 = vpack.c.bf16 %v14612_v46, %v14608_v8  ;;  %v4544_v46 = vld [vmem:[%s16791_s9] sm:$0xff] }
 0x841   : > { %11354 = vmatpush1.bf16.msra.mxu0 %v11353_v27  ;;  %v4800_v49 = vsel %vm862_vm12, %v12216_v26, %v12217_v1  ;;  %v4799_v27 = vsel %vm862_vm12, %v12231_v14, %v12216_v26  ;;  %v4801_v59 = vsel %vm862_vm12, %v12232_v5, %v12241_v4  ;;  %v12222_v6 = vunpack.i.h.bf16 %v14796_v39 }
 0x842   : > { %11356 = vmatprep.subr.bf16.mxu0 %v16867_v28  ;;  %v11361_v42 = vpack.c.bf16 %v4542_v16, %v4540_v47  ;;  %v11363_v40 = vpack.c.bf16 %v4802_v15, %v4800_v49  ;;  %v12247_v31 = vunpack.i.h.bf16 %v14806_v12  ;;  %v12246_v8 = vunpack.i.l.bf16 %v14806_v12 }
 0x843   : > { %v14865_v21 = vpop.permute.xlu0 %12294  ;;  %v14867_v38 = vpop.permute.xlu1 %12289  ;;  %v12262_v28 = vunpack.i.h.bf16 %v14820_v22  ;;  %v12261_v1 = vunpack.i.l.bf16 %v14820_v22  ;;  %v12237_v12 = vunpack.i.h.bf16 %v14826_v63  ;;  %v12236_v47 = vunpack.i.l.bf16 %v14826_v63 }
 0x844   : > { %11046 = vmatmul.mubr.msk.f32.vlgmr.msra.gmra.mrb[16].mxu0 %vm1385_vm13, %v11045_v57  ;;  %v12221_v57 = vunpack.i.l.bf16 %v14796_v39 }
 0x845   : > { %11358 = vmatpush1.bf16.msra.mxu0 %v11357_v45  ;;  %4743 = vmatprep.mubr.f32.mxu0 %v16862_v41  ;;  %v11365_v45 = vpack.c.bf16 %v4801_v59, %v4799_v27  ;;  %v4804_v49 = vsel %vm862_vm12, %v12261_v1, %v12262_v28  ;;  %v12267_v59 = vunpack.i.h.bf16 %v14828_v7  ;;  %v12276_v28 = vunpack.i.l.bf16 %v14843_v19 }
 0x846   : > { %11360 = vmatprep.subr.bf16.mxu0 %v16868_v53  ;;  %v4941_v15 = vsel %vm1002_vm14, %v12221_v57, %v12222_v6  ;;  %v4943_v53 = vsel %vm1002_vm14, %v12246_v8, %v12247_v31 }
 0x847   : > { %v14881_v43 = vpop.permute.xlu0 %12314  ;;  %v14883_v11 = vpop.permute.xlu1 %12299  ;;  %v11371_v31 = vpack.c.bf16 %v4943_v53, %v4941_v15  ;;  %v12282_v53 = vunpack.i.h.bf16 %v14847_v50 }
 0x849   : > { %11362 = vmatpush1.bf16.msra.mxu0 %v11361_v42 }
 0x84a   : > { %11364 = vmatprep.subr.bf16.mxu0 %v11363_v40  ;;  %v12266_v40 = vunpack.i.l.bf16 %v14828_v7  ;;  %v11048_v7 = vld [vmem:[%s16791_s9 + $0x10] sm:$0xff] }
 0x84b   : > { %v12320_v4 = vpop.permute.xlu0 %12319  ;;  %v12305_v26 = vpop.permute.xlu1 %12304 }
 0x84c   : > { %v12322_v16 = vunpack.i.h.bf16 %v12320_v4  ;;  %v12321_v5 = vunpack.i.l.bf16 %v12320_v4  ;;  %v12307_v39 = vunpack.i.h.bf16 %v12305_v26  ;;  %v12306_v14 = vunpack.i.l.bf16 %v12305_v26  ;;  %11047 = vmatmul.mubr.msk.f32.vlgmr.msra.gmra.mrb[16].mxu0 %vm1385_vm13, %v4544_v46 }
 0x84d   : > { %11366 = vmatpush1.bf16.msra.mxu0 %v11365_v45  ;;  %4882 = vmatprep.mubr.f32.mxu0 %v16862_v41  ;;  %v4940_v26 = vsel %vm1002_vm14, %v12236_v47, %v12221_v57  ;;  %v4942_v45 = vsel %vm1002_vm14, %v12237_v12, %v12246_v8  ;;  %v4945_v57 = vsel %vm1002_vm14, %v12266_v40, %v12267_v59 }
 0x84e   : > { %v4805_v22 = vsel %vm862_vm12, %v12307_v39, %v12321_v5  ;;  %v4803_v42 = vsel %vm862_vm12, %v12306_v14, %v12261_v1  ;;  %v4806_v27 = vsel %vm862_vm12, %v12321_v5, %v12322_v16  ;;  %v12277_v39 = vunpack.i.h.bf16 %v14843_v19 }
 0x84f   : > { %v14909_v63 = vpop.permute.xlu0 %12324  ;;  %v12310_v46 = vpop.permute.xlu1 %12309  ;;  %v11367_v6 = vpack.c.bf16 %v4806_v27, %v4804_v49  ;;  %v11369_v4 = vpack.c.bf16 %v4805_v22, %v4803_v42  ;;  %v12207_v16 = vunpack.i.h.bf16 %v14782_v56  ;;  %v12206_v5 = vunpack.i.l.bf16 %v14782_v56 }
 0x850   : > { %v12311_v1 = vunpack.i.l.bf16 %v12310_v46  ;;  %v12312_v8 = vunpack.i.h.bf16 %v12310_v46  ;;  %v11373_v47 = vpack.c.bf16 %v4942_v45, %v4940_v26  ;;  %v12281_v22 = vunpack.i.l.bf16 %v14847_v50 }
 0x851   : > { %11368 = vmatprep.subr.bf16.mxu0 %v11367_v6  ;;  %v12317_v42 = vunpack.i.h.bf16 %v14881_v43  ;;  %v5060_v56 = vsel %vm1127_vm15, %v12276_v28, %v12277_v39  ;;  %v12316_v49 = vunpack.i.l.bf16 %v14881_v43  ;;  %v5058_v26 = vsel %vm1127_vm15, %v12206_v5, %v12207_v16 }
 0x852   : > { %11370 = vmatpush1.bf16.msra.mxu0 %v11369_v4  ;;  %v4944_v27 = vsel %vm1002_vm14, %v12311_v1, %v12266_v40  ;;  %v12287_v45 = vunpack.i.h.bf16 %v14849_v2  ;;  %v12286_v43 = vunpack.i.l.bf16 %v14849_v2  ;;  %v11379_v40 = vpack.c.bf16 %v5060_v56, %v5058_v26 }
 0x853   : > { %v12340_v14 = vpop.permute.xlu0 %12339  ;;  %v14920_v15 = vpop.permute.xlu1 %12329  ;;  %11372 = vmatprep.subr.bf16.mxu0 %v11371_v31  ;;  %v5057_v39 = vsel %vm1127_vm15, %v12281_v22, %v12206_v5  ;;  %v5059_v1 = vsel %vm1127_vm15, %v12282_v53, %v12276_v28  ;;  %v5064_v16 = vsel %vm1127_vm15, %v12316_v49, %v12317_v42  ;;  %v12296_v2 = vunpack.i.l.bf16 %v14865_v21 }
 0x854   : > { %v12342_v12 = vunpack.i.h.bf16 %v12340_v14  ;;  %v12341_v19 = vunpack.i.l.bf16 %v12340_v14  ;;  %v12301_v14 = vunpack.i.l.bf16 %v14883_v11  ;;  %v12292_v5 = vunpack.i.h.bf16 %v14867_v38 }
 0x855   : > { %11049 = vmatmul.mubr.msk.f32.vlgmr.msra.gmra.mrb[16].mxu0 %vm1385_vm13, %v11048_v7  ;;  %v12302_v7 = vunpack.i.h.bf16 %v14883_v11  ;;  %v12291_v28 = vunpack.i.l.bf16 %v14867_v38  ;;  %v12327_v11 = vunpack.i.h.bf16 %v14909_v63  ;;  %v11381_v53 = vpack.c.bf16 %v5059_v1, %v5057_v39  ;;  %v11052_v1 = vld [vmem:[%s16791_s9 + $0x20] sm:$0xff] }
 0x856   : > { %v4946_v59 = vsel %vm1002_vm14, %v12312_v8, %v12341_v19  ;;  %11374 = vmatpush1.bf16.msra.mxu0 %v11373_v47  ;;  %v4947_v46 = vsel %vm1002_vm14, %v12341_v19, %v12342_v12  ;;  %5023 = vmatprep.mubr.f32.mxu0 %v16862_v41  ;;  %v12297_v8 = vunpack.i.h.bf16 %v14865_v21  ;;  %v12326_v47 = vunpack.i.l.bf16 %v14909_v63 }
 0x857   : > { %v14933_v6 = vpop.permute.xlu0 %12344  ;;  %v14935_v50 = vpop.permute.xlu1 %12334  ;;  %v11375_v4 = vpack.c.bf16 %v4947_v46, %v4945_v57  ;;  %v11377_v31 = vpack.c.bf16 %v4946_v59, %v4944_v27  ;;  %v11050_v57 = vld [vmem:[%s16791_s9 + $0x18] sm:$0xff]  ;;  %v5062_v22 = vsel %vm1127_vm15, %v12286_v43, %v12287_v45  ;;  %v5063_v42 = vsel %vm1127_vm15, %v12292_v5, %v12316_v49 }
 0x858   : > { %v11383_v56 = vpack.c.bf16 %v5064_v16, %v5062_v22  ;;  %v5201_v21 = vsel %vm1267_vm0, %v12301_v14, %v12302_v7  ;;  %v5061_v38 = vsel %vm1127_vm15, %v12291_v28, %v12286_v43  ;;  %v5199_v63 = vsel %vm1267_vm0, %v12296_v2, %v12297_v8 }
 0x859   : > { %11376 = vmatprep.subr.bf16.mxu0 %v11375_v4  ;;  %v5198_v46 = vsel %vm1267_vm0, %v12326_v47, %v12296_v2  ;;  %v5200_v49 = vsel %vm1267_vm0, %v12327_v11, %v12301_v14  ;;  %v11385_v4 = vpack.c.bf16 %v5063_v42, %v5061_v38  ;;  %v12332_v26 = vunpack.i.h.bf16 %v14920_v15 }
 0x85a   : > { %11378 = vmatpush1.bf16.msra.mxu0 %v11377_v31  ;;  %v11387_v31 = vpack.c.bf16 %v5201_v21, %v5199_v63  ;;  %v12331_v45 = vunpack.i.l.bf16 %v14920_v15  ;;  %v12336_v43 = vunpack.i.l.bf16 %v14935_v50  ;;  %v12347_v7 = vunpack.i.h.bf16 %v14933_v6 }
 0x85b   : > { %v12355_v12 = vpop.permute.xlu0 %12354  ;;  %v12350_v19 = vpop.permute.xlu1 %12349  ;;  %11380 = vmatprep.subr.bf16.mxu0 %v11379_v40  ;;  %v12337_v14 = vunpack.i.h.bf16 %v14935_v50  ;;  %v11389_v2 = vpack.c.bf16 %v5200_v49, %v5198_v46 }
 0x85c   : > { %v12352_v40 = vunpack.i.h.bf16 %v12350_v19  ;;  %v12351_v39 = vunpack.i.l.bf16 %v12350_v19  ;;  %v12357_v15 = vunpack.i.h.bf16 %v12355_v12  ;;  %v12356_v5 = vunpack.i.l.bf16 %v12355_v12 }
 0x85d   : > { %11051 = vmatmul.mubr.msk.f32.vlgmr.msra.gmra.mrb[16].mxu0 %vm1385_vm13, %v11050_v57  ;;  %v12346_v57 = vunpack.i.l.bf16 %v14933_v6  ;;  %v5203_v11 = vsel %vm1267_vm0, %v12331_v45, %v12332_v26 }
 0x85e   : > { %11382 = vmatpush1.bf16.msra.mxu0 %v11381_v53  ;;  %5140 = vmatprep.mubr.f32.mxu0 %v16862_v41  ;;  %v5342_v47 = vsel %vm1407_vm2, %v12351_v39, %v12352_v40  ;;  %v5202_v53 = vsel %vm1267_vm0, %v12336_v43, %v12331_v45  ;;  %v5341_v63 = vsel %vm1407_vm2, %v12357_v15, %v12351_v39 }
 0x85f   : > { %v14960_v27 = vpop.permute.xlu0 %12369  ;;  %v14962_v59 = vpop.permute.xlu1 %12359  ;;  %11384 = vmatprep.subr.bf16.mxu0 %v11383_v56  ;;  %v5340_v21 = vsel %vm1407_vm2, %v12346_v57, %v12347_v7  ;;  %v5339_v38 = vsel %vm1407_vm2, %v12356_v5, %v12346_v57 }
 0x860   : > { %v12372_v46 = vunpack.i.h.bf16 %v14960_v27  ;;  %v11395_v49 = vpack.c.bf16 %v5342_v47, %v5340_v21  ;;  %v12361_v26 = vunpack.i.l.bf16 %v14962_v59 }
 0x862   : > { %11386 = vmatpush1.bf16.msra.mxu0 %v11385_v4  ;;  %v12371_v4 = vunpack.i.l.bf16 %v14960_v27 }
 0x863   : > { %v12380_v16 = vpop.permute.xlu0 %12379  ;;  %v12365_v8 = vpop.permute.xlu1 %12364  ;;  %11388 = vmatprep.subr.bf16.mxu0 %v11387_v31  ;;  %v12362_v31 = vunpack.i.h.bf16 %v14962_v59 }
 0x864   : > { %v12382_v28 = vunpack.i.h.bf16 %v12380_v16  ;;  %v12381_v19 = vunpack.i.l.bf16 %v12380_v16  ;;  %v12366_v45 = vunpack.i.l.bf16 %v12365_v8  ;;  %v12367_v7 = vunpack.i.h.bf16 %v12365_v8 }
 0x865   : > { %11053 = vmatmul.mubr.msk.f32.vlgmr.msra.gmra.mrb[16].mxu0 %vm1385_vm13, %v11052_v1  ;;  %v11054_v1 = vld [vmem:[%s16791_s9 + $0x28] sm:$0xff]  ;;  %v5344_v5 = vsel %vm1407_vm2, %v12361_v26, %v12362_v31  ;;  %v11056_v31 = vld [vmem:[%s16791_s9 + $0x30] sm:$0xff] }
 0x866   : > { %v5204_v6 = vsel %vm1267_vm0, %v12337_v14, %v12381_v19  ;;  %11390 = vmatpush1.bf16.msra.mxu0 %v11389_v2  ;;  %v5205_v50 = vsel %vm1267_vm0, %v12381_v19, %v12382_v28  ;;  %5281 = vmatprep.mubr.f32.mxu0 %v16862_v41  ;;  %v11397_v14 = vpack.c.bf16 %v5341_v63, %v5339_v38 }
 0x867   : > { %v12385_v22 = vpop.permute.xlu0 %12384  ;;  %v12375_v42 = vpop.permute.xlu1 %12374  ;;  %v11391_v12 = vpack.c.bf16 %v5205_v50, %v5203_v11  ;;  %v11393_v56 = vpack.c.bf16 %v5204_v6, %v5202_v53  ;;  %v5343_v59 = vsel %vm1407_vm2, %v12366_v45, %v12361_v26  ;;  %v5457_v28 = vsel %vm1532_vm3, %v12371_v4, %v12372_v46 }
 0x868   : > { %v12377_v40 = vunpack.i.h.bf16 %v12375_v42  ;;  %v12376_v43 = vunpack.i.l.bf16 %v12375_v42  ;;  %v12387_v16 = vunpack.i.h.bf16 %v12385_v22  ;;  %v12386_v27 = vunpack.i.l.bf16 %v12385_v22 }
 0x869   : > { %11392 = vmatprep.subr.bf16.mxu0 %v11391_v12 }
 0x86a   : > { %11394 = vmatpush1.bf16.msra.mxu0 %v11393_v56  ;;  %v5459_v11 = vsel %vm1532_vm3, %v12376_v43, %v12377_v40  ;;  %v5456_v12 = vsel %vm1532_vm3, %v12386_v27, %v12371_v4  ;;  %v5458_v56 = vsel %vm1532_vm3, %v12387_v16, %v12376_v43 }
 0x86b   : > { %v12395_v39 = vpop.permute.xlu0 %12394  ;;  %v12390_v57 = vpop.permute.xlu1 %12389  ;;  %11396 = vmatprep.subr.bf16.mxu0 %v11395_v49  ;;  %v11403_v49 = vpack.c.bf16 %v5459_v11, %v5457_v28 }
 0x86c   : > { %v12397_v2 = vunpack.i.h.bf16 %v12395_v39  ;;  %v12396_v15 = vunpack.i.l.bf16 %v12395_v39  ;;  %v12392_v47 = vunpack.i.h.bf16 %v12390_v57  ;;  %v12391_v53 = vunpack.i.l.bf16 %v12390_v57 }
 0x86d   : > { %11055 = vmatmul.mubr.msk.f32.vlgmr.msra.gmra.mrb[16].mxu0 %vm1385_vm13, %v11054_v1  ;;  %v11405_v1 = vpack.c.bf16 %v5458_v56, %v5456_v12 }
 0x86e   : > { %v5345_v19 = vsel %vm1407_vm2, %v12367_v7, %v12396_v15  ;;  %11398 = vmatpush1.bf16.msra.mxu0 %v11397_v14  ;;  %v5346_v8 = vsel %vm1407_vm2, %v12396_v15, %v12397_v2  ;;  %5422 = vmatprep.mubr.f32.mxu0 %v16862_v41  ;;  %v5461_v4 = vsel %vm1532_vm3, %v12391_v53, %v12392_v47 }
 0x86f   : > { %v12400_v6 = vpop.permute.xlu0 %12399  ;;  %v12405_v50 = vpop.permute.xlu1 %12404  ;;  %v11399_v22 = vpack.c.bf16 %v5346_v8, %v5344_v5  ;;  %v11401_v42 = vpack.c.bf16 %v5345_v19, %v5343_v59 }
 0x870   : > { %v12402_v21 = vunpack.i.h.bf16 %v12400_v6  ;;  %v12401_v38 = vunpack.i.l.bf16 %v12400_v6  ;;  %v12407_v63 = vunpack.i.h.bf16 %v12405_v50  ;;  %v12406_v46 = vunpack.i.l.bf16 %v12405_v50 }
 0x871   : > { %11400 = vmatprep.subr.bf16.mxu0 %v11399_v22  ;;  %v11058_v22 = vld [vmem:[%s16791_s9 + $0x38] sm:$0xff] }
 0x872   : > { %11402 = vmatpush1.bf16.msra.mxu0 %v11401_v42  ;;  %v5463_v26 = vsel %vm1532_vm3, %v12401_v38, %v12402_v21  ;;  %v5462_v14 = vsel %vm1532_vm3, %v12407_v63, %v12401_v38  ;;  %v5460_v16 = vsel %vm1532_vm3, %v12406_v46, %v12391_v53 }
 0x873   : > { %v12410_v45 = vpop.permute.xlu0 %12409  ;;  %v12415_v40 = vpop.permute.xlu1 %12414  ;;  %11404 = vmatprep.subr.bf16.mxu0 %v11403_v49  ;;  %v11407_v27 = vpack.c.bf16 %v5463_v26, %v5461_v4  ;;  %v11409_v8 = vpack.c.bf16 %v5462_v14, %v5460_v16  ;;  %v5759_v16 = vmul.f32 %v14752_v48, %v13232_v17  ;;  %v11067_v48 = vld [vmem:[%s16787_s5 + $0x28] sm:$0xff] }
 0x874   : > { %v12412_v43 = vunpack.i.h.bf16 %v12410_v45  ;;  %v12411_v7 = vunpack.i.l.bf16 %v12410_v45  ;;  %v12417_v39 = vunpack.i.h.bf16 %v12415_v40  ;;  %v12416_v57 = vunpack.i.l.bf16 %v12415_v40 }
 0x875   : > { %11057 = vmatmul.mubr.msk.f32.vlgmr.msra.gmra.mrb[16].mxu0 %vm1385_vm13, %v11056_v31 }
 0x876   : > { %11406 = vmatpush1.bf16.msra.mxu0 %v11405_v1  ;;  %v5598_v2 = vsel %vm1671_vm7, %v12411_v7, %v12412_v43  ;;  %v5600_v15 = vsel %vm1671_vm7, %v12416_v57, %v12417_v39  ;;  %5539 = vmatprep.mubr.f32.mxu0 %v16862_v41 }
 0x877   : > { %v12420_v59 = vpop.permute.xlu0 %12419  ;;  %v12425_v5 = vpop.permute.xlu1 %12424  ;;  %11408 = vmatprep.subr.bf16.mxu0 %v11407_v27  ;;  %v11411_v6 = vpack.c.bf16 %v5600_v15, %v5598_v2  ;;  %v11066_v27 = vld [vmem:[%s16787_s5 + $0x20] sm:$0xff] }
 0x878   : > { %v12422_v28 = vunpack.i.h.bf16 %v12420_v59  ;;  %v12421_v19 = vunpack.i.l.bf16 %v12420_v59  ;;  %v12427_v11 = vunpack.i.h.bf16 %v12425_v5  ;;  %v12426_v47 = vunpack.i.l.bf16 %v12425_v5 }
 0x879   : > { %v5758_v59 = vmul.f32 %v14760_v55, %v13236_v18  ;;  %v11068_v55 = vld [vmem:[%s16787_s5 + $0x30] sm:$0xff] }
 0x87a   : > { %v5597_v53 = vsel %vm1671_vm7, %v12421_v19, %v12411_v7  ;;  %v5599_v50 = vsel %vm1671_vm7, %v12422_v28, %v12416_v57  ;;  %11410 = vmatpush1.bf16.msra.mxu0 %v11409_v8  ;;  %v5602_v49 = vsel %vm1671_vm7, %v12426_v47, %v12427_v11  ;;  %v11060_v7 = vld [vmem:[%s16791_s9 + $0x40] sm:$0xff]  ;;  %v11069_v19 = vld [vmem:[%s16787_s5 + $0x38] sm:$0xff] }
 0x87b   : > { %v12430_v42 = vpop.permute.xlu0 %12429  ;;  %v12435_v12 = vpop.permute.xlu1 %12434  ;;  %11412 = vmatprep.subr.bf16.mxu0 %v11411_v6  ;;  %v11413_v56 = vpack.c.bf16 %v5599_v50, %v5597_v53  ;;  %v5760_v8 = vld [vmem:[%s16787_s5] sm:$0xff]  ;;  %v5761_v50 = vld [vmem:[%s16787_s5 + $0x8] sm:$0xff] }
 0x87c   : > { %v12432_v21 = vunpack.i.h.bf16 %v12430_v42  ;;  %v12431_v38 = vunpack.i.l.bf16 %v12430_v42  ;;  %v12437_v63 = vunpack.i.h.bf16 %v12435_v12  ;;  %v12436_v46 = vunpack.i.l.bf16 %v12435_v12  ;;  %v5763_v12 = vld [vmem:[%s16787_s5 + $0x18] sm:$0xff] }
 0x87d   : > { %11059 = vmatmul.mubr.msk.f32.vlgmr.msra.gmra.mrb[16].mxu0 %vm1385_vm13, %v11058_v22  ;;  %v5762_v22 = vld [vmem:[%s16787_s5 + $0x10] sm:$0xff] }
 0x87e   : > { %v5603_v31 = vsel %vm1671_vm7, %v12437_v63, %v12431_v38  ;;  %v5601_v26 = vsel %vm1671_vm7, %v12436_v46, %v12426_v47  ;;  %11414 = vmatpush1.bf16.msra.mxu0 %v11413_v56  ;;  %v5604_v45 = vsel %vm1671_vm7, %v12431_v38, %v12432_v21  ;;  %5680 = vmatprep.mubr.f32.mxu0 %v16862_v41  ;;  %v11078_v56 = vld [vmem:[%s16787_s5 + $0x40] sm:$0xff] }
 0x87f   : > { %v5775_v40 = vpop.permute.xlu0 %5774  ;;  %v5777_v1 = vpop.permute.xlu1 %5776  ;;  %v11415_v4 = vpack.c.bf16 %v5604_v45, %v5602_v49  ;;  %v11417_v43 = vpack.c.bf16 %v5603_v31, %v5601_v26  ;;  %v11079_v49 = vld [vmem:[%s16787_s5 + $0x48] sm:$0xff]  ;;  %v11080_v31 = vld [vmem:[%s16787_s5 + $0x50] sm:$0xff]  ;;  %v11081_v45 = vld [vmem:[%s16787_s5 + $0x58] sm:$0xff] }
 0x880   : > { %v5779_v39 = vsel %vm619_vm9, %v5775_v40, %v5777_v1 }
 0x881   : > { %11416 = vmatprep.subr.bf16.mxu0 %v11415_v4 }
 0x882   : > { %11418 = vmatpush1.bf16.msra.mxu0 %v11417_v43 }
 0x883   : > { %v5773_v57 = vpop.permute.xlu0 %5772  ;;  %5794 = vmatprep.subr.mxu0 %v5779_v39  ;;  %v5997_v2 = vpop.permute.xlu1 %5996  ;;  %v11087_v39 = vld [vmem:[%s16787_s5 + $0x68] sm:$0xff] }
 0x884   : > { %v5778_v14 = vsel %vm619_vm9, %v5773_v57, %v5775_v40  ;;  %v11086_v40 = vld [vmem:[%s16787_s5 + $0x60] sm:$0xff]  ;;  %v11088_v57 = vld [vmem:[%s16787_s5 + $0x70] sm:$0xff] }
 0x885   : > { %11061 = vmatmul.mubr.msk.f32.vlgmr.msra.gmra.mrb[16].mxu0 %vm1385_vm13, %v11060_v7 }
 0x886   : > { %5795 = vmatpush1.msra.mxu0 %v5778_v14  ;;  %5858 = vmatprep.mubr.f32.mxu0 %v16862_v41 }
 0x887   : > { %v5999_v15 = vpop.permute.xlu0 %5998  ;;  %5895 = vmatprep.subr.mxu0 %v5759_v16  ;;  %v5995_v28 = vpop.permute.xlu1 %5994  ;;  %v11089_v16 = vld [vmem:[%s16787_s5 + $0x78] sm:$0xff] }
 0x888   : > { %v6001_v5 = vsel %vm862_vm12, %v5997_v2, %v5999_v15  ;;  %v6000_v6 = vsel %vm862_vm12, %v5995_v28, %v5997_v2 }
 0x889   : > { %11070 = vmatmul.mubr.msk.f32.vlgmr.msra.gmra.mrb[18].mxu0 %vm624_vm10, %v11066_v27  ;;  %v11094_v27 = vld [vmem:[%s16787_s5 + $0x80] sm:$0xff] }
 0x88a   : > { %5896 = vmatpush1.msra.mxu0 %v5758_v59  ;;  %5864 = vmatprep.mubr.f32.mxu0 %v16862_v41 }
 0x88b   : > { %6016 = vmatprep.subr.mxu0 %v6001_v5  ;;  %v6126_v11 = vpop.permute.xlu0 %6125  ;;  %v6128_v47 = vpop.permute.xlu1 %6127 }
 0x88c   : > { %v6130_v53 = vsel %vm1002_vm14, %v6126_v11, %v6128_v47 }
 0x88d   : > { %11071 = vmatmul.mubr.msk.f32.gmra.mrb[20].mxu0 %vm624_vm10, %v11067_v48  ;;  %v11095_v48 = vld [vmem:[%s16787_s5 + $0x88] sm:$0xff] }
 0x88e   : > { %5870 = vmatprep.mubr.f32.mxu0 %v16862_v41 }
 0x88f   : > { %v6124_v42 = vpop.permute.xlu0 %6123  ;;  %v6249_v63 = vpop.permute.xlu1 %6248 }
 0x890   : > { %v6129_v38 = vsel %vm1002_vm14, %v6124_v42, %v6126_v11 }
 0x891   : > { %11072 = vmatmul.mubr.msk.f32.gmra.mrb[22].mxu0 %vm624_vm10, %v11068_v55  ;;  %v11096_v55 = vld [vmem:[%s16787_s5 + $0x90] sm:$0xff] }
 0x892   : > { %5876 = vmatprep.mubr.f32.mxu0 %v16862_v41 }
 0x893   : > { %v6251_v21 = vpop.permute.xlu0 %6250  ;;  %v6247_v26 = vpop.permute.xlu1 %6246 }
 0x894   : > { %v6253_v46 = vsel %vm1127_vm15, %v6249_v63, %v6251_v21  ;;  %v6252_v43 = vsel %vm1127_vm15, %v6247_v26, %v6249_v63  ;;  %v11113_v26 = vld [vmem:[%s16787_s5 + $0xd8] sm:$0xff] }
 0x895   : > { %11073 = vmatmul.mubr.msk.f32.gmra.mrb[24].mxu0 %vm624_vm10, %v11069_v19  ;;  %v11097_v19 = vld [vmem:[%s16787_s5 + $0x98] sm:$0xff] }
 0x896   : > { %5959 = vmatprep.mubr.f32.mxu0 %v16862_v41 }
 0x897   : > { %v6378_v1 = vpop.permute.xlu0 %6377  ;;  %v6380_v4 = vpop.permute.xlu1 %6379 }
 0x898   : > { %v6382_v7 = vsel %vm1267_vm0, %v6378_v1, %v6380_v4  ;;  %v11119_v4 = vld [vmem:[%s16787_s5 + $0xe8] sm:$0xff] }
 0x899   : > { %11074 = vmatmul.mubr.msk.f32.vlgmr.msra.gmra.mrb[18].mxu0 %vm624_vm10, %v5760_v8  ;;  %v11102_v8 = vld [vmem:[%s16787_s5 + $0xa0] sm:$0xff] }
 0x89a   : > { %6017 = vmatpush1.msra.mxu0 %v6000_v6  ;;  %5965 = vmatprep.mubr.f32.mxu0 %v16862_v41 }
 0x89b   : > { %6145 = vmatprep.subr.mxu0 %v6130_v53  ;;  %v6376_v14 = vpop.permute.xlu0 %6375  ;;  %v6507_v59 = vpop.permute.xlu1 %6506 }
 0x89c   : > { %v6381_v15 = vsel %vm1267_vm0, %v6376_v14, %v6378_v1  ;;  %v11128_v14 = vld [vmem:[%s16787_s5 + $0x110] sm:$0xff] }
 0x89d   : > { %11075 = vmatmul.mubr.msk.f32.gmra.mrb[20].mxu0 %vm624_vm10, %v5761_v50  ;;  %v11103_v50 = vld [vmem:[%s16787_s5 + $0xa8] sm:$0xff] }
 0x89e   : > { %5971 = vmatprep.mubr.f32.mxu0 %v16862_v41 }
 0x89f   : > { %v6509_v2 = vpop.permute.xlu0 %6508  ;;  %v6505_v28 = vpop.permute.xlu1 %6504 }
 0x8a0   : > { %v6511_v5 = vsel %vm1407_vm2, %v6507_v59, %v6509_v2  ;;  %v6510_v6 = vsel %vm1407_vm2, %v6505_v28, %v6507_v59 }
 0x8a1   : > { %11076 = vmatmul.mubr.msk.f32.gmra.mrb[22].mxu0 %vm624_vm10, %v5762_v22  ;;  %v11104_v22 = vld [vmem:[%s16787_s5 + $0xb0] sm:$0xff] }
 0x8a2   : > { %5977 = vmatprep.mubr.f32.mxu0 %v16862_v41 }
 0x8a3   : > { %v6630_v11 = vpop.permute.xlu0 %6629  ;;  %v6632_v47 = vpop.permute.xlu1 %6631 }
 0x8a4   : > { %v6634_v53 = vsel %vm1532_vm3, %v6630_v11, %v6632_v47 }
 0x8a5   : > { %11077 = vmatmul.mubr.msk.f32.gmra.mrb[24].mxu0 %vm624_vm10, %v5763_v12  ;;  %v11105_v12 = vld [vmem:[%s16787_s5 + $0xb8] sm:$0xff] }
 0x8a6   : > { %6080 = vmatprep.mubr.f32.mxu0 %v16862_v41 }
 0x8a7   : > { %v6628_v42 = vpop.permute.xlu0 %6627  ;;  %v6759_v63 = vpop.permute.xlu1 %6758 }
 0x8a9   : > { %11082 = vmatmul.mubr.msk.f32.vlgmr.msra.gmra.mrb[18].mxu0 %vm624_vm10, %v11078_v56  ;;  %v11110_v56 = vld [vmem:[%s16787_s5 + $0xc0] sm:$0xff] }
 0x8aa   : > { %6146 = vmatpush1.msra.mxu0 %v6129_v38  ;;  %6086 = vmatprep.mubr.f32.mxu0 %v16862_v41  ;;  %v6633_v38 = vsel %vm1532_vm3, %v6628_v42, %v6630_v11 }
 0x8ab   : > { %6268 = vmatprep.subr.mxu0 %v6253_v46  ;;  %v6761_v21 = vpop.permute.xlu0 %6760 }
 0x8ac   : > { %v6763_v46 = vsel %vm1671_vm7, %v6759_v63, %v6761_v21 }
 0x8ad   : > { %11083 = vmatmul.mubr.msk.f32.gmra.mrb[20].mxu0 %vm624_vm10, %v11079_v49  ;;  %v11111_v49 = vld [vmem:[%s16787_s5 + $0xc8] sm:$0xff] }
 0x8ae   : > { %6092 = vmatprep.mubr.f32.mxu0 %v16862_v41 }
 0x8b1   : > { %11084 = vmatmul.mubr.msk.f32.gmra.mrb[22].mxu0 %vm624_vm10, %v11080_v31  ;;  %v11112_v31 = vld [vmem:[%s16787_s5 + $0xd0] sm:$0xff] }
 0x8b2   : > { %6098 = vmatprep.mubr.f32.mxu0 %v16862_v41 }
 0x8b5   : > { %11085 = vmatmul.mubr.msk.f32.gmra.mrb[24].mxu0 %vm624_vm10, %v11081_v45  ;;  %v6757_v45 = vpop.permute.xlu1 %6756 }
 0x8b6   : > { %6209 = vmatprep.mubr.f32.mxu0 %v16862_v41  ;;  %v6762_v1 = vsel %vm1671_vm7, %v6757_v45, %v6759_v63 }
 0x8b9   : > { %11090 = vmatmul.mubr.msk.f32.vlgmr.msra.gmra.mrb[18].mxu0 %vm624_vm10, %v11086_v40  ;;  %v11118_v40 = vld [vmem:[%s16787_s5 + $0xe0] sm:$0xff] }
 0x8ba   : > { %6269 = vmatpush1.msra.mxu0 %v6252_v43  ;;  %6215 = vmatprep.mubr.f32.mxu0 %v16862_v41  ;;  %v11120_v43 = vld [vmem:[%s16787_s5 + $0xf0] sm:$0xff] }
 0x8bb   : > { %6397 = vmatprep.subr.mxu0 %v6382_v7  ;;  %v11121_v7 = vld [vmem:[%s16787_s5 + $0xf8] sm:$0xff] }
 0x8bd   : > { %11091 = vmatmul.mubr.msk.f32.gmra.mrb[20].mxu0 %vm624_vm10, %v11087_v39  ;;  %v11126_v39 = vld [vmem:[%s16787_s5 + $0x100] sm:$0xff] }
 0x8be   : > { %6221 = vmatprep.mubr.f32.mxu0 %v16862_v41 }
 0x8c1   : > { %11092 = vmatmul.mubr.msk.f32.gmra.mrb[22].mxu0 %vm624_vm10, %v11088_v57  ;;  %v11127_v57 = vld [vmem:[%s16787_s5 + $0x108] sm:$0xff] }
 0x8c2   : > { %6227 = vmatprep.mubr.f32.mxu0 %v16862_v41 }
 0x8c5   : > { %11093 = vmatmul.mubr.msk.f32.gmra.mrb[24].mxu0 %vm624_vm10, %v11089_v16  ;;  %v11129_v16 = vld [vmem:[%s16787_s5 + $0x118] sm:$0xff] }
 0x8c6   : > { %6332 = vmatprep.mubr.f32.mxu0 %v16862_v41 }
 0x8c9   : > { %11098 = vmatmul.mubr.msk.f32.vlgmr.msra.gmra.mrb[18].mxu0 %vm624_vm10, %v11094_v27 }
 0x8ca   : > { %6398 = vmatpush1.msra.mxu0 %v6381_v15  ;;  %6338 = vmatprep.mubr.f32.mxu0 %v16862_v41 }
 0x8cb   : > { %6526 = vmatprep.subr.mxu0 %v6511_v5 }
 0x8cd   : > { %11099 = vmatmul.mubr.msk.f32.gmra.mrb[20].mxu0 %vm624_vm10, %v11095_v48 }
 0x8ce   : > { %6344 = vmatprep.mubr.f32.mxu0 %v16862_v41 }
 0x8d1   : > { %11100 = vmatmul.mubr.msk.f32.gmra.mrb[22].mxu0 %vm624_vm10, %v11096_v55 }
 0x8d2   : > { %6350 = vmatprep.mubr.f32.mxu0 %v16862_v41 }
 0x8d5   : > { %11101 = vmatmul.mubr.msk.f32.gmra.mrb[24].mxu0 %vm624_vm10, %v11097_v19 }
 0x8d6   : > { %6461 = vmatprep.mubr.f32.mxu0 %v16862_v41 }
 0x8d9   : > { %11106 = vmatmul.mubr.msk.f32.vlgmr.msra.gmra.mrb[18].mxu0 %vm624_vm10, %v11102_v8 }
 0x8da   : > { %6527 = vmatpush1.msra.mxu0 %v6510_v6  ;;  %6467 = vmatprep.mubr.f32.mxu0 %v16862_v41 }
 0x8db   : > { %6649 = vmatprep.subr.mxu0 %v6634_v53 }
 0x8dd   : > { %11107 = vmatmul.mubr.msk.f32.gmra.mrb[20].mxu0 %vm624_vm10, %v11103_v50 }
 0x8de   : > { %6473 = vmatprep.mubr.f32.mxu0 %v16862_v41 }
 0x8e1   : > { %11108 = vmatmul.mubr.msk.f32.gmra.mrb[22].mxu0 %vm624_vm10, %v11104_v22 }
 0x8e2   : > { %6479 = vmatprep.mubr.f32.mxu0 %v16862_v41 }
 0x8e5   : > { %11109 = vmatmul.mubr.msk.f32.gmra.mrb[24].mxu0 %vm624_vm10, %v11105_v12 }
 0x8e6   : > { %6590 = vmatprep.mubr.f32.mxu0 %v16862_v41 }
 0x8e9   : > { %11114 = vmatmul.mubr.msk.f32.vlgmr.msra.gmra.mrb[18].mxu0 %vm624_vm10, %v11110_v56 }
 0x8ea   : > { %6650 = vmatpush1.msra.mxu0 %v6633_v38  ;;  %6596 = vmatprep.mubr.f32.mxu0 %v16862_v41 }
 0x8eb   : > { %6778 = vmatprep.subr.mxu0 %v6763_v46 }
 0x8ed   : > { %11115 = vmatmul.mubr.msk.f32.gmra.mrb[20].mxu0 %vm624_vm10, %v11111_v49 }
 0x8ee   : > { %6602 = vmatprep.mubr.f32.mxu0 %v16862_v41 }
 0x8f1   : > { %11116 = vmatmul.mubr.msk.f32.gmra.mrb[22].mxu0 %vm624_vm10, %v11112_v31 }
 0x8f2   : > { %6608 = vmatprep.mubr.f32.mxu0 %v16862_v41 }
 0x8f5   : > { %11117 = vmatmul.mubr.msk.f32.gmra.mrb[24].mxu0 %vm624_vm10, %v11113_v26 }
 0x8f6   : > { %6713 = vmatprep.mubr.f32.mxu0 %v16862_v41 }
 0x8f9   : > { %11122 = vmatmul.mubr.msk.f32.vlgmr.msra.gmra.mrb[18].mxu0 %vm624_vm10, %v11118_v40 }
 0x8fa   : > { %6779 = vmatpush1.msra.mxu0 %v6762_v1  ;;  %6719 = vmatprep.mubr.f32.mxu0 %v16862_v41 }
 0x8fd   : > { %11123 = vmatmul.mubr.msk.f32.gmra.mrb[20].mxu0 %vm624_vm10, %v11119_v4 }
 0x8fe   : > { %6725 = vmatprep.mubr.f32.mxu0 %v16862_v41 }
 0x901   : > { %11124 = vmatmul.mubr.msk.f32.gmra.mrb[22].mxu0 %vm624_vm10, %v11120_v43  ;;  %v12954_v43 = vld [vmem:[%s16789_s7] sm:$0xff] }
 0x902   : > { %6731 = vmatprep.mubr.f32.mxu0 %v16862_v41 }
 0x905   : > { %11125 = vmatmul.mubr.msk.f32.gmra.mrb[24].mxu0 %vm624_vm10, %v11121_v7  ;;  %v12955_v7 = vld [vmem:[%s16789_s7 + $0x8] sm:$0xff] }
 0x906   : > { %6842 = vmatprep.mubr.f32.mxu0 %v16862_v41 }
 0x909   : > { %11130 = vmatmul.mubr.msk.f32.vlgmr.msra.gmra.mrb[18].mxu0 %vm624_vm10, %v11126_v39  ;;  %v12956_v39 = vld [vmem:[%s16789_s7 + $0x10] sm:$0xff] }
 0x90a   : > { %6848 = vmatprep.mubr.f32.mxu0 %v16862_v41 }
 0x90d   : > { %11131 = vmatmul.mubr.msk.f32.gmra.mrb[20].mxu0 %vm624_vm10, %v11127_v57  ;;  %v12957_v57 = vld [vmem:[%s16789_s7 + $0x18] sm:$0xff] }
 0x90e   : > { %6854 = vmatprep.mubr.f32.mxu0 %v16862_v41 }
 0x911   : > { %11132 = vmatmul.mubr.msk.f32.gmra.mrb[22].mxu0 %vm624_vm10, %v11128_v14 }
 0x912   : > { %6860 = vmatprep.mubr.f32.mxu0 %v16862_v41 }
 0x915   : > { %11133 = vmatmul.mubr.msk.f32.gmra.mrb[24].mxu0 %vm624_vm10, %v11129_v16 }
 0x916   : > { %9467 = vmatprep.mubr.f32.mxu0 %v16862_v41 }
 0x958   : > { %v15230_v27 = vpop.f32.mrb[16].mxu0 }
 0x959   : > { %v15232_v2 = vpop.f32.mrb[17].mxu0 }
 0x9dc   : > { %v6844_v15 = vpop.f32.mrb[18].mxu0 }
 0x9dd   : > { %v6846_v59 = vpop.f32.mrb[19].mxu0  ;;  %v6875_v5 = vadd.f32 %v6844_v15, %v13592_v58 }
 0x9de   : > { %v6876_v48 = vadd.f32 %v6846_v59, %v13592_v58 }
 0x9df   : > { %v6883_v11 = vmax.f32 %v6875_v5, 0.0 }
 0x9e0   : > { %v6850_v55 = vpop.f32.mrb[20].mxu0  ;;  %v6884_v6 = vmax.f32 %v6876_v48, 0.0 }
 0x9e1   : > { %v6877_v28 = vadd.f32 %v6850_v55, %v13596_v3  ;;  %v6852_v19 = vpop.f32.mrb[21].mxu0 }
 0x9e2   : > { %v6878_v8 = vadd.f32 %v6852_v19, %v13596_v3 }
 0x9e3   : > { %v6885_v47 = vmax.f32 %v6877_v28, 0.0 }
 0x9e4   : > { %v6886_v53 = vmax.f32 %v6878_v8, 0.0  ;;  %v6856_v50 = vpop.f32.mrb[22].mxu0 }
 0x9e5   : > { %v11421_v22 = vpack.c.bf16 %v6885_v47, %v6883_v11  ;;  %v6858_v42 = vpop.f32.mrb[23].mxu0  ;;  %v6879_v56 = vadd.f32 %v6856_v50, %v13599_v9 }
 0x9e6   : > { %v11419_v12 = vpack.c.bf16 %v6886_v53, %v6884_v6  ;;  %v6880_v21 = vadd.f32 %v6858_v42, %v13599_v9 }
 0x9e7   : > { %v6887_v31 = vmax.f32 %v6879_v56, 0.0 }
 0x9e8   : > { %v6862_v38 = vpop.f32.mrb[24].mxu0  ;;  %11420 = vmatprep.subr.bf16.mxu1 %v11419_v12  ;;  %v6888_v45 = vmax.f32 %v6880_v21, 0.0 }
 0x9e9   : > { %v6881_v63 = vadd.f32 %v6862_v38, %v13603_v34  ;;  %v6864_v46 = vpop.f32.mrb[25].mxu0  ;;  %11422 = vmatpush1.bf16.msra.mxu1 %v11421_v22 }
 0x9ea   : > { %v6882_v49 = vadd.f32 %v6864_v46, %v13603_v34  ;;  %v11157_v46 = vld [vmem:[%s13205_s17 + $0x18] sm:$0xff] }
 0x9eb   : > { %v6889_v26 = vmax.f32 %v6881_v63, 0.0 }
 0x9ec   : > { %v6890_v40 = vmax.f32 %v6882_v49, 0.0 }
 0x9ed   : > { %v11425_v1 = vpack.c.bf16 %v6889_v26, %v6887_v31  ;;  %v15279_v26 = vmul.f32 %v11157_v46, %v13209_v10 }
 0x9ee   : > { %v11423_v4 = vpack.c.bf16 %v6890_v40, %v6888_v45  ;;  %v11158_v45 = vld [vmem:[%s13196_s15 + $0x6] sm:$0x3] }
 0x9ef   : > { %16869 = vst [vmem:[#allocation19_spill] sm:$0xff] %v15279_v26  ;;  %v8248_v40 = vcombine.high %v15279_v26, %v15279_v26 }
 0x9f0   : > { %11424 = vmatprep.subr.bf16.mxu1 %v11423_v4 }
 0x9f1   : > { %11426 = vmatpush1.bf16.msra.mxu1 %v11425_v1 }
 0x9f4   : > { %11134 = vmatmul.mubr.msk.f32.vlgmr.msra.gmra.mrb[18].mxu1 %vm1385_vm13, %v12954_v43 }
 0x9f5   : > { %6961 = vmatprep.mubr.f32.mxu1 %v16862_v41 }
 0x9f8   : > { %11135 = vmatmul.mubr.msk.f32.gmra.mrb[20].mxu1 %vm1385_vm13, %v12955_v7 }
 0x9f9   : > { %6967 = vmatprep.mubr.f32.mxu1 %v16862_v41 }
 0x9fc   : > { %11136 = vmatmul.mubr.msk.f32.gmra.mrb[22].mxu1 %vm1385_vm13, %v12956_v39 }
 0x9fd   : > { %6973 = vmatprep.mubr.f32.mxu1 %v16862_v41 }
 0xa00   : > { %11137 = vmatmul.mubr.msk.f32.gmra.mrb[24].mxu1 %vm1385_vm13, %v12957_v57 }
 0xa01   : > { %7181 = vmatprep.mubr.f32.mxu1 %v16862_v41 }
 0xac7   : > { %v6957_v14 = vpop.f32.mrb[18].mxu1 }
 0xac8   : > { %v6958_v16 = vadd.f32 %v6957_v14, %v13632_v52  ;;  %v6959_v15 = vpop.f32.mrb[19].mxu1 }
 0xac9   : > { %v6960_v59 = vadd.f32 %v6959_v15, %v13632_v52 }
 0xaca   : > { %v6980_v5 = vmax.f32 %v6958_v16, 0.0 }
 0xacb   : > { %v6981_v48 = vmax.f32 %v6960_v59, 0.0  ;;  %v6963_v55 = vpop.f32.mrb[20].mxu1 }
 0xacc   : > { %v6964_v28 = vadd.f32 %v6963_v55, %v13636_v60  ;;  %v6965_v19 = vpop.f32.mrb[21].mxu1  ;;  %6996 = vrot.lane.b32.xlu0 %v6980_v5, %s16851_s0 }
 0xacd   : > { %v6966_v8 = vadd.f32 %v6965_v19, %v13636_v60  ;;  %6998 = vrot.lane.b32.xlu1 %v6981_v48, %s16851_s0 }
 0xace   : > { %v6982_v11 = vmax.f32 %v6964_v28, 0.0 }
 0xacf   : > { %v6983_v47 = vmax.f32 %v6966_v8, 0.0  ;;  %v6969_v6 = vpop.f32.mrb[22].mxu1 }
 0xad0   : > { %v6970_v53 = vadd.f32 %v6969_v6, %v13642_v13  ;;  %v6971_v50 = vpop.f32.mrb[23].mxu1  ;;  %7000 = vrot.lane.b32.xlu0 %v6982_v11, %s16851_s0 }
 0xad1   : > { %v6972_v22 = vadd.f32 %v6971_v50, %v13642_v13  ;;  %7002 = vrot.lane.b32.xlu1 %v6983_v47, %s16851_s0 }
 0xad2   : > { %v6984_v42 = vmax.f32 %v6970_v53, 0.0 }
 0xad3   : > { %v6985_v12 = vmax.f32 %v6972_v22, 0.0  ;;  %v6975_v56 = vpop.f32.mrb[24].mxu1 }
 0xad4   : > { %v6976_v21 = vadd.f32 %v6975_v56, %v13648_v25  ;;  %v6977_v38 = vpop.f32.mrb[25].mxu1  ;;  %7004 = vrot.lane.b32.xlu0 %v6984_v42, %s16851_s0 }
 0xad5   : > { %v6978_v63 = vadd.f32 %v6977_v38, %v13648_v25  ;;  %7006 = vrot.lane.b32.xlu1 %v6985_v12, %s16851_s0 }
 0xad6   : > { %v6986_v49 = vmax.f32 %v6976_v21, 0.0 }
 0xad7   : > { %v6987_v31 = vmax.f32 %v6978_v63, 0.0 }
 0xad8   : > { %7008 = vrot.lane.b32.xlu0 %v6986_v49, %s16851_s0 }
 0xad9   : > { %7010 = vrot.lane.b32.xlu1 %v6987_v31, %s16851_s0 }
 0xadc   : > { %8261 = vrot.lane.b32.xlu0 %v11158_v45, %s16851_s0 }
 0xadd   : > { %8249 = vrot.lane.b32.xlu1 %v15279_v26, %s16851_s0 }
 0xae0   : > { %8251 = vrot.lane.b32.xlu0 %v8248_v40, %s16851_s0 }
 0xb3e   : > { %v6997_v1 = vpop.permute.xlu0 %6996 }
 0xb3f   : > { %7028 = vst.msk [vmem:[#allocation3] sm:$0xff] %vm1990_vm11, %v6997_v1  ;;  %v6999_v4 = vpop.permute.xlu1 %6998 }
 0xb40   : > { %7030 = vst.msk [vmem:[#allocation3 + $0x10] sm:$0xff] %vm521_vm1, %v6999_v4  ;;  %v15294_v39 = vsel %vm521_vm1, %v6997_v1, %v6999_v4 }
 0xb41   : > { %v7263_v5 = vmul.f32 %v15294_v39, %v13272_v32  ;;  %v7404_v22 = vmul.f32 %v15294_v39, %v13289_v37 }
 0xb42   : > { %v7001_v10 = vpop.permute.xlu0 %7000 }
 0xb43   : > { %7031 = vst.msk [vmem:[#allocation3 + $0x18] sm:$0xff] %vm1990_vm11, %v7001_v10  ;;  %v7003_v43 = vpop.permute.xlu1 %7002 }
 0xb44   : > { %7033 = vst.msk [vmem:[#allocation3 + $0x28] sm:$0xff] %vm521_vm1, %v7003_v43  ;;  %v15317_v28 = vsel %vm521_vm1, %v7001_v10, %v7003_v43 }
 0xb45   : > { %v7266_v42 = vmul.f32 %v15317_v28, %v13272_v32  ;;  %v7407_v45 = vmul.f32 %v15317_v28, %v13289_v37 }
 0xb46   : > { %v7005_v7 = vpop.permute.xlu0 %7004  ;;  %v15312_v48 = vld [vmem:[#allocation3] sm:$0xff] }
 0xb47   : > { %7034 = vst.msk [vmem:[#allocation3 + $0x30] sm:$0xff] %vm1990_vm11, %v7005_v7  ;;  %v7007_v57 = vpop.permute.xlu1 %7006  ;;  %v15297_v14 = vld [vmem:[#allocation3 + $0x10] sm:$0xff] }
 0xb48   : > { %7036 = vst.msk [vmem:[#allocation3 + $0x40] sm:$0xff] %vm521_vm1, %v7007_v57  ;;  %v15302_v16 = vpack.i.bf16 %v15297_v14, %v15294_v39  ;;  %v7264_v15 = vmul.f32 %v15297_v14, %v13266_v30  ;;  %v7405_v6 = vmul.f32 %v15297_v14, %v13281_v35  ;;  %v15351_v40 = vsel %vm521_vm1, %v7005_v7, %v7007_v57 }
 0xb49   : > { %v7262_v7 = vmul.f32 %v15312_v48, %v13262_v29  ;;  %v7269_v57 = vmul.f32 %v15351_v40, %v13272_v32 }
 0xb4a   : > { %v7009_v59 = vpop.permute.xlu0 %7008  ;;  %12444 = vrot.lane.b32.xlu1 %v15302_v16, %s16853_s27  ;;  %12439 = vrot.lane.b32.xlu0 %v15302_v16, %s16854_s22  ;;  %v15314_v55 = vld [vmem:[#allocation3 + $0x18] sm:$0xff]  ;;  %v12453_v47 = vpack.i.bf16 %v7264_v15, %v7263_v5  ;;  %v12458_v21 = vpack.i.bf16 %v7405_v6, %v7404_v22 }
 0xb4b   : > { %7037 = vst.msk [vmem:[#allocation3 + $0x48] sm:$0xff] %vm1990_vm11, %v7009_v59  ;;  %v7011_v19 = vpop.permute.xlu1 %7010  ;;  %v15322_v8 = vpack.i.bf16 %v15314_v55, %v15312_v48  ;;  %v15324_v11 = vld [vmem:[#allocation3 + $0x28] sm:$0xff]  ;;  %v7265_v10 = vmul.f32 %v15314_v55, %v13262_v29 }
 0xb4c   : > { %7039 = vst.msk [vmem:[#allocation3 + $0x58] sm:$0xff] %vm521_vm1, %v7011_v19  ;;  %v7267_v53 = vmul.f32 %v15324_v11, %v13266_v30  ;;  %v7408_v63 = vmul.f32 %v15324_v11, %v13281_v35  ;;  %v15357_v20 = vpack.i.bf16 %v15324_v11, %v15317_v28 }
 0xb4d   : > { %v12468_v15 = vpack.i.bf16 %v7265_v10, %v7262_v7  ;;  %v7662_v7 = vmul.f32 %v15294_v39, %v13331_v54 }
 0xb4e   : > { %v8262_v50 = vpop.permute.xlu0 %8261  ;;  %12454 = vrot.lane.b32.xlu1 %v12453_v47, %s16855_s30  ;;  %12449 = vrot.lane.b32.xlu0 %v15322_v8, %s16854_s22  ;;  %v12478_v38 = vpack.i.bf16 %v7267_v53, %v7266_v42  ;;  %v12483_v4 = vpack.i.bf16 %v7408_v63, %v7407_v45  ;;  %v7406_v47 = vmul.f32 %v15314_v55, %v13283_v36 }
 0xb4f   : > { %v8263_v12 = vrot.slane %v8262_v50, 7  ;;  %v8250_v56 = vpop.permute.xlu1 %8249  ;;  %v15342_v49 = vld [vmem:[#allocation3 + $0x40] sm:$0xff]  ;;  %v7403_v53 = vmul.f32 %v15312_v48, %v13283_v36  ;;  %v15397_v63 = vmul.f32 %v15317_v28, %v13232_v17 }
 0xb50   : > { %8257 = vst.msk [vmem:[#allocation2] sm:$0xf] %vm567_vm5, %v8250_v56  ;;  %v7270_v43 = vmul.f32 %v15342_v49, %v13266_v30  ;;  %v7411_v6 = vmul.f32 %v15342_v49, %v13281_v35 }
 0xb51   : > { %v8264_v46 = vsel %vm521_vm1, %v8263_v12, %v8262_v50  ;;  %v7410_v50 = vmul.f32 %v15351_v40, %v13289_v37  ;;  %v12473_v22 = vpack.i.bf16 %v7406_v47, %v7403_v53 }
 0xb52   : > { %8266 = vst.msk [vmem:[#allocation2 + $0x4] ss:$8 sm:$0x7] %vm13241_vm4, %v8264_v46  ;;  %v8252_v31 = vpop.permute.xlu0 %8251  ;;  %12459 = vrot.lane.b32.xlu1 %v12458_v21, %s16856_s24  ;;  %12479 = vrot.lane.b32.xlu0 %v12478_v38, %s16855_s30  ;;  %v12498_v5 = vpack.i.bf16 %v7270_v43, %v7269_v57  ;;  %v15389_v21 = vpack.i.bf16 %v15342_v49, %v15351_v40  ;;  %v15399_v46 = vld [vmem:[#allocation3 + $0x48] sm:$0xff]  ;;  %vm3198_vm4 = vcmask 0  }
 0xb53   : > { %v8253_v1 = vsel %vm521_vm1, %v8250_v56, %v8252_v31  ;;  %8259 = vst.msk [vmem:[#allocation2 + $0x10] sm:$0xf] %vm570_vm6, %v8252_v31  ;;  %v12503_v42 = vpack.i.bf16 %v7411_v6, %v7410_v50  ;;  %v15380_v12 = vld [vmem:[#allocation3 + $0x58] sm:$0xff]  ;;  %v15385_v56 = vsel %vm521_vm1, %v7009_v59, %v7011_v19  ;;  %v15407_v59 = vmul.f32 %v15294_v39, %v13232_v17  ;;  %v15409_v19 = vld [vmem:[#allocation3 + $0x30] sm:$0xff] }
 0xb54   : > { %8258 = vst [vmem:[#allocation2 + $0x8] sm:$0xf] %v8253_v1  ;;  %v15393_v38 = vpack.i.bf16 %v15380_v12, %v15385_v56  ;;  %v15413_v31 = vpack.i.bf16 %v15399_v46, %v15409_v19  ;;  %v15419_v1 = vmul.f32 %v15351_v40, %v13232_v17  ;;  %v7663_v43 = vmul.f32 %v15297_v14, %v13321_v51 }
 0xb55   : > { %v7271_v6 = vmul.f32 %v15399_v46, %v13262_v29  ;;  %v7273_v53 = vmul.f32 %v15380_v12, %v13266_v30  ;;  %v7268_v50 = vmul.f32 %v15409_v19, %v13262_v29 }
 0xb56   : > { %12464 = vrot.lane.b32.xlu1 %v15357_v20, %s16854_s22  ;;  %12484 = vrot.lane.b32.xlu0 %v12483_v4, %s16856_s24  ;;  %v15423_v4 = vmul.f32 %v15385_v56, %v13232_v17  ;;  %v12533_v57 = vpack.i.bf16 %v7663_v43, %v7662_v7  ;;  %v7412_v7 = vmul.f32 %v15399_v46, %v13283_v36 }
 0xb5a   : > { %12469 = vrot.lane.b32.xlu1 %v12468_v15, %s16855_s30  ;;  %12499 = vrot.lane.b32.xlu0 %v12498_v5, %s16855_s30  ;;  %v7666_v15 = vmul.f32 %v15324_v11, %v13321_v51  ;;  %v7665_v5 = vmul.f32 %v15317_v28, %v13331_v54 }
 0xb5c   : > { %v12538_v47 = vpack.i.bf16 %v7666_v15, %v7665_v5  ;;  %v7409_v15 = vmul.f32 %v15409_v19, %v13283_v36  ;;  %v7661_v5 = vmul.f32 %v15312_v48, %v13310_v44 }
 0xb5e   : > { %12474 = vrot.lane.b32.xlu1 %v12473_v22, %s16856_s24  ;;  %12504 = vrot.lane.b32.xlu0 %v12503_v42, %s16856_s24  ;;  %v7272_v22 = vmul.f32 %v15385_v56, %v13272_v32  ;;  %v12543_v42 = vpack.i.bf16 %v7271_v6, %v7268_v50  ;;  %v7669_v6 = vmul.f32 %v15342_v49, %v13321_v51 }
 0xb5f   : > { %v7668_v50 = vmul.f32 %v15351_v40, %v13331_v54 }
 0xb60   : > { %v12558_v43 = vpack.i.bf16 %v7273_v53, %v7272_v22  ;;  %v7414_v53 = vmul.f32 %v15380_v12, %v13281_v35  ;;  %v7413_v22 = vmul.f32 %v15385_v56, %v13289_v37 }
 0xb62   : > { %12489 = vrot.lane.b32.xlu1 %v15389_v21, %s16854_s22  ;;  %12509 = vrot.lane.b32.xlu0 %v15393_v38, %s16854_s22 }
 0xb66   : > { %12494 = vrot.lane.b32.xlu1 %v15413_v31, %s16854_s22  ;;  %12514 = vrot.lane.b32.xlu0 %v15357_v20, %s16853_s27 }
 0xb6a   : > { %12519 = vrot.lane.b32.xlu1 %v15322_v8, %s16853_s27  ;;  %12524 = vrot.lane.b32.xlu0 %v15389_v21, %s16853_s27 }
 0xb6e   : > { %12534 = vrot.lane.b32.xlu1 %v12533_v57, %s16857_s23  ;;  %12529 = vrot.lane.b32.xlu0 %v15413_v31, %s16853_s27  ;;  %v7664_v57 = vmul.f32 %v15314_v55, %v13310_v44 }
 0xb70   : > { %v12563_v10 = vpack.i.bf16 %v7664_v57, %v7661_v5  ;;  %v7804_v57 = vmul.f32 %v15297_v14, %v13345_v61 }
 0xb72   : > { %12554 = vrot.lane.b32.xlu1 %v15393_v38, %s16853_s27  ;;  %12539 = vrot.lane.b32.xlu0 %v12538_v47, %s16857_s23  ;;  %v12548_v47 = vpack.i.bf16 %v7412_v7, %v7409_v15  ;;  %v7670_v7 = vmul.f32 %v15399_v46, %v13310_v44  ;;  %v7803_v15 = vmul.f32 %v15294_v39, %v13358_v0 }
 0xb76   : > { %12544 = vrot.lane.b32.xlu0 %v12543_v42, %s16855_s30  ;;  %12559 = vrot.lane.b32.xlu1 %v12558_v43, %s16855_s30  ;;  %v12568_v42 = vpack.i.bf16 %v7669_v6, %v7668_v50  ;;  %v12578_v43 = vpack.i.bf16 %v7414_v53, %v7413_v22  ;;  %v7807_v6 = vmul.f32 %v15324_v11, %v13345_v61 }
 0xb77   : > { %v7805_v53 = vmul.f32 %v15314_v55, %v13349_v62  ;;  %v7806_v50 = vmul.f32 %v15317_v28, %v13358_v0  ;;  %v7802_v22 = vmul.f32 %v15312_v48, %v13349_v62 }
 0xb7a   : > { %12549 = vrot.lane.b32.xlu0 %v12548_v47, %s16856_s24  ;;  %12564 = vrot.lane.b32.xlu1 %v12563_v10, %s16857_s23  ;;  %v7667_v10 = vmul.f32 %v15409_v19, %v13310_v44  ;;  %v12583_v47 = vpack.i.bf16 %v7804_v57, %v7803_v15  ;;  %v7809_v57 = vmul.f32 %v15351_v40, %v13358_v0 }
 0xb7b   : > { %v7811_v15 = vmul.f32 %v15399_v46, %v13349_v62 }
 0xb7c   : > { %v12573_v5 = vpack.i.bf16 %v7670_v7, %v7667_v10  ;;  %v7810_v7 = vmul.f32 %v15342_v49, %v13345_v61 }
 0xb7e   : > { %12569 = vrot.lane.b32.xlu0 %v12568_v42, %s16857_s23  ;;  %12579 = vrot.lane.b32.xlu1 %v12578_v43, %s16856_s24  ;;  %v12588_v42 = vpack.i.bf16 %v7807_v6, %v7806_v50  ;;  %v12593_v43 = vpack.i.bf16 %v7805_v53, %v7802_v22  ;;  %v12598_v10 = vpack.i.bf16 %v7810_v7, %v7809_v57 }
 0xb7f   : > { %v7671_v6 = vmul.f32 %v15385_v56, %v13331_v54  ;;  %v7813_v22 = vmul.f32 %v15380_v12, %v13345_v61  ;;  %v8062_v7 = vmul.f32 %v15297_v14, %v13392_v23  ;;  %v8063_v14 = vmul.f32 %v15314_v55, %v13395_v24 }
 0xb82   : > { %12574 = vrot.lane.b32.xlu0 %v12573_v5, %s16857_s23  ;;  %12584 = vrot.lane.b32.xlu1 %v12583_v47, %s16858_s16  ;;  %v7672_v5 = vmul.f32 %v15380_v12, %v13321_v51  ;;  %v7808_v47 = vmul.f32 %v15409_v19, %v13349_v62 }
 0xb84   : > { %v12603_v53 = vpack.i.bf16 %v7811_v15, %v7808_v47  ;;  %v12618_v50 = vpack.i.bf16 %v7672_v5, %v7671_v6  ;;  %v8066_v15 = vmul.f32 %v15409_v19, %v13395_v24  ;;  %v15561_v6 = vld [vmem:[#allocation2 + $0x10] sm:$0xff] }
 0xb86   : > { %12589 = vrot.lane.b32.xlu0 %v12588_v42, %s16858_s16  ;;  %12594 = vrot.lane.b32.xlu1 %v12593_v43, %s16858_s16  ;;  %v8065_v43 = vmul.f32 %v15324_v11, %v13392_v23  ;;  %v8068_v11 = vmul.f32 %v15342_v49, %v13392_v23  ;;  %v8071_v49 = vmul.f32 %v15380_v12, %v13392_v23 }
 0xb8a   : > { %12599 = vrot.lane.b32.xlu0 %v12598_v10, %s16858_s16  ;;  %12609 = vrot.lane.b32.xlu1 %v15302_v16, %s16859_s21  ;;  %v7812_v16 = vmul.f32 %v15385_v56, %v13358_v0  ;;  %v8069_v10 = vmul.f32 %v15399_v46, %v13395_v24 }
 0xb8c   : > { %v12633_v42 = vpack.i.bf16 %v7813_v22, %v7812_v16  ;;  %v12673_v5 = vpack.i.bf16 %v8069_v10, %v8066_v15 }
 0xb8e   : > { %12604 = vrot.lane.b32.xlu0 %v12603_v53, %s16858_s16  ;;  %12619 = vrot.lane.b32.xlu1 %v12618_v50, %s16857_s23  ;;  %v15563_v53 = vld [vmem:[#allocation2 + $0x8] sm:$0xff]  ;;  %v8498_v50 = vmul.f32 %v15561_v6, %v13266_v30 }
 0xb8f   : > { %v8497_v12 = vmul.f32 %v15563_v53, %v13272_v32  ;;  %v8626_v16 = vmul.f32 %v15563_v53, %v13289_v37 }
 0xb92   : > { %12614 = vrot.lane.b32.xlu0 %v15357_v20, %s16859_s21  ;;  %12624 = vrot.lane.b32.xlu1 %v15322_v8, %s16859_s21  ;;  %v8064_v8 = vmul.f32 %v15317_v28, %v13406_v33  ;;  %v8061_v20 = vmul.f32 %v15294_v39, %v13406_v33  ;;  %v8060_v28 = vmul.f32 %v15312_v48, %v13395_v24 }
 0xb94   : > { %v12648_v57 = vpack.i.bf16 %v8062_v7, %v8061_v20  ;;  %v12658_v39 = vpack.i.bf16 %v8063_v14, %v8060_v28 }
 0xb96   : > { %12629 = vrot.lane.b32.xlu0 %v15389_v21, %s16859_s21  ;;  %12634 = vrot.lane.b32.xlu1 %v12633_v42, %s16858_s16  ;;  %v12653_v21 = vpack.i.bf16 %v8065_v43, %v8064_v8  ;;  %v8627_v42 = vmul.f32 %v15561_v6, %v13281_v35 }
 0xb9a   : > { %12644 = vrot.lane.b32.xlu0 %v15413_v31, %s16859_s21  ;;  %12639 = vrot.lane.b32.xlu1 %v15393_v38, %s16859_s21  ;;  %v8067_v38 = vmul.f32 %v15351_v40, %v13406_v33  ;;  %v8070_v40 = vmul.f32 %v15385_v56, %v13406_v33  ;;  %v15571_v56 = vld [vmem:[#allocation2] sm:$0xff] }
 0xb9b   : > { %v8496_v22 = vmul.f32 %v15571_v56, %v13262_v29  ;;  %v8625_v43 = vmul.f32 %v15571_v56, %v13283_v36  ;;  %v8877_v28 = vmul.f32 %v15571_v56, %v13310_v44 }
 0xb9c   : > { %v12663_v31 = vpack.i.bf16 %v8068_v11, %v8067_v38  ;;  %v12668_v47 = vpack.i.bf16 %v8071_v49, %v8070_v40  ;;  %v8879_v11 = vmul.f32 %v15561_v6, %v13321_v51 }
 0xb9e   : > { %12654 = vrot.lane.b32.xlu0 %v12653_v21, %s16860_s1  ;;  %12649 = vrot.lane.b32.xlu1 %v12648_v57, %s16860_s1  ;;  %v8878_v57 = vmul.f32 %v15563_v53, %v13331_v54 }
 0xba2   : > { %12664 = vrot.lane.b32.xlu0 %v12663_v31, %s16860_s1  ;;  %12659 = vrot.lane.b32.xlu1 %v12658_v39, %s16860_s1  ;;  %v9007_v31 = vmul.f32 %v15563_v53, %v13358_v0 }
 0xba6   : > { %12674 = vrot.lane.b32.xlu0 %v12673_v5, %s16860_s1  ;;  %12669 = vrot.lane.b32.xlu1 %v12668_v47, %s16860_s1  ;;  %v9008_v5 = vmul.f32 %v15561_v6, %v13345_v61  ;;  %v9006_v47 = vmul.f32 %v15571_v56, %v13349_v62 }
 0xbaa   : > { %8288 = vrot.lane.b32.xlu0 %v15561_v6, %s16854_s22  ;;  %8286 = vrot.lane.b32.xlu1 %v15563_v53, %s16854_s22 }
 0xbae   : > { %8284 = vrot.lane.b32.xlu1 %v15571_v56, %s16854_s22  ;;  %8508 = vrot.lane.b32.xlu0 %v8497_v12, %s16855_s30 }
 0xbb2   : > { %8510 = vrot.lane.b32.xlu1 %v8498_v50, %s16855_s30  ;;  %8506 = vrot.lane.b32.xlu0 %v8496_v22, %s16855_s30 }
 0xbb6   : > { %8637 = vrot.lane.b32.xlu1 %v8626_v16, %s16856_s24  ;;  %8639 = vrot.lane.b32.xlu0 %v8627_v42, %s16856_s24 }
 0xbba   : > { %8635 = vrot.lane.b32.xlu1 %v8625_v43, %s16856_s24  ;;  %8760 = vrot.lane.b32.xlu0 %v15563_v53, %s16853_s27 }
 0xbbc   : > { %v15593_v7 = vpop.permute.xlu1 %12444  ;;  %v12440_v8 = vpop.permute.xlu0 %12439 }
 0xbbd   : > { %v12442_v39 = vunpack.i.h.bf16 %v12440_v8  ;;  %v12441_v10 = vunpack.i.l.bf16 %v12440_v8 }
 0xbbe   : > { %8762 = vrot.lane.b32.xlu1 %v15561_v6, %s16853_s27  ;;  %8758 = vrot.lane.b32.xlu0 %v15571_v56, %s16853_s27 }
 0xbbf   : > { %v7099_v43 = vsel %vm619_vm9, %v12441_v10, %v12442_v39  ;;  %v9259_v39 = vmul.f32 %v15563_v53, %v13406_v33 }
 0xbc0   : > { %v15599_v20 = vpop.permute.xlu1 %12454  ;;  %v12450_v21 = vpop.permute.xlu0 %12449 }
 0xbc1   : > { %v12451_v49 = vunpack.i.l.bf16 %v12450_v21  ;;  %v12452_v12 = vunpack.i.h.bf16 %v12450_v21 }
 0xbc2   : > { %8889 = vrot.lane.b32.xlu1 %v8878_v57, %s16857_s23  ;;  %8891 = vrot.lane.b32.xlu0 %v8879_v11, %s16857_s23 }
 0xbc3   : > { %v7098_v16 = vsel %vm619_vm9, %v12451_v49, %v12441_v10 }
 0xbc4   : > { %v15607_v14 = vpop.permute.xlu1 %12459  ;;  %v15609_v38 = vpop.permute.xlu0 %12479 }
 0xbc5   : > { %v12481_v26 = vunpack.i.l.bf16 %v15609_v38 }
 0xbc6   : > { %8887 = vrot.lane.b32.xlu1 %v8877_v28, %s16857_s23  ;;  %9018 = vrot.lane.b32.xlu0 %v9007_v31, %s16858_s16 }
 0xbc8   : > { %v12465_v15 = vpop.permute.xlu1 %12464  ;;  %v15617_v40 = vpop.permute.xlu0 %12484 }
 0xbc9   : > { %v12467_v50 = vunpack.i.h.bf16 %v12465_v15  ;;  %v12466_v22 = vunpack.i.l.bf16 %v12465_v15 }
 0xbca   : > { %9020 = vrot.lane.b32.xlu1 %v9008_v5, %s16858_s16  ;;  %9016 = vrot.lane.b32.xlu0 %v9006_v47, %s16858_s16  ;;  %v9260_v5 = vmul.f32 %v15561_v6, %v13392_v23  ;;  %v9258_v47 = vmul.f32 %v15571_v56, %v13395_v24 }
 0xbcb   : > { %v7100_v42 = vsel %vm619_vm9, %v12452_v12, %v12466_v22  ;;  %v7101_v8 = vsel %vm619_vm9, %v12466_v22, %v12467_v50 }
 0xbcc   : > { %v15629_v57 = vpop.permute.xlu1 %12469  ;;  %v15631_v11 = vpop.permute.xlu0 %12499  ;;  %v11427_v28 = vpack.c.bf16 %v7101_v8, %v7099_v43  ;;  %v11429_v21 = vpack.c.bf16 %v7100_v42, %v7098_v16 }
 0xbce   : > { %9141 = vrot.lane.b32.xlu1 %v15563_v53, %s16859_s21  ;;  %9143 = vrot.lane.b32.xlu0 %v15561_v6, %s16859_s21 }
 0xbcf   : > { %11428 = vmatprep.subr.bf16.mxu1 %v11427_v28 }
 0xbd0   : > { %11430 = vmatpush1.bf16.msra.mxu1 %v11429_v21  ;;  %v15637_v31 = vpop.permute.xlu1 %12474  ;;  %v15639_v49 = vpop.permute.xlu0 %12504 }
 0xbd2   : > { %9139 = vrot.lane.b32.xlu1 %v15571_v56, %s16859_s21  ;;  %9270 = vrot.lane.b32.xlu0 %v9259_v39, %s16860_s1 }
 0xbd4   : > { %v12490_v10 = vpop.permute.xlu1 %12489  ;;  %v12510_v15 = vpop.permute.xlu0 %12509 }
 0xbd5   : > { %v12492_v12 = vunpack.i.h.bf16 %v12490_v10  ;;  %v12491_v50 = vunpack.i.l.bf16 %v12490_v10  ;;  %v12512_v22 = vunpack.i.h.bf16 %v12510_v15  ;;  %v12511_v16 = vunpack.i.l.bf16 %v12510_v15 }
 0xbd6   : > { %9272 = vrot.lane.b32.xlu1 %v9260_v5, %s16860_s1  ;;  %9268 = vrot.lane.b32.xlu0 %v9258_v47, %s16860_s1 }
 0xbd7   : > { %v7103_v42 = vsel %vm619_vm9, %v12491_v50, %v12492_v12  ;;  %v7105_v43 = vsel %vm619_vm9, %v12511_v16, %v12512_v22  ;;  %v7050_v12 = vmul.f32 %v15314_v55, %v13236_v18  ;;  %v12482_v22 = vunpack.i.h.bf16 %v15609_v38 }
 0xbd8   : > { %v12495_v8 = vpop.permute.xlu1 %12494  ;;  %v15654_v28 = vpop.permute.xlu0 %12514  ;;  %v11431_v21 = vpack.c.bf16 %v7105_v43, %v7103_v42  ;;  %v11138_v42 = vld [vmem:[%s16791_s9 + $0x8] sm:$0xff]  ;;  %v12456_v55 = vunpack.i.l.bf16 %v15599_v20 }
 0xbd9   : > { %v12497_v6 = vunpack.i.h.bf16 %v12495_v8  ;;  %v12496_v39 = vunpack.i.l.bf16 %v12495_v8 }
 0xbda   : > { %11432 = vmatprep.subr.bf16.mxu1 %v11431_v21  ;;  %v7054_v21 = vmul.f32 %v15399_v46, %v13236_v18 }
 0xbdb   : > { %v7102_v45 = vsel %vm619_vm9, %v12496_v39, %v12491_v50  ;;  %v7104_v10 = vsel %vm619_vm9, %v12497_v6, %v12511_v16  ;;  %v7048_v50 = vmul.f32 %v15312_v48, %v13236_v18  ;;  %v16870_v16 = vpack.c.bf16 %v15397_v63, %v15407_v59 }
 0xbdc   : > { %v15658_v15 = vpop.permute.xlu1 %12519  ;;  %v15660_v5 = vpop.permute.xlu0 %12524  ;;  %v11433_v47 = vpack.c.bf16 %v7104_v10, %v7102_v45  ;;  %v12457_v45 = vunpack.i.h.bf16 %v15599_v20  ;;  %v12472_v6 = vunpack.i.h.bf16 %v15629_v57  ;;  %v12471_v48 = vunpack.i.l.bf16 %v15629_v57 }
 0xbdd   : > { %v11437_v38 = vpack.c.bf16 %v7050_v12, %v7048_v50  ;;  %v7052_v63 = vmul.f32 %v15409_v19, %v13236_v18  ;;  %v7314_v59 = vsel %vm862_vm12, %v12481_v26, %v12482_v22  ;;  %v16871_v20 = vpack.c.bf16 %v15423_v4, %v15419_v1  ;;  %v7056_v4 = vld [vmem:[%s16791_s9] sm:$0xff] }
 0xbde   : > { %11434 = vmatpush1.bf16.msra.mxu1 %v11433_v47  ;;  %v7312_v57 = vsel %vm862_vm12, %v12456_v55, %v12457_v45  ;;  %v7311_v47 = vsel %vm862_vm12, %v12471_v48, %v12456_v55  ;;  %v7313_v12 = vsel %vm862_vm12, %v12472_v6, %v12481_v26  ;;  %v12462_v22 = vunpack.i.h.bf16 %v15607_v14 }
 0xbdf   : > { %11436 = vmatprep.subr.bf16.mxu1 %v16870_v16  ;;  %v11441_v10 = vpack.c.bf16 %v7054_v21, %v7052_v63  ;;  %v11443_v19 = vpack.c.bf16 %v7314_v59, %v7312_v57  ;;  %v12487_v50 = vunpack.i.h.bf16 %v15617_v40  ;;  %v12486_v1 = vunpack.i.l.bf16 %v15617_v40 }
 0xbe0   : > { %v15676_v43 = vpop.permute.xlu1 %12534  ;;  %v15678_v8 = vpop.permute.xlu0 %12529  ;;  %v12502_v16 = vunpack.i.h.bf16 %v15631_v11  ;;  %v12501_v45 = vunpack.i.l.bf16 %v15631_v11  ;;  %v12477_v40 = vunpack.i.h.bf16 %v15637_v31  ;;  %v12476_v63 = vunpack.i.l.bf16 %v15637_v31 }
 0xbe1   : > { %11139 = vmatmul.mubr.msk.f32.vlgmr.msra.gmra.mrb[26].mxu1 %vm1385_vm13, %v11138_v42  ;;  %v12461_v42 = vunpack.i.l.bf16 %v15607_v14 }
 0xbe2   : > { %11438 = vmatpush1.bf16.msra.mxu1 %v11437_v38  ;;  %7255 = vmatprep.mubr.f32.mxu1 %v16862_v41  ;;  %v11445_v38 = vpack.c.bf16 %v7313_v12, %v7311_v47  ;;  %v7316_v57 = vsel %vm862_vm12, %v12501_v45, %v12502_v16  ;;  %v12507_v12 = vunpack.i.h.bf16 %v15639_v49  ;;  %v12516_v16 = vunpack.i.l.bf16 %v15654_v28 }
 0xbe3   : > { %11440 = vmatprep.subr.bf16.mxu1 %v16871_v20  ;;  %v7453_v59 = vsel %vm1002_vm14, %v12461_v42, %v12462_v22  ;;  %v7455_v20 = vsel %vm1002_vm14, %v12486_v1, %v12487_v50 }
 0xbe4   : > { %v15692_v39 = vpop.permute.xlu1 %12554  ;;  %v15694_v46 = vpop.permute.xlu0 %12539  ;;  %v11451_v50 = vpack.c.bf16 %v7455_v20, %v7453_v59  ;;  %v12522_v20 = vunpack.i.h.bf16 %v15658_v15 }
 0xbe6   : > { %11442 = vmatpush1.bf16.msra.mxu1 %v11441_v10 }
 0xbe7   : > { %11444 = vmatprep.subr.bf16.mxu1 %v11443_v19  ;;  %v12506_v19 = vunpack.i.l.bf16 %v15639_v49  ;;  %v11141_v49 = vld [vmem:[%s16791_s9 + $0x10] sm:$0xff] }
 0xbe8   : > { %v12560_v26 = vpop.permute.xlu1 %12559  ;;  %v12545_v55 = vpop.permute.xlu0 %12544 }
 0xbe9   : > { %v12562_v21 = vunpack.i.h.bf16 %v12560_v26  ;;  %v12561_v6 = vunpack.i.l.bf16 %v12560_v26  ;;  %v12547_v14 = vunpack.i.h.bf16 %v12545_v55  ;;  %v12546_v48 = vunpack.i.l.bf16 %v12545_v55  ;;  %11140 = vmatmul.mubr.msk.f32.vlgmr.msra.gmra.mrb[26].mxu1 %vm1385_vm13, %v7056_v4 }
 0xbea   : > { %11446 = vmatpush1.bf16.msra.mxu1 %v11445_v38  ;;  %7394 = vmatprep.mubr.f32.mxu1 %v16862_v41  ;;  %v7452_v55 = vsel %vm1002_vm14, %v12476_v63, %v12461_v42  ;;  %v7454_v38 = vsel %vm1002_vm14, %v12477_v40, %v12486_v1  ;;  %v7457_v42 = vsel %vm1002_vm14, %v12506_v19, %v12507_v12 }
 0xbeb   : > { %v7317_v11 = vsel %vm862_vm12, %v12547_v14, %v12561_v6  ;;  %v7315_v10 = vsel %vm862_vm12, %v12546_v48, %v12501_v45  ;;  %v7318_v47 = vsel %vm862_vm12, %v12561_v6, %v12562_v21  ;;  %v12517_v14 = vunpack.i.h.bf16 %v15654_v28 }
 0xbec   : > { %v15720_v31 = vpop.permute.xlu1 %12564  ;;  %v12550_v4 = vpop.permute.xlu0 %12549  ;;  %v11447_v22 = vpack.c.bf16 %v7318_v47, %v7316_v57  ;;  %v11449_v26 = vpack.c.bf16 %v7317_v11, %v7315_v10  ;;  %v12447_v21 = vunpack.i.h.bf16 %v15593_v7  ;;  %v12446_v6 = vunpack.i.l.bf16 %v15593_v7 }
 0xbed   : > { %v12551_v45 = vunpack.i.l.bf16 %v12550_v4  ;;  %v12552_v1 = vunpack.i.h.bf16 %v12550_v4  ;;  %v11453_v63 = vpack.c.bf16 %v7454_v38, %v7452_v55  ;;  %v12521_v11 = vunpack.i.l.bf16 %v15658_v15 }
 0xbee   : > { %11448 = vmatprep.subr.bf16.mxu1 %v11447_v22  ;;  %v12557_v10 = vunpack.i.h.bf16 %v15692_v39  ;;  %v7572_v7 = vsel %vm1127_vm15, %v12516_v16, %v12517_v14  ;;  %v12556_v57 = vunpack.i.l.bf16 %v15692_v39  ;;  %v7570_v55 = vsel %vm1127_vm15, %v12446_v6, %v12447_v21 }
 0xbef   : > { %11450 = vmatpush1.bf16.msra.mxu1 %v11449_v26  ;;  %v7456_v47 = vsel %vm1002_vm14, %v12551_v45, %v12506_v19  ;;  %v12527_v38 = vunpack.i.h.bf16 %v15660_v5  ;;  %v12526_v39 = vunpack.i.l.bf16 %v15660_v5  ;;  %v11459_v19 = vpack.c.bf16 %v7572_v7, %v7570_v55 }
 0xbf0   : > { %v12580_v48 = vpop.permute.xlu1 %12579  ;;  %v15731_v59 = vpop.permute.xlu0 %12569  ;;  %11452 = vmatprep.subr.bf16.mxu1 %v11451_v50  ;;  %v7569_v14 = vsel %vm1127_vm15, %v12521_v11, %v12446_v6  ;;  %v7571_v45 = vsel %vm1127_vm15, %v12522_v20, %v12516_v16  ;;  %v7576_v21 = vsel %vm1127_vm15, %v12556_v57, %v12557_v10  ;;  %v12536_v5 = vunpack.i.l.bf16 %v15676_v43 }
 0xbf1   : > { %v12582_v40 = vunpack.i.h.bf16 %v12580_v48  ;;  %v12581_v28 = vunpack.i.l.bf16 %v12580_v48  ;;  %v12541_v48 = vunpack.i.l.bf16 %v15694_v46  ;;  %v12532_v6 = vunpack.i.h.bf16 %v15678_v8 }
 0xbf2   : > { %11142 = vmatmul.mubr.msk.f32.vlgmr.msra.gmra.mrb[26].mxu1 %vm1385_vm13, %v11141_v49  ;;  %v12542_v49 = vunpack.i.h.bf16 %v15694_v46  ;;  %v12531_v16 = vunpack.i.l.bf16 %v15678_v8  ;;  %v12567_v46 = vunpack.i.h.bf16 %v15720_v31  ;;  %v11461_v20 = vpack.c.bf16 %v7571_v45, %v7569_v14  ;;  %v11145_v45 = vld [vmem:[%s16791_s9 + $0x20] sm:$0xff] }
 0xbf3   : > { %v7458_v12 = vsel %vm1002_vm14, %v12552_v1, %v12581_v28  ;;  %11454 = vmatpush1.bf16.msra.mxu1 %v11453_v63  ;;  %v7459_v4 = vsel %vm1002_vm14, %v12581_v28, %v12582_v40  ;;  %7535 = vmatprep.mubr.f32.mxu1 %v16862_v41  ;;  %v12537_v1 = vunpack.i.h.bf16 %v15676_v43  ;;  %v12566_v63 = vunpack.i.l.bf16 %v15720_v31 }
 0xbf4   : > { %v15744_v22 = vpop.permute.xlu1 %12584  ;;  %v15746_v15 = vpop.permute.xlu0 %12574  ;;  %v11455_v26 = vpack.c.bf16 %v7459_v4, %v7457_v42  ;;  %v11457_v50 = vpack.c.bf16 %v7458_v12, %v7456_v47  ;;  %v11143_v42 = vld [vmem:[%s16791_s9 + $0x18] sm:$0xff]  ;;  %v7574_v11 = vsel %vm1127_vm15, %v12526_v39, %v12527_v38  ;;  %v7575_v10 = vsel %vm1127_vm15, %v12532_v6, %v12556_v57 }
 0xbf5   : > { %v11463_v7 = vpack.c.bf16 %v7576_v21, %v7574_v11  ;;  %v7713_v43 = vsel %vm1267_vm0, %v12541_v48, %v12542_v49  ;;  %v7573_v8 = vsel %vm1127_vm15, %v12531_v16, %v12526_v39  ;;  %v7711_v31 = vsel %vm1267_vm0, %v12536_v5, %v12537_v1 }
 0xbf6   : > { %11456 = vmatprep.subr.bf16.mxu1 %v11455_v26  ;;  %v7710_v4 = vsel %vm1267_vm0, %v12566_v63, %v12536_v5  ;;  %v7712_v57 = vsel %vm1267_vm0, %v12567_v46, %v12541_v48  ;;  %v11465_v26 = vpack.c.bf16 %v7575_v10, %v7573_v8  ;;  %v12572_v55 = vunpack.i.h.bf16 %v15731_v59 }
 0xbf7   : > { %11458 = vmatpush1.bf16.msra.mxu1 %v11457_v50  ;;  %v11467_v50 = vpack.c.bf16 %v7713_v43, %v7711_v31  ;;  %v12571_v38 = vunpack.i.l.bf16 %v15731_v59  ;;  %v12576_v39 = vunpack.i.l.bf16 %v15746_v15  ;;  %v12587_v49 = vunpack.i.h.bf16 %v15744_v22 }
 0xbf8   : > { %v12595_v40 = vpop.permute.xlu1 %12594  ;;  %v12590_v28 = vpop.permute.xlu0 %12589  ;;  %11460 = vmatprep.subr.bf16.mxu1 %v11459_v19  ;;  %v12577_v48 = vunpack.i.h.bf16 %v15746_v15  ;;  %v11469_v5 = vpack.c.bf16 %v7712_v57, %v7710_v4 }
 0xbf9   : > { %v12592_v19 = vunpack.i.h.bf16 %v12590_v28  ;;  %v12591_v14 = vunpack.i.l.bf16 %v12590_v28  ;;  %v12597_v59 = vunpack.i.h.bf16 %v12595_v40  ;;  %v12596_v6 = vunpack.i.l.bf16 %v12595_v40 }
 0xbfa   : > { %11144 = vmatmul.mubr.msk.f32.vlgmr.msra.gmra.mrb[26].mxu1 %vm1385_vm13, %v11143_v42  ;;  %v12586_v42 = vunpack.i.l.bf16 %v15744_v22  ;;  %v7715_v46 = vsel %vm1267_vm0, %v12571_v38, %v12572_v55 }
 0xbfb   : > { %11462 = vmatpush1.bf16.msra.mxu1 %v11461_v20  ;;  %7652 = vmatprep.mubr.f32.mxu1 %v16862_v41  ;;  %v7854_v63 = vsel %vm1407_vm2, %v12591_v14, %v12592_v19  ;;  %v7714_v20 = vsel %vm1267_vm0, %v12576_v39, %v12571_v38  ;;  %v7853_v31 = vsel %vm1407_vm2, %v12597_v59, %v12591_v14 }
 0xbfc   : > { %v15771_v47 = vpop.permute.xlu1 %12609  ;;  %v15773_v12 = vpop.permute.xlu0 %12599  ;;  %11464 = vmatprep.subr.bf16.mxu1 %v11463_v7  ;;  %v7852_v43 = vsel %vm1407_vm2, %v12586_v42, %v12587_v49  ;;  %v7851_v8 = vsel %vm1407_vm2, %v12596_v6, %v12586_v42 }
 0xbfd   : > { %v12612_v4 = vunpack.i.h.bf16 %v15771_v47  ;;  %v11475_v57 = vpack.c.bf16 %v7854_v63, %v7852_v43  ;;  %v12601_v55 = vunpack.i.l.bf16 %v15773_v12 }
 0xbff   : > { %11466 = vmatpush1.bf16.msra.mxu1 %v11465_v26  ;;  %v12611_v26 = vunpack.i.l.bf16 %v15771_v47 }
 0xc00   : > { %v12620_v21 = vpop.permute.xlu1 %12619  ;;  %v12605_v1 = vpop.permute.xlu0 %12604  ;;  %11468 = vmatprep.subr.bf16.mxu1 %v11467_v50  ;;  %v12602_v50 = vunpack.i.h.bf16 %v15773_v12 }
 0xc01   : > { %v12622_v16 = vunpack.i.h.bf16 %v12620_v21  ;;  %v12621_v28 = vunpack.i.l.bf16 %v12620_v21  ;;  %v12606_v38 = vunpack.i.l.bf16 %v12605_v1  ;;  %v12607_v49 = vunpack.i.h.bf16 %v12605_v1 }
 0xc02   : > { %11146 = vmatmul.mubr.msk.f32.vlgmr.msra.gmra.mrb[26].mxu1 %vm1385_vm13, %v11145_v45  ;;  %v11147_v45 = vld [vmem:[%s16791_s9 + $0x28] sm:$0xff]  ;;  %v7856_v6 = vsel %vm1407_vm2, %v12601_v55, %v12602_v50  ;;  %v11149_v50 = vld [vmem:[%s16791_s9 + $0x30] sm:$0xff] }
 0xc03   : > { %v7716_v22 = vsel %vm1267_vm0, %v12577_v48, %v12621_v28  ;;  %11470 = vmatpush1.bf16.msra.mxu1 %v11469_v5  ;;  %v7717_v15 = vsel %vm1267_vm0, %v12621_v28, %v12622_v16  ;;  %7793 = vmatprep.mubr.f32.mxu1 %v16862_v41  ;;  %v11477_v48 = vpack.c.bf16 %v7853_v31, %v7851_v8 }
 0xc04   : > { %v12625_v11 = vpop.permute.xlu1 %12624  ;;  %v12615_v10 = vpop.permute.xlu0 %12614  ;;  %v11471_v40 = vpack.c.bf16 %v7717_v15, %v7715_v46  ;;  %v11473_v7 = vpack.c.bf16 %v7716_v22, %v7714_v20  ;;  %v7855_v12 = vsel %vm1407_vm2, %v12606_v38, %v12601_v55  ;;  %v7969_v16 = vsel %vm1532_vm3, %v12611_v26, %v12612_v4 }
 0xc05   : > { %v12617_v19 = vunpack.i.h.bf16 %v12615_v10  ;;  %v12616_v39 = vunpack.i.l.bf16 %v12615_v10  ;;  %v12627_v21 = vunpack.i.h.bf16 %v12625_v11  ;;  %v12626_v47 = vunpack.i.l.bf16 %v12625_v11 }
 0xc06   : > { %11472 = vmatprep.subr.bf16.mxu1 %v11471_v40 }
 0xc07   : > { %11474 = vmatpush1.bf16.msra.mxu1 %v11473_v7  ;;  %v7971_v46 = vsel %vm1532_vm3, %v12616_v39, %v12617_v19  ;;  %v7968_v40 = vsel %vm1532_vm3, %v12626_v47, %v12611_v26  ;;  %v7970_v7 = vsel %vm1532_vm3, %v12627_v21, %v12616_v39 }
 0xc08   : > { %v12635_v14 = vpop.permute.xlu1 %12634  ;;  %v12630_v42 = vpop.permute.xlu0 %12629  ;;  %11476 = vmatprep.subr.bf16.mxu1 %v11475_v57  ;;  %v11483_v57 = vpack.c.bf16 %v7971_v46, %v7969_v16  ;;  %v11485_v38 = vpack.c.bf16 %v7970_v7, %v7968_v40 }
 0xc09   : > { %v12637_v5 = vunpack.i.h.bf16 %v12635_v14  ;;  %v12636_v59 = vunpack.i.l.bf16 %v12635_v14  ;;  %v12632_v20 = vunpack.i.h.bf16 %v12630_v42  ;;  %v12631_v22 = vunpack.i.l.bf16 %v12630_v42 }
 0xc0a   : > { %11148 = vmatmul.mubr.msk.f32.vlgmr.msra.gmra.mrb[26].mxu1 %vm1385_vm13, %v11147_v45 }
 0xc0b   : > { %v7857_v28 = vsel %vm1407_vm2, %v12607_v49, %v12636_v59  ;;  %11478 = vmatpush1.bf16.msra.mxu1 %v11477_v48  ;;  %v7858_v1 = vsel %vm1407_vm2, %v12636_v59, %v12637_v5  ;;  %7934 = vmatprep.mubr.f32.mxu1 %v16862_v41  ;;  %v7973_v26 = vsel %vm1532_vm3, %v12631_v22, %v12632_v20 }
 0xc0c   : > { %v11481_v63 = vpack.c.bf16 %v7857_v28, %v7855_v12  ;;  %v12640_v15 = vpop.permute.xlu1 %12639  ;;  %v12645_v11 = vpop.permute.xlu0 %12644  ;;  %v11479_v10 = vpack.c.bf16 %v7858_v1, %v7856_v6 }
 0xc0d   : > { %v12642_v43 = vunpack.i.h.bf16 %v12640_v15  ;;  %v12641_v8 = vunpack.i.l.bf16 %v12640_v15  ;;  %v12647_v31 = vunpack.i.h.bf16 %v12645_v11  ;;  %v12646_v4 = vunpack.i.l.bf16 %v12645_v11  ;;  %v11151_v11 = vld [vmem:[%s16791_s9 + $0x38] sm:$0xff] }
 0xc0e   : > { %11480 = vmatprep.subr.bf16.mxu1 %v11479_v10 }
 0xc0f   : > { %11482 = vmatpush1.bf16.msra.mxu1 %v11481_v63  ;;  %v7975_v55 = vsel %vm1532_vm3, %v12641_v8, %v12642_v43  ;;  %v7974_v48 = vsel %vm1532_vm3, %v12647_v31, %v12641_v8  ;;  %v7972_v21 = vsel %vm1532_vm3, %v12646_v4, %v12631_v22 }
 0xc10   : > { %v12650_v19 = vpop.permute.xlu1 %12649  ;;  %v12655_v45 = vpop.permute.xlu0 %12654  ;;  %11484 = vmatprep.subr.bf16.mxu1 %v11483_v57  ;;  %v11487_v47 = vpack.c.bf16 %v7975_v55, %v7973_v26  ;;  %v11489_v16 = vpack.c.bf16 %v7974_v48, %v7972_v21  ;;  %v8271_v21 = vmul.f32 %v15563_v53, %v13232_v17  ;;  %v11160_v53 = vld [vmem:[%s16787_s5 + $0x28] sm:$0xff] }
 0xc11   : > { %v12652_v39 = vunpack.i.h.bf16 %v12650_v19  ;;  %v12651_v49 = vunpack.i.l.bf16 %v12650_v19  ;;  %v12657_v14 = vunpack.i.h.bf16 %v12655_v45  ;;  %v12656_v42 = vunpack.i.l.bf16 %v12655_v45 }
 0xc12   : > { %11150 = vmatmul.mubr.msk.f32.vlgmr.msra.gmra.mrb[26].mxu1 %vm1385_vm13, %v11149_v50 }
 0xc13   : > { %11486 = vmatpush1.bf16.msra.mxu1 %v11485_v38  ;;  %v8110_v5 = vsel %vm1671_vm7, %v12651_v49, %v12652_v39  ;;  %v8112_v59 = vsel %vm1671_vm7, %v12656_v42, %v12657_v14  ;;  %8051 = vmatprep.mubr.f32.mxu1 %v16862_v41 }
 0xc14   : > { %v12660_v12 = vpop.permute.xlu1 %12659  ;;  %v12665_v6 = vpop.permute.xlu0 %12664  ;;  %11488 = vmatprep.subr.bf16.mxu1 %v11487_v47  ;;  %v11491_v20 = vpack.c.bf16 %v8112_v59, %v8110_v5  ;;  %v11159_v47 = vld [vmem:[%s16787_s5 + $0x20] sm:$0xff] }
 0xc15   : > { %v12662_v28 = vunpack.i.h.bf16 %v12660_v12  ;;  %v12661_v1 = vunpack.i.l.bf16 %v12660_v12  ;;  %v12667_v46 = vunpack.i.h.bf16 %v12665_v6  ;;  %v12666_v63 = vunpack.i.l.bf16 %v12665_v6 }
 0xc16   : > { %v8270_v12 = vmul.f32 %v15571_v56, %v13236_v18  ;;  %v11161_v56 = vld [vmem:[%s16787_s5 + $0x30] sm:$0xff] }
 0xc17   : > { %v8109_v22 = vsel %vm1671_vm7, %v12661_v1, %v12651_v49  ;;  %v8111_v15 = vsel %vm1671_vm7, %v12662_v28, %v12656_v42  ;;  %11490 = vmatpush1.bf16.msra.mxu1 %v11489_v16  ;;  %v8114_v57 = vsel %vm1671_vm7, %v12666_v63, %v12667_v46  ;;  %v11153_v49 = vld [vmem:[%s16791_s9 + $0x40] sm:$0xff]  ;;  %v11162_v28 = vld [vmem:[%s16787_s5 + $0x38] sm:$0xff] }
 0xc18   : > { %v11493_v10 = vpack.c.bf16 %v8111_v15, %v8109_v22  ;;  %v12670_v40 = vpop.permute.xlu1 %12669  ;;  %v12675_v7 = vpop.permute.xlu0 %12674  ;;  %11492 = vmatprep.subr.bf16.mxu1 %v11491_v20  ;;  %v8272_v1 = vld [vmem:[%s16787_s5] sm:$0xff]  ;;  %v8273_v15 = vld [vmem:[%s16787_s5 + $0x8] sm:$0xff] }
 0xc19   : > { %v12672_v43 = vunpack.i.h.bf16 %v12670_v40  ;;  %v12671_v8 = vunpack.i.l.bf16 %v12670_v40  ;;  %v12677_v31 = vunpack.i.h.bf16 %v12675_v7  ;;  %v12676_v4 = vunpack.i.l.bf16 %v12675_v7  ;;  %v8275_v40 = vld [vmem:[%s16787_s5 + $0x18] sm:$0xff]  ;;  %v11171_v7 = vld [vmem:[%s16787_s5 + $0x40] sm:$0xff] }
 0xc1a   : > { %11152 = vmatmul.mubr.msk.f32.vlgmr.msra.gmra.mrb[26].mxu1 %vm1385_vm13, %v11151_v11  ;;  %v8274_v11 = vld [vmem:[%s16787_s5 + $0x10] sm:$0xff] }
 0xc1b   : > { %v8115_v50 = vsel %vm1671_vm7, %v12677_v31, %v12671_v8  ;;  %v8113_v55 = vsel %vm1671_vm7, %v12676_v4, %v12666_v63  ;;  %11494 = vmatpush1.bf16.msra.mxu1 %v11493_v10  ;;  %v8116_v38 = vsel %vm1671_vm7, %v12671_v8, %v12672_v43  ;;  %8192 = vmatprep.mubr.f32.mxu1 %v16862_v41 }
 0xc1c   : > { %v11497_v19 = vpack.c.bf16 %v8115_v50, %v8113_v55  ;;  %v8287_v45 = vpop.permute.xlu1 %8286  ;;  %v8289_v26 = vpop.permute.xlu0 %8288  ;;  %v11495_v39 = vpack.c.bf16 %v8116_v38, %v8114_v57  ;;  %v11172_v57 = vld [vmem:[%s16787_s5 + $0x48] sm:$0xff]  ;;  %v11173_v50 = vld [vmem:[%s16787_s5 + $0x50] sm:$0xff]  ;;  %v11174_v38 = vld [vmem:[%s16787_s5 + $0x58] sm:$0xff] }
 0xc1d   : > { %v8291_v14 = vsel %vm619_vm9, %v8287_v45, %v8289_v26 }
 0xc1e   : > { %11496 = vmatprep.subr.bf16.mxu1 %v11495_v39 }
 0xc1f   : > { %11498 = vmatpush1.bf16.msra.mxu1 %v11497_v19  ;;  %v11179_v19 = vld [vmem:[%s16787_s5 + $0x60] sm:$0xff] }
 0xc20   : > { %v8285_v42 = vpop.permute.xlu1 %8284  ;;  %8306 = vmatprep.subr.mxu1 %v8291_v14  ;;  %v8509_v5 = vpop.permute.xlu0 %8508  ;;  %v11180_v14 = vld [vmem:[%s16787_s5 + $0x68] sm:$0xff] }
 0xc21   : > { %v8290_v48 = vsel %vm619_vm9, %v8285_v42, %v8287_v45  ;;  %v11181_v42 = vld [vmem:[%s16787_s5 + $0x70] sm:$0xff] }
 0xc22   : > { %11154 = vmatmul.mubr.msk.f32.vlgmr.msra.gmra.mrb[26].mxu1 %vm1385_vm13, %v11153_v49 }
 0xc23   : > { %8307 = vmatpush1.msra.mxu1 %v8290_v48  ;;  %8370 = vmatprep.mubr.f32.mxu1 %v16862_v41 }
 0xc24   : > { %v8511_v59 = vpop.permute.xlu1 %8510  ;;  %8407 = vmatprep.subr.mxu1 %v8271_v21  ;;  %v8507_v16 = vpop.permute.xlu0 %8506  ;;  %v11182_v21 = vld [vmem:[%s16787_s5 + $0x78] sm:$0xff] }
 0xc25   : > { %v8513_v6 = vsel %vm862_vm12, %v8509_v5, %v8511_v59  ;;  %v8512_v20 = vsel %vm862_vm12, %v8507_v16, %v8509_v5 }
 0xc26   : > { %11163 = vmatmul.mubr.msk.f32.vlgmr.msra.gmra.mrb[28].mxu1 %vm624_vm10, %v11159_v47  ;;  %v11187_v47 = vld [vmem:[%s16787_s5 + $0x80] sm:$0xff] }
 0xc27   : > { %8408 = vmatpush1.msra.mxu1 %v8270_v12  ;;  %8376 = vmatprep.mubr.f32.mxu1 %v16862_v41 }
 0xc28   : > { %8528 = vmatprep.subr.mxu1 %v8513_v6  ;;  %v8638_v46 = vpop.permute.xlu1 %8637  ;;  %v8640_v63 = vpop.permute.xlu0 %8639 }
 0xc29   : > { %v8642_v22 = vsel %vm1002_vm14, %v8638_v46, %v8640_v63 }
 0xc2a   : > { %11164 = vmatmul.mubr.msk.f32.gmra.mrb[30].mxu1 %vm624_vm10, %v11160_v53  ;;  %v11188_v53 = vld [vmem:[%s16787_s5 + $0x88] sm:$0xff] }
 0xc2b   : > { %8382 = vmatprep.mubr.f32.mxu1 %v16862_v41 }
 0xc2c   : > { %v8636_v10 = vpop.permute.xlu1 %8635  ;;  %v8761_v31 = vpop.permute.xlu0 %8760 }
 0xc2d   : > { %v8641_v8 = vsel %vm1002_vm14, %v8636_v10, %v8638_v46 }
 0xc2e   : > { %11165 = vmatmul.mubr.msk.f32.gmra.mrb[32].mxu1 %vm624_vm10, %v11161_v56  ;;  %v11189_v56 = vld [vmem:[%s16787_s5 + $0x90] sm:$0xff] }
 0xc2f   : > { %8388 = vmatprep.mubr.f32.mxu1 %v16862_v41 }
 0xc30   : > { %v8763_v43 = vpop.permute.xlu1 %8762  ;;  %v8759_v55 = vpop.permute.xlu0 %8758 }
 0xc31   : > { %v8765_v4 = vsel %vm1127_vm15, %v8761_v31, %v8763_v43  ;;  %v8764_v39 = vsel %vm1127_vm15, %v8759_v55, %v8761_v31  ;;  %v11206_v55 = vld [vmem:[%s16787_s5 + $0xd8] sm:$0xff] }
 0xc32   : > { %11166 = vmatmul.mubr.msk.f32.gmra.mrb[34].mxu1 %vm624_vm10, %v11162_v28  ;;  %v11190_v28 = vld [vmem:[%s16787_s5 + $0x98] sm:$0xff] }
 0xc33   : > { %8471 = vmatprep.mubr.f32.mxu1 %v16862_v41 }
 0xc34   : > { %v8890_v45 = vpop.permute.xlu1 %8889  ;;  %v8892_v26 = vpop.permute.xlu0 %8891 }
 0xc35   : > { %v8894_v49 = vsel %vm1267_vm0, %v8890_v45, %v8892_v26  ;;  %v11212_v26 = vld [vmem:[%s16787_s5 + $0xe8] sm:$0xff] }
 0xc36   : > { %11167 = vmatmul.mubr.msk.f32.vlgmr.msra.gmra.mrb[28].mxu1 %vm624_vm10, %v8272_v1  ;;  %v11195_v1 = vld [vmem:[%s16787_s5 + $0xa0] sm:$0xff] }
 0xc37   : > { %8529 = vmatpush1.msra.mxu1 %v8512_v20  ;;  %8477 = vmatprep.mubr.f32.mxu1 %v16862_v41 }
 0xc38   : > { %8657 = vmatprep.subr.mxu1 %v8642_v22  ;;  %v8888_v48 = vpop.permute.xlu1 %8887  ;;  %v9019_v12 = vpop.permute.xlu0 %9018 }
 0xc39   : > { %v8893_v59 = vsel %vm1267_vm0, %v8888_v48, %v8890_v45  ;;  %v11221_v48 = vld [vmem:[%s16787_s5 + $0x110] sm:$0xff] }
 0xc3a   : > { %11168 = vmatmul.mubr.msk.f32.gmra.mrb[30].mxu1 %vm624_vm10, %v8273_v15  ;;  %v11196_v15 = vld [vmem:[%s16787_s5 + $0xa8] sm:$0xff] }
 0xc3b   : > { %8483 = vmatprep.mubr.f32.mxu1 %v16862_v41 }
 0xc3c   : > { %v9021_v5 = vpop.permute.xlu1 %9020  ;;  %v9017_v16 = vpop.permute.xlu0 %9016 }
 0xc3d   : > { %v9023_v6 = vsel %vm1407_vm2, %v9019_v12, %v9021_v5  ;;  %v9022_v20 = vsel %vm1407_vm2, %v9017_v16, %v9019_v12 }
 0xc3e   : > { %11169 = vmatmul.mubr.msk.f32.gmra.mrb[32].mxu1 %vm624_vm10, %v8274_v11  ;;  %v11197_v11 = vld [vmem:[%s16787_s5 + $0xb0] sm:$0xff] }
 0xc3f   : > { %8489 = vmatprep.mubr.f32.mxu1 %v16862_v41 }
 0xc40   : > { %v9142_v46 = vpop.permute.xlu1 %9141  ;;  %v9144_v63 = vpop.permute.xlu0 %9143 }
 0xc41   : > { %v9146_v22 = vsel %vm1532_vm3, %v9142_v46, %v9144_v63 }
 0xc42   : > { %11170 = vmatmul.mubr.msk.f32.gmra.mrb[34].mxu1 %vm624_vm10, %v8275_v40  ;;  %v11198_v40 = vld [vmem:[%s16787_s5 + $0xb8] sm:$0xff] }
 0xc43   : > { %8592 = vmatprep.mubr.f32.mxu1 %v16862_v41 }
 0xc44   : > { %v9140_v10 = vpop.permute.xlu1 %9139  ;;  %v9271_v31 = vpop.permute.xlu0 %9270 }
 0xc46   : > { %11175 = vmatmul.mubr.msk.f32.vlgmr.msra.gmra.mrb[28].mxu1 %vm624_vm10, %v11171_v7  ;;  %v11203_v7 = vld [vmem:[%s16787_s5 + $0xc0] sm:$0xff] }
 0xc47   : > { %8658 = vmatpush1.msra.mxu1 %v8641_v8  ;;  %8598 = vmatprep.mubr.f32.mxu1 %v16862_v41  ;;  %v9145_v8 = vsel %vm1532_vm3, %v9140_v10, %v9142_v46 }
 0xc48   : > { %8780 = vmatprep.subr.mxu1 %v8765_v4  ;;  %v9273_v43 = vpop.permute.xlu1 %9272 }
 0xc49   : > { %v9275_v4 = vsel %vm1671_vm7, %v9271_v31, %v9273_v43 }
 0xc4a   : > { %11176 = vmatmul.mubr.msk.f32.gmra.mrb[30].mxu1 %vm624_vm10, %v11172_v57  ;;  %v11204_v57 = vld [vmem:[%s16787_s5 + $0xc8] sm:$0xff] }
 0xc4b   : > { %8604 = vmatprep.mubr.f32.mxu1 %v16862_v41 }
 0xc4e   : > { %11177 = vmatmul.mubr.msk.f32.gmra.mrb[32].mxu1 %vm624_vm10, %v11173_v50  ;;  %v11205_v50 = vld [vmem:[%s16787_s5 + $0xd0] sm:$0xff] }
 0xc4f   : > { %8610 = vmatprep.mubr.f32.mxu1 %v16862_v41 }
 0xc52   : > { %11178 = vmatmul.mubr.msk.f32.gmra.mrb[34].mxu1 %vm624_vm10, %v11174_v38  ;;  %v9269_v38 = vpop.permute.xlu0 %9268 }
 0xc53   : > { %8721 = vmatprep.mubr.f32.mxu1 %v16862_v41  ;;  %v9274_v45 = vsel %vm1671_vm7, %v9269_v38, %v9271_v31 }
 0xc56   : > { %11183 = vmatmul.mubr.msk.f32.vlgmr.msra.gmra.mrb[28].mxu1 %vm624_vm10, %v11179_v19  ;;  %v11211_v19 = vld [vmem:[%s16787_s5 + $0xe0] sm:$0xff] }
 0xc57   : > { %8781 = vmatpush1.msra.mxu1 %v8764_v39  ;;  %8727 = vmatprep.mubr.f32.mxu1 %v16862_v41  ;;  %v11213_v39 = vld [vmem:[%s16787_s5 + $0xf0] sm:$0xff] }
 0xc58   : > { %8909 = vmatprep.subr.mxu1 %v8894_v49  ;;  %v11214_v49 = vld [vmem:[%s16787_s5 + $0xf8] sm:$0xff] }
 0xc5a   : > { %11184 = vmatmul.mubr.msk.f32.gmra.mrb[30].mxu1 %vm624_vm10, %v11180_v14  ;;  %v11219_v14 = vld [vmem:[%s16787_s5 + $0x100] sm:$0xff] }
 0xc5b   : > { %8733 = vmatprep.mubr.f32.mxu1 %v16862_v41 }
 0xc5e   : > { %11185 = vmatmul.mubr.msk.f32.gmra.mrb[32].mxu1 %vm624_vm10, %v11181_v42  ;;  %v11220_v42 = vld [vmem:[%s16787_s5 + $0x108] sm:$0xff] }
 0xc5f   : > { %8739 = vmatprep.mubr.f32.mxu1 %v16862_v41 }
 0xc62   : > { %11186 = vmatmul.mubr.msk.f32.gmra.mrb[34].mxu1 %vm624_vm10, %v11182_v21  ;;  %v11222_v21 = vld [vmem:[%s16787_s5 + $0x118] sm:$0xff] }
 0xc63   : > { %8844 = vmatprep.mubr.f32.mxu1 %v16862_v41 }
 0xc66   : > { %11191 = vmatmul.mubr.msk.f32.vlgmr.msra.gmra.mrb[28].mxu1 %vm624_vm10, %v11187_v47 }
 0xc67   : > { %8910 = vmatpush1.msra.mxu1 %v8893_v59  ;;  %8850 = vmatprep.mubr.f32.mxu1 %v16862_v41 }
 0xc68   : > { %9038 = vmatprep.subr.mxu1 %v9023_v6 }
 0xc6a   : > { %11192 = vmatmul.mubr.msk.f32.gmra.mrb[30].mxu1 %vm624_vm10, %v11188_v53 }
 0xc6b   : > { %8856 = vmatprep.mubr.f32.mxu1 %v16862_v41 }
 0xc6e   : > { %11193 = vmatmul.mubr.msk.f32.gmra.mrb[32].mxu1 %vm624_vm10, %v11189_v56 }
 0xc6f   : > { %8862 = vmatprep.mubr.f32.mxu1 %v16862_v41 }
 0xc72   : > { %11194 = vmatmul.mubr.msk.f32.gmra.mrb[34].mxu1 %vm624_vm10, %v11190_v28 }
 0xc73   : > { %8973 = vmatprep.mubr.f32.mxu1 %v16862_v41 }
 0xc76   : > { %11199 = vmatmul.mubr.msk.f32.vlgmr.msra.gmra.mrb[28].mxu1 %vm624_vm10, %v11195_v1 }
 0xc77   : > { %9039 = vmatpush1.msra.mxu1 %v9022_v20  ;;  %8979 = vmatprep.mubr.f32.mxu1 %v16862_v41 }
 0xc78   : > { %9161 = vmatprep.subr.mxu1 %v9146_v22 }
 0xc7a   : > { %11200 = vmatmul.mubr.msk.f32.gmra.mrb[30].mxu1 %vm624_vm10, %v11196_v15 }
 0xc7b   : > { %8985 = vmatprep.mubr.f32.mxu1 %v16862_v41 }
 0xc7e   : > { %11201 = vmatmul.mubr.msk.f32.gmra.mrb[32].mxu1 %vm624_vm10, %v11197_v11 }
 0xc7f   : > { %8991 = vmatprep.mubr.f32.mxu1 %v16862_v41 }
 0xc82   : > { %11202 = vmatmul.mubr.msk.f32.gmra.mrb[34].mxu1 %vm624_vm10, %v11198_v40 }
 0xc83   : > { %9102 = vmatprep.mubr.f32.mxu1 %v16862_v41 }
 0xc86   : > { %11207 = vmatmul.mubr.msk.f32.vlgmr.msra.gmra.mrb[28].mxu1 %vm624_vm10, %v11203_v7 }
 0xc87   : > { %9162 = vmatpush1.msra.mxu1 %v9145_v8  ;;  %9108 = vmatprep.mubr.f32.mxu1 %v16862_v41 }
 0xc88   : > { %9290 = vmatprep.subr.mxu1 %v9275_v4 }
 0xc8a   : > { %11208 = vmatmul.mubr.msk.f32.gmra.mrb[30].mxu1 %vm624_vm10, %v11204_v57 }
 0xc8b   : > { %9114 = vmatprep.mubr.f32.mxu1 %v16862_v41 }
 0xc8e   : > { %11209 = vmatmul.mubr.msk.f32.gmra.mrb[32].mxu1 %vm624_vm10, %v11205_v50 }
 0xc8f   : > { %9120 = vmatprep.mubr.f32.mxu1 %v16862_v41 }
 0xc92   : > { %11210 = vmatmul.mubr.msk.f32.gmra.mrb[34].mxu1 %vm624_vm10, %v11206_v55 }
 0xc93   : > { %9225 = vmatprep.mubr.f32.mxu1 %v16862_v41 }
 0xc96   : > { %11215 = vmatmul.mubr.msk.f32.vlgmr.msra.gmra.mrb[28].mxu1 %vm624_vm10, %v11211_v19 }
 0xc97   : > { %9291 = vmatpush1.msra.mxu1 %v9274_v45  ;;  %9231 = vmatprep.mubr.f32.mxu1 %v16862_v41  ;;  %v12960_v45 = vld [vmem:[%s16789_s7 + $0x10] sm:$0xff] }
 0xc9a   : > { %11216 = vmatmul.mubr.msk.f32.gmra.mrb[30].mxu1 %vm624_vm10, %v11212_v26  ;;  %v12961_v26 = vld [vmem:[%s16789_s7 + $0x18] sm:$0xff] }
 0xc9b   : > { %9237 = vmatprep.mubr.f32.mxu1 %v16862_v41 }
 0xc9e   : > { %11217 = vmatmul.mubr.msk.f32.gmra.mrb[32].mxu1 %vm624_vm10, %v11213_v39 }
 0xc9f   : > { %9243 = vmatprep.mubr.f32.mxu1 %v16862_v41 }
 0xca2   : > { %11218 = vmatmul.mubr.msk.f32.gmra.mrb[34].mxu1 %vm624_vm10, %v11214_v49 }
 0xca3   : > { %9354 = vmatprep.mubr.f32.mxu1 %v16862_v41 }
 0xca6   : > { %11223 = vmatmul.mubr.msk.f32.vlgmr.msra.gmra.mrb[28].mxu1 %vm624_vm10, %v11219_v14 }
 0xca7   : > { %9360 = vmatprep.mubr.f32.mxu1 %v16862_v41 }
 0xcaa   : > { %11224 = vmatmul.mubr.msk.f32.gmra.mrb[30].mxu1 %vm624_vm10, %v11220_v42 }
 0xcab   : > { %9366 = vmatprep.mubr.f32.mxu1 %v16862_v41 }
 0xcae   : > { %11225 = vmatmul.mubr.msk.f32.gmra.mrb[32].mxu1 %vm624_vm10, %v11221_v48 }
 0xcaf   : > { %9372 = vmatprep.mubr.f32.mxu1 %v16862_v41 }
 0xcb2   : > { %11226 = vmatmul.mubr.msk.f32.gmra.mrb[34].mxu1 %vm624_vm10, %v11222_v21 }
 0xcf5   : > { %v16040_v47 = vpop.f32.mrb[26].mxu1 }
 0xcf6   : > { %v16042_v5 = vpop.f32.mrb[27].mxu1 }
 0xcf7   : > { %16872 = vst [vmem:[#allocation20_spill] sm:$0xff] %v16042_v5 }
 0xd79   : > { %v9356_v59 = vpop.f32.mrb[28].mxu1 }
 0xd7a   : > { %v9358_v12 = vpop.f32.mrb[29].mxu1  ;;  %v9387_v6 = vadd.f32 %v9356_v59, %v13592_v58 }
 0xd7b   : > { %v9388_v53 = vadd.f32 %v9358_v12, %v13592_v58 }
 0xd7c   : > { %v9395_v46 = vmax.f32 %v9387_v6, 0.0 }
 0xd7d   : > { %v9362_v56 = vpop.f32.mrb[30].mxu1  ;;  %v9396_v20 = vmax.f32 %v9388_v53, 0.0 }
 0xd7e   : > { %v9389_v16 = vadd.f32 %v9362_v56, %v13596_v3  ;;  %v9364_v28 = vpop.f32.mrb[31].mxu1 }
 0xd7f   : > { %v9390_v1 = vadd.f32 %v9364_v28, %v13596_v3 }
 0xd80   : > { %v9397_v63 = vmax.f32 %v9389_v16, 0.0 }
 0xd81   : > { %v9398_v22 = vmax.f32 %v9390_v1, 0.0  ;;  %v9368_v15 = vpop.f32.mrb[32].mxu1 }
 0xd82   : > { %v11501_v11 = vpack.c.bf16 %v9397_v63, %v9395_v46  ;;  %v9370_v10 = vpop.f32.mrb[33].mxu1  ;;  %v9391_v7 = vadd.f32 %v9368_v15, %v13599_v9 }
 0xd83   : > { %v11499_v40 = vpack.c.bf16 %v9398_v22, %v9396_v20  ;;  %v9392_v43 = vadd.f32 %v9370_v10, %v13599_v9  ;;  %v12958_v9 = vld [vmem:[%s16789_s7] sm:$0xff] }
 0xd84   : > { %v9399_v4 = vmax.f32 %v9391_v7, 0.0 }
 0xd85   : > { %v9374_v8 = vpop.f32.mrb[34].mxu1  ;;  %11500 = vmatprep.subr.bf16.mxu0 %v11499_v40  ;;  %v9400_v50 = vmax.f32 %v9392_v43, 0.0 }
 0xd86   : > { %v9393_v58 = vadd.f32 %v9374_v8, %v13603_v34  ;;  %v9376_v31 = vpop.f32.mrb[35].mxu1  ;;  %11502 = vmatpush1.bf16.msra.mxu0 %v11501_v11 }
 0xd87   : > { %v9394_v3 = vadd.f32 %v9376_v31, %v13603_v34  ;;  %v12959_v34 = vld [vmem:[%s16789_s7 + $0x8] sm:$0xff] }
 0xd88   : > { %v9401_v57 = vmax.f32 %v9393_v58, 0.0 }
 0xd89   : > { %v9402_v55 = vmax.f32 %v9394_v3, 0.0 }
 0xd8a   : > { %v11505_v38 = vpack.c.bf16 %v9401_v57, %v9399_v4 }
 0xd8b   : > { %v11503_v19 = vpack.c.bf16 %v9402_v55, %v9400_v50 }
 0xd8d   : > { %11504 = vmatprep.subr.bf16.mxu0 %v11503_v19 }
 0xd8e   : > { %11506 = vmatpush1.bf16.msra.mxu0 %v11505_v38 }
 0xd91   : > { %11227 = vmatmul.mubr.msk.f32.vlgmr.msra.gmra.mrb[26].mxu0 %vm1385_vm13, %v12958_v9 }
 0xd92   : > { %9473 = vmatprep.mubr.f32.mxu0 %v16862_v41 }
 0xd95   : > { %11228 = vmatmul.mubr.msk.f32.gmra.mrb[28].mxu0 %vm1385_vm13, %v12959_v34 }
 0xd96   : > { %9479 = vmatprep.mubr.f32.mxu0 %v16862_v41 }
 0xd99   : > { %11229 = vmatmul.mubr.msk.f32.gmra.mrb[30].mxu0 %vm1385_vm13, %v12960_v45 }
 0xd9a   : > { %9485 = vmatprep.mubr.f32.mxu0 %v16862_v41 }
 0xd9d   : > { %11230 = vmatmul.mubr.msk.f32.gmra.mrb[32].mxu0 %vm1385_vm13, %v12961_v26 }
 0xd9e   : > { %9693 = vmatprep.mubr.f32.mxu0 %v16862_v41 }
 0xe64   : > { %v9469_v39 = vpop.f32.mrb[26].mxu0 }
 0xe65   : > { %v9470_v49 = vadd.f32 %v9469_v39, %v13632_v52  ;;  %v9471_v14 = vpop.f32.mrb[27].mxu0 }
 0xe66   : > { %v9472_v42 = vadd.f32 %v9471_v14, %v13632_v52 }
 0xe67   : > { %v9492_v48 = vmax.f32 %v9470_v49, 0.0 }
 0xe68   : > { %v9493_v21 = vmax.f32 %v9472_v42, 0.0  ;;  %v9475_v59 = vpop.f32.mrb[28].mxu0 }
 0xe69   : > { %v9476_v12 = vadd.f32 %v9475_v59, %v13636_v60  ;;  %v9477_v6 = vpop.f32.mrb[29].mxu0  ;;  %9508 = vrot.lane.b32.xlu1 %v9492_v48, %s16851_s0 }
 0xe6a   : > { %v9478_v53 = vadd.f32 %v9477_v6, %v13636_v60  ;;  %9510 = vrot.lane.b32.xlu0 %v9493_v21, %s16851_s0 }
 0xe6b   : > { %v9494_v56 = vmax.f32 %v9476_v12, 0.0 }
 0xe6c   : > { %v9495_v16 = vmax.f32 %v9478_v53, 0.0  ;;  %v9481_v28 = vpop.f32.mrb[30].mxu0 }
 0xe6d   : > { %v9482_v1 = vadd.f32 %v9481_v28, %v13642_v13  ;;  %v9483_v46 = vpop.f32.mrb[31].mxu0  ;;  %9512 = vrot.lane.b32.xlu1 %v9494_v56, %s16851_s0 }
 0xe6e   : > { %v9484_v52 = vadd.f32 %v9483_v46, %v13642_v13  ;;  %9514 = vrot.lane.b32.xlu0 %v9495_v16, %s16851_s0 }
 0xe6f   : > { %v9496_v63 = vmax.f32 %v9482_v1, 0.0 }
 0xe70   : > { %v9497_v20 = vmax.f32 %v9484_v52, 0.0  ;;  %v9487_v22 = vpop.f32.mrb[32].mxu0 }
 0xe71   : > { %v9488_v15 = vadd.f32 %v9487_v22, %v13648_v25  ;;  %v9489_v60 = vpop.f32.mrb[33].mxu0  ;;  %9516 = vrot.lane.b32.xlu1 %v9496_v63, %s16851_s0 }
 0xe72   : > { %v9490_v11 = vadd.f32 %v9489_v60, %v13648_v25  ;;  %9518 = vrot.lane.b32.xlu0 %v9497_v20, %s16851_s0 }
 0xe73   : > { %v9498_v10 = vmax.f32 %v9488_v15, 0.0 }
 0xe74   : > { %v9499_v40 = vmax.f32 %v9490_v11, 0.0 }
 0xe75   : > { %9520 = vrot.lane.b32.xlu1 %v9498_v10, %s16851_s0 }
 0xe76   : > { %9522 = vrot.lane.b32.xlu0 %v9499_v40, %s16851_s0 }
 0xedb   : > { %v9509_v13 = vpop.permute.xlu1 %9508 }
 0xedc   : > { %9540 = vst.msk [vmem:[#allocation3] sm:$0xff] %vm1990_vm11, %v9509_v13  ;;  %v9511_v7 = vpop.permute.xlu0 %9510 }
 0xedd   : > { %v16090_v43 = vsel %vm521_vm1, %v9509_v13, %v9511_v7  ;;  %9542 = vst.msk [vmem:[#allocation3 + $0x10] sm:$0xff] %vm521_vm1, %v9511_v7 }
 0xede   : > { %v9775_v42 = vmul.f32 %v16090_v43, %v13272_v32  ;;  %v9916_v53 = vmul.f32 %v16090_v43, %v13289_v37  ;;  %v16168_v22 = vmul.f32 %v16090_v43, %v13406_v33  ;;  %v16176_v60 = vmul.f32 %v16090_v43, %v13232_v17 }
 0xedf   : > { %v9513_v8 = vpop.permute.xlu1 %9512 }
 0xee0   : > { %9543 = vst.msk [vmem:[#allocation3 + $0x18] sm:$0xff] %vm1990_vm11, %v9513_v8  ;;  %v9515_v25 = vpop.permute.xlu0 %9514 }
 0xee1   : > { %v16095_v58 = vsel %vm521_vm1, %v9513_v8, %v9515_v25  ;;  %9545 = vst.msk [vmem:[#allocation3 + $0x28] sm:$0xff] %vm521_vm1, %v9515_v25 }
 0xee2   : > { %v9778_v48 = vmul.f32 %v16095_v58, %v13272_v32  ;;  %v9919_v56 = vmul.f32 %v16095_v58, %v13289_v37  ;;  %v16172_v15 = vmul.f32 %v16095_v58, %v13406_v33  ;;  %v16188_v13 = vmul.f32 %v16095_v58, %v13232_v17 }
 0xee3   : > { %v9517_v31 = vpop.permute.xlu1 %9516  ;;  %v16128_v26 = vld [vmem:[#allocation3] sm:$0xff] }
 0xee4   : > { %9546 = vst.msk [vmem:[#allocation3 + $0x30] sm:$0xff] %vm1990_vm11, %v9517_v31  ;;  %v9519_v3 = vpop.permute.xlu0 %9518  ;;  %v16099_v4 = vld [vmem:[#allocation3 + $0x10] sm:$0xff]  ;;  %v9774_v52 = vmul.f32 %v16128_v26, %v13262_v29  ;;  %v9915_v20 = vmul.f32 %v16128_v26, %v13283_v36 }
 0xee5   : > { %v16102_v57 = vsel %vm521_vm1, %v9517_v31, %v9519_v3  ;;  %9548 = vst.msk [vmem:[#allocation3 + $0x40] sm:$0xff] %vm521_vm1, %v9519_v3  ;;  %v16107_v50 = vpack.i.bf16 %v16099_v4, %v16090_v43  ;;  %v9776_v49 = vmul.f32 %v16099_v4, %v13266_v30  ;;  %v9917_v12 = vmul.f32 %v16099_v4, %v13281_v35 }
 0xee6   : > { %v16184_v40 = vmul.f32 %v16099_v4, %v13392_v23  ;;  %v16198_v31 = vmul.f32 %v16128_v26, %v13395_v24 }
 0xee7   : > { %v9521_v55 = vpop.permute.xlu1 %9520  ;;  %12679 = vrot.lane.b32.xlu1 %v16107_v50, %s16854_s22  ;;  %v16122_v45 = vld [vmem:[#allocation3 + $0x18] sm:$0xff]  ;;  %v12693_v21 = vpack.i.bf16 %v9776_v49, %v9775_v42  ;;  %v12698_v1 = vpack.i.bf16 %v9917_v12, %v9916_v53  ;;  %v16212_v49 = vmul.f32 %v16102_v57, %v13406_v33  ;;  %v9922_v53 = vmul.f32 %v16102_v57, %v13289_v37 }
 0xee8   : > { %9549 = vst.msk [vmem:[#allocation3 + $0x48] sm:$0xff] %vm1990_vm11, %v9521_v55  ;;  %v9523_v38 = vpop.permute.xlu0 %9522  ;;  %v16112_v19 = vld [vmem:[#allocation3 + $0x28] sm:$0xff]  ;;  %v16132_v39 = vpack.i.bf16 %v16122_v45, %v16128_v26  ;;  %v9777_v16 = vmul.f32 %v16122_v45, %v13262_v29  ;;  %v9918_v28 = vmul.f32 %v16122_v45, %v13283_v36  ;;  %v16202_v3 = vmul.f32 %v16122_v45, %v13395_v24 }
 0xee9   : > { %v16115_v9 = vsel %vm521_vm1, %v9521_v55, %v9523_v38  ;;  %9551 = vst.msk [vmem:[#allocation3 + $0x58] sm:$0xff] %vm521_vm1, %v9523_v38  ;;  %v16120_v34 = vpack.i.bf16 %v16112_v19, %v16095_v58  ;;  %v9779_v14 = vmul.f32 %v16112_v19, %v13266_v30  ;;  %v9920_v6 = vmul.f32 %v16112_v19, %v13281_v35 }
 0xeea   : > { %v12708_v11 = vpack.i.bf16 %v9777_v16, %v9774_v52  ;;  %v12713_v7 = vpack.i.bf16 %v9918_v28, %v9915_v20  ;;  %v16194_v25 = vmul.f32 %v16112_v19, %v13392_v23  ;;  %v16245_v16 = vmul.f32 %v16128_v26, %v13236_v18 }
 0xeeb   : > { %12684 = vrot.lane.b32.xlu1 %v16107_v50, %s16853_s27  ;;  %12704 = vrot.lane.b32.xlu0 %v16120_v34, %s16854_s22  ;;  %v12723_v59 = vpack.i.bf16 %v9779_v14, %v9778_v48  ;;  %v12728_v46 = vpack.i.bf16 %v9920_v6, %v9919_v56  ;;  %v16180_v10 = vld [vmem:[#allocation3 + $0x30] sm:$0xff]  ;;  %v16249_v28 = vmul.f32 %v16122_v45, %v13236_v18  ;;  %vm3185_vm1 = vcmask 1043456  }
 0xeec   : > { %v16162_v63 = vld [vmem:[#allocation3 + $0x40] sm:$0xff]  ;;  %v16263_v52 = vmul.f32 %v16180_v10, %v13236_v18  ;;  %v9780_v48 = vmul.f32 %v16180_v10, %v13262_v29  ;;  %v10173_v38 = vmul.f32 %v16128_v26, %v13310_v44 }
 0xeed   : > { %v16206_v55 = vpack.i.bf16 %v16162_v63, %v16102_v57  ;;  %v16216_v14 = vmul.f32 %v16162_v63, %v13392_v23  ;;  %v9782_v42 = vmul.f32 %v16162_v63, %v13266_v30 }
 0xeef   : > { %12689 = vrot.lane.b32.xlu1 %v16132_v39, %s16854_s22  ;;  %12719 = vrot.lane.b32.xlu0 %v16120_v34, %s16853_s27  ;;  %v16190_v8 = vld [vmem:[#allocation3 + $0x48] sm:$0xff] }
 0xef0   : > { %v16235_v6 = vmul.f32 %v16190_v8, %v13395_v24  ;;  %v16241_v56 = vpack.i.bf16 %v16190_v8, %v16180_v10  ;;  %v16267_v20 = vmul.f32 %v16190_v8, %v13236_v18  ;;  %v10175_v18 = vmul.f32 %v16099_v4, %v13321_v51 }
 0xef3   : > { %12694 = vrot.lane.b32.xlu1 %v12693_v21, %s16855_s30  ;;  %12724 = vrot.lane.b32.xlu0 %v12723_v59, %s16855_s30  ;;  %v16226_v59 = vmul.f32 %v16180_v10, %v13395_v24 }
 0xef7   : > { %12699 = vrot.lane.b32.xlu1 %v12698_v1, %s16856_s24  ;;  %12729 = vrot.lane.b32.xlu0 %v12728_v46, %s16856_s24  ;;  %v16253_v1 = vmul.f32 %v16102_v57, %v13232_v17  ;;  %v16259_v46 = vmul.f32 %v16115_v9, %v13232_v17  ;;  %v9781_v17 = vmul.f32 %v16102_v57, %v13272_v32 }
 0xef9   : > { %v12743_v12 = vpack.i.bf16 %v9782_v42, %v9781_v17  ;;  %v10174_v42 = vmul.f32 %v16090_v43, %v13331_v54 }
 0xefb   : > { %12709 = vrot.lane.b32.xlu1 %v12708_v11, %s16855_s30  ;;  %12734 = vrot.lane.b32.xlu0 %v16206_v55, %s16854_s22  ;;  %v16269_v11 = vld [vmem:[#allocation3 + $0x58] sm:$0xff]  ;;  %v12773_v17 = vpack.i.bf16 %v10175_v18, %v10174_v42  ;;  %v9784_v18 = vmul.f32 %v16115_v9, %v13272_v32 }
 0xefc   : > { %v16284_v21 = vpack.i.bf16 %v16269_v11, %v16115_v9 }
 0xeff   : > { %12714 = vrot.lane.b32.xlu1 %v12713_v7, %s16856_s24  ;;  %12739 = vrot.lane.b32.xlu0 %v16241_v56, %s16854_s22  ;;  %v9923_v7 = vmul.f32 %v16162_v63, %v13281_v35 }
 0xf01   : > { %v12748_v24 = vpack.i.bf16 %v9923_v7, %v9922_v53  ;;  %v9785_v53 = vmul.f32 %v16269_v11, %v13266_v30  ;;  %v10176_v30 = vmul.f32 %v16122_v45, %v13310_v44 }
 0xf03   : > { %12744 = vrot.lane.b32.xlu0 %v12743_v12, %s16855_s30  ;;  %12754 = vrot.lane.b32.xlu1 %v16284_v21, %s16854_s22  ;;  %v10178_v12 = vmul.f32 %v16112_v19, %v13321_v51  ;;  %v12798_v42 = vpack.i.bf16 %v9785_v53, %v9784_v18  ;;  %v12803_v32 = vpack.i.bf16 %v10176_v30, %v10173_v38  ;;  %s16731_s22 = scalar_lea.hbm %s16794_s12, %s11258_s20 }
 0xf04   : > { %v9926_v53 = vmul.f32 %v16269_v11, %v13281_v35  ;;  %v10181_v38 = vmul.f32 %v16162_v63, %v13321_v51  ;;  %v10180_v35 = vmul.f32 %v16102_v57, %v13331_v54  ;;  %v10314_v30 = vmul.f32 %v16128_v26, %v13349_v62 }
 0xf05   : > { %v10183_v26 = vmul.f32 %v16115_v9, %v13331_v54 }
 0xf07   : > { %12749 = vrot.lane.b32.xlu0 %v12748_v24, %s16856_s24  ;;  %12759 = vrot.lane.b32.xlu1 %v16132_v39, %s16853_s27  ;;  %v10177_v24 = vmul.f32 %v16095_v58, %v13331_v54  ;;  %v10324_v54 = vmul.f32 %v16115_v9, %v13358_v0 }
 0xf09   : > { %v12778_v7 = vpack.i.bf16 %v10178_v12, %v10177_v24  ;;  %v9924_v12 = vmul.f32 %v16190_v8, %v13283_v36  ;;  %v9921_v24 = vmul.f32 %v16180_v10, %v13283_v36  ;;  %v10315_v36 = vmul.f32 %v16090_v43, %v13358_v0 }
 0xf0b   : > { %12764 = vrot.lane.b32.xlu0 %v16206_v55, %s16853_s27  ;;  %12774 = vrot.lane.b32.xlu1 %v12773_v17, %s16857_s23  ;;  %v9783_v17 = vmul.f32 %v16190_v8, %v13262_v29  ;;  %v9925_v29 = vmul.f32 %v16115_v9, %v13289_v37  ;;  %v12788_v18 = vpack.i.bf16 %v9924_v12, %v9921_v24 }
 0xf0c   : > { %v10319_v12 = vmul.f32 %v16112_v19, %v13345_v61  ;;  %v10322_v24 = vmul.f32 %v16162_v63, %v13345_v61  ;;  %v10321_v19 = vmul.f32 %v16102_v57, %v13358_v0 }
 0xf0d   : > { %v12783_v5 = vpack.i.bf16 %v9783_v17, %v9780_v48  ;;  %v10316_v48 = vmul.f32 %v16099_v4, %v13345_v61  ;;  %v10317_v17 = vmul.f32 %v16122_v45, %v13349_v62  ;;  %v10179_v4 = vmul.f32 %v16180_v10, %v13310_v44 }
 0xf0e   : > { %v10318_v45 = vmul.f32 %v16095_v58, %v13358_v0  ;;  %v16874_v0 = vpack.i.bf16 %v16194_v25, %v16172_v15  ;;  %v16877_v15 = vpack.i.bf16 %v16235_v6, %v16226_v59 }
 0xf0f   : > { %12769 = vrot.lane.b32.xlu0 %v16241_v56, %s16853_s27  ;;  %12794 = vrot.lane.b32.xlu1 %v16284_v21, %s16853_s27  ;;  %v12823_v37 = vpack.i.bf16 %v10316_v48, %v10315_v36  ;;  %v12833_v43 = vpack.i.bf16 %v10317_v17, %v10314_v30 }
 0xf13   : > { %12779 = vrot.lane.b32.xlu0 %v12778_v7, %s16857_s23  ;;  %12799 = vrot.lane.b32.xlu1 %v12798_v42, %s16855_s30  ;;  %v12818_v7 = vpack.i.bf16 %v9926_v53, %v9925_v29  ;;  %v10182_v42 = vmul.f32 %v16190_v8, %v13310_v44  ;;  %v12828_v53 = vpack.i.bf16 %v10319_v12, %v10318_v45 }
 0xf14   : > { %v10184_v44 = vmul.f32 %v16269_v11, %v13321_v51  ;;  %v12838_v29 = vpack.i.bf16 %v10322_v24, %v10321_v19  ;;  %v10320_v51 = vmul.f32 %v16180_v10, %v13349_v62 }
 0xf16   : > { %v12858_v58 = vpack.i.bf16 %v10184_v44, %v10183_v26 }
 0xf17   : > { %12784 = vrot.lane.b32.xlu0 %v12783_v5, %s16855_s30  ;;  %12804 = vrot.lane.b32.xlu1 %v12803_v32, %s16857_s23  ;;  %v12808_v5 = vpack.i.bf16 %v10181_v38, %v10180_v35  ;;  %v12813_v32 = vpack.i.bf16 %v10182_v42, %v10179_v4  ;;  %s16738_s30 = scalar_lea.sflag [#allocation5], %s451_s25 }
 0xf1b   : > { %12789 = vrot.lane.b32.xlu0 %v12788_v18, %s16856_s24  ;;  %12819 = vrot.lane.b32.xlu1 %v12818_v7, %s16856_s24  ;;  %v10323_v18 = vmul.f32 %v16190_v8, %v13349_v62  ;;  %v10583_v62 = vmul.f32 %v16269_v11, %v13392_v23  ;;  %v497_v23 = vld [vmem:[%s16792_s10] sm:$0xff]  ;;  %s12971_s24 = sshll.u32 %s13047_s29, 4  ;;  %s12972_s24 = int_to_ptr.vmem [resolvable:$false] %s12971_s24 }
 0xf1d   : > { %v12843_v63 = vpack.i.bf16 %v10323_v18, %v10320_v51 }
 0xf1f   : > { %12809 = vrot.lane.b32.xlu0 %v12808_v5, %s16857_s23  ;;  %12824 = vrot.lane.b32.xlu1 %v12823_v37, %s16858_s16 }
 0xf23   : > { %12814 = vrot.lane.b32.xlu0 %v12813_v32, %s16857_s23  ;;  %12834 = vrot.lane.b32.xlu1 %v12833_v43, %s16858_s16 }
 0xf27   : > { %12829 = vrot.lane.b32.xlu0 %v12828_v53, %s16858_s16  ;;  %12849 = vrot.lane.b32.xlu1 %v16107_v50, %s16859_s21  ;;  %v10325_v50 = vmul.f32 %v16269_v11, %v13345_v61  ;;  %v16873_v61 = vpack.i.bf16 %v16184_v40, %v16168_v22  ;;  %v16876_v22 = vpack.i.bf16 %v16216_v14, %v16212_v49 }
 0xf29   : > { %v12873_v57 = vpack.i.bf16 %v10325_v50, %v10324_v54 }
 0xf2b   : > { %12839 = vrot.lane.b32.xlu0 %v12838_v29, %s16858_s16  ;;  %12859 = vrot.lane.b32.xlu1 %v12858_v58, %s16857_s23  ;;  %s12973_s23 = scalar_lea.vmem %s12972_s24, 1024 }
 0xf2f   : > { %12844 = vrot.lane.b32.xlu0 %v12843_v63, %s16858_s16  ;;  %12864 = vrot.lane.b32.xlu1 %v16132_v39, %s16859_s21  ;;  %v10582_v39 = vmul.f32 %v16115_v9, %v13406_v33  ;;  %v498_v33 = vld [vmem:[%s16793_s11] sm:$0xf] }
 0xf31   : > { %v12908_v10 = vpack.i.bf16 %v10583_v62, %v10582_v39 }
 0xf33   : > { %12854 = vrot.lane.b32.xlu0 %v16120_v34, %s16859_s21  ;;  %12874 = vrot.lane.b32.xlu1 %v12873_v57, %s16858_s16  ;;  %v16875_v34 = vpack.i.bf16 %v16202_v3, %v16198_v31 }
 0xf37   : > { %12869 = vrot.lane.b32.xlu0 %v16206_v55, %s16859_s21  ;;  %12879 = vrot.lane.b32.xlu1 %v16284_v21, %s16859_s21 }
 0xf3b   : > { %12884 = vrot.lane.b32.xlu0 %v16241_v56, %s16859_s21  ;;  %12889 = vrot.lane.b32.xlu1 %v16873_v61, %s16860_s1 }
 0xf3f   : > { %12894 = vrot.lane.b32.xlu0 %v16874_v0, %s16860_s1  ;;  %12899 = vrot.lane.b32.xlu1 %v16875_v34, %s16860_s1  ;;  %v11231_v34 = vld [vmem:[%s16791_s9 + $0x8] sm:$0xff] }
 0xf43   : > { %12904 = vrot.lane.b32.xlu0 %v16876_v22, %s16860_s1  ;;  %12909 = vrot.lane.b32.xlu1 %v12908_v10, %s16860_s1  ;;  %v16878_v22 = vpack.c.bf16 %v16188_v13, %v16176_v60  ;;  %v16880_v60 = vpack.c.bf16 %v16259_v46, %v16253_v1 }
 0xf47   : > { %12914 = vrot.lane.b32.xlu0 %v16877_v15, %s16860_s1  ;;  %3174 = vperm.xlu1 %11956, %v497_v23  }
 0xf4b   : > { %501 = vperm.xlu0 %11957, %v498_v33   ;;  %v16879_v33 = vpack.c.bf16 %v16249_v28, %v16245_v16 }
 0xf59   : > { %v12680_v9 = vpop.permute.xlu1 %12679 }
 0xf5a   : > { %v12682_v40 = vunpack.i.h.bf16 %v12680_v9  ;;  %v12681_v8 = vunpack.i.l.bf16 %v12680_v9 }
 0xf5c   : > { %v9611_v49 = vsel %vm619_vm9, %v12681_v8, %v12682_v40 }
 0xf5d   : > { %v12705_v25 = vpop.permute.xlu0 %12704  ;;  %v16425_v31 = vpop.permute.xlu1 %12684 }
 0xf5e   : > { %v12707_v3 = vunpack.i.h.bf16 %v12705_v25  ;;  %v12706_v55 = vunpack.i.l.bf16 %v12705_v25 }
 0xf60   : > { %v9613_v14 = vsel %vm619_vm9, %v12706_v55, %v12707_v3 }
 0xf61   : > { %v16429_v21 = vpop.permute.xlu0 %12719  ;;  %v12690_v59 = vpop.permute.xlu1 %12689  ;;  %v11507_v6 = vpack.c.bf16 %v9613_v14, %v9611_v49  ;;  %v16881_v49 = vpack.c.bf16 %v16267_v20, %v16263_v52  ;;  %v9568_v14 = vld [vmem:[%s16791_s9] sm:$0xff] }
 0xf62   : > { %v12692_v56 = vunpack.i.h.bf16 %v12690_v59  ;;  %v12691_v11 = vunpack.i.l.bf16 %v12690_v59 }
 0xf63   : > { %11508 = vmatprep.subr.bf16.mxu0 %v11507_v6 }
 0xf64   : > { %v9612_v7 = vsel %vm619_vm9, %v12692_v56, %v12706_v55  ;;  %v9610_v38 = vsel %vm619_vm9, %v12691_v11, %v12681_v8 }
 0xf65   : > { %v11509_v48 = vpack.c.bf16 %v9612_v7, %v9610_v38  ;;  %v12725_v35 = vpop.permute.xlu0 %12724  ;;  %v12695_v36 = vpop.permute.xlu1 %12694 }
 0xf66   : > { %v12727_v57 = vunpack.i.h.bf16 %v12725_v35  ;;  %v12726_v61 = vunpack.i.l.bf16 %v12725_v35  ;;  %v12697_v62 = vunpack.i.h.bf16 %v12695_v36  ;;  %v12696_v0 = vunpack.i.l.bf16 %v12695_v36 }
 0xf67   : > { %11510 = vmatpush1.bf16.msra.mxu0 %v11509_v48 }
 0xf68   : > { %v9824_v9 = vsel %vm862_vm12, %v12696_v0, %v12697_v62  ;;  %v9826_v40 = vsel %vm862_vm12, %v12726_v61, %v12727_v57  ;;  %v12687_v62 = vunpack.i.h.bf16 %v16425_v31 }
 0xf69   : > { %v16433_v5 = vpop.permute.xlu0 %12729  ;;  %v16435_v37 = vpop.permute.xlu1 %12699  ;;  %v11523_v16 = vpack.c.bf16 %v9826_v40, %v9824_v9 }
 0xf6a   : > { %v12732_v1 = vunpack.i.h.bf16 %v16433_v5  ;;  %v12731_v46 = vunpack.i.l.bf16 %v16433_v5  ;;  %v12702_v59 = vunpack.i.h.bf16 %v16435_v37  ;;  %v12701_v11 = vunpack.i.l.bf16 %v16435_v37 }
 0xf6d   : > { %v12735_v42 = vpop.permute.xlu0 %12734  ;;  %v12710_v17 = vpop.permute.xlu1 %12709 }
 0xf6e   : > { %v12737_v32 = vunpack.i.h.bf16 %v12735_v42  ;;  %v12736_v43 = vunpack.i.l.bf16 %v12735_v42  ;;  %v12712_v23 = vunpack.i.h.bf16 %v12710_v17  ;;  %v12711_v15 = vunpack.i.l.bf16 %v12710_v17 }
 0xf70   : > { %v9615_v58 = vsel %vm619_vm9, %v12736_v43, %v12737_v32  ;;  %v9825_v13 = vsel %vm862_vm12, %v12712_v23, %v12726_v61  ;;  %v9823_v3 = vsel %vm862_vm12, %v12711_v15, %v12696_v0  ;;  %v9965_v32 = vsel %vm1002_vm14, %v12701_v11, %v12702_v59  ;;  %v11234_v0 = vld [vmem:[%s16791_s9 + $0x10] sm:$0xff] }
 0xf71   : > { %v12740_v4 = vpop.permute.xlu0 %12739  ;;  %v16437_v30 = vpop.permute.xlu1 %12714  ;;  %v11525_v7 = vpack.c.bf16 %v9825_v13, %v9823_v3 }
 0xf72   : > { %v12741_v12 = vunpack.i.l.bf16 %v12740_v4  ;;  %v12742_v24 = vunpack.i.h.bf16 %v12740_v4  ;;  %v12717_v35 = vunpack.i.h.bf16 %v16437_v30  ;;  %v12716_v36 = vunpack.i.l.bf16 %v16437_v30 }
 0xf74   : > { %v9614_v26 = vsel %vm619_vm9, %v12741_v12, %v12736_v43  ;;  %v9967_v43 = vsel %vm1002_vm14, %v12731_v46, %v12732_v1  ;;  %v12722_v12 = vunpack.i.h.bf16 %v16429_v21 }
 0xf75   : > { %v16439_v45 = vpop.permute.xlu0 %12744  ;;  %v12755_v53 = vpop.permute.xlu1 %12754 }
 0xf76   : > { %v12757_v44 = vunpack.i.h.bf16 %v12755_v53  ;;  %v12756_v19 = vunpack.i.l.bf16 %v12755_v53  ;;  %v12747_v28 = vunpack.i.h.bf16 %v16439_v45  ;;  %v12746_v55 = vunpack.i.l.bf16 %v16439_v45 }
 0xf77   : > { %v12721_v45 = vunpack.i.l.bf16 %v16429_v21 }
 0xf78   : > { %v9616_v29 = vsel %vm619_vm9, %v12742_v24, %v12756_v19  ;;  %v9617_v18 = vsel %vm619_vm9, %v12756_v19, %v12757_v44  ;;  %v9828_v20 = vsel %vm862_vm12, %v12746_v55, %v12747_v28  ;;  %v9966_v19 = vsel %vm1002_vm14, %v12717_v35, %v12731_v46 }
 0xf79   : > { %v11513_v51 = vpack.c.bf16 %v9616_v29, %v9614_v26  ;;  %v16445_v63 = vpop.permute.xlu0 %12749  ;;  %v16447_v50 = vpop.permute.xlu1 %12759  ;;  %v11511_v54 = vpack.c.bf16 %v9617_v18, %v9615_v58  ;;  %v9964_v26 = vsel %vm1002_vm14, %v12716_v36, %v12701_v11 }
 0xf7a   : > { %v12752_v53 = vunpack.i.h.bf16 %v16445_v63  ;;  %v12751_v24 = vunpack.i.l.bf16 %v16445_v63  ;;  %v12686_v63 = vunpack.i.l.bf16 %v16425_v31  ;;  %v11533_v15 = vpack.c.bf16 %v9966_v19, %v9964_v26 }
 0xf7b   : > { %11512 = vmatprep.subr.bf16.mxu0 %v11511_v54 }
 0xf7c   : > { %11514 = vmatpush1.bf16.msra.mxu0 %v11513_v51  ;;  %v11531_v51 = vpack.c.bf16 %v9967_v43, %v9965_v32 }
 0xf7d   : > { %v16452_v39 = vpop.permute.xlu0 %12764  ;;  %v16454_v10 = vpop.permute.xlu1 %12774  ;;  %11516 = vmatprep.subr.bf16.mxu0 %v16878_v22  ;;  %v9969_v22 = vsel %vm1002_vm14, %v12751_v24, %v12752_v53 }
 0xf7e   : > { %v12767_v1 = vunpack.i.h.bf16 %v16452_v39  ;;  %v12766_v46 = vunpack.i.l.bf16 %v16452_v39  ;;  %v12777_v39 = vunpack.i.h.bf16 %v16454_v10  ;;  %v12776_v35 = vunpack.i.l.bf16 %v16454_v10 }
 0xf7f   : > { %11232 = vmatmul.mubr.msk.f32.vlgmr.msra.gmra.mrb[34].mxu0 %vm1385_vm13, %v11231_v34  ;;  %v12762_v34 = vunpack.i.h.bf16 %v16447_v50 }
 0xf80   : > { %11518 = vmatpush1.bf16.msra.mxu0 %v16879_v33  ;;  %9767 = vmatprep.mubr.f32.mxu0 %v16862_v41  ;;  %v12761_v33 = vunpack.i.l.bf16 %v16447_v50  ;;  %v10082_v50 = vsel %vm1127_vm15, %v12686_v63, %v12687_v62 }
 0xf81   : > { %v16466_v8 = vpop.permute.xlu0 %12769  ;;  %v16468_v25 = vpop.permute.xlu1 %12794  ;;  %11520 = vmatprep.subr.bf16.mxu0 %v16880_v60  ;;  %v10084_v60 = vsel %vm1127_vm15, %v12721_v45, %v12722_v12 }
 0xf82   : > { %v12796_v28 = vunpack.i.l.bf16 %v16468_v25 }
 0xf84   : > { %11522 = vmatpush1.bf16.msra.mxu0 %v16881_v49  ;;  %v11539_v49 = vpack.c.bf16 %v10084_v60, %v10082_v50 }
 0xf85   : > { %v16486_v6 = vpop.permute.xlu0 %12779  ;;  %v12800_v56 = vpop.permute.xlu1 %12799  ;;  %11524 = vmatprep.subr.bf16.mxu0 %v11523_v16  ;;  %v12797_v16 = vunpack.i.h.bf16 %v16468_v25  ;;  %v12772_v25 = vunpack.i.h.bf16 %v16466_v8 }
 0xf86   : > { %v12802_v38 = vunpack.i.h.bf16 %v12800_v56  ;;  %v12801_v52 = vunpack.i.l.bf16 %v12800_v56 }
 0xf87   : > { %11233 = vmatmul.mubr.msk.f32.vlgmr.msra.gmra.mrb[34].mxu0 %vm1385_vm13, %v9568_v14  ;;  %v10081_v14 = vsel %vm1127_vm15, %v12761_v33, %v12686_v63  ;;  %v10087_v32 = vsel %vm1127_vm15, %v12772_v25, %v12796_v28 }
 0xf88   : > { %11526 = vmatpush1.bf16.msra.mxu0 %v11525_v7  ;;  %v9830_v48 = vsel %vm862_vm12, %v12801_v52, %v12802_v38  ;;  %9906 = vmatprep.mubr.f32.mxu0 %v16862_v41  ;;  %v12771_v7 = vunpack.i.l.bf16 %v16466_v8  ;;  %v12782_v38 = vunpack.i.h.bf16 %v16486_v6 }
 0xf89   : > { %v12785_v5 = vpop.permute.xlu0 %12784  ;;  %v16495_v42 = vpop.permute.xlu1 %12804  ;;  %v11527_v37 = vpack.c.bf16 %v9830_v48, %v9828_v20  ;;  %v11236_v20 = vld [vmem:[%s16791_s9 + $0x18] sm:$0xff]  ;;  %v10088_v48 = vsel %vm1127_vm15, %v12796_v28, %v12797_v16 }
 0xf8a   : > { %v12787_v17 = vunpack.i.h.bf16 %v12785_v5  ;;  %v12786_v4 = vunpack.i.l.bf16 %v12785_v5  ;;  %v12807_v5 = vunpack.i.h.bf16 %v16495_v42  ;;  %v12806_v8 = vunpack.i.l.bf16 %v16495_v42 }
 0xf8b   : > { %11528 = vmatprep.subr.bf16.mxu0 %v11527_v37 }
 0xf8c   : > { %v9827_v30 = vsel %vm862_vm12, %v12786_v4, %v12746_v55  ;;  %v9829_v44 = vsel %vm862_vm12, %v12787_v17, %v12801_v52  ;;  %v10083_v55 = vsel %vm1127_vm15, %v12762_v34, %v12721_v45  ;;  %v12781_v52 = vunpack.i.l.bf16 %v16486_v6 }
 0xf8d   : > { %v11529_v29 = vpack.c.bf16 %v9829_v44, %v9827_v30  ;;  %v12790_v58 = vpop.permute.xlu0 %12789  ;;  %v12820_v18 = vpop.permute.xlu1 %12819  ;;  %v11541_v36 = vpack.c.bf16 %v10083_v55, %v10081_v14  ;;  %v10086_v6 = vsel %vm1127_vm15, %v12766_v46, %v12767_v1  ;;  %v10085_v4 = vsel %vm1127_vm15, %v12771_v7, %v12766_v46 }
 0xf8e   : > { %v12792_v54 = vunpack.i.h.bf16 %v12790_v58  ;;  %v12791_v57 = vunpack.i.l.bf16 %v12790_v58  ;;  %v12822_v21 = vunpack.i.h.bf16 %v12820_v18  ;;  %v12821_v61 = vunpack.i.l.bf16 %v12820_v18 }
 0xf8f   : > { %11530 = vmatpush1.bf16.msra.mxu0 %v11529_v29  ;;  %v11543_v43 = vpack.c.bf16 %v10088_v48, %v10086_v6  ;;  %v10225_v10 = vsel %vm1267_vm0, %v12781_v52, %v12782_v38  ;;  %v10223_v45 = vsel %vm1267_vm0, %v12776_v35, %v12777_v39  ;;  %v11545_v53 = vpack.c.bf16 %v10087_v32, %v10085_v4  ;;  %v11240_v38 = vld [vmem:[%s16791_s9 + $0x28] sm:$0xff] }
 0xf90   : > { %11532 = vmatprep.subr.bf16.mxu0 %v11531_v51  ;;  %v9971_v23 = vsel %vm1002_vm14, %v12821_v61, %v12822_v21  ;;  %v9968_v13 = vsel %vm1002_vm14, %v12791_v57, %v12751_v24  ;;  %v9970_v3 = vsel %vm1002_vm14, %v12792_v54, %v12821_v61  ;;  %v10224_v24 = vsel %vm1267_vm0, %v12807_v5, %v12781_v52  ;;  %v11238_v21 = vld [vmem:[%s16791_s9 + $0x20] sm:$0xff] }
 0xf91   : > { %v16516_v9 = vpop.permute.xlu0 %12809  ;;  %v16518_v40 = vpop.permute.xlu1 %12824  ;;  %v11535_v31 = vpack.c.bf16 %v9971_v23, %v9969_v22  ;;  %v11537_v59 = vpack.c.bf16 %v9970_v3, %v9968_v13  ;;  %v10222_v30 = vsel %vm1267_vm0, %v12806_v8, %v12776_v35  ;;  %v11547_v26 = vpack.c.bf16 %v10225_v10, %v10223_v45 }
 0xf92   : > { %11235 = vmatmul.mubr.msk.f32.vlgmr.msra.gmra.mrb[34].mxu0 %vm1385_vm13, %v11234_v0  ;;  %v12812_v12 = vunpack.i.h.bf16 %v16516_v9  ;;  %v12811_v42 = vunpack.i.l.bf16 %v16516_v9  ;;  %v12827_v54 = vunpack.i.h.bf16 %v16518_v40  ;;  %v12826_v57 = vunpack.i.l.bf16 %v16518_v40 }
 0xf93   : > { %11534 = vmatpush1.bf16.msra.mxu0 %v11533_v15  ;;  %10047 = vmatprep.mubr.f32.mxu0 %v16862_v41  ;;  %v11549_v34 = vpack.c.bf16 %v10224_v24, %v10222_v30 }
 0xf94   : > { %11536 = vmatprep.subr.bf16.mxu0 %v11535_v31  ;;  %v10227_v63 = vsel %vm1267_vm0, %v12811_v42, %v12812_v12  ;;  %v10364_v16 = vsel %vm1407_vm2, %v12826_v57, %v12827_v54 }
 0xf95   : > { %v12815_v56 = vpop.permute.xlu0 %12814  ;;  %v16532_v11 = vpop.permute.xlu1 %12834 }
 0xf96   : > { %v12817_v61 = vunpack.i.h.bf16 %v12815_v56  ;;  %v12816_v62 = vunpack.i.l.bf16 %v12815_v56  ;;  %v12837_v40 = vunpack.i.h.bf16 %v16532_v11  ;;  %v12836_v31 = vunpack.i.l.bf16 %v16532_v11 }
 0xf97   : > { %11538 = vmatpush1.bf16.msra.mxu0 %v11537_v59 }
 0xf98   : > { %11540 = vmatprep.subr.bf16.mxu0 %v11539_v49  ;;  %v10226_v60 = vsel %vm1267_vm0, %v12816_v62, %v12811_v42  ;;  %v10363_v11 = vsel %vm1407_vm2, %v12836_v31, %v12826_v57 }
 0xf99   : > { %v12830_v37 = vpop.permute.xlu0 %12829  ;;  %v16546_v17 = vpop.permute.xlu1 %12849 }
 0xf9a   : > { %11237 = vmatmul.mubr.msk.f32.vlgmr.msra.gmra.mrb[34].mxu0 %vm1385_vm13, %v11236_v20  ;;  %v12832_v29 = vunpack.i.h.bf16 %v12830_v37  ;;  %v12831_v58 = vunpack.i.l.bf16 %v12830_v37  ;;  %v12852_v25 = vunpack.i.h.bf16 %v16546_v17  ;;  %v12851_v52 = vunpack.i.l.bf16 %v16546_v17 }
 0xf9b   : > { %11542 = vmatpush1.bf16.msra.mxu0 %v11541_v36  ;;  %10164 = vmatprep.mubr.f32.mxu0 %v16862_v41 }
 0xf9c   : > { %11544 = vmatprep.subr.bf16.mxu0 %v11543_v43  ;;  %v10366_v9 = vsel %vm1407_vm2, %v12831_v58, %v12832_v29  ;;  %v10365_v28 = vsel %vm1407_vm2, %v12837_v40, %v12831_v58  ;;  %v10481_v45 = vsel %vm1532_vm3, %v12851_v52, %v12852_v25 }
 0xf9d   : > { %v16559_v44 = vpop.permute.xlu0 %12839  ;;  %v12860_v19 = vpop.permute.xlu1 %12859  ;;  %v11555_v14 = vpack.c.bf16 %v10366_v9, %v10364_v16  ;;  %v11557_v35 = vpack.c.bf16 %v10365_v28, %v10363_v11 }
 0xf9e   : > { %v12862_v18 = vunpack.i.h.bf16 %v12860_v19  ;;  %v12861_v51 = vunpack.i.l.bf16 %v12860_v19  ;;  %v12842_v13 = vunpack.i.h.bf16 %v16559_v44  ;;  %v12841_v3 = vunpack.i.l.bf16 %v16559_v44 }
 0xf9f   : > { %11546 = vmatpush1.bf16.msra.mxu0 %v11545_v53 }
 0xfa0   : > { %11548 = vmatprep.subr.bf16.mxu0 %v11547_v26  ;;  %v10229_v0 = vsel %vm1267_vm0, %v12861_v51, %v12862_v18  ;;  %v10228_v33 = vsel %vm1267_vm0, %v12817_v61, %v12861_v51  ;;  %v10368_v48 = vsel %vm1407_vm2, %v12841_v3, %v12842_v13  ;;  %v11242_v51 = vld [vmem:[%s16791_s9 + $0x30] sm:$0xff] }
 0xfa1   : > { %v12845_v22 = vpop.permute.xlu0 %12844  ;;  %v16568_v23 = vpop.permute.xlu1 %12864  ;;  %v11551_v15 = vpack.c.bf16 %v10229_v0, %v10227_v63  ;;  %v11553_v50 = vpack.c.bf16 %v10228_v33, %v10226_v60 }
 0xfa2   : > { %11239 = vmatmul.mubr.msk.f32.vlgmr.msra.gmra.mrb[34].mxu0 %vm1385_vm13, %v11238_v21  ;;  %v12847_v7 = vunpack.i.h.bf16 %v12845_v22  ;;  %v12846_v20 = vunpack.i.l.bf16 %v12845_v22  ;;  %v12867_v17 = vunpack.i.h.bf16 %v16568_v23  ;;  %v12866_v42 = vunpack.i.l.bf16 %v16568_v23 }
 0xfa3   : > { %11550 = vmatpush1.bf16.msra.mxu0 %v11549_v34  ;;  %10305 = vmatprep.mubr.f32.mxu0 %v16862_v41 }
 0xfa4   : > { %11552 = vmatprep.subr.bf16.mxu0 %v11551_v15  ;;  %v10367_v12 = vsel %vm1407_vm2, %v12846_v20, %v12841_v3  ;;  %v10480_v54 = vsel %vm1532_vm3, %v12866_v42, %v12851_v52  ;;  %v12962_v20 = vld [vmem:[%s16784_s2] sm:$0x3] }
 0xfa5   : > { %v12855_v55 = vpop.permute.xlu0 %12854  ;;  %v12875_v49 = vpop.permute.xlu1 %12874 }
 0xfa6   : > { %v12857_v1 = vunpack.i.h.bf16 %v12855_v55  ;;  %v12856_v46 = vunpack.i.l.bf16 %v12855_v55  ;;  %v12877_v59 = vunpack.i.h.bf16 %v12875_v49  ;;  %v12876_v56 = vunpack.i.l.bf16 %v12875_v49 }
 0xfa7   : > { %11554 = vmatpush1.bf16.msra.mxu0 %v11553_v50 }
 0xfa8   : > { %11556 = vmatprep.subr.bf16.mxu0 %v11555_v14  ;;  %v10370_v39 = vsel %vm1407_vm2, %v12876_v56, %v12877_v59  ;;  %v10369_v36 = vsel %vm1407_vm2, %v12847_v7, %v12876_v56  ;;  %v10483_v6 = vsel %vm1532_vm3, %v12856_v46, %v12857_v1  ;;  %v10482_v53 = vsel %vm1532_vm3, %v12867_v17, %v12856_v46  ;;  %v11244_v46 = vld [vmem:[%s16791_s9 + $0x38] sm:$0xff] }
 0xfa9   : > { %v12870_v5 = vpop.permute.xlu0 %12869  ;;  %v12880_v8 = vpop.permute.xlu1 %12879  ;;  %v11559_v37 = vpack.c.bf16 %v10370_v39, %v10368_v48  ;;  %v11561_v24 = vpack.c.bf16 %v10369_v36, %v10367_v12  ;;  %v11563_v19 = vpack.c.bf16 %v10483_v6, %v10481_v45  ;;  %v11565_v61 = vpack.c.bf16 %v10482_v53, %v10480_v54  ;;  %v16884_v12 = vld [vmem:[#allocation16_spill] sm:$0xff]  ;;  %v16885_v45 = vld [vmem:[#allocation17_spill] sm:$0xff] }
 0xfaa   : > { %v12872_v4 = vunpack.i.h.bf16 %v12870_v5  ;;  %v12871_v32 = vunpack.i.l.bf16 %v12870_v5  ;;  %v12882_v43 = vunpack.i.h.bf16 %v12880_v8  ;;  %v12881_v10 = vunpack.i.l.bf16 %v12880_v8  ;;  %11241 = vmatmul.mubr.msk.f32.vlgmr.msra.gmra.mrb[34].mxu0 %vm1385_vm13, %v11240_v38  ;;  %v11246_v5 = vld [vmem:[%s16791_s9 + $0x40] sm:$0xff]  ;;  %v16882_v8 = vld [vmem:[#allocation12_spill] sm:$0xff] }
 0xfab   : > { %11558 = vmatpush1.bf16.msra.mxu0 %v11557_v35  ;;  %10446 = vmatprep.mubr.f32.mxu0 %v16862_v41  ;;  %v480_v48 = vsub.f32 1.0, %v12962_v20 }
 0xfac   : > { %11560 = vmatprep.subr.bf16.mxu0 %v11559_v37  ;;  %v10485_v58 = vsel %vm1532_vm3, %v12871_v32, %v12872_v4  ;;  %v10487_v18 = vsel %vm1532_vm3, %v12881_v10, %v12882_v43  ;;  %v16883_v37 = vld [vmem:[#allocation13_spill] sm:$0xff] }
 0xfad   : > { %v12885_v30 = vpop.permute.xlu0 %12884  ;;  %v12890_v44 = vpop.permute.xlu1 %12889  ;;  %v11567_v22 = vpack.c.bf16 %v10487_v18, %v10485_v58  ;;  %v553_v6 = vrot.slane %v480_v48, %v16883_v37  ;;  %v481_v4 = vld [vmem:[%s16785_s3] sm:$0x3]  ;;  %v16886_v18 = vld [vmem:[#allocation20_spill] sm:$0xff] }
 0xfae   : > { %v12887_v26 = vunpack.i.h.bf16 %v12885_v30  ;;  %v12886_v29 = vunpack.i.l.bf16 %v12885_v30  ;;  %v12892_v57 = vunpack.i.h.bf16 %v12890_v44  ;;  %v12891_v21 = vunpack.i.l.bf16 %v12890_v44  ;;  %v12963_v44 = vld [vmem:[%s13205_s17] sm:$0xff] }
 0xfaf   : > { %11562 = vmatpush1.bf16.msra.mxu0 %v11561_v24  ;;  %v16636_v43 = vrot.slane %v481_v4, %v16882_v8 }
 0xfb0   : > { %11564 = vmatprep.subr.bf16.mxu0 %v11563_v19  ;;  %v10484_v62 = vsel %vm1532_vm3, %v12886_v29, %v12871_v32  ;;  %v10486_v63 = vsel %vm1532_vm3, %v12887_v26, %v12881_v10  ;;  %v10622_v40 = vsel %vm1671_vm7, %v12891_v21, %v12892_v57  ;;  %v16639_v10 = vrot.slane %v481_v4, %v16883_v37  ;;  %v12964_v26 = vld [vmem:[%s13205_s17 + $0x8] sm:$0xff] }
 0xfb1   : > { %v12895_v0 = vpop.permute.xlu0 %12894  ;;  %v12900_v34 = vpop.permute.xlu1 %12899  ;;  %v11569_v60 = vpack.c.bf16 %v10486_v63, %v10484_v62 }
 0xfb2   : > { %v12897_v23 = vunpack.i.h.bf16 %v12895_v0  ;;  %v12896_v15 = vunpack.i.l.bf16 %v12895_v0  ;;  %v12902_v33 = vunpack.i.h.bf16 %v12900_v34  ;;  %v12901_v9 = vunpack.i.l.bf16 %v12900_v34  ;;  %11243 = vmatmul.mubr.msk.f32.vlgmr.msra.gmra.mrb[34].mxu0 %vm1385_vm13, %v11242_v51 }
 0xfb3   : > { %11566 = vmatpush1.bf16.msra.mxu0 %v11565_v61  ;;  %10563 = vmatprep.mubr.f32.mxu0 %v16862_v41 }
 0xfb4   : > { %11568 = vmatprep.subr.bf16.mxu0 %v11567_v22  ;;  %v10624_v31 = vsel %vm1671_vm7, %v12896_v15, %v12897_v23  ;;  %v10623_v13 = vsel %vm1671_vm7, %v12902_v33, %v12896_v15  ;;  %v10621_v3 = vsel %vm1671_vm7, %v12901_v9, %v12891_v21  ;;  %v12965_v21 = vld [vmem:[%s13205_s17 + $0x10] sm:$0xff] }
 0xfb5   : > { %v12905_v16 = vpop.permute.xlu0 %12904  ;;  %v12910_v28 = vpop.permute.xlu1 %12909  ;;  %v11571_v50 = vpack.c.bf16 %v10624_v31, %v10622_v40  ;;  %v11573_v11 = vpack.c.bf16 %v10623_v13, %v10621_v3 }
 0xfb6   : > { %v12907_v55 = vunpack.i.h.bf16 %v12905_v16  ;;  %v12906_v49 = vunpack.i.l.bf16 %v12905_v16  ;;  %v12912_v14 = vunpack.i.h.bf16 %v12910_v28  ;;  %v12911_v1 = vunpack.i.l.bf16 %v12910_v28 }
 0xfb7   : > { %11570 = vmatpush1.bf16.msra.mxu0 %v11569_v60 }
 0xfb8   : > { %11572 = vmatprep.subr.bf16.mxu0 %v11571_v50  ;;  %v10626_v59 = vsel %vm1671_vm7, %v12906_v49, %v12907_v55  ;;  %v10628_v56 = vsel %vm1671_vm7, %v12911_v1, %v12912_v14 }
 0xfb9   : > { %v12915_v25 = vpop.permute.xlu0 %12914  ;;  %v11575_v7 = vpack.c.bf16 %v10628_v56, %v10626_v59 }
 0xfba   : > { %v12917_v38 = vunpack.i.h.bf16 %v12915_v25  ;;  %v12916_v52 = vunpack.i.l.bf16 %v12915_v25  ;;  %11245 = vmatmul.mubr.msk.f32.vlgmr.msra.gmra.mrb[34].mxu0 %vm1385_vm13, %v11244_v46 }
 0xfbb   : > { %11574 = vmatpush1.bf16.msra.mxu0 %v11573_v11  ;;  %10704 = vmatprep.mubr.f32.mxu0 %v16862_v41  ;;  %v549_v41 = vrot.slane %v480_v48, %v16882_v8 }
 0xfbc   : > { %v10625_v39 = vsel %vm1671_vm7, %v12916_v52, %v12906_v49  ;;  %v10627_v35 = vsel %vm1671_vm7, %v12917_v38, %v12911_v1  ;;  %11576 = vmatprep.subr.bf16.mxu0 %v11575_v7 }
 0xfbd   : > { %v11577_v36 = vpack.c.bf16 %v10627_v35, %v10625_v39  ;;  %v16633_v32 = vcombine.low %v549_v41, %v553_v6 }
 0xfbf   : > { %11578 = vmatpush1.bf16.msra.mxu0 %v11577_v36  ;;  %v556_v19 = vmul.f32 %v12963_v44, %v16633_v32  ;;  %v3222_v29 = vmul.f32 %v12964_v26, %v16633_v32  ;;  %v5734_v61 = vmul.f32 %v12965_v21, %v16633_v32 }
 0xfc2   : > { %11247 = vmatmul.mubr.msk.f32.vlgmr.msra.gmra.mrb[34].mxu0 %vm1385_vm13, %v11246_v5 }
 0xfc6   : > { %v16641_v17 = vpop.permute.xlu1 %3174 }
 0xfc7   : > { %v3177_v42 = vadd.f32 %v16641_v17, %v16884_v12  ;;  %v3178_v53 = vadd.f32 %v16641_v17, %v16885_v45  ;;  %v5689_v24 = vadd.f32 %v15230_v27, %v16641_v17  ;;  %v5690_v30 = vadd.f32 %v15232_v2, %v16641_v17 }
 0xfc8   : > { %v8201_v58 = vadd.f32 %v16040_v47, %v16641_v17  ;;  %v8202_v51 = vadd.f32 %v16886_v18, %v16641_v17 }
 0xfc9   : > { %v3183_v54 = vmul.f32 %v3177_v42, %v16636_v43  ;;  %v3184_v57 = vmul.f32 %v3178_v53, %v16639_v10  ;;  %v5695_v27 = vmul.f32 %v5689_v24, %v16636_v43  ;;  %v5696_v2 = vmul.f32 %v5690_v30, %v16639_v10 }
 0xfca   : > { %v8207_v62 = vmul.f32 %v8201_v58, %v16636_v43  ;;  %v8208_v63 = vmul.f32 %v8202_v51, %v16639_v10  ;;  %12918 = vtanh.f32 %v3177_v42  ;;  %v502_v33 = vpop.permute.xlu0 %501 }
 0xfcb   : > { %12920 = vtanh.f32 %v3178_v53  ;;  %v3202_v47 = vcombine.high %v3183_v54, %v3184_v57  ;;  %v5713_v0 = vcombine.high %v5695_v27, %v5696_v2  ;;  %v16668_v9 = vmul.f32 %v16636_v43, %v502_v33  ;;  %v16888_v54 = vld [vmem:[#allocation15_spill] sm:$0xff]  ;;  %v16889_v2 = vld [vmem:[#allocation18_spill] sm:$0xff] }
 0xfcc   : > { %12922 = vtanh.f32 %v5689_v24  ;;  %v8225_v34 = vcombine.high %v8207_v62, %v8208_v63  ;;  %v16671_v31 = vmul.f32 %v16639_v10, %v502_v33 }
 0xfcd   : > { %v3204_v22 = vadd.f32 %v3202_v47, %v556_v19  ;;  %12924 = vtanh.f32 %v5690_v30  ;;  %v5715_v23 = vadd.f32 %v5713_v0, %v3222_v29  ;;  %v16887_v29 = vld [vmem:[#allocation14_spill] sm:$0xff] }
 0xfce   : > { %12926 = vtanh.f32 %v8201_v58  ;;  %v8227_v15 = vadd.f32 %v8225_v34, %v5734_v61 }
 0xfcf   : > { %12928 = vtanh.f32 %v8202_v51 }
 0xfd4   : > { %v12919_v40 = vpop.eup %12918 }
 0xfd5   : > { %v12921_v60 = vpop.eup %12920  ;;  %v3181_v13 = vmul.f32 %v12919_v40, %v16668_v9 }
 0xfd6   : > { %v12923_v3 = vpop.eup %12922  ;;  %v3182_v16 = vmul.f32 %v12921_v60, %v16671_v31 }
 0xfd7   : > { %v12925_v28 = vpop.eup %12924  ;;  %v3186_v50 = vsel %vm3185_vm1, %v3181_v13, 0.0  ;;  %v3205_v55 = vmul.f32 1.442695, %v3181_v13  ;;  %v5693_v49 = vmul.f32 %v12923_v3, %v16668_v9 }
 0xfd8   : > { %v12927_v14 = vpop.eup %12926  ;;  %v3187_v1 = vsel %vm3185_vm1, %v3182_v16, 0.0  ;;  %v3207_v46 = vmul.f32 1.442695, %v3182_v16  ;;  %v5694_v59 = vmul.f32 %v12925_v28, %v16671_v31 }
 0xfd9   : > { %v12929_v56 = vpop.eup %12928  ;;  %v3188_v11 = vadd.f32 %v3187_v1, %v3186_v50  ;;  %12930 = vpow2.f32 %v3205_v55  ;;  %v5697_v25 = vsel %vm3185_vm1, %v5693_v49, 0.0  ;;  %v5716_v7 = vmul.f32 1.442695, %v5693_v49 }
 0xfda   : > { %12932 = vpow2.f32 %v3207_v46  ;;  %v5698_v38 = vsel %vm3185_vm1, %v5694_v59, 0.0  ;;  %v5718_v52 = vmul.f32 1.442695, %v5694_v59  ;;  %v8205_v20 = vmul.f32 %v12927_v14, %v16668_v9 }
 0xfdb   : > { %3189 = vadd.xlane.f32.xlu1 %v3188_v11  ;;  %v5699_v48 = vadd.f32 %v5698_v38, %v5697_v25  ;;  %12934 = vpow2.f32 %v5716_v7  ;;  %v8206_v39 = vmul.f32 %v12929_v56, %v16671_v31 }
 0xfdc   : > { %12936 = vpow2.f32 %v5718_v52  ;;  %v8209_v35 = vsel %vm3185_vm1, %v8205_v20, 0.0  ;;  %v8228_v36 = vmul.f32 1.442695, %v8205_v20 }
 0xfdd   : > { %5700 = vadd.xlane.f32.xlu0 %v5699_v48  ;;  %v8210_v5 = vsel %vm3185_vm1, %v8206_v39, 0.0  ;;  %v8230_v8 = vmul.f32 1.442695, %v8206_v39 }
 0xfde   : > { %v8211_v41 = vadd.f32 %v8210_v5, %v8209_v35  ;;  %12938 = vpow2.f32 %v8228_v36 }
 0xfdf   : > { %12940 = vpow2.f32 %v8230_v8 }
 0xfe1   : > { %8212 = vadd.xlane.f32.xlu0 %v8211_v41 }
 0xfe3   : > { %v12931_v37 = vpop.eup %12930 }
 0xfe4   : > { %v12933_v6 = vpop.eup %12932 }
 0xfe5   : > { %v12935_v4 = vpop.eup %12934  ;;  %v3211_v12 = vcombine.low %v12931_v37, %v12933_v6 }
 0xfe6   : > { %v12937_v42 = vpop.eup %12936 }
 0xfe7   : > { %v3213_v45 = vmul.f32 %v3211_v12, %v3204_v22  ;;  %v5722_v53 = vcombine.low %v12935_v4, %v12937_v42 }
 0xfe8   : > { %v12939_v24 = vpop.eup %12938 }
 0xfe9   : > { %v12941_v30 = vpop.eup %12940  ;;  %v5724_v44 = vmul.f32 %v5722_v53, %v5715_v23  ;;  %v3214_v19 = vmul.f32 %v3213_v45, %v16633_v32  ;;  %v16890_v53 = vld [vmem:[#allocation19_spill] sm:$0xff] }
 0xfea   : > { %v8234_v26 = vcombine.low %v12939_v24, %v12941_v30 }
 0xfeb   : > { %v3215_v58 = vadd.f32 %v3214_v19, %v16887_v29  ;;  %v5725_v18 = vmul.f32 %v5724_v44, %v16633_v32 }
 0xfec   : > { %v8236_v51 = vmul.f32 %v8234_v26, %v8227_v15 }
 0xfed   : > { %3216 = vst [vmem:[%s16691_s8] sm:$0xff] %v3215_v58  ;;  %v5726_v57 = vadd.f32 %v5725_v18, %v16888_v54 }
 0xfee   : > { %v8237_v27 = vmul.f32 %v8236_v51, %v16633_v32 }
 0xfef   : > { %11063 = vst [vmem:[%s16691_s8 + $0x8] sm:$0xff] %v5726_v57 }
 0xff0   : > { %v8238_v21 = vadd.f32 %v8237_v27, %v16889_v2 }
 0xff2   : > { %11156 = vst [vmem:[%s16691_s8 + $0x10] sm:$0xff] %v8238_v21 }
0x1068   : > { %v3190_v61 = vpop.xlane.xlu1 %3189 }
0x1069   : > { %v3191_v62 = vsel %vm3185_vm1, %v3190_v61, 0.0 }
0x106a   : > { %v3192_v63 = vrot.slane %v3191_v62, 4  ;;  %v5701_v47 = vpop.xlane.xlu0 %5700 }
0x106b   : > { %v5702_v0 = vsel %vm3185_vm1, %v5701_v47, 0.0 }
0x106c   : > { %v3193_v34 = vadd.f32 %v3192_v63, %v3191_v62  ;;  %v5703_v22 = vrot.slane %v5702_v0, 4 }
0x106e   : > { %v3194_v23 = vrot.slane %v3193_v34, 2  ;;  %v5704_v15 = vadd.f32 %v5703_v22, %v5702_v0  ;;  %v8213_v33 = vpop.xlane.xlu0 %8212 }
0x106f   : > { %v8214_v40 = vsel %vm3185_vm1, %v8213_v33, 0.0 }
0x1070   : > { %v3195_v60 = vadd.f32 %v3194_v23, %v3193_v34  ;;  %v5705_v13 = vrot.slane %v5704_v15, 2  ;;  %v8215_v3 = vrot.slane %v8214_v40, 4 }
0x1072   : > { %v3196_v16 = vrot.slane %v3195_v60, 1  ;;  %v5706_v28 = vadd.f32 %v5705_v13, %v5704_v15  ;;  %v8216_v50 = vadd.f32 %v8215_v3, %v8214_v40 }
0x1074   : > { %v3197_v55 = vadd.f32 %v3196_v16, %v3195_v60  ;;  %v5707_v49 = vrot.slane %v5706_v28, 1  ;;  %v8217_v14 = vrot.slane %v8216_v50, 2 }
0x1076   : > { %3199 = vst.msk [vmem:[%s16706_s6] sm:$0x1] %vm3198_vm4, %v3197_v55  ;;  %v5708_v1 = vadd.f32 %v5707_v49, %v5706_v28  ;;  %v8218_v46 = vadd.f32 %v8217_v14, %v8216_v50 }
0x1078   : > { %11062 = vst.msk [vmem:[%s16706_s6 + $0x1] sm:$0x1] %vm3198_vm4, %v5708_v1  ;;  %v8219_v59 = vrot.slane %v8218_v46, 1 }
0x107a   : > { %v8220_v56 = vadd.f32 %v8219_v59, %v8218_v46 }
0x107c   : > { %11155 = vst.msk [vmem:[%s16706_s6 + $0x2] sm:$0x1] %vm3198_vm4, %v8220_v56 }
0x1095   : > { %v10706_v11 = vpop.f32.mrb[34].mxu0 }
0x1096   : > { %v10713_v25 = vadd.f32 %v10706_v11, %v16641_v17  ;;  %v10708_v7 = vpop.f32.mrb[35].mxu0 }
0x1097   : > { %v10714_v38 = vadd.f32 %v10708_v7, %v16641_v17 }
0x1098   : > { %12942 = vtanh.f32 %v10713_v25  ;;  %v10719_v52 = vmul.f32 %v10713_v25, %v16636_v43 }
0x1099   : > { %12944 = vtanh.f32 %v10714_v38  ;;  %v10720_v20 = vmul.f32 %v10714_v38, %v16639_v10  ;;  %v12966_v10 = vld [vmem:[%s13205_s17 + $0x18] sm:$0xff]  ;;  %s10772_s17 = sshll.u32 %s16691_s8, 4  ;;  %s16734_s17 = int_to_ptr.vmem [resolvable:$true] %s10772_s17 }
0x109a   : > { %v8246_v6 = vmul.f32 %v12966_v10, %v16633_v32  ;;  %s12967_s1 = scalar_lea.vmem %s16734_s17, 512  ;;  %p12974_p0 = scmp.lt.s32.totalorder %s16734_s17, %s12972_s24 }
0x109b   : > { %v10737_v48 = vcombine.high %v10719_v52, %v10720_v20  ;;  %p12968_p11 = scmp.ne.s32.totalorder %s16734_s17, %s12967_s1  ;;  %p12975_p1 = scmp.lt.s32.totalorder %s12973_s23, %s12967_s1 }
0x109d   : > { %v10739_v4 = vadd.f32 %v10737_v48, %v8246_v6  ;;  %p12969_p12 = pnand %p12968_p11, %p13158_p5  ;;  %p12976_p2 = por %p12975_p1, %p12974_p0 }
0x109f   : > { %p12970_p13 = pneg %p12969_p12 }
0x10a1   : > { %p12977_p3 = pnand %p12976_p2, %p12970_p13 }
0x10a2   : > { %v12943_v39 = vpop.eup %12942 }
0x10a3   : > { %v12945_v35 = vpop.eup %12944  ;;  %v10717_v36 = vmul.f32 %v12943_v39, %v16668_v9 }
0x10a4   : > { %v10718_v5 = vmul.f32 %v12945_v35, %v16671_v31 }
0x10a5   : > { %v10721_v8 = vsel %vm3185_vm1, %v10717_v36, 0.0  ;;  %v10740_v41 = vmul.f32 1.442695, %v10717_v36 }
0x10a6   : > { %v10722_v17 = vsel %vm3185_vm1, %v10718_v5, 0.0  ;;  %v10742_v37 = vmul.f32 1.442695, %v10718_v5 }
0x10a7   : > { %v10723_v43 = vadd.f32 %v10722_v17, %v10721_v8  ;;  %12946 = vpow2.f32 %v10740_v41 }
0x10a8   : > { %12948 = vpow2.f32 %v10742_v37 }
0x10a9   : > { %10724 = vadd.xlane.f32.xlu1 %v10723_v43 }
0x10b1   : > { %v12947_v9 = vpop.eup %12946 }
0x10b2   : > { %v12949_v31 = vpop.eup %12948 }
0x10b3   : > { %v10746_v12 = vcombine.low %v12947_v9, %v12949_v31 }
0x10b5   : > { %v10748_v42 = vmul.f32 %v10746_v12, %v10739_v4 }
0x10b7   : > { %v10749_v45 = vmul.f32 %v10748_v42, %v16633_v32 }
0x10b9   : > { %v10750_v24 = vadd.f32 %v10749_v45, %v16890_v53 }
0x10bb   : > { %11249 = vst [vmem:[%s16691_s8 + $0x18] sm:$0xff] %v10750_v24 }
0x10bc   : > { %12980 = shalt.err (!%p12977_p3)
}
0x10bd   : > { %s12981_s16 = scalar_lea.hbm %s16731_s22, 512  ;;  %s12985_s25 = scalar_lea.hbm %s16794_s12, 1024 }
0x10be   : > { %p12982_p4 = scmp.ne.s32.totalorder %s16731_s22, %s12981_s16  ;;  %p12986_p9 = scmp.lt.u32.totalorder %s16731_s22, %s16794_s12 }
0x10bf   : > { %p12987_p10 = scmp.lt.u32.totalorder %s12985_s25, %s12981_s16  ;;  %p12989_p12 = scmp.lt.u32.totalorder %s12981_s16, %s16731_s22 }
0x10c0   : > { %p12983_p7 = pnand %p12982_p4, %p13158_p5 }
0x10c1   : > { %p12988_p11 = por %p12987_p10, %p12986_p9 }
0x10c2   : > { %p12984_p8 = pneg %p12983_p7 }
0x10c3   : > { %p12990_p13 = por %p12989_p12, %p12988_p11 }
0x10c5   : > { %p12991_p0 = pnand %p12990_p13, %p12984_p8 }
0x10c7   : > { %12994 = shalt.err (!%p12991_p0)
}
0x10c8   : > { %s13048_s14 = smov 128   ;;  %s13049_s4 = smov 8  }
0x10c9   : > { %11899 = dma.vmem_to_hbm [thread:$0]  (%p13158_p5), %s16734_s17, 512, %s16731_s22, %s16738_s30, %s13048_s14, %s13048_s14, %s13049_s4  }
0x1136   : > { %v10725_v32 = vpop.xlane.xlu1 %10724 }
0x1137   : > { %v10726_v30 = vsel %vm3185_vm1, %v10725_v32, 0.0 }
0x1138   : > { %v10727_v44 = vrot.slane %v10726_v30, 4 }
0x113a   : > { %v10728_v19 = vadd.f32 %v10727_v44, %v10726_v30 }
0x113c   : > { %v10729_v26 = vrot.slane %v10728_v19, 2 }
0x113e   : > { %v10730_v29 = vadd.f32 %v10729_v26, %v10728_v19 }
0x1140   : > { %v10731_v58 = vrot.slane %v10730_v29, 1 }
0x1142   : > { %v10732_v18 = vadd.f32 %v10731_v58, %v10730_v29 }
0x1144   : > { %11248 = vst.msk [vmem:[%s16706_s6 + $0x3] sm:$0x1] %vm3198_vm4, %v10732_v18 }
0x1145 PF: > { %s16891_s20 = sld [smem:[#allocation7_spill]]  ;;  %p11905_p1 = scmp.ge.s32.totalorder %s13029_s28, 2 }
0x1147   : > { %p11902_p2 = pnand %p11905_p1, %p13162_p6 }
0x114b   : > { %s10791_s27 = sand.u32 1, %s16891_s20  }
0x114c   : > { %s10792_s18 = scalar_lea.sflag [#allocation5], %s10791_s27 }
0x114d   : > { %13012 = dma.done.wait (!%p11902_p2), %s10792_s18, 512  }
0x114e   : > { %13014 = vsyncadd (!%p11902_p2), %s10792_s18, 4294966784  ;;  %s16893_s28 = sld [smem:[#allocation9_spill]]  ;;  %s16894_s22 = sld [smem:[#allocation8_spill]] }
0x114f   : > { %s16895_s27 = sld [smem:[#allocation10_spill]]  ;;  %s16896_s25 = smov %s13021_s26 }
0x1154   : > { %p24_p5 = scmp.ge.s32.totalorder %s16893_s28, 4   ;;  %s16897_s26 = smov %s16894_s22 }
0x1156   :  { %26 = sbr.rel (!%p24_p5) target bundleno = 9 (0x9), region = 148 }
0x115d   :  { %10804 = vsyncpa [#allocation5], 1 }
0x115e   :  { %10806 = vsyncpa [#allocation5 + $0x1], 1 }

</bundles_post_ra>
